<compile_context>
chip_gen: v7x
topology: tpu7x:2x2x1
jax: 0.10.0
libtpu: 0.0.40
codegen_flags: <defaults>
</compile_context>

<pallas_src>
import functools

import jax
import jax.numpy as jnp
import numpy as np
from jax.experimental import pallas as pl
from jax.experimental.pallas import tpu as pltpu


def _fold_bn(gamma, beta, mean, var, eps=1e-5):
    scale = gamma / jnp.sqrt(var + eps)
    bias = beta - mean * scale
    return (scale.reshape(1, -1).astype(jnp.float32),
            bias.reshape(1, -1).astype(jnp.float32))


def _fused_block_kernel(xmain_ref, xprev_ref, xnext_ref,   # input planes of this depth tile
                        w_dw_ref,                          # (27, C)   BN1-scaled depthwise taps
                        b1_ref,                            # (1, C)    folded BN1 bias
                        w_pw_ref,                          # (C, Cout) BN2-scaled pointwise weight (mxu dtype)
                        b2_ref,                            # (1, Cout) folded BN2 bias
                        o_ref,                             # (1, TD, Ho, Wo, Cout)
                        xpad_ref,                          # VMEM (TDS+2, H+2, W+2, C) f32 halo scratch
                        y1_ref,                            # VMEM (TD, Ho, Wo, C) mxu-dtype staging
                        *, stride, td, in_depth):
    _, tds, H, W, C = xmain_ref.shape
    _, _, Ho, Wo, Cout = o_ref.shape
    f32 = jnp.float32

    t = pl.program_id(1)
    d_start = t * tds              # first center input plane of this tile
    d_prev = d_start - 1
    d_next = d_start + tds

    # Zero the whole halo scratch once per batch index (first depth tile).
    # This fills the 1-voxel H/W border ring (never written afterwards) and the
    # depth = -1 padding plane; interiors are fully overwritten every step.
    @pl.when(t == 0)
    def _():
        xpad_ref[...] = jnp.zeros_like(xpad_ref)

    # ---- stage this tile's input planes into the scratch interior ----------
    @pl.when(d_prev >= 0)
    def _():
        xpad_ref[0, pl.ds(1, H), pl.ds(1, W), :] = xprev_ref[0, 0].astype(f32)

    for j in range(tds):
        xpad_ref[1 + j, pl.ds(1, H), pl.ds(1, W), :] = xmain_ref[0, j].astype(f32)

    @pl.when(d_next < in_depth)
    def _():
        xpad_ref[tds + 1, pl.ds(1, H), pl.ds(1, W), :] = xnext_ref[0, 0].astype(f32)

    @pl.when(jnp.logical_and(d_next >= in_depth, t > 0))
    def _():
        # the previous depth tile left real data in the top halo plane;
        # restore the zero 'same' padding for the last tile.
        xpad_ref[tds + 1, pl.ds(1, H), pl.ds(1, W), :] = jnp.zeros((H, W, C), f32)

    # ---- depthwise 3x3x3 (taps pre-scaled by BN1) + bias + ReLU (VPU) -------
    # One output plane at a time (bounded vreg pressure), staged to y1_ref in
    # the MXU dtype.  Three partial accumulators (one per kd) break the 27-op
    # serial dependency chain.
    # TODO(synk): the offset-1 interior copies / kw-shifted reads cross the
    #             8-sublane boundary; a pltpu.roll-based W halo would move that
    #             work to the idle XLU (mainly a v5e win).
    b1 = b1_ref[0, :]
    for dd in range(td):
        parts = []
        for kd in range(3):
            p = dd * stride + kd      # scratch plane holding input depth d_start + dd*stride + (kd-1)
            acc = None
            for kh in range(3):
                for kw in range(3):
                    tap = w_dw_ref[kd * 9 + kh * 3 + kw, :]
                    if stride == 1:
                        win = xpad_ref[p, pl.ds(kh, Ho), pl.ds(kw, Wo), :]
                    else:
                        # strided reads: compute only at strided output positions
                        win = xpad_ref[p, pl.ds(kh, Ho, stride), pl.ds(kw, Wo, stride), :]
                    term = win * tap
                    acc = term if acc is None else acc + term
            parts.append(acc)
        pre = (parts[0] + parts[1]) + parts[2] + b1
        y1_ref[dd] = jnp.maximum(pre, 0.0).astype(y1_ref.dtype)

    # ---- pointwise 1x1x1 conv: ONE MXU matmul over TD*Ho*Wo rows ------------
    y2 = jnp.dot(y1_ref[...].reshape(td * Ho * Wo, C), w_pw_ref[...],
                 preferred_element_type=f32)
    y2 = jnp.maximum(y2 + b2_ref[0, :], 0.0)
    o_ref[0] = y2.reshape(td, Ho, Wo, Cout).astype(o_ref.dtype)


def _vmem_budget_bytes():
    """Generation-aware VMEM budget (~48 MiB on v7x, up to 96 MiB on v5e/v6e)."""
    cap = 64 * 2**20
    try:
        cap = int(getattr(pltpu.get_tpu_info(), "vmem_capacity_bytes", cap))
    except Exception:
        pass
    return min(cap * 3 // 4, 96 * 2**20)


def _step_vmem_bytes(td, stride, H, W, C, Cout, mxu_itemsize):
    Ho = (H - 1) // stride + 1
    Wo = (W - 1) // stride + 1
    tds = td * stride
    in_bytes = 2 * (tds + 2) * H * W * C * 4                 # double-buffered input blocks
    out_bytes = 2 * td * Ho * Wo * Cout * 4                  # double-buffered output block
    wt_bytes = 2 * (27 * C * 4 + C * 4 + C * Cout * mxu_itemsize + Cout * 4)
    scratch = (tds + 2) * (H + 2) * (W + 2) * C * 4 + td * Ho * Wo * C * mxu_itemsize
    return in_bytes + out_bytes + wt_bytes + scratch


def _select_depth_tile(Do, stride, H, W, C, Cout, mxu_itemsize, td_target, budget):
    """Largest TD <= td_target that divides Do and fits the VMEM budget."""
    best = 1
    for td in range(1, max(1, min(td_target, Do)) + 1):
        if Do % td != 0:
            continue
        if _step_vmem_bytes(td, stride, H, W, C, Cout, mxu_itemsize) <= budget:
            best = td
    return best


def block_forward_ndhwc(x, params, stride=1, mxu_dtype=jnp.bfloat16, td_target=8):
    """Fused Block forward on channels-last (NDHWC) activations.

    mxu_dtype: operand dtype of the pointwise matmul (bf16 default -> bf16-native
    MXU on v6e/v7x with f32 accumulation; pass float32 for bit-tight checks).
    """
    x = x.astype(jnp.float32)
    N, D, H, W, C = x.shape
    Cout = params["pw_w"].shape[1]
    Do = (D - 1) // stride + 1
    Ho = (H - 1) // stride + 1
    Wo = (W - 1) // stride + 1

    mxu_itemsize = jnp.dtype(mxu_dtype).itemsize
    budget = _vmem_budget_bytes()
    td = _select_depth_tile(Do, stride, H, W, C, Cout, mxu_itemsize, td_target, budget)
    tds = td * stride
    n_tiles = Do // td
    d_pad = n_tiles * tds                         # >= D (== D for stride=1)
    if d_pad > D:
        x = jnp.pad(x, ((0, 0), (0, d_pad - D), (0, 0), (0, 0), (0, 0)))

    # Fold BN scales into the conv weights; only the biases stay in-kernel.
    s1, b1 = _fold_bn(params["bn1_gamma"], params["bn1_beta"],
                      params["bn1_mean"], params["bn1_var"])
    s2, b2 = _fold_bn(params["bn2_gamma"], params["bn2_beta"],
                      params["bn2_mean"], params["bn2_var"])
    w_dw = params["dw_w"].reshape(27, C).astype(jnp.float32) * s1       # (27, C)
    w_pw = (params["pw_w"].astype(jnp.float32) * s2).astype(mxu_dtype)  # (C, Cout)

    kernel = functools.partial(_fused_block_kernel, stride=stride, td=td,
                               in_depth=d_pad)

    main_map = lambda n, t: (n, t, 0, 0, 0)                              # block of tds planes
    prev_map = lambda n, t: (n, jnp.maximum(t * tds - 1, 0), 0, 0, 0)    # clamped halo plane
    next_map = lambda n, t: (n, jnp.minimum(t * tds + tds, d_pad - 1), 0, 0, 0)
    wt_map = lambda n, t: (0, 0)

    in_specs = [
        pl.BlockSpec((1, tds, H, W, C), main_map),
        pl.BlockSpec((1, 1, H, W, C), prev_map),
        pl.BlockSpec((1, 1, H, W, C), next_map),
        pl.BlockSpec((27, C), wt_map),
        pl.BlockSpec((1, C), wt_map),
        pl.BlockSpec((C, Cout), wt_map),
        pl.BlockSpec((1, Cout), wt_map),
    ]
    out_specs = pl.BlockSpec((1, td, Ho, Wo, Cout), lambda n, t: (n, t, 0, 0, 0))

    step_bytes = _step_vmem_bytes(td, stride, H, W, C, Cout, mxu_itemsize)
    vmem_limit = int(min(budget, max(16 * 2**20, step_bytes + (2 << 20))))

    flops = 2 * N * Do * Ho * Wo * (27 * C + C * Cout)
    bytes_accessed = (4 * (N * n_tiles * (tds + 2) * H * W * C
                           + N * Do * Ho * Wo * Cout + 27 * C + C + Cout)
                      + mxu_itemsize * C * Cout)

    # TODO(synk): a bf16 output dtype would halve write traffic for production nets.
    return pl.pallas_call(
        kernel,
        out_shape=jax.ShapeDtypeStruct((N, Do, Ho, Wo, Cout), jnp.float32),
        grid=(N, n_tiles),
        in_specs=in_specs,
        out_specs=out_specs,
        scratch_shapes=[
            pltpu.VMEM((tds + 2, H + 2, W + 2, C), jnp.float32),
            pltpu.VMEM((td, Ho, Wo, C), mxu_dtype),
        ],
        compiler_params=pltpu.CompilerParams(
            dimension_semantics=("parallel", "arbitrary"),
            vmem_limit_bytes=vmem_limit),
        cost_estimate=pl.CostEstimate(flops=flops, transcendentals=0,
                                      bytes_accessed=bytes_accessed),
    )(x, x, x, w_dw, b1, w_pw, b2)


def block_forward(x_ncdhw, params, stride=1, mxu_dtype=jnp.bfloat16, td_target=8):
    """JAX/Pallas equivalent of Block.forward (eval-mode BN). Input/output NCDHW."""
    # TODO(synk): for multi-Block networks keep activations persistently in NDHWC
    #             (use block_forward_ndhwc directly) to avoid these HBM transposes.
    x = jnp.transpose(x_ncdhw, (0, 2, 3, 4, 1))
    out = block_forward_ndhwc(x, params, stride=stride, mxu_dtype=mxu_dtype,
                              td_target=td_target)
    return jnp.transpose(out, (0, 4, 1, 2, 3))


def block_forward_ref(x, params, stride=1, eps=1e-5):
    """Pure-JAX reference (mirrors the PyTorch forward, eval-mode BN). NCDHW."""
    N, C, D, H, W = x.shape

    def bn(y, g, b, m, v):
        shp = (1, -1, 1, 1, 1)
        return ((y - m.reshape(shp)) / jnp.sqrt(v.reshape(shp) + eps)
                * g.reshape(shp) + b.reshape(shp))

    w_dw = jnp.transpose(params["dw_w"], (3, 0, 1, 2))[:, None]          # (C,1,3,3,3)
    out = jax.lax.conv_general_dilated(
        x, w_dw, window_strides=(stride,) * 3, padding=[(1, 1)] * 3,
        dimension_numbers=("NCDHW", "OIDHW", "NCDHW"), feature_group_count=C)
    out = jax.nn.relu(bn(out, params["bn1_gamma"], params["bn1_beta"],
                         params["bn1_mean"], params["bn1_var"]))

    w_pw = jnp.transpose(params["pw_w"], (1, 0))[:, :, None, None, None]  # (Cout,Cin,1,1,1)
    out = jax.lax.conv_general_dilated(
        out, w_pw, window_strides=(1, 1, 1), padding=[(0, 0)] * 3,
        dimension_numbers=("NCDHW", "OIDHW", "NCDHW"))
    out = jax.nn.relu(bn(out, params["bn2_gamma"], params["bn2_beta"],
                         params["bn2_mean"], params["bn2_var"]))
    return out


if __name__ == "__main__":
    # lane-dense configuration: C is a multiple of 128 so the channel (lane)
    # axis is fully occupied in both the depthwise and pointwise stages.
    N, Cin, Cout, D, H, W = 2, 128, 128, 8, 8, 8
    stride = 1

    ks = jax.random.split(jax.random.PRNGKey(0), 12)
    x = jax.random.normal(ks[0], (N, Cin, D, H, W), dtype=jnp.float32)
    params = {
        "dw_w": 0.2 * jax.random.normal(ks[1], (3, 3, 3, Cin), dtype=jnp.float32),
        "pw_w": 0.2 * jax.random.normal(ks[2], (Cin, Cout), dtype=jnp.float32),
        "bn1_gamma": jax.random.uniform(ks[3], (Cin,), minval=0.5, maxval=1.5),
        "bn1_beta": 0.1 * jax.random.normal(ks[4], (Cin,)),
        "bn1_mean": 0.1 * jax.random.normal(ks[5], (Cin,)),
        "bn1_var": jax.random.uniform(ks[6], (Cin,), minval=0.5, maxval=1.5),
        "bn2_gamma": jax.random.uniform(ks[7], (Cout,), minval=0.5, maxval=1.5),
        "bn2_beta": 0.1 * jax.random.normal(ks[8], (Cout,)),
        "bn2_mean": 0.1 * jax.random.normal(ks[9], (Cout,)),
        "bn2_var": jax.random.uniform(ks[10], (Cout,), minval=0.5, maxval=1.5),
    }

    ref = jax.block_until_ready(block_forward_ref(x, params, stride=stride))

    # td_target=4 -> two depth tiles per batch index, exercising the cross-tile
    # halo path and giving the pointwise matmul M = 4*8*8 = 256 rows.

    # 1) f32 MXU path: bit-tight check against the pure-JAX reference.
    out_f32 = jax.block_until_ready(
        block_forward(x, params, stride=stride, mxu_dtype=jnp.float32, td_target=4))
    assert out_f32.shape == (N, Cout, D, H, W), out_f32.shape
    np.testing.assert_allclose(np.asarray(out_f32), np.asarray(ref),
                               rtol=5e-4, atol=5e-4)

    # 2) default bf16 MXU path (f32 accumulation): looser tolerance.
    out_bf16 = jax.block_until_ready(
        block_forward(x, params, stride=stride, td_target=4))
    assert out_bf16.shape == (N, Cout, D, H, W), out_bf16.shape
    np.testing.assert_allclose(np.asarray(out_bf16), np.asarray(ref),
                               rtol=5e-2, atol=3.5e-1)

    print("KERNEL_OK")
</pallas_src>

<mosaic_0001>
module attributes {stable_mosaic.version = 11 : i64} {
  func.func @_fused_block_kernel(%arg0: i32, %arg1: i32, %arg2: memref<1x4x8x8x128xf32, #tpu.memory_space<vmem>>, %arg3: memref<1x1x8x8x128xf32, #tpu.memory_space<vmem>>, %arg4: memref<1x1x8x8x128xf32, #tpu.memory_space<vmem>>, %arg5: memref<27x128xf32, #tpu.memory_space<vmem>>, %arg6: memref<1x128xf32, #tpu.memory_space<vmem>>, %arg7: memref<128x128xf32, #tpu.memory_space<vmem>>, %arg8: memref<1x128xf32, #tpu.memory_space<vmem>>, %arg9: memref<1x4x8x8x128xf32, #tpu.memory_space<vmem>>, %arg10: memref<6x10x10x128xf32, #tpu.memory_space<vmem>>, %arg11: memref<4x8x8x128xf32, #tpu.memory_space<vmem>>) attributes {dimension_semantics = [#tpu.dimension_semantics<parallel>, #tpu.dimension_semantics<arbitrary>], iteration_bounds = array<i64: 2, 2>, scalar_prefetch = 0 : i64, scratch_operands = 2 : i64, tpu.core_type = #tpu.core_type<tc>, window_params = [{transform_indices = @transform_0, window_bounds = array<i64: 1, 4, 8, 8, 128>}, {transform_indices = @transform_1, window_bounds = array<i64: 1, 1, 8, 8, 128>}, {transform_indices = @transform_2, window_bounds = array<i64: 1, 1, 8, 8, 128>}, {pipeline_mode = #tpu.pipeline_mode<synchronous>, transform_indices = @transform_3, window_bounds = array<i64: 27, 128>}, {pipeline_mode = #tpu.pipeline_mode<synchronous>, transform_indices = @transform_4, window_bounds = array<i64: 1, 128>}, {pipeline_mode = #tpu.pipeline_mode<synchronous>, transform_indices = @transform_5, window_bounds = array<i64: 128, 128>}, {pipeline_mode = #tpu.pipeline_mode<synchronous>, transform_indices = @transform_6, window_bounds = array<i64: 1, 128>}, {transform_indices = @transform_7, window_bounds = array<i64: 1, 4, 8, 8, 128>}]} {
    %c4_i32 = arith.constant 4 : i32
    %0 = arith.muli %arg1, %c4_i32 : i32
    %c1_i32 = arith.constant 1 : i32
    %1 = arith.subi %0, %c1_i32 : i32
    %c4_i32_0 = arith.constant 4 : i32
    %2 = arith.addi %0, %c4_i32_0 : i32
    %c0_i32 = arith.constant 0 : i32
    %3 = arith.cmpi eq, %arg1, %c0_i32 : i32
    %4 = arith.extui %3 : i1 to i32
    %c0_i32_1 = arith.constant 0 : i32
    %5 = arith.cmpi ne, %4, %c0_i32_1 : i32
    scf.if %5 {
      %cst_701 = arith.constant 0.000000e+00 : f32
      %946 = vector.broadcast %cst_701 : f32 to vector<6x10x10x128xf32>
      %c0_702 = arith.constant 0 : index
      %c0_703 = arith.constant 0 : index
      %c0_704 = arith.constant 0 : index
      %c0_705 = arith.constant 0 : index
      %947 = vector.load %arg10[%c0_702, %c0_703, %c0_704, %c0_705] : memref<6x10x10x128xf32, #tpu.memory_space<vmem>>, vector<6x10x10x128xf32>
      tpu.vector_store %arg10[%c0_702, %c0_703, %c0_704, %c0_705], %946 {strides = array<i32>} : memref<6x10x10x128xf32, #tpu.memory_space<vmem>>, vector<6x10x10x128xf32>,
    } else {
    }
    %c0_i32_2 = arith.constant 0 : i32
    %6 = arith.cmpi sge, %1, %c0_i32_2 : i32
    %7 = arith.extui %6 : i1 to i32
    %c0_i32_3 = arith.constant 0 : i32
    %8 = arith.cmpi ne, %7, %c0_i32_3 : i32
    scf.if %8 {
      %c0_701 = arith.constant 0 : index
      %c0_702 = arith.constant 0 : index
      %c0_703 = arith.constant 0 : index
      %c0_704 = arith.constant 0 : index
      %c0_705 = arith.constant 0 : index
      %946 = vector.load %arg3[%c0_701, %c0_702, %c0_703, %c0_704, %c0_705] : memref<1x1x8x8x128xf32, #tpu.memory_space<vmem>>, vector<1x1x8x8x128xf32>
      %947 = vector.shape_cast %946 : vector<1x1x8x8x128xf32> to vector<8x8x128xf32>
      %c0_706 = arith.constant 0 : index
      %c1_707 = arith.constant 1 : index
      %c1_708 = arith.constant 1 : index
      %c0_709 = arith.constant 0 : index
      %948 = vector.load %arg10[%c0_706, %c1_707, %c1_708, %c0_709] : memref<6x10x10x128xf32, #tpu.memory_space<vmem>>, vector<1x8x8x128xf32>
      %949 = vector.shape_cast %948 : vector<1x8x8x128xf32> to vector<8x8x128xf32>
      %950 = vector.shape_cast %947 : vector<8x8x128xf32> to vector<1x8x8x128xf32>
      tpu.vector_store %arg10[%c0_706, %c1_707, %c1_708, %c0_709], %950 {strides = array<i32>} : memref<6x10x10x128xf32, #tpu.memory_space<vmem>>, vector<1x8x8x128xf32>,
    } else {
    }
    %c0 = arith.constant 0 : index
    %c0_4 = arith.constant 0 : index
    %c0_5 = arith.constant 0 : index
    %c0_6 = arith.constant 0 : index
    %c0_7 = arith.constant 0 : index
    %9 = vector.load %arg2[%c0, %c0_4, %c0_5, %c0_6, %c0_7] : memref<1x4x8x8x128xf32, #tpu.memory_space<vmem>>, vector<1x1x8x8x128xf32>
    %10 = vector.shape_cast %9 : vector<1x1x8x8x128xf32> to vector<8x8x128xf32>
    %c1 = arith.constant 1 : index
    %c1_8 = arith.constant 1 : index
    %c1_9 = arith.constant 1 : index
    %c0_10 = arith.constant 0 : index
    %11 = vector.load %arg10[%c1, %c1_8, %c1_9, %c0_10] : memref<6x10x10x128xf32, #tpu.memory_space<vmem>>, vector<1x8x8x128xf32>
    %12 = vector.shape_cast %11 : vector<1x8x8x128xf32> to vector<8x8x128xf32>
    %13 = vector.shape_cast %10 : vector<8x8x128xf32> to vector<1x8x8x128xf32>
    tpu.vector_store %arg10[%c1, %c1_8, %c1_9, %c0_10], %13 {strides = array<i32>} : memref<6x10x10x128xf32, #tpu.memory_space<vmem>>, vector<1x8x8x128xf32>,
    %c0_11 = arith.constant 0 : index
    %c1_12 = arith.constant 1 : index
    %c0_13 = arith.constant 0 : index
    %c0_14 = arith.constant 0 : index
    %c0_15 = arith.constant 0 : index
    %14 = vector.load %arg2[%c0_11, %c1_12, %c0_13, %c0_14, %c0_15] : memref<1x4x8x8x128xf32, #tpu.memory_space<vmem>>, vector<1x1x8x8x128xf32>
    %15 = vector.shape_cast %14 : vector<1x1x8x8x128xf32> to vector<8x8x128xf32>
    %c2 = arith.constant 2 : index
    %c1_16 = arith.constant 1 : index
    %c1_17 = arith.constant 1 : index
    %c0_18 = arith.constant 0 : index
    %16 = vector.load %arg10[%c2, %c1_16, %c1_17, %c0_18] : memref<6x10x10x128xf32, #tpu.memory_space<vmem>>, vector<1x8x8x128xf32>
    %17 = vector.shape_cast %16 : vector<1x8x8x128xf32> to vector<8x8x128xf32>
    %18 = vector.shape_cast %15 : vector<8x8x128xf32> to vector<1x8x8x128xf32>
    tpu.vector_store %arg10[%c2, %c1_16, %c1_17, %c0_18], %18 {strides = array<i32>} : memref<6x10x10x128xf32, #tpu.memory_space<vmem>>, vector<1x8x8x128xf32>,
    %c0_19 = arith.constant 0 : index
    %c2_20 = arith.constant 2 : index
    %c0_21 = arith.constant 0 : index
    %c0_22 = arith.constant 0 : index
    %c0_23 = arith.constant 0 : index
    %19 = vector.load %arg2[%c0_19, %c2_20, %c0_21, %c0_22, %c0_23] : memref<1x4x8x8x128xf32, #tpu.memory_space<vmem>>, vector<1x1x8x8x128xf32>
    %20 = vector.shape_cast %19 : vector<1x1x8x8x128xf32> to vector<8x8x128xf32>
    %c3 = arith.constant 3 : index
    %c1_24 = arith.constant 1 : index
    %c1_25 = arith.constant 1 : index
    %c0_26 = arith.constant 0 : index
    %21 = vector.load %arg10[%c3, %c1_24, %c1_25, %c0_26] : memref<6x10x10x128xf32, #tpu.memory_space<vmem>>, vector<1x8x8x128xf32>
    %22 = vector.shape_cast %21 : vector<1x8x8x128xf32> to vector<8x8x128xf32>
    %23 = vector.shape_cast %20 : vector<8x8x128xf32> to vector<1x8x8x128xf32>
    tpu.vector_store %arg10[%c3, %c1_24, %c1_25, %c0_26], %23 {strides = array<i32>} : memref<6x10x10x128xf32, #tpu.memory_space<vmem>>, vector<1x8x8x128xf32>,
    %c0_27 = arith.constant 0 : index
    %c3_28 = arith.constant 3 : index
    %c0_29 = arith.constant 0 : index
    %c0_30 = arith.constant 0 : index
    %c0_31 = arith.constant 0 : index
    %24 = vector.load %arg2[%c0_27, %c3_28, %c0_29, %c0_30, %c0_31] : memref<1x4x8x8x128xf32, #tpu.memory_space<vmem>>, vector<1x1x8x8x128xf32>
    %25 = vector.shape_cast %24 : vector<1x1x8x8x128xf32> to vector<8x8x128xf32>
    %c4 = arith.constant 4 : index
    %c1_32 = arith.constant 1 : index
    %c1_33 = arith.constant 1 : index
    %c0_34 = arith.constant 0 : index
    %26 = vector.load %arg10[%c4, %c1_32, %c1_33, %c0_34] : memref<6x10x10x128xf32, #tpu.memory_space<vmem>>, vector<1x8x8x128xf32>
    %27 = vector.shape_cast %26 : vector<1x8x8x128xf32> to vector<8x8x128xf32>
    %28 = vector.shape_cast %25 : vector<8x8x128xf32> to vector<1x8x8x128xf32>
    tpu.vector_store %arg10[%c4, %c1_32, %c1_33, %c0_34], %28 {strides = array<i32>} : memref<6x10x10x128xf32, #tpu.memory_space<vmem>>, vector<1x8x8x128xf32>,
    %c8_i32 = arith.constant 8 : i32
    %29 = arith.cmpi slt, %2, %c8_i32 : i32
    %30 = arith.extui %29 : i1 to i32
    %c0_i32_35 = arith.constant 0 : i32
    %31 = arith.cmpi ne, %30, %c0_i32_35 : i32
    scf.if %31 {
      %c0_701 = arith.constant 0 : index
      %c0_702 = arith.constant 0 : index
      %c0_703 = arith.constant 0 : index
      %c0_704 = arith.constant 0 : index
      %c0_705 = arith.constant 0 : index
      %946 = vector.load %arg4[%c0_701, %c0_702, %c0_703, %c0_704, %c0_705] : memref<1x1x8x8x128xf32, #tpu.memory_space<vmem>>, vector<1x1x8x8x128xf32>
      %947 = vector.shape_cast %946 : vector<1x1x8x8x128xf32> to vector<8x8x128xf32>
      %c5_706 = arith.constant 5 : index
      %c1_707 = arith.constant 1 : index
      %c1_708 = arith.constant 1 : index
      %c0_709 = arith.constant 0 : index
      %948 = vector.load %arg10[%c5_706, %c1_707, %c1_708, %c0_709] : memref<6x10x10x128xf32, #tpu.memory_space<vmem>>, vector<1x8x8x128xf32>
      %949 = vector.shape_cast %948 : vector<1x8x8x128xf32> to vector<8x8x128xf32>
      %950 = vector.shape_cast %947 : vector<8x8x128xf32> to vector<1x8x8x128xf32>
      tpu.vector_store %arg10[%c5_706, %c1_707, %c1_708, %c0_709], %950 {strides = array<i32>} : memref<6x10x10x128xf32, #tpu.memory_space<vmem>>, vector<1x8x8x128xf32>,
    } else {
    }
    %c8_i32_36 = arith.constant 8 : i32
    %32 = arith.cmpi sge, %2, %c8_i32_36 : i32
    %c0_i32_37 = arith.constant 0 : i32
    %33 = arith.cmpi sgt, %arg1, %c0_i32_37 : i32
    %34 = arith.andi %32, %33 : i1
    %35 = arith.extui %34 : i1 to i32
    %c0_i32_38 = arith.constant 0 : i32
    %36 = arith.cmpi ne, %35, %c0_i32_38 : i32
    scf.if %36 {
      %cst_701 = arith.constant 0.000000e+00 : f32
      %946 = vector.broadcast %cst_701 : f32 to vector<8x8x128xf32>
      %c5_702 = arith.constant 5 : index
      %c1_703 = arith.constant 1 : index
      %c1_704 = arith.constant 1 : index
      %c0_705 = arith.constant 0 : index
      %947 = vector.load %arg10[%c5_702, %c1_703, %c1_704, %c0_705] : memref<6x10x10x128xf32, #tpu.memory_space<vmem>>, vector<1x8x8x128xf32>
      %948 = vector.shape_cast %947 : vector<1x8x8x128xf32> to vector<8x8x128xf32>
      %949 = vector.shape_cast %946 : vector<8x8x128xf32> to vector<1x8x8x128xf32>
      tpu.vector_store %arg10[%c5_702, %c1_703, %c1_704, %c0_705], %949 {strides = array<i32>} : memref<6x10x10x128xf32, #tpu.memory_space<vmem>>, vector<1x8x8x128xf32>,
    } else {
    }
    %c0_39 = arith.constant 0 : index
    %c0_40 = arith.constant 0 : index
    %37 = vector.load %arg6[%c0_39, %c0_40] : memref<1x128xf32, #tpu.memory_space<vmem>>, vector<1x128xf32>
    %38 = vector.shape_cast %37 : vector<1x128xf32> to vector<128xf32>
    %c0_41 = arith.constant 0 : index
    %c0_42 = arith.constant 0 : index
    %39 = vector.load %arg5[%c0_41, %c0_42] : memref<27x128xf32, #tpu.memory_space<vmem>>, vector<1x128xf32>
    %40 = vector.shape_cast %39 : vector<1x128xf32> to vector<128xf32>
    %c0_43 = arith.constant 0 : index
    %c0_44 = arith.constant 0 : index
    %c0_45 = arith.constant 0 : index
    %c0_46 = arith.constant 0 : index
    %41 = vector.load %arg10[%c0_43, %c0_44, %c0_45, %c0_46] : memref<6x10x10x128xf32, #tpu.memory_space<vmem>>, vector<1x8x8x128xf32>
    %42 = vector.shape_cast %41 : vector<1x8x8x128xf32> to vector<8x8x128xf32>
    %43 = vector.shape_cast %40 : vector<128xf32> to vector<1x1x128xf32>
    %44 = vector.broadcast %43 : vector<1x1x128xf32> to vector<8x8x128xf32>
    %45 = arith.mulf %42, %44 : vector<8x8x128xf32>
    %c1_47 = arith.constant 1 : index
    %c0_48 = arith.constant 0 : index
    %46 = vector.load %arg5[%c1_47, %c0_48] : memref<27x128xf32, #tpu.memory_space<vmem>>, vector<1x128xf32>
    %47 = vector.shape_cast %46 : vector<1x128xf32> to vector<128xf32>
    %c0_49 = arith.constant 0 : index
    %c0_50 = arith.constant 0 : index
    %c1_51 = arith.constant 1 : index
    %c0_52 = arith.constant 0 : index
    %48 = vector.load %arg10[%c0_49, %c0_50, %c1_51, %c0_52] : memref<6x10x10x128xf32, #tpu.memory_space<vmem>>, vector<1x8x8x128xf32>
    %49 = vector.shape_cast %48 : vector<1x8x8x128xf32> to vector<8x8x128xf32>
    %50 = vector.shape_cast %47 : vector<128xf32> to vector<1x1x128xf32>
    %51 = vector.broadcast %50 : vector<1x1x128xf32> to vector<8x8x128xf32>
    %52 = arith.mulf %49, %51 : vector<8x8x128xf32>
    %53 = arith.addf %45, %52 : vector<8x8x128xf32>
    %c2_53 = arith.constant 2 : index
    %c0_54 = arith.constant 0 : index
    %54 = vector.load %arg5[%c2_53, %c0_54] : memref<27x128xf32, #tpu.memory_space<vmem>>, vector<1x128xf32>
    %55 = vector.shape_cast %54 : vector<1x128xf32> to vector<128xf32>
    %c0_55 = arith.constant 0 : index
    %c0_56 = arith.constant 0 : index
    %c2_57 = arith.constant 2 : index
    %c0_58 = arith.constant 0 : index
    %56 = vector.load %arg10[%c0_55, %c0_56, %c2_57, %c0_58] : memref<6x10x10x128xf32, #tpu.memory_space<vmem>>, vector<1x8x8x128xf32>
    %57 = vector.shape_cast %56 : vector<1x8x8x128xf32> to vector<8x8x128xf32>
    %58 = vector.shape_cast %55 : vector<128xf32> to vector<1x1x128xf32>
    %59 = vector.broadcast %58 : vector<1x1x128xf32> to vector<8x8x128xf32>
    %60 = arith.mulf %57, %59 : vector<8x8x128xf32>
    %61 = arith.addf %53, %60 : vector<8x8x128xf32>
    %c3_59 = arith.constant 3 : index
    %c0_60 = arith.constant 0 : index
    %62 = vector.load %arg5[%c3_59, %c0_60] : memref<27x128xf32, #tpu.memory_space<vmem>>, vector<1x128xf32>
    %63 = vector.shape_cast %62 : vector<1x128xf32> to vector<128xf32>
    %c0_61 = arith.constant 0 : index
    %c1_62 = arith.constant 1 : index
    %c0_63 = arith.constant 0 : index
    %c0_64 = arith.constant 0 : index
    %64 = vector.load %arg10[%c0_61, %c1_62, %c0_63, %c0_64] : memref<6x10x10x128xf32, #tpu.memory_space<vmem>>, vector<1x8x8x128xf32>
    %65 = vector.shape_cast %64 : vector<1x8x8x128xf32> to vector<8x8x128xf32>
    %66 = vector.shape_cast %63 : vector<128xf32> to vector<1x1x128xf32>
    %67 = vector.broadcast %66 : vector<1x1x128xf32> to vector<8x8x128xf32>
    %68 = arith.mulf %65, %67 : vector<8x8x128xf32>
    %69 = arith.addf %61, %68 : vector<8x8x128xf32>
    %c4_65 = arith.constant 4 : index
    %c0_66 = arith.constant 0 : index
    %70 = vector.load %arg5[%c4_65, %c0_66] : memref<27x128xf32, #tpu.memory_space<vmem>>, vector<1x128xf32>
    %71 = vector.shape_cast %70 : vector<1x128xf32> to vector<128xf32>
    %c0_67 = arith.constant 0 : index
    %c1_68 = arith.constant 1 : index
    %c1_69 = arith.constant 1 : index
    %c0_70 = arith.constant 0 : index
    %72 = vector.load %arg10[%c0_67, %c1_68, %c1_69, %c0_70] : memref<6x10x10x128xf32, #tpu.memory_space<vmem>>, vector<1x8x8x128xf32>
    %73 = vector.shape_cast %72 : vector<1x8x8x128xf32> to vector<8x8x128xf32>
    %74 = vector.shape_cast %71 : vector<128xf32> to vector<1x1x128xf32>
    %75 = vector.broadcast %74 : vector<1x1x128xf32> to vector<8x8x128xf32>
    %76 = arith.mulf %73, %75 : vector<8x8x128xf32>
    %77 = arith.addf %69, %76 : vector<8x8x128xf32>
    %c5 = arith.constant 5 : index
    %c0_71 = arith.constant 0 : index
    %78 = vector.load %arg5[%c5, %c0_71] : memref<27x128xf32, #tpu.memory_space<vmem>>, vector<1x128xf32>
    %79 = vector.shape_cast %78 : vector<1x128xf32> to vector<128xf32>
    %c0_72 = arith.constant 0 : index
    %c1_73 = arith.constant 1 : index
    %c2_74 = arith.constant 2 : index
    %c0_75 = arith.constant 0 : index
    %80 = vector.load %arg10[%c0_72, %c1_73, %c2_74, %c0_75] : memref<6x10x10x128xf32, #tpu.memory_space<vmem>>, vector<1x8x8x128xf32>
    %81 = vector.shape_cast %80 : vector<1x8x8x128xf32> to vector<8x8x128xf32>
    %82 = vector.shape_cast %79 : vector<128xf32> to vector<1x1x128xf32>
    %83 = vector.broadcast %82 : vector<1x1x128xf32> to vector<8x8x128xf32>
    %84 = arith.mulf %81, %83 : vector<8x8x128xf32>
    %85 = arith.addf %77, %84 : vector<8x8x128xf32>
    %c6 = arith.constant 6 : index
    %c0_76 = arith.constant 0 : index
    %86 = vector.load %arg5[%c6, %c0_76] : memref<27x128xf32, #tpu.memory_space<vmem>>, vector<1x128xf32>
    %87 = vector.shape_cast %86 : vector<1x128xf32> to vector<128xf32>
    %c0_77 = arith.constant 0 : index
    %c2_78 = arith.constant 2 : index
    %c0_79 = arith.constant 0 : index
    %c0_80 = arith.constant 0 : index
    %88 = vector.load %arg10[%c0_77, %c2_78, %c0_79, %c0_80] : memref<6x10x10x128xf32, #tpu.memory_space<vmem>>, vector<1x8x8x128xf32>
    %89 = vector.shape_cast %88 : vector<1x8x8x128xf32> to vector<8x8x128xf32>
    %90 = vector.shape_cast %87 : vector<128xf32> to vector<1x1x128xf32>
    %91 = vector.broadcast %90 : vector<1x1x128xf32> to vector<8x8x128xf32>
    %92 = arith.mulf %89, %91 : vector<8x8x128xf32>
    %93 = arith.addf %85, %92 : vector<8x8x128xf32>
    %c7 = arith.constant 7 : index
    %c0_81 = arith.constant 0 : index
    %94 = vector.load %arg5[%c7, %c0_81] : memref<27x128xf32, #tpu.memory_space<vmem>>, vector<1x128xf32>
    %95 = vector.shape_cast %94 : vector<1x128xf32> to vector<128xf32>
    %c0_82 = arith.constant 0 : index
    %c2_83 = arith.constant 2 : index
    %c1_84 = arith.constant 1 : index
    %c0_85 = arith.constant 0 : index
    %96 = vector.load %arg10[%c0_82, %c2_83, %c1_84, %c0_85] : memref<6x10x10x128xf32, #tpu.memory_space<vmem>>, vector<1x8x8x128xf32>
    %97 = vector.shape_cast %96 : vector<1x8x8x128xf32> to vector<8x8x128xf32>
    %98 = vector.shape_cast %95 : vector<128xf32> to vector<1x1x128xf32>
    %99 = vector.broadcast %98 : vector<1x1x128xf32> to vector<8x8x128xf32>
    %100 = arith.mulf %97, %99 : vector<8x8x128xf32>
    %101 = arith.addf %93, %100 : vector<8x8x128xf32>
    %c8 = arith.constant 8 : index
    %c0_86 = arith.constant 0 : index
    %102 = vector.load %arg5[%c8, %c0_86] : memref<27x128xf32, #tpu.memory_space<vmem>>, vector<1x128xf32>
    %103 = vector.shape_cast %102 : vector<1x128xf32> to vector<128xf32>
    %c0_87 = arith.constant 0 : index
    %c2_88 = arith.constant 2 : index
    %c2_89 = arith.constant 2 : index
    %c0_90 = arith.constant 0 : index
    %104 = vector.load %arg10[%c0_87, %c2_88, %c2_89, %c0_90] : memref<6x10x10x128xf32, #tpu.memory_space<vmem>>, vector<1x8x8x128xf32>
    %105 = vector.shape_cast %104 : vector<1x8x8x128xf32> to vector<8x8x128xf32>
    %106 = vector.shape_cast %103 : vector<128xf32> to vector<1x1x128xf32>
    %107 = vector.broadcast %106 : vector<1x1x128xf32> to vector<8x8x128xf32>
    %108 = arith.mulf %105, %107 : vector<8x8x128xf32>
    %109 = arith.addf %101, %108 : vector<8x8x128xf32>
    %c9 = arith.constant 9 : index
    %c0_91 = arith.constant 0 : index
    %110 = vector.load %arg5[%c9, %c0_91] : memref<27x128xf32, #tpu.memory_space<vmem>>, vector<1x128xf32>
    %111 = vector.shape_cast %110 : vector<1x128xf32> to vector<128xf32>
    %c1_92 = arith.constant 1 : index
    %c0_93 = arith.constant 0 : index
    %c0_94 = arith.constant 0 : index
    %c0_95 = arith.constant 0 : index
    %112 = vector.load %arg10[%c1_92, %c0_93, %c0_94, %c0_95] : memref<6x10x10x128xf32, #tpu.memory_space<vmem>>, vector<1x8x8x128xf32>
    %113 = vector.shape_cast %112 : vector<1x8x8x128xf32> to vector<8x8x128xf32>
    %114 = vector.shape_cast %111 : vector<128xf32> to vector<1x1x128xf32>
    %115 = vector.broadcast %114 : vector<1x1x128xf32> to vector<8x8x128xf32>
    %116 = arith.mulf %113, %115 : vector<8x8x128xf32>
    %c10 = arith.constant 10 : index
    %c0_96 = arith.constant 0 : index
    %117 = vector.load %arg5[%c10, %c0_96] : memref<27x128xf32, #tpu.memory_space<vmem>>, vector<1x128xf32>
    %118 = vector.shape_cast %117 : vector<1x128xf32> to vector<128xf32>
    %c1_97 = arith.constant 1 : index
    %c0_98 = arith.constant 0 : index
    %c1_99 = arith.constant 1 : index
    %c0_100 = arith.constant 0 : index
    %119 = vector.load %arg10[%c1_97, %c0_98, %c1_99, %c0_100] : memref<6x10x10x128xf32, #tpu.memory_space<vmem>>, vector<1x8x8x128xf32>
    %120 = vector.shape_cast %119 : vector<1x8x8x128xf32> to vector<8x8x128xf32>
    %121 = vector.shape_cast %118 : vector<128xf32> to vector<1x1x128xf32>
    %122 = vector.broadcast %121 : vector<1x1x128xf32> to vector<8x8x128xf32>
    %123 = arith.mulf %120, %122 : vector<8x8x128xf32>
    %124 = arith.addf %116, %123 : vector<8x8x128xf32>
    %c11 = arith.constant 11 : index
    %c0_101 = arith.constant 0 : index
    %125 = vector.load %arg5[%c11, %c0_101] : memref<27x128xf32, #tpu.memory_space<vmem>>, vector<1x128xf32>
    %126 = vector.shape_cast %125 : vector<1x128xf32> to vector<128xf32>
    %c1_102 = arith.constant 1 : index
    %c0_103 = arith.constant 0 : index
    %c2_104 = arith.constant 2 : index
    %c0_105 = arith.constant 0 : index
    %127 = vector.load %arg10[%c1_102, %c0_103, %c2_104, %c0_105] : memref<6x10x10x128xf32, #tpu.memory_space<vmem>>, vector<1x8x8x128xf32>
    %128 = vector.shape_cast %127 : vector<1x8x8x128xf32> to vector<8x8x128xf32>
    %129 = vector.shape_cast %126 : vector<128xf32> to vector<1x1x128xf32>
    %130 = vector.broadcast %129 : vector<1x1x128xf32> to vector<8x8x128xf32>
    %131 = arith.mulf %128, %130 : vector<8x8x128xf32>
    %132 = arith.addf %124, %131 : vector<8x8x128xf32>
    %c12 = arith.constant 12 : index
    %c0_106 = arith.constant 0 : index
    %133 = vector.load %arg5[%c12, %c0_106] : memref<27x128xf32, #tpu.memory_space<vmem>>, vector<1x128xf32>
    %134 = vector.shape_cast %133 : vector<1x128xf32> to vector<128xf32>
    %c1_107 = arith.constant 1 : index
    %c1_108 = arith.constant 1 : index
    %c0_109 = arith.constant 0 : index
    %c0_110 = arith.constant 0 : index
    %135 = vector.load %arg10[%c1_107, %c1_108, %c0_109, %c0_110] : memref<6x10x10x128xf32, #tpu.memory_space<vmem>>, vector<1x8x8x128xf32>
    %136 = vector.shape_cast %135 : vector<1x8x8x128xf32> to vector<8x8x128xf32>
    %137 = vector.shape_cast %134 : vector<128xf32> to vector<1x1x128xf32>
    %138 = vector.broadcast %137 : vector<1x1x128xf32> to vector<8x8x128xf32>
    %139 = arith.mulf %136, %138 : vector<8x8x128xf32>
    %140 = arith.addf %132, %139 : vector<8x8x128xf32>
    %c13 = arith.constant 13 : index
    %c0_111 = arith.constant 0 : index
    %141 = vector.load %arg5[%c13, %c0_111] : memref<27x128xf32, #tpu.memory_space<vmem>>, vector<1x128xf32>
    %142 = vector.shape_cast %141 : vector<1x128xf32> to vector<128xf32>
    %c1_112 = arith.constant 1 : index
    %c1_113 = arith.constant 1 : index
    %c1_114 = arith.constant 1 : index
    %c0_115 = arith.constant 0 : index
    %143 = vector.load %arg10[%c1_112, %c1_113, %c1_114, %c0_115] : memref<6x10x10x128xf32, #tpu.memory_space<vmem>>, vector<1x8x8x128xf32>
    %144 = vector.shape_cast %143 : vector<1x8x8x128xf32> to vector<8x8x128xf32>
    %145 = vector.shape_cast %142 : vector<128xf32> to vector<1x1x128xf32>
    %146 = vector.broadcast %145 : vector<1x1x128xf32> to vector<8x8x128xf32>
    %147 = arith.mulf %144, %146 : vector<8x8x128xf32>
    %148 = arith.addf %140, %147 : vector<8x8x128xf32>
    %c14 = arith.constant 14 : index
    %c0_116 = arith.constant 0 : index
    %149 = vector.load %arg5[%c14, %c0_116] : memref<27x128xf32, #tpu.memory_space<vmem>>, vector<1x128xf32>
    %150 = vector.shape_cast %149 : vector<1x128xf32> to vector<128xf32>
    %c1_117 = arith.constant 1 : index
    %c1_118 = arith.constant 1 : index
    %c2_119 = arith.constant 2 : index
    %c0_120 = arith.constant 0 : index
    %151 = vector.load %arg10[%c1_117, %c1_118, %c2_119, %c0_120] : memref<6x10x10x128xf32, #tpu.memory_space<vmem>>, vector<1x8x8x128xf32>
    %152 = vector.shape_cast %151 : vector<1x8x8x128xf32> to vector<8x8x128xf32>
    %153 = vector.shape_cast %150 : vector<128xf32> to vector<1x1x128xf32>
    %154 = vector.broadcast %153 : vector<1x1x128xf32> to vector<8x8x128xf32>
    %155 = arith.mulf %152, %154 : vector<8x8x128xf32>
    %156 = arith.addf %148, %155 : vector<8x8x128xf32>
    %c15 = arith.constant 15 : index
    %c0_121 = arith.constant 0 : index
    %157 = vector.load %arg5[%c15, %c0_121] : memref<27x128xf32, #tpu.memory_space<vmem>>, vector<1x128xf32>
    %158 = vector.shape_cast %157 : vector<1x128xf32> to vector<128xf32>
    %c1_122 = arith.constant 1 : index
    %c2_123 = arith.constant 2 : index
    %c0_124 = arith.constant 0 : index
    %c0_125 = arith.constant 0 : index
    %159 = vector.load %arg10[%c1_122, %c2_123, %c0_124, %c0_125] : memref<6x10x10x128xf32, #tpu.memory_space<vmem>>, vector<1x8x8x128xf32>
    %160 = vector.shape_cast %159 : vector<1x8x8x128xf32> to vector<8x8x128xf32>
    %161 = vector.shape_cast %158 : vector<128xf32> to vector<1x1x128xf32>
    %162 = vector.broadcast %161 : vector<1x1x128xf32> to vector<8x8x128xf32>
    %163 = arith.mulf %160, %162 : vector<8x8x128xf32>
    %164 = arith.addf %156, %163 : vector<8x8x128xf32>
    %c16 = arith.constant 16 : index
    %c0_126 = arith.constant 0 : index
    %165 = vector.load %arg5[%c16, %c0_126] : memref<27x128xf32, #tpu.memory_space<vmem>>, vector<1x128xf32>
    %166 = vector.shape_cast %165 : vector<1x128xf32> to vector<128xf32>
    %c1_127 = arith.constant 1 : index
    %c2_128 = arith.constant 2 : index
    %c1_129 = arith.constant 1 : index
    %c0_130 = arith.constant 0 : index
    %167 = vector.load %arg10[%c1_127, %c2_128, %c1_129, %c0_130] : memref<6x10x10x128xf32, #tpu.memory_space<vmem>>, vector<1x8x8x128xf32>
    %168 = vector.shape_cast %167 : vector<1x8x8x128xf32> to vector<8x8x128xf32>
    %169 = vector.shape_cast %166 : vector<128xf32> to vector<1x1x128xf32>
    %170 = vector.broadcast %169 : vector<1x1x128xf32> to vector<8x8x128xf32>
    %171 = arith.mulf %168, %170 : vector<8x8x128xf32>
    %172 = arith.addf %164, %171 : vector<8x8x128xf32>
    %c17 = arith.constant 17 : index
    %c0_131 = arith.constant 0 : index
    %173 = vector.load %arg5[%c17, %c0_131] : memref<27x128xf32, #tpu.memory_space<vmem>>, vector<1x128xf32>
    %174 = vector.shape_cast %173 : vector<1x128xf32> to vector<128xf32>
    %c1_132 = arith.constant 1 : index
    %c2_133 = arith.constant 2 : index
    %c2_134 = arith.constant 2 : index
    %c0_135 = arith.constant 0 : index
    %175 = vector.load %arg10[%c1_132, %c2_133, %c2_134, %c0_135] : memref<6x10x10x128xf32, #tpu.memory_space<vmem>>, vector<1x8x8x128xf32>
    %176 = vector.shape_cast %175 : vector<1x8x8x128xf32> to vector<8x8x128xf32>
    %177 = vector.shape_cast %174 : vector<128xf32> to vector<1x1x128xf32>
    %178 = vector.broadcast %177 : vector<1x1x128xf32> to vector<8x8x128xf32>
    %179 = arith.mulf %176, %178 : vector<8x8x128xf32>
    %180 = arith.addf %172, %179 : vector<8x8x128xf32>
    %c18 = arith.constant 18 : index
    %c0_136 = arith.constant 0 : index
    %181 = vector.load %arg5[%c18, %c0_136] : memref<27x128xf32, #tpu.memory_space<vmem>>, vector<1x128xf32>
    %182 = vector.shape_cast %181 : vector<1x128xf32> to vector<128xf32>
    %c2_137 = arith.constant 2 : index
    %c0_138 = arith.constant 0 : index
    %c0_139 = arith.constant 0 : index
    %c0_140 = arith.constant 0 : index
    %183 = vector.load %arg10[%c2_137, %c0_138, %c0_139, %c0_140] : memref<6x10x10x128xf32, #tpu.memory_space<vmem>>, vector<1x8x8x128xf32>
    %184 = vector.shape_cast %183 : vector<1x8x8x128xf32> to vector<8x8x128xf32>
    %185 = vector.shape_cast %182 : vector<128xf32> to vector<1x1x128xf32>
    %186 = vector.broadcast %185 : vector<1x1x128xf32> to vector<8x8x128xf32>
    %187 = arith.mulf %184, %186 : vector<8x8x128xf32>
    %c19 = arith.constant 19 : index
    %c0_141 = arith.constant 0 : index
    %188 = vector.load %arg5[%c19, %c0_141] : memref<27x128xf32, #tpu.memory_space<vmem>>, vector<1x128xf32>
    %189 = vector.shape_cast %188 : vector<1x128xf32> to vector<128xf32>
    %c2_142 = arith.constant 2 : index
    %c0_143 = arith.constant 0 : index
    %c1_144 = arith.constant 1 : index
    %c0_145 = arith.constant 0 : index
    %190 = vector.load %arg10[%c2_142, %c0_143, %c1_144, %c0_145] : memref<6x10x10x128xf32, #tpu.memory_space<vmem>>, vector<1x8x8x128xf32>
    %191 = vector.shape_cast %190 : vector<1x8x8x128xf32> to vector<8x8x128xf32>
    %192 = vector.shape_cast %189 : vector<128xf32> to vector<1x1x128xf32>
    %193 = vector.broadcast %192 : vector<1x1x128xf32> to vector<8x8x128xf32>
    %194 = arith.mulf %191, %193 : vector<8x8x128xf32>
    %195 = arith.addf %187, %194 : vector<8x8x128xf32>
    %c20 = arith.constant 20 : index
    %c0_146 = arith.constant 0 : index
    %196 = vector.load %arg5[%c20, %c0_146] : memref<27x128xf32, #tpu.memory_space<vmem>>, vector<1x128xf32>
    %197 = vector.shape_cast %196 : vector<1x128xf32> to vector<128xf32>
    %c2_147 = arith.constant 2 : index
    %c0_148 = arith.constant 0 : index
    %c2_149 = arith.constant 2 : index
    %c0_150 = arith.constant 0 : index
    %198 = vector.load %arg10[%c2_147, %c0_148, %c2_149, %c0_150] : memref<6x10x10x128xf32, #tpu.memory_space<vmem>>, vector<1x8x8x128xf32>
    %199 = vector.shape_cast %198 : vector<1x8x8x128xf32> to vector<8x8x128xf32>
    %200 = vector.shape_cast %197 : vector<128xf32> to vector<1x1x128xf32>
    %201 = vector.broadcast %200 : vector<1x1x128xf32> to vector<8x8x128xf32>
    %202 = arith.mulf %199, %201 : vector<8x8x128xf32>
    %203 = arith.addf %195, %202 : vector<8x8x128xf32>
    %c21 = arith.constant 21 : index
    %c0_151 = arith.constant 0 : index
    %204 = vector.load %arg5[%c21, %c0_151] : memref<27x128xf32, #tpu.memory_space<vmem>>, vector<1x128xf32>
    %205 = vector.shape_cast %204 : vector<1x128xf32> to vector<128xf32>
    %c2_152 = arith.constant 2 : index
    %c1_153 = arith.constant 1 : index
    %c0_154 = arith.constant 0 : index
    %c0_155 = arith.constant 0 : index
    %206 = vector.load %arg10[%c2_152, %c1_153, %c0_154, %c0_155] : memref<6x10x10x128xf32, #tpu.memory_space<vmem>>, vector<1x8x8x128xf32>
    %207 = vector.shape_cast %206 : vector<1x8x8x128xf32> to vector<8x8x128xf32>
    %208 = vector.shape_cast %205 : vector<128xf32> to vector<1x1x128xf32>
    %209 = vector.broadcast %208 : vector<1x1x128xf32> to vector<8x8x128xf32>
    %210 = arith.mulf %207, %209 : vector<8x8x128xf32>
    %211 = arith.addf %203, %210 : vector<8x8x128xf32>
    %c22 = arith.constant 22 : index
    %c0_156 = arith.constant 0 : index
    %212 = vector.load %arg5[%c22, %c0_156] : memref<27x128xf32, #tpu.memory_space<vmem>>, vector<1x128xf32>
    %213 = vector.shape_cast %212 : vector<1x128xf32> to vector<128xf32>
    %c2_157 = arith.constant 2 : index
    %c1_158 = arith.constant 1 : index
    %c1_159 = arith.constant 1 : index
    %c0_160 = arith.constant 0 : index
    %214 = vector.load %arg10[%c2_157, %c1_158, %c1_159, %c0_160] : memref<6x10x10x128xf32, #tpu.memory_space<vmem>>, vector<1x8x8x128xf32>
    %215 = vector.shape_cast %214 : vector<1x8x8x128xf32> to vector<8x8x128xf32>
    %216 = vector.shape_cast %213 : vector<128xf32> to vector<1x1x128xf32>
    %217 = vector.broadcast %216 : vector<1x1x128xf32> to vector<8x8x128xf32>
    %218 = arith.mulf %215, %217 : vector<8x8x128xf32>
    %219 = arith.addf %211, %218 : vector<8x8x128xf32>
    %c23 = arith.constant 23 : index
    %c0_161 = arith.constant 0 : index
    %220 = vector.load %arg5[%c23, %c0_161] : memref<27x128xf32, #tpu.memory_space<vmem>>, vector<1x128xf32>
    %221 = vector.shape_cast %220 : vector<1x128xf32> to vector<128xf32>
    %c2_162 = arith.constant 2 : index
    %c1_163 = arith.constant 1 : index
    %c2_164 = arith.constant 2 : index
    %c0_165 = arith.constant 0 : index
    %222 = vector.load %arg10[%c2_162, %c1_163, %c2_164, %c0_165] : memref<6x10x10x128xf32, #tpu.memory_space<vmem>>, vector<1x8x8x128xf32>
    %223 = vector.shape_cast %222 : vector<1x8x8x128xf32> to vector<8x8x128xf32>
    %224 = vector.shape_cast %221 : vector<128xf32> to vector<1x1x128xf32>
    %225 = vector.broadcast %224 : vector<1x1x128xf32> to vector<8x8x128xf32>
    %226 = arith.mulf %223, %225 : vector<8x8x128xf32>
    %227 = arith.addf %219, %226 : vector<8x8x128xf32>
    %c24 = arith.constant 24 : index
    %c0_166 = arith.constant 0 : index
    %228 = vector.load %arg5[%c24, %c0_166] : memref<27x128xf32, #tpu.memory_space<vmem>>, vector<1x128xf32>
    %229 = vector.shape_cast %228 : vector<1x128xf32> to vector<128xf32>
    %c2_167 = arith.constant 2 : index
    %c2_168 = arith.constant 2 : index
    %c0_169 = arith.constant 0 : index
    %c0_170 = arith.constant 0 : index
    %230 = vector.load %arg10[%c2_167, %c2_168, %c0_169, %c0_170] : memref<6x10x10x128xf32, #tpu.memory_space<vmem>>, vector<1x8x8x128xf32>
    %231 = vector.shape_cast %230 : vector<1x8x8x128xf32> to vector<8x8x128xf32>
    %232 = vector.shape_cast %229 : vector<128xf32> to vector<1x1x128xf32>
    %233 = vector.broadcast %232 : vector<1x1x128xf32> to vector<8x8x128xf32>
    %234 = arith.mulf %231, %233 : vector<8x8x128xf32>
    %235 = arith.addf %227, %234 : vector<8x8x128xf32>
    %c25 = arith.constant 25 : index
    %c0_171 = arith.constant 0 : index
    %236 = vector.load %arg5[%c25, %c0_171] : memref<27x128xf32, #tpu.memory_space<vmem>>, vector<1x128xf32>
    %237 = vector.shape_cast %236 : vector<1x128xf32> to vector<128xf32>
    %c2_172 = arith.constant 2 : index
    %c2_173 = arith.constant 2 : index
    %c1_174 = arith.constant 1 : index
    %c0_175 = arith.constant 0 : index
    %238 = vector.load %arg10[%c2_172, %c2_173, %c1_174, %c0_175] : memref<6x10x10x128xf32, #tpu.memory_space<vmem>>, vector<1x8x8x128xf32>
    %239 = vector.shape_cast %238 : vector<1x8x8x128xf32> to vector<8x8x128xf32>
    %240 = vector.shape_cast %237 : vector<128xf32> to vector<1x1x128xf32>
    %241 = vector.broadcast %240 : vector<1x1x128xf32> to vector<8x8x128xf32>
    %242 = arith.mulf %239, %241 : vector<8x8x128xf32>
    %243 = arith.addf %235, %242 : vector<8x8x128xf32>
    %c26 = arith.constant 26 : index
    %c0_176 = arith.constant 0 : index
    %244 = vector.load %arg5[%c26, %c0_176] : memref<27x128xf32, #tpu.memory_space<vmem>>, vector<1x128xf32>
    %245 = vector.shape_cast %244 : vector<1x128xf32> to vector<128xf32>
    %c2_177 = arith.constant 2 : index
    %c2_178 = arith.constant 2 : index
    %c2_179 = arith.constant 2 : index
    %c0_180 = arith.constant 0 : index
    %246 = vector.load %arg10[%c2_177, %c2_178, %c2_179, %c0_180] : memref<6x10x10x128xf32, #tpu.memory_space<vmem>>, vector<1x8x8x128xf32>
    %247 = vector.shape_cast %246 : vector<1x8x8x128xf32> to vector<8x8x128xf32>
    %248 = vector.shape_cast %245 : vector<128xf32> to vector<1x1x128xf32>
    %249 = vector.broadcast %248 : vector<1x1x128xf32> to vector<8x8x128xf32>
    %250 = arith.mulf %247, %249 : vector<8x8x128xf32>
    %251 = arith.addf %243, %250 : vector<8x8x128xf32>
    %252 = arith.addf %109, %180 : vector<8x8x128xf32>
    %253 = arith.addf %252, %251 : vector<8x8x128xf32>
    %254 = vector.shape_cast %38 : vector<128xf32> to vector<1x1x128xf32>
    %255 = vector.broadcast %254 : vector<1x1x128xf32> to vector<8x8x128xf32>
    %256 = arith.addf %253, %255 : vector<8x8x128xf32>
    %cst = arith.constant 0.000000e+00 : f32
    %257 = vector.broadcast %cst : f32 to vector<8x8x128xf32>
    %258 = arith.maximumf %256, %257 : vector<8x8x128xf32>
    %c0_181 = arith.constant 0 : index
    %c0_182 = arith.constant 0 : index
    %c0_183 = arith.constant 0 : index
    %c0_184 = arith.constant 0 : index
    %259 = vector.load %arg11[%c0_181, %c0_182, %c0_183, %c0_184] : memref<4x8x8x128xf32, #tpu.memory_space<vmem>>, vector<1x8x8x128xf32>
    %260 = vector.shape_cast %259 : vector<1x8x8x128xf32> to vector<8x8x128xf32>
    %261 = vector.shape_cast %258 : vector<8x8x128xf32> to vector<1x8x8x128xf32>
    tpu.vector_store %arg11[%c0_181, %c0_182, %c0_183, %c0_184], %261 {strides = array<i32>} : memref<4x8x8x128xf32, #tpu.memory_space<vmem>>, vector<1x8x8x128xf32>,
    %c0_185 = arith.constant 0 : index
    %c0_186 = arith.constant 0 : index
    %262 = vector.load %arg5[%c0_185, %c0_186] : memref<27x128xf32, #tpu.memory_space<vmem>>, vector<1x128xf32>
    %263 = vector.shape_cast %262 : vector<1x128xf32> to vector<128xf32>
    %c1_187 = arith.constant 1 : index
    %c0_188 = arith.constant 0 : index
    %c0_189 = arith.constant 0 : index
    %c0_190 = arith.constant 0 : index
    %264 = vector.load %arg10[%c1_187, %c0_188, %c0_189, %c0_190] : memref<6x10x10x128xf32, #tpu.memory_space<vmem>>, vector<1x8x8x128xf32>
    %265 = vector.shape_cast %264 : vector<1x8x8x128xf32> to vector<8x8x128xf32>
    %266 = vector.shape_cast %263 : vector<128xf32> to vector<1x1x128xf32>
    %267 = vector.broadcast %266 : vector<1x1x128xf32> to vector<8x8x128xf32>
    %268 = arith.mulf %265, %267 : vector<8x8x128xf32>
    %c1_191 = arith.constant 1 : index
    %c0_192 = arith.constant 0 : index
    %269 = vector.load %arg5[%c1_191, %c0_192] : memref<27x128xf32, #tpu.memory_space<vmem>>, vector<1x128xf32>
    %270 = vector.shape_cast %269 : vector<1x128xf32> to vector<128xf32>
    %c1_193 = arith.constant 1 : index
    %c0_194 = arith.constant 0 : index
    %c1_195 = arith.constant 1 : index
    %c0_196 = arith.constant 0 : index
    %271 = vector.load %arg10[%c1_193, %c0_194, %c1_195, %c0_196] : memref<6x10x10x128xf32, #tpu.memory_space<vmem>>, vector<1x8x8x128xf32>
    %272 = vector.shape_cast %271 : vector<1x8x8x128xf32> to vector<8x8x128xf32>
    %273 = vector.shape_cast %270 : vector<128xf32> to vector<1x1x128xf32>
    %274 = vector.broadcast %273 : vector<1x1x128xf32> to vector<8x8x128xf32>
    %275 = arith.mulf %272, %274 : vector<8x8x128xf32>
    %276 = arith.addf %268, %275 : vector<8x8x128xf32>
    %c2_197 = arith.constant 2 : index
    %c0_198 = arith.constant 0 : index
    %277 = vector.load %arg5[%c2_197, %c0_198] : memref<27x128xf32, #tpu.memory_space<vmem>>, vector<1x128xf32>
    %278 = vector.shape_cast %277 : vector<1x128xf32> to vector<128xf32>
    %c1_199 = arith.constant 1 : index
    %c0_200 = arith.constant 0 : index
    %c2_201 = arith.constant 2 : index
    %c0_202 = arith.constant 0 : index
    %279 = vector.load %arg10[%c1_199, %c0_200, %c2_201, %c0_202] : memref<6x10x10x128xf32, #tpu.memory_space<vmem>>, vector<1x8x8x128xf32>
    %280 = vector.shape_cast %279 : vector<1x8x8x128xf32> to vector<8x8x128xf32>
    %281 = vector.shape_cast %278 : vector<128xf32> to vector<1x1x128xf32>
    %282 = vector.broadcast %281 : vector<1x1x128xf32> to vector<8x8x128xf32>
    %283 = arith.mulf %280, %282 : vector<8x8x128xf32>
    %284 = arith.addf %276, %283 : vector<8x8x128xf32>
    %c3_203 = arith.constant 3 : index
    %c0_204 = arith.constant 0 : index
    %285 = vector.load %arg5[%c3_203, %c0_204] : memref<27x128xf32, #tpu.memory_space<vmem>>, vector<1x128xf32>
    %286 = vector.shape_cast %285 : vector<1x128xf32> to vector<128xf32>
    %c1_205 = arith.constant 1 : index
    %c1_206 = arith.constant 1 : index
    %c0_207 = arith.constant 0 : index
    %c0_208 = arith.constant 0 : index
    %287 = vector.load %arg10[%c1_205, %c1_206, %c0_207, %c0_208] : memref<6x10x10x128xf32, #tpu.memory_space<vmem>>, vector<1x8x8x128xf32>
    %288 = vector.shape_cast %287 : vector<1x8x8x128xf32> to vector<8x8x128xf32>
    %289 = vector.shape_cast %286 : vector<128xf32> to vector<1x1x128xf32>
    %290 = vector.broadcast %289 : vector<1x1x128xf32> to vector<8x8x128xf32>
    %291 = arith.mulf %288, %290 : vector<8x8x128xf32>
    %292 = arith.addf %284, %291 : vector<8x8x128xf32>
    %c4_209 = arith.constant 4 : index
    %c0_210 = arith.constant 0 : index
    %293 = vector.load %arg5[%c4_209, %c0_210] : memref<27x128xf32, #tpu.memory_space<vmem>>, vector<1x128xf32>
    %294 = vector.shape_cast %293 : vector<1x128xf32> to vector<128xf32>
    %c1_211 = arith.constant 1 : index
    %c1_212 = arith.constant 1 : index
    %c1_213 = arith.constant 1 : index
    %c0_214 = arith.constant 0 : index
    %295 = vector.load %arg10[%c1_211, %c1_212, %c1_213, %c0_214] : memref<6x10x10x128xf32, #tpu.memory_space<vmem>>, vector<1x8x8x128xf32>
    %296 = vector.shape_cast %295 : vector<1x8x8x128xf32> to vector<8x8x128xf32>
    %297 = vector.shape_cast %294 : vector<128xf32> to vector<1x1x128xf32>
    %298 = vector.broadcast %297 : vector<1x1x128xf32> to vector<8x8x128xf32>
    %299 = arith.mulf %296, %298 : vector<8x8x128xf32>
    %300 = arith.addf %292, %299 : vector<8x8x128xf32>
    %c5_215 = arith.constant 5 : index
    %c0_216 = arith.constant 0 : index
    %301 = vector.load %arg5[%c5_215, %c0_216] : memref<27x128xf32, #tpu.memory_space<vmem>>, vector<1x128xf32>
    %302 = vector.shape_cast %301 : vector<1x128xf32> to vector<128xf32>
    %c1_217 = arith.constant 1 : index
    %c1_218 = arith.constant 1 : index
    %c2_219 = arith.constant 2 : index
    %c0_220 = arith.constant 0 : index
    %303 = vector.load %arg10[%c1_217, %c1_218, %c2_219, %c0_220] : memref<6x10x10x128xf32, #tpu.memory_space<vmem>>, vector<1x8x8x128xf32>
    %304 = vector.shape_cast %303 : vector<1x8x8x128xf32> to vector<8x8x128xf32>
    %305 = vector.shape_cast %302 : vector<128xf32> to vector<1x1x128xf32>
    %306 = vector.broadcast %305 : vector<1x1x128xf32> to vector<8x8x128xf32>
    %307 = arith.mulf %304, %306 : vector<8x8x128xf32>
    %308 = arith.addf %300, %307 : vector<8x8x128xf32>
    %c6_221 = arith.constant 6 : index
    %c0_222 = arith.constant 0 : index
    %309 = vector.load %arg5[%c6_221, %c0_222] : memref<27x128xf32, #tpu.memory_space<vmem>>, vector<1x128xf32>
    %310 = vector.shape_cast %309 : vector<1x128xf32> to vector<128xf32>
    %c1_223 = arith.constant 1 : index
    %c2_224 = arith.constant 2 : index
    %c0_225 = arith.constant 0 : index
    %c0_226 = arith.constant 0 : index
    %311 = vector.load %arg10[%c1_223, %c2_224, %c0_225, %c0_226] : memref<6x10x10x128xf32, #tpu.memory_space<vmem>>, vector<1x8x8x128xf32>
    %312 = vector.shape_cast %311 : vector<1x8x8x128xf32> to vector<8x8x128xf32>
    %313 = vector.shape_cast %310 : vector<128xf32> to vector<1x1x128xf32>
    %314 = vector.broadcast %313 : vector<1x1x128xf32> to vector<8x8x128xf32>
    %315 = arith.mulf %312, %314 : vector<8x8x128xf32>
    %316 = arith.addf %308, %315 : vector<8x8x128xf32>
    %c7_227 = arith.constant 7 : index
    %c0_228 = arith.constant 0 : index
    %317 = vector.load %arg5[%c7_227, %c0_228] : memref<27x128xf32, #tpu.memory_space<vmem>>, vector<1x128xf32>
    %318 = vector.shape_cast %317 : vector<1x128xf32> to vector<128xf32>
    %c1_229 = arith.constant 1 : index
    %c2_230 = arith.constant 2 : index
    %c1_231 = arith.constant 1 : index
    %c0_232 = arith.constant 0 : index
    %319 = vector.load %arg10[%c1_229, %c2_230, %c1_231, %c0_232] : memref<6x10x10x128xf32, #tpu.memory_space<vmem>>, vector<1x8x8x128xf32>
    %320 = vector.shape_cast %319 : vector<1x8x8x128xf32> to vector<8x8x128xf32>
    %321 = vector.shape_cast %318 : vector<128xf32> to vector<1x1x128xf32>
    %322 = vector.broadcast %321 : vector<1x1x128xf32> to vector<8x8x128xf32>
    %323 = arith.mulf %320, %322 : vector<8x8x128xf32>
    %324 = arith.addf %316, %323 : vector<8x8x128xf32>
    %c8_233 = arith.constant 8 : index
    %c0_234 = arith.constant 0 : index
    %325 = vector.load %arg5[%c8_233, %c0_234] : memref<27x128xf32, #tpu.memory_space<vmem>>, vector<1x128xf32>
    %326 = vector.shape_cast %325 : vector<1x128xf32> to vector<128xf32>
    %c1_235 = arith.constant 1 : index
    %c2_236 = arith.constant 2 : index
    %c2_237 = arith.constant 2 : index
    %c0_238 = arith.constant 0 : index
    %327 = vector.load %arg10[%c1_235, %c2_236, %c2_237, %c0_238] : memref<6x10x10x128xf32, #tpu.memory_space<vmem>>, vector<1x8x8x128xf32>
    %328 = vector.shape_cast %327 : vector<1x8x8x128xf32> to vector<8x8x128xf32>
    %329 = vector.shape_cast %326 : vector<128xf32> to vector<1x1x128xf32>
    %330 = vector.broadcast %329 : vector<1x1x128xf32> to vector<8x8x128xf32>
    %331 = arith.mulf %328, %330 : vector<8x8x128xf32>
    %332 = arith.addf %324, %331 : vector<8x8x128xf32>
    %c9_239 = arith.constant 9 : index
    %c0_240 = arith.constant 0 : index
    %333 = vector.load %arg5[%c9_239, %c0_240] : memref<27x128xf32, #tpu.memory_space<vmem>>, vector<1x128xf32>
    %334 = vector.shape_cast %333 : vector<1x128xf32> to vector<128xf32>
    %c2_241 = arith.constant 2 : index
    %c0_242 = arith.constant 0 : index
    %c0_243 = arith.constant 0 : index
    %c0_244 = arith.constant 0 : index
    %335 = vector.load %arg10[%c2_241, %c0_242, %c0_243, %c0_244] : memref<6x10x10x128xf32, #tpu.memory_space<vmem>>, vector<1x8x8x128xf32>
    %336 = vector.shape_cast %335 : vector<1x8x8x128xf32> to vector<8x8x128xf32>
    %337 = vector.shape_cast %334 : vector<128xf32> to vector<1x1x128xf32>
    %338 = vector.broadcast %337 : vector<1x1x128xf32> to vector<8x8x128xf32>
    %339 = arith.mulf %336, %338 : vector<8x8x128xf32>
    %c10_245 = arith.constant 10 : index
    %c0_246 = arith.constant 0 : index
    %340 = vector.load %arg5[%c10_245, %c0_246] : memref<27x128xf32, #tpu.memory_space<vmem>>, vector<1x128xf32>
    %341 = vector.shape_cast %340 : vector<1x128xf32> to vector<128xf32>
    %c2_247 = arith.constant 2 : index
    %c0_248 = arith.constant 0 : index
    %c1_249 = arith.constant 1 : index
    %c0_250 = arith.constant 0 : index
    %342 = vector.load %arg10[%c2_247, %c0_248, %c1_249, %c0_250] : memref<6x10x10x128xf32, #tpu.memory_space<vmem>>, vector<1x8x8x128xf32>
    %343 = vector.shape_cast %342 : vector<1x8x8x128xf32> to vector<8x8x128xf32>
    %344 = vector.shape_cast %341 : vector<128xf32> to vector<1x1x128xf32>
    %345 = vector.broadcast %344 : vector<1x1x128xf32> to vector<8x8x128xf32>
    %346 = arith.mulf %343, %345 : vector<8x8x128xf32>
    %347 = arith.addf %339, %346 : vector<8x8x128xf32>
    %c11_251 = arith.constant 11 : index
    %c0_252 = arith.constant 0 : index
    %348 = vector.load %arg5[%c11_251, %c0_252] : memref<27x128xf32, #tpu.memory_space<vmem>>, vector<1x128xf32>
    %349 = vector.shape_cast %348 : vector<1x128xf32> to vector<128xf32>
    %c2_253 = arith.constant 2 : index
    %c0_254 = arith.constant 0 : index
    %c2_255 = arith.constant 2 : index
    %c0_256 = arith.constant 0 : index
    %350 = vector.load %arg10[%c2_253, %c0_254, %c2_255, %c0_256] : memref<6x10x10x128xf32, #tpu.memory_space<vmem>>, vector<1x8x8x128xf32>
    %351 = vector.shape_cast %350 : vector<1x8x8x128xf32> to vector<8x8x128xf32>
    %352 = vector.shape_cast %349 : vector<128xf32> to vector<1x1x128xf32>
    %353 = vector.broadcast %352 : vector<1x1x128xf32> to vector<8x8x128xf32>
    %354 = arith.mulf %351, %353 : vector<8x8x128xf32>
    %355 = arith.addf %347, %354 : vector<8x8x128xf32>
    %c12_257 = arith.constant 12 : index
    %c0_258 = arith.constant 0 : index
    %356 = vector.load %arg5[%c12_257, %c0_258] : memref<27x128xf32, #tpu.memory_space<vmem>>, vector<1x128xf32>
    %357 = vector.shape_cast %356 : vector<1x128xf32> to vector<128xf32>
    %c2_259 = arith.constant 2 : index
    %c1_260 = arith.constant 1 : index
    %c0_261 = arith.constant 0 : index
    %c0_262 = arith.constant 0 : index
    %358 = vector.load %arg10[%c2_259, %c1_260, %c0_261, %c0_262] : memref<6x10x10x128xf32, #tpu.memory_space<vmem>>, vector<1x8x8x128xf32>
    %359 = vector.shape_cast %358 : vector<1x8x8x128xf32> to vector<8x8x128xf32>
    %360 = vector.shape_cast %357 : vector<128xf32> to vector<1x1x128xf32>
    %361 = vector.broadcast %360 : vector<1x1x128xf32> to vector<8x8x128xf32>
    %362 = arith.mulf %359, %361 : vector<8x8x128xf32>
    %363 = arith.addf %355, %362 : vector<8x8x128xf32>
    %c13_263 = arith.constant 13 : index
    %c0_264 = arith.constant 0 : index
    %364 = vector.load %arg5[%c13_263, %c0_264] : memref<27x128xf32, #tpu.memory_space<vmem>>, vector<1x128xf32>
    %365 = vector.shape_cast %364 : vector<1x128xf32> to vector<128xf32>
    %c2_265 = arith.constant 2 : index
    %c1_266 = arith.constant 1 : index
    %c1_267 = arith.constant 1 : index
    %c0_268 = arith.constant 0 : index
    %366 = vector.load %arg10[%c2_265, %c1_266, %c1_267, %c0_268] : memref<6x10x10x128xf32, #tpu.memory_space<vmem>>, vector<1x8x8x128xf32>
    %367 = vector.shape_cast %366 : vector<1x8x8x128xf32> to vector<8x8x128xf32>
    %368 = vector.shape_cast %365 : vector<128xf32> to vector<1x1x128xf32>
    %369 = vector.broadcast %368 : vector<1x1x128xf32> to vector<8x8x128xf32>
    %370 = arith.mulf %367, %369 : vector<8x8x128xf32>
    %371 = arith.addf %363, %370 : vector<8x8x128xf32>
    %c14_269 = arith.constant 14 : index
    %c0_270 = arith.constant 0 : index
    %372 = vector.load %arg5[%c14_269, %c0_270] : memref<27x128xf32, #tpu.memory_space<vmem>>, vector<1x128xf32>
    %373 = vector.shape_cast %372 : vector<1x128xf32> to vector<128xf32>
    %c2_271 = arith.constant 2 : index
    %c1_272 = arith.constant 1 : index
    %c2_273 = arith.constant 2 : index
    %c0_274 = arith.constant 0 : index
    %374 = vector.load %arg10[%c2_271, %c1_272, %c2_273, %c0_274] : memref<6x10x10x128xf32, #tpu.memory_space<vmem>>, vector<1x8x8x128xf32>
    %375 = vector.shape_cast %374 : vector<1x8x8x128xf32> to vector<8x8x128xf32>
    %376 = vector.shape_cast %373 : vector<128xf32> to vector<1x1x128xf32>
    %377 = vector.broadcast %376 : vector<1x1x128xf32> to vector<8x8x128xf32>
    %378 = arith.mulf %375, %377 : vector<8x8x128xf32>
    %379 = arith.addf %371, %378 : vector<8x8x128xf32>
    %c15_275 = arith.constant 15 : index
    %c0_276 = arith.constant 0 : index
    %380 = vector.load %arg5[%c15_275, %c0_276] : memref<27x128xf32, #tpu.memory_space<vmem>>, vector<1x128xf32>
    %381 = vector.shape_cast %380 : vector<1x128xf32> to vector<128xf32>
    %c2_277 = arith.constant 2 : index
    %c2_278 = arith.constant 2 : index
    %c0_279 = arith.constant 0 : index
    %c0_280 = arith.constant 0 : index
    %382 = vector.load %arg10[%c2_277, %c2_278, %c0_279, %c0_280] : memref<6x10x10x128xf32, #tpu.memory_space<vmem>>, vector<1x8x8x128xf32>
    %383 = vector.shape_cast %382 : vector<1x8x8x128xf32> to vector<8x8x128xf32>
    %384 = vector.shape_cast %381 : vector<128xf32> to vector<1x1x128xf32>
    %385 = vector.broadcast %384 : vector<1x1x128xf32> to vector<8x8x128xf32>
    %386 = arith.mulf %383, %385 : vector<8x8x128xf32>
    %387 = arith.addf %379, %386 : vector<8x8x128xf32>
    %c16_281 = arith.constant 16 : index
    %c0_282 = arith.constant 0 : index
    %388 = vector.load %arg5[%c16_281, %c0_282] : memref<27x128xf32, #tpu.memory_space<vmem>>, vector<1x128xf32>
    %389 = vector.shape_cast %388 : vector<1x128xf32> to vector<128xf32>
    %c2_283 = arith.constant 2 : index
    %c2_284 = arith.constant 2 : index
    %c1_285 = arith.constant 1 : index
    %c0_286 = arith.constant 0 : index
    %390 = vector.load %arg10[%c2_283, %c2_284, %c1_285, %c0_286] : memref<6x10x10x128xf32, #tpu.memory_space<vmem>>, vector<1x8x8x128xf32>
    %391 = vector.shape_cast %390 : vector<1x8x8x128xf32> to vector<8x8x128xf32>
    %392 = vector.shape_cast %389 : vector<128xf32> to vector<1x1x128xf32>
    %393 = vector.broadcast %392 : vector<1x1x128xf32> to vector<8x8x128xf32>
    %394 = arith.mulf %391, %393 : vector<8x8x128xf32>
    %395 = arith.addf %387, %394 : vector<8x8x128xf32>
    %c17_287 = arith.constant 17 : index
    %c0_288 = arith.constant 0 : index
    %396 = vector.load %arg5[%c17_287, %c0_288] : memref<27x128xf32, #tpu.memory_space<vmem>>, vector<1x128xf32>
    %397 = vector.shape_cast %396 : vector<1x128xf32> to vector<128xf32>
    %c2_289 = arith.constant 2 : index
    %c2_290 = arith.constant 2 : index
    %c2_291 = arith.constant 2 : index
    %c0_292 = arith.constant 0 : index
    %398 = vector.load %arg10[%c2_289, %c2_290, %c2_291, %c0_292] : memref<6x10x10x128xf32, #tpu.memory_space<vmem>>, vector<1x8x8x128xf32>
    %399 = vector.shape_cast %398 : vector<1x8x8x128xf32> to vector<8x8x128xf32>
    %400 = vector.shape_cast %397 : vector<128xf32> to vector<1x1x128xf32>
    %401 = vector.broadcast %400 : vector<1x1x128xf32> to vector<8x8x128xf32>
    %402 = arith.mulf %399, %401 : vector<8x8x128xf32>
    %403 = arith.addf %395, %402 : vector<8x8x128xf32>
    %c18_293 = arith.constant 18 : index
    %c0_294 = arith.constant 0 : index
    %404 = vector.load %arg5[%c18_293, %c0_294] : memref<27x128xf32, #tpu.memory_space<vmem>>, vector<1x128xf32>
    %405 = vector.shape_cast %404 : vector<1x128xf32> to vector<128xf32>
    %c3_295 = arith.constant 3 : index
    %c0_296 = arith.constant 0 : index
    %c0_297 = arith.constant 0 : index
    %c0_298 = arith.constant 0 : index
    %406 = vector.load %arg10[%c3_295, %c0_296, %c0_297, %c0_298] : memref<6x10x10x128xf32, #tpu.memory_space<vmem>>, vector<1x8x8x128xf32>
    %407 = vector.shape_cast %406 : vector<1x8x8x128xf32> to vector<8x8x128xf32>
    %408 = vector.shape_cast %405 : vector<128xf32> to vector<1x1x128xf32>
    %409 = vector.broadcast %408 : vector<1x1x128xf32> to vector<8x8x128xf32>
    %410 = arith.mulf %407, %409 : vector<8x8x128xf32>
    %c19_299 = arith.constant 19 : index
    %c0_300 = arith.constant 0 : index
    %411 = vector.load %arg5[%c19_299, %c0_300] : memref<27x128xf32, #tpu.memory_space<vmem>>, vector<1x128xf32>
    %412 = vector.shape_cast %411 : vector<1x128xf32> to vector<128xf32>
    %c3_301 = arith.constant 3 : index
    %c0_302 = arith.constant 0 : index
    %c1_303 = arith.constant 1 : index
    %c0_304 = arith.constant 0 : index
    %413 = vector.load %arg10[%c3_301, %c0_302, %c1_303, %c0_304] : memref<6x10x10x128xf32, #tpu.memory_space<vmem>>, vector<1x8x8x128xf32>
    %414 = vector.shape_cast %413 : vector<1x8x8x128xf32> to vector<8x8x128xf32>
    %415 = vector.shape_cast %412 : vector<128xf32> to vector<1x1x128xf32>
    %416 = vector.broadcast %415 : vector<1x1x128xf32> to vector<8x8x128xf32>
    %417 = arith.mulf %414, %416 : vector<8x8x128xf32>
    %418 = arith.addf %410, %417 : vector<8x8x128xf32>
    %c20_305 = arith.constant 20 : index
    %c0_306 = arith.constant 0 : index
    %419 = vector.load %arg5[%c20_305, %c0_306] : memref<27x128xf32, #tpu.memory_space<vmem>>, vector<1x128xf32>
    %420 = vector.shape_cast %419 : vector<1x128xf32> to vector<128xf32>
    %c3_307 = arith.constant 3 : index
    %c0_308 = arith.constant 0 : index
    %c2_309 = arith.constant 2 : index
    %c0_310 = arith.constant 0 : index
    %421 = vector.load %arg10[%c3_307, %c0_308, %c2_309, %c0_310] : memref<6x10x10x128xf32, #tpu.memory_space<vmem>>, vector<1x8x8x128xf32>
    %422 = vector.shape_cast %421 : vector<1x8x8x128xf32> to vector<8x8x128xf32>
    %423 = vector.shape_cast %420 : vector<128xf32> to vector<1x1x128xf32>
    %424 = vector.broadcast %423 : vector<1x1x128xf32> to vector<8x8x128xf32>
    %425 = arith.mulf %422, %424 : vector<8x8x128xf32>
    %426 = arith.addf %418, %425 : vector<8x8x128xf32>
    %c21_311 = arith.constant 21 : index
    %c0_312 = arith.constant 0 : index
    %427 = vector.load %arg5[%c21_311, %c0_312] : memref<27x128xf32, #tpu.memory_space<vmem>>, vector<1x128xf32>
    %428 = vector.shape_cast %427 : vector<1x128xf32> to vector<128xf32>
    %c3_313 = arith.constant 3 : index
    %c1_314 = arith.constant 1 : index
    %c0_315 = arith.constant 0 : index
    %c0_316 = arith.constant 0 : index
    %429 = vector.load %arg10[%c3_313, %c1_314, %c0_315, %c0_316] : memref<6x10x10x128xf32, #tpu.memory_space<vmem>>, vector<1x8x8x128xf32>
    %430 = vector.shape_cast %429 : vector<1x8x8x128xf32> to vector<8x8x128xf32>
    %431 = vector.shape_cast %428 : vector<128xf32> to vector<1x1x128xf32>
    %432 = vector.broadcast %431 : vector<1x1x128xf32> to vector<8x8x128xf32>
    %433 = arith.mulf %430, %432 : vector<8x8x128xf32>
    %434 = arith.addf %426, %433 : vector<8x8x128xf32>
    %c22_317 = arith.constant 22 : index
    %c0_318 = arith.constant 0 : index
    %435 = vector.load %arg5[%c22_317, %c0_318] : memref<27x128xf32, #tpu.memory_space<vmem>>, vector<1x128xf32>
    %436 = vector.shape_cast %435 : vector<1x128xf32> to vector<128xf32>
    %c3_319 = arith.constant 3 : index
    %c1_320 = arith.constant 1 : index
    %c1_321 = arith.constant 1 : index
    %c0_322 = arith.constant 0 : index
    %437 = vector.load %arg10[%c3_319, %c1_320, %c1_321, %c0_322] : memref<6x10x10x128xf32, #tpu.memory_space<vmem>>, vector<1x8x8x128xf32>
    %438 = vector.shape_cast %437 : vector<1x8x8x128xf32> to vector<8x8x128xf32>
    %439 = vector.shape_cast %436 : vector<128xf32> to vector<1x1x128xf32>
    %440 = vector.broadcast %439 : vector<1x1x128xf32> to vector<8x8x128xf32>
    %441 = arith.mulf %438, %440 : vector<8x8x128xf32>
    %442 = arith.addf %434, %441 : vector<8x8x128xf32>
    %c23_323 = arith.constant 23 : index
    %c0_324 = arith.constant 0 : index
    %443 = vector.load %arg5[%c23_323, %c0_324] : memref<27x128xf32, #tpu.memory_space<vmem>>, vector<1x128xf32>
    %444 = vector.shape_cast %443 : vector<1x128xf32> to vector<128xf32>
    %c3_325 = arith.constant 3 : index
    %c1_326 = arith.constant 1 : index
    %c2_327 = arith.constant 2 : index
    %c0_328 = arith.constant 0 : index
    %445 = vector.load %arg10[%c3_325, %c1_326, %c2_327, %c0_328] : memref<6x10x10x128xf32, #tpu.memory_space<vmem>>, vector<1x8x8x128xf32>
    %446 = vector.shape_cast %445 : vector<1x8x8x128xf32> to vector<8x8x128xf32>
    %447 = vector.shape_cast %444 : vector<128xf32> to vector<1x1x128xf32>
    %448 = vector.broadcast %447 : vector<1x1x128xf32> to vector<8x8x128xf32>
    %449 = arith.mulf %446, %448 : vector<8x8x128xf32>
    %450 = arith.addf %442, %449 : vector<8x8x128xf32>
    %c24_329 = arith.constant 24 : index
    %c0_330 = arith.constant 0 : index
    %451 = vector.load %arg5[%c24_329, %c0_330] : memref<27x128xf32, #tpu.memory_space<vmem>>, vector<1x128xf32>
    %452 = vector.shape_cast %451 : vector<1x128xf32> to vector<128xf32>
    %c3_331 = arith.constant 3 : index
    %c2_332 = arith.constant 2 : index
    %c0_333 = arith.constant 0 : index
    %c0_334 = arith.constant 0 : index
    %453 = vector.load %arg10[%c3_331, %c2_332, %c0_333, %c0_334] : memref<6x10x10x128xf32, #tpu.memory_space<vmem>>, vector<1x8x8x128xf32>
    %454 = vector.shape_cast %453 : vector<1x8x8x128xf32> to vector<8x8x128xf32>
    %455 = vector.shape_cast %452 : vector<128xf32> to vector<1x1x128xf32>
    %456 = vector.broadcast %455 : vector<1x1x128xf32> to vector<8x8x128xf32>
    %457 = arith.mulf %454, %456 : vector<8x8x128xf32>
    %458 = arith.addf %450, %457 : vector<8x8x128xf32>
    %c25_335 = arith.constant 25 : index
    %c0_336 = arith.constant 0 : index
    %459 = vector.load %arg5[%c25_335, %c0_336] : memref<27x128xf32, #tpu.memory_space<vmem>>, vector<1x128xf32>
    %460 = vector.shape_cast %459 : vector<1x128xf32> to vector<128xf32>
    %c3_337 = arith.constant 3 : index
    %c2_338 = arith.constant 2 : index
    %c1_339 = arith.constant 1 : index
    %c0_340 = arith.constant 0 : index
    %461 = vector.load %arg10[%c3_337, %c2_338, %c1_339, %c0_340] : memref<6x10x10x128xf32, #tpu.memory_space<vmem>>, vector<1x8x8x128xf32>
    %462 = vector.shape_cast %461 : vector<1x8x8x128xf32> to vector<8x8x128xf32>
    %463 = vector.shape_cast %460 : vector<128xf32> to vector<1x1x128xf32>
    %464 = vector.broadcast %463 : vector<1x1x128xf32> to vector<8x8x128xf32>
    %465 = arith.mulf %462, %464 : vector<8x8x128xf32>
    %466 = arith.addf %458, %465 : vector<8x8x128xf32>
    %c26_341 = arith.constant 26 : index
    %c0_342 = arith.constant 0 : index
    %467 = vector.load %arg5[%c26_341, %c0_342] : memref<27x128xf32, #tpu.memory_space<vmem>>, vector<1x128xf32>
    %468 = vector.shape_cast %467 : vector<1x128xf32> to vector<128xf32>
    %c3_343 = arith.constant 3 : index
    %c2_344 = arith.constant 2 : index
    %c2_345 = arith.constant 2 : index
    %c0_346 = arith.constant 0 : index
    %469 = vector.load %arg10[%c3_343, %c2_344, %c2_345, %c0_346] : memref<6x10x10x128xf32, #tpu.memory_space<vmem>>, vector<1x8x8x128xf32>
    %470 = vector.shape_cast %469 : vector<1x8x8x128xf32> to vector<8x8x128xf32>
    %471 = vector.shape_cast %468 : vector<128xf32> to vector<1x1x128xf32>
    %472 = vector.broadcast %471 : vector<1x1x128xf32> to vector<8x8x128xf32>
    %473 = arith.mulf %470, %472 : vector<8x8x128xf32>
    %474 = arith.addf %466, %473 : vector<8x8x128xf32>
    %475 = arith.addf %332, %403 : vector<8x8x128xf32>
    %476 = arith.addf %475, %474 : vector<8x8x128xf32>
    %477 = vector.shape_cast %38 : vector<128xf32> to vector<1x1x128xf32>
    %478 = vector.broadcast %477 : vector<1x1x128xf32> to vector<8x8x128xf32>
    %479 = arith.addf %476, %478 : vector<8x8x128xf32>
    %cst_347 = arith.constant 0.000000e+00 : f32
    %480 = vector.broadcast %cst_347 : f32 to vector<8x8x128xf32>
    %481 = arith.maximumf %479, %480 : vector<8x8x128xf32>
    %c1_348 = arith.constant 1 : index
    %c0_349 = arith.constant 0 : index
    %c0_350 = arith.constant 0 : index
    %c0_351 = arith.constant 0 : index
    %482 = vector.load %arg11[%c1_348, %c0_349, %c0_350, %c0_351] : memref<4x8x8x128xf32, #tpu.memory_space<vmem>>, vector<1x8x8x128xf32>
    %483 = vector.shape_cast %482 : vector<1x8x8x128xf32> to vector<8x8x128xf32>
    %484 = vector.shape_cast %481 : vector<8x8x128xf32> to vector<1x8x8x128xf32>
    tpu.vector_store %arg11[%c1_348, %c0_349, %c0_350, %c0_351], %484 {strides = array<i32>} : memref<4x8x8x128xf32, #tpu.memory_space<vmem>>, vector<1x8x8x128xf32>,
    %c0_352 = arith.constant 0 : index
    %c0_353 = arith.constant 0 : index
    %485 = vector.load %arg5[%c0_352, %c0_353] : memref<27x128xf32, #tpu.memory_space<vmem>>, vector<1x128xf32>
    %486 = vector.shape_cast %485 : vector<1x128xf32> to vector<128xf32>
    %c2_354 = arith.constant 2 : index
    %c0_355 = arith.constant 0 : index
    %c0_356 = arith.constant 0 : index
    %c0_357 = arith.constant 0 : index
    %487 = vector.load %arg10[%c2_354, %c0_355, %c0_356, %c0_357] : memref<6x10x10x128xf32, #tpu.memory_space<vmem>>, vector<1x8x8x128xf32>
    %488 = vector.shape_cast %487 : vector<1x8x8x128xf32> to vector<8x8x128xf32>
    %489 = vector.shape_cast %486 : vector<128xf32> to vector<1x1x128xf32>
    %490 = vector.broadcast %489 : vector<1x1x128xf32> to vector<8x8x128xf32>
    %491 = arith.mulf %488, %490 : vector<8x8x128xf32>
    %c1_358 = arith.constant 1 : index
    %c0_359 = arith.constant 0 : index
    %492 = vector.load %arg5[%c1_358, %c0_359] : memref<27x128xf32, #tpu.memory_space<vmem>>, vector<1x128xf32>
    %493 = vector.shape_cast %492 : vector<1x128xf32> to vector<128xf32>
    %c2_360 = arith.constant 2 : index
    %c0_361 = arith.constant 0 : index
    %c1_362 = arith.constant 1 : index
    %c0_363 = arith.constant 0 : index
    %494 = vector.load %arg10[%c2_360, %c0_361, %c1_362, %c0_363] : memref<6x10x10x128xf32, #tpu.memory_space<vmem>>, vector<1x8x8x128xf32>
    %495 = vector.shape_cast %494 : vector<1x8x8x128xf32> to vector<8x8x128xf32>
    %496 = vector.shape_cast %493 : vector<128xf32> to vector<1x1x128xf32>
    %497 = vector.broadcast %496 : vector<1x1x128xf32> to vector<8x8x128xf32>
    %498 = arith.mulf %495, %497 : vector<8x8x128xf32>
    %499 = arith.addf %491, %498 : vector<8x8x128xf32>
    %c2_364 = arith.constant 2 : index
    %c0_365 = arith.constant 0 : index
    %500 = vector.load %arg5[%c2_364, %c0_365] : memref<27x128xf32, #tpu.memory_space<vmem>>, vector<1x128xf32>
    %501 = vector.shape_cast %500 : vector<1x128xf32> to vector<128xf32>
    %c2_366 = arith.constant 2 : index
    %c0_367 = arith.constant 0 : index
    %c2_368 = arith.constant 2 : index
    %c0_369 = arith.constant 0 : index
    %502 = vector.load %arg10[%c2_366, %c0_367, %c2_368, %c0_369] : memref<6x10x10x128xf32, #tpu.memory_space<vmem>>, vector<1x8x8x128xf32>
    %503 = vector.shape_cast %502 : vector<1x8x8x128xf32> to vector<8x8x128xf32>
    %504 = vector.shape_cast %501 : vector<128xf32> to vector<1x1x128xf32>
    %505 = vector.broadcast %504 : vector<1x1x128xf32> to vector<8x8x128xf32>
    %506 = arith.mulf %503, %505 : vector<8x8x128xf32>
    %507 = arith.addf %499, %506 : vector<8x8x128xf32>
    %c3_370 = arith.constant 3 : index
    %c0_371 = arith.constant 0 : index
    %508 = vector.load %arg5[%c3_370, %c0_371] : memref<27x128xf32, #tpu.memory_space<vmem>>, vector<1x128xf32>
    %509 = vector.shape_cast %508 : vector<1x128xf32> to vector<128xf32>
    %c2_372 = arith.constant 2 : index
    %c1_373 = arith.constant 1 : index
    %c0_374 = arith.constant 0 : index
    %c0_375 = arith.constant 0 : index
    %510 = vector.load %arg10[%c2_372, %c1_373, %c0_374, %c0_375] : memref<6x10x10x128xf32, #tpu.memory_space<vmem>>, vector<1x8x8x128xf32>
    %511 = vector.shape_cast %510 : vector<1x8x8x128xf32> to vector<8x8x128xf32>
    %512 = vector.shape_cast %509 : vector<128xf32> to vector<1x1x128xf32>
    %513 = vector.broadcast %512 : vector<1x1x128xf32> to vector<8x8x128xf32>
    %514 = arith.mulf %511, %513 : vector<8x8x128xf32>
    %515 = arith.addf %507, %514 : vector<8x8x128xf32>
    %c4_376 = arith.constant 4 : index
    %c0_377 = arith.constant 0 : index
    %516 = vector.load %arg5[%c4_376, %c0_377] : memref<27x128xf32, #tpu.memory_space<vmem>>, vector<1x128xf32>
    %517 = vector.shape_cast %516 : vector<1x128xf32> to vector<128xf32>
    %c2_378 = arith.constant 2 : index
    %c1_379 = arith.constant 1 : index
    %c1_380 = arith.constant 1 : index
    %c0_381 = arith.constant 0 : index
    %518 = vector.load %arg10[%c2_378, %c1_379, %c1_380, %c0_381] : memref<6x10x10x128xf32, #tpu.memory_space<vmem>>, vector<1x8x8x128xf32>
    %519 = vector.shape_cast %518 : vector<1x8x8x128xf32> to vector<8x8x128xf32>
    %520 = vector.shape_cast %517 : vector<128xf32> to vector<1x1x128xf32>
    %521 = vector.broadcast %520 : vector<1x1x128xf32> to vector<8x8x128xf32>
    %522 = arith.mulf %519, %521 : vector<8x8x128xf32>
    %523 = arith.addf %515, %522 : vector<8x8x128xf32>
    %c5_382 = arith.constant 5 : index
    %c0_383 = arith.constant 0 : index
    %524 = vector.load %arg5[%c5_382, %c0_383] : memref<27x128xf32, #tpu.memory_space<vmem>>, vector<1x128xf32>
    %525 = vector.shape_cast %524 : vector<1x128xf32> to vector<128xf32>
    %c2_384 = arith.constant 2 : index
    %c1_385 = arith.constant 1 : index
    %c2_386 = arith.constant 2 : index
    %c0_387 = arith.constant 0 : index
    %526 = vector.load %arg10[%c2_384, %c1_385, %c2_386, %c0_387] : memref<6x10x10x128xf32, #tpu.memory_space<vmem>>, vector<1x8x8x128xf32>
    %527 = vector.shape_cast %526 : vector<1x8x8x128xf32> to vector<8x8x128xf32>
    %528 = vector.shape_cast %525 : vector<128xf32> to vector<1x1x128xf32>
    %529 = vector.broadcast %528 : vector<1x1x128xf32> to vector<8x8x128xf32>
    %530 = arith.mulf %527, %529 : vector<8x8x128xf32>
    %531 = arith.addf %523, %530 : vector<8x8x128xf32>
    %c6_388 = arith.constant 6 : index
    %c0_389 = arith.constant 0 : index
    %532 = vector.load %arg5[%c6_388, %c0_389] : memref<27x128xf32, #tpu.memory_space<vmem>>, vector<1x128xf32>
    %533 = vector.shape_cast %532 : vector<1x128xf32> to vector<128xf32>
    %c2_390 = arith.constant 2 : index
    %c2_391 = arith.constant 2 : index
    %c0_392 = arith.constant 0 : index
    %c0_393 = arith.constant 0 : index
    %534 = vector.load %arg10[%c2_390, %c2_391, %c0_392, %c0_393] : memref<6x10x10x128xf32, #tpu.memory_space<vmem>>, vector<1x8x8x128xf32>
    %535 = vector.shape_cast %534 : vector<1x8x8x128xf32> to vector<8x8x128xf32>
    %536 = vector.shape_cast %533 : vector<128xf32> to vector<1x1x128xf32>
    %537 = vector.broadcast %536 : vector<1x1x128xf32> to vector<8x8x128xf32>
    %538 = arith.mulf %535, %537 : vector<8x8x128xf32>
    %539 = arith.addf %531, %538 : vector<8x8x128xf32>
    %c7_394 = arith.constant 7 : index
    %c0_395 = arith.constant 0 : index
    %540 = vector.load %arg5[%c7_394, %c0_395] : memref<27x128xf32, #tpu.memory_space<vmem>>, vector<1x128xf32>
    %541 = vector.shape_cast %540 : vector<1x128xf32> to vector<128xf32>
    %c2_396 = arith.constant 2 : index
    %c2_397 = arith.constant 2 : index
    %c1_398 = arith.constant 1 : index
    %c0_399 = arith.constant 0 : index
    %542 = vector.load %arg10[%c2_396, %c2_397, %c1_398, %c0_399] : memref<6x10x10x128xf32, #tpu.memory_space<vmem>>, vector<1x8x8x128xf32>
    %543 = vector.shape_cast %542 : vector<1x8x8x128xf32> to vector<8x8x128xf32>
    %544 = vector.shape_cast %541 : vector<128xf32> to vector<1x1x128xf32>
    %545 = vector.broadcast %544 : vector<1x1x128xf32> to vector<8x8x128xf32>
    %546 = arith.mulf %543, %545 : vector<8x8x128xf32>
    %547 = arith.addf %539, %546 : vector<8x8x128xf32>
    %c8_400 = arith.constant 8 : index
    %c0_401 = arith.constant 0 : index
    %548 = vector.load %arg5[%c8_400, %c0_401] : memref<27x128xf32, #tpu.memory_space<vmem>>, vector<1x128xf32>
    %549 = vector.shape_cast %548 : vector<1x128xf32> to vector<128xf32>
    %c2_402 = arith.constant 2 : index
    %c2_403 = arith.constant 2 : index
    %c2_404 = arith.constant 2 : index
    %c0_405 = arith.constant 0 : index
    %550 = vector.load %arg10[%c2_402, %c2_403, %c2_404, %c0_405] : memref<6x10x10x128xf32, #tpu.memory_space<vmem>>, vector<1x8x8x128xf32>
    %551 = vector.shape_cast %550 : vector<1x8x8x128xf32> to vector<8x8x128xf32>
    %552 = vector.shape_cast %549 : vector<128xf32> to vector<1x1x128xf32>
    %553 = vector.broadcast %552 : vector<1x1x128xf32> to vector<8x8x128xf32>
    %554 = arith.mulf %551, %553 : vector<8x8x128xf32>
    %555 = arith.addf %547, %554 : vector<8x8x128xf32>
    %c9_406 = arith.constant 9 : index
    %c0_407 = arith.constant 0 : index
    %556 = vector.load %arg5[%c9_406, %c0_407] : memref<27x128xf32, #tpu.memory_space<vmem>>, vector<1x128xf32>
    %557 = vector.shape_cast %556 : vector<1x128xf32> to vector<128xf32>
    %c3_408 = arith.constant 3 : index
    %c0_409 = arith.constant 0 : index
    %c0_410 = arith.constant 0 : index
    %c0_411 = arith.constant 0 : index
    %558 = vector.load %arg10[%c3_408, %c0_409, %c0_410, %c0_411] : memref<6x10x10x128xf32, #tpu.memory_space<vmem>>, vector<1x8x8x128xf32>
    %559 = vector.shape_cast %558 : vector<1x8x8x128xf32> to vector<8x8x128xf32>
    %560 = vector.shape_cast %557 : vector<128xf32> to vector<1x1x128xf32>
    %561 = vector.broadcast %560 : vector<1x1x128xf32> to vector<8x8x128xf32>
    %562 = arith.mulf %559, %561 : vector<8x8x128xf32>
    %c10_412 = arith.constant 10 : index
    %c0_413 = arith.constant 0 : index
    %563 = vector.load %arg5[%c10_412, %c0_413] : memref<27x128xf32, #tpu.memory_space<vmem>>, vector<1x128xf32>
    %564 = vector.shape_cast %563 : vector<1x128xf32> to vector<128xf32>
    %c3_414 = arith.constant 3 : index
    %c0_415 = arith.constant 0 : index
    %c1_416 = arith.constant 1 : index
    %c0_417 = arith.constant 0 : index
    %565 = vector.load %arg10[%c3_414, %c0_415, %c1_416, %c0_417] : memref<6x10x10x128xf32, #tpu.memory_space<vmem>>, vector<1x8x8x128xf32>
    %566 = vector.shape_cast %565 : vector<1x8x8x128xf32> to vector<8x8x128xf32>
    %567 = vector.shape_cast %564 : vector<128xf32> to vector<1x1x128xf32>
    %568 = vector.broadcast %567 : vector<1x1x128xf32> to vector<8x8x128xf32>
    %569 = arith.mulf %566, %568 : vector<8x8x128xf32>
    %570 = arith.addf %562, %569 : vector<8x8x128xf32>
    %c11_418 = arith.constant 11 : index
    %c0_419 = arith.constant 0 : index
    %571 = vector.load %arg5[%c11_418, %c0_419] : memref<27x128xf32, #tpu.memory_space<vmem>>, vector<1x128xf32>
    %572 = vector.shape_cast %571 : vector<1x128xf32> to vector<128xf32>
    %c3_420 = arith.constant 3 : index
    %c0_421 = arith.constant 0 : index
    %c2_422 = arith.constant 2 : index
    %c0_423 = arith.constant 0 : index
    %573 = vector.load %arg10[%c3_420, %c0_421, %c2_422, %c0_423] : memref<6x10x10x128xf32, #tpu.memory_space<vmem>>, vector<1x8x8x128xf32>
    %574 = vector.shape_cast %573 : vector<1x8x8x128xf32> to vector<8x8x128xf32>
    %575 = vector.shape_cast %572 : vector<128xf32> to vector<1x1x128xf32>
    %576 = vector.broadcast %575 : vector<1x1x128xf32> to vector<8x8x128xf32>
    %577 = arith.mulf %574, %576 : vector<8x8x128xf32>
    %578 = arith.addf %570, %577 : vector<8x8x128xf32>
    %c12_424 = arith.constant 12 : index
    %c0_425 = arith.constant 0 : index
    %579 = vector.load %arg5[%c12_424, %c0_425] : memref<27x128xf32, #tpu.memory_space<vmem>>, vector<1x128xf32>
    %580 = vector.shape_cast %579 : vector<1x128xf32> to vector<128xf32>
    %c3_426 = arith.constant 3 : index
    %c1_427 = arith.constant 1 : index
    %c0_428 = arith.constant 0 : index
    %c0_429 = arith.constant 0 : index
    %581 = vector.load %arg10[%c3_426, %c1_427, %c0_428, %c0_429] : memref<6x10x10x128xf32, #tpu.memory_space<vmem>>, vector<1x8x8x128xf32>
    %582 = vector.shape_cast %581 : vector<1x8x8x128xf32> to vector<8x8x128xf32>
    %583 = vector.shape_cast %580 : vector<128xf32> to vector<1x1x128xf32>
    %584 = vector.broadcast %583 : vector<1x1x128xf32> to vector<8x8x128xf32>
    %585 = arith.mulf %582, %584 : vector<8x8x128xf32>
    %586 = arith.addf %578, %585 : vector<8x8x128xf32>
    %c13_430 = arith.constant 13 : index
    %c0_431 = arith.constant 0 : index
    %587 = vector.load %arg5[%c13_430, %c0_431] : memref<27x128xf32, #tpu.memory_space<vmem>>, vector<1x128xf32>
    %588 = vector.shape_cast %587 : vector<1x128xf32> to vector<128xf32>
    %c3_432 = arith.constant 3 : index
    %c1_433 = arith.constant 1 : index
    %c1_434 = arith.constant 1 : index
    %c0_435 = arith.constant 0 : index
    %589 = vector.load %arg10[%c3_432, %c1_433, %c1_434, %c0_435] : memref<6x10x10x128xf32, #tpu.memory_space<vmem>>, vector<1x8x8x128xf32>
    %590 = vector.shape_cast %589 : vector<1x8x8x128xf32> to vector<8x8x128xf32>
    %591 = vector.shape_cast %588 : vector<128xf32> to vector<1x1x128xf32>
    %592 = vector.broadcast %591 : vector<1x1x128xf32> to vector<8x8x128xf32>
    %593 = arith.mulf %590, %592 : vector<8x8x128xf32>
    %594 = arith.addf %586, %593 : vector<8x8x128xf32>
    %c14_436 = arith.constant 14 : index
    %c0_437 = arith.constant 0 : index
    %595 = vector.load %arg5[%c14_436, %c0_437] : memref<27x128xf32, #tpu.memory_space<vmem>>, vector<1x128xf32>
    %596 = vector.shape_cast %595 : vector<1x128xf32> to vector<128xf32>
    %c3_438 = arith.constant 3 : index
    %c1_439 = arith.constant 1 : index
    %c2_440 = arith.constant 2 : index
    %c0_441 = arith.constant 0 : index
    %597 = vector.load %arg10[%c3_438, %c1_439, %c2_440, %c0_441] : memref<6x10x10x128xf32, #tpu.memory_space<vmem>>, vector<1x8x8x128xf32>
    %598 = vector.shape_cast %597 : vector<1x8x8x128xf32> to vector<8x8x128xf32>
    %599 = vector.shape_cast %596 : vector<128xf32> to vector<1x1x128xf32>
    %600 = vector.broadcast %599 : vector<1x1x128xf32> to vector<8x8x128xf32>
    %601 = arith.mulf %598, %600 : vector<8x8x128xf32>
    %602 = arith.addf %594, %601 : vector<8x8x128xf32>
    %c15_442 = arith.constant 15 : index
    %c0_443 = arith.constant 0 : index
    %603 = vector.load %arg5[%c15_442, %c0_443] : memref<27x128xf32, #tpu.memory_space<vmem>>, vector<1x128xf32>
    %604 = vector.shape_cast %603 : vector<1x128xf32> to vector<128xf32>
    %c3_444 = arith.constant 3 : index
    %c2_445 = arith.constant 2 : index
    %c0_446 = arith.constant 0 : index
    %c0_447 = arith.constant 0 : index
    %605 = vector.load %arg10[%c3_444, %c2_445, %c0_446, %c0_447] : memref<6x10x10x128xf32, #tpu.memory_space<vmem>>, vector<1x8x8x128xf32>
    %606 = vector.shape_cast %605 : vector<1x8x8x128xf32> to vector<8x8x128xf32>
    %607 = vector.shape_cast %604 : vector<128xf32> to vector<1x1x128xf32>
    %608 = vector.broadcast %607 : vector<1x1x128xf32> to vector<8x8x128xf32>
    %609 = arith.mulf %606, %608 : vector<8x8x128xf32>
    %610 = arith.addf %602, %609 : vector<8x8x128xf32>
    %c16_448 = arith.constant 16 : index
    %c0_449 = arith.constant 0 : index
    %611 = vector.load %arg5[%c16_448, %c0_449] : memref<27x128xf32, #tpu.memory_space<vmem>>, vector<1x128xf32>
    %612 = vector.shape_cast %611 : vector<1x128xf32> to vector<128xf32>
    %c3_450 = arith.constant 3 : index
    %c2_451 = arith.constant 2 : index
    %c1_452 = arith.constant 1 : index
    %c0_453 = arith.constant 0 : index
    %613 = vector.load %arg10[%c3_450, %c2_451, %c1_452, %c0_453] : memref<6x10x10x128xf32, #tpu.memory_space<vmem>>, vector<1x8x8x128xf32>
    %614 = vector.shape_cast %613 : vector<1x8x8x128xf32> to vector<8x8x128xf32>
    %615 = vector.shape_cast %612 : vector<128xf32> to vector<1x1x128xf32>
    %616 = vector.broadcast %615 : vector<1x1x128xf32> to vector<8x8x128xf32>
    %617 = arith.mulf %614, %616 : vector<8x8x128xf32>
    %618 = arith.addf %610, %617 : vector<8x8x128xf32>
    %c17_454 = arith.constant 17 : index
    %c0_455 = arith.constant 0 : index
    %619 = vector.load %arg5[%c17_454, %c0_455] : memref<27x128xf32, #tpu.memory_space<vmem>>, vector<1x128xf32>
    %620 = vector.shape_cast %619 : vector<1x128xf32> to vector<128xf32>
    %c3_456 = arith.constant 3 : index
    %c2_457 = arith.constant 2 : index
    %c2_458 = arith.constant 2 : index
    %c0_459 = arith.constant 0 : index
    %621 = vector.load %arg10[%c3_456, %c2_457, %c2_458, %c0_459] : memref<6x10x10x128xf32, #tpu.memory_space<vmem>>, vector<1x8x8x128xf32>
    %622 = vector.shape_cast %621 : vector<1x8x8x128xf32> to vector<8x8x128xf32>
    %623 = vector.shape_cast %620 : vector<128xf32> to vector<1x1x128xf32>
    %624 = vector.broadcast %623 : vector<1x1x128xf32> to vector<8x8x128xf32>
    %625 = arith.mulf %622, %624 : vector<8x8x128xf32>
    %626 = arith.addf %618, %625 : vector<8x8x128xf32>
    %c18_460 = arith.constant 18 : index
    %c0_461 = arith.constant 0 : index
    %627 = vector.load %arg5[%c18_460, %c0_461] : memref<27x128xf32, #tpu.memory_space<vmem>>, vector<1x128xf32>
    %628 = vector.shape_cast %627 : vector<1x128xf32> to vector<128xf32>
    %c4_462 = arith.constant 4 : index
    %c0_463 = arith.constant 0 : index
    %c0_464 = arith.constant 0 : index
    %c0_465 = arith.constant 0 : index
    %629 = vector.load %arg10[%c4_462, %c0_463, %c0_464, %c0_465] : memref<6x10x10x128xf32, #tpu.memory_space<vmem>>, vector<1x8x8x128xf32>
    %630 = vector.shape_cast %629 : vector<1x8x8x128xf32> to vector<8x8x128xf32>
    %631 = vector.shape_cast %628 : vector<128xf32> to vector<1x1x128xf32>
    %632 = vector.broadcast %631 : vector<1x1x128xf32> to vector<8x8x128xf32>
    %633 = arith.mulf %630, %632 : vector<8x8x128xf32>
    %c19_466 = arith.constant 19 : index
    %c0_467 = arith.constant 0 : index
    %634 = vector.load %arg5[%c19_466, %c0_467] : memref<27x128xf32, #tpu.memory_space<vmem>>, vector<1x128xf32>
    %635 = vector.shape_cast %634 : vector<1x128xf32> to vector<128xf32>
    %c4_468 = arith.constant 4 : index
    %c0_469 = arith.constant 0 : index
    %c1_470 = arith.constant 1 : index
    %c0_471 = arith.constant 0 : index
    %636 = vector.load %arg10[%c4_468, %c0_469, %c1_470, %c0_471] : memref<6x10x10x128xf32, #tpu.memory_space<vmem>>, vector<1x8x8x128xf32>
    %637 = vector.shape_cast %636 : vector<1x8x8x128xf32> to vector<8x8x128xf32>
    %638 = vector.shape_cast %635 : vector<128xf32> to vector<1x1x128xf32>
    %639 = vector.broadcast %638 : vector<1x1x128xf32> to vector<8x8x128xf32>
    %640 = arith.mulf %637, %639 : vector<8x8x128xf32>
    %641 = arith.addf %633, %640 : vector<8x8x128xf32>
    %c20_472 = arith.constant 20 : index
    %c0_473 = arith.constant 0 : index
    %642 = vector.load %arg5[%c20_472, %c0_473] : memref<27x128xf32, #tpu.memory_space<vmem>>, vector<1x128xf32>
    %643 = vector.shape_cast %642 : vector<1x128xf32> to vector<128xf32>
    %c4_474 = arith.constant 4 : index
    %c0_475 = arith.constant 0 : index
    %c2_476 = arith.constant 2 : index
    %c0_477 = arith.constant 0 : index
    %644 = vector.load %arg10[%c4_474, %c0_475, %c2_476, %c0_477] : memref<6x10x10x128xf32, #tpu.memory_space<vmem>>, vector<1x8x8x128xf32>
    %645 = vector.shape_cast %644 : vector<1x8x8x128xf32> to vector<8x8x128xf32>
    %646 = vector.shape_cast %643 : vector<128xf32> to vector<1x1x128xf32>
    %647 = vector.broadcast %646 : vector<1x1x128xf32> to vector<8x8x128xf32>
    %648 = arith.mulf %645, %647 : vector<8x8x128xf32>
    %649 = arith.addf %641, %648 : vector<8x8x128xf32>
    %c21_478 = arith.constant 21 : index
    %c0_479 = arith.constant 0 : index
    %650 = vector.load %arg5[%c21_478, %c0_479] : memref<27x128xf32, #tpu.memory_space<vmem>>, vector<1x128xf32>
    %651 = vector.shape_cast %650 : vector<1x128xf32> to vector<128xf32>
    %c4_480 = arith.constant 4 : index
    %c1_481 = arith.constant 1 : index
    %c0_482 = arith.constant 0 : index
    %c0_483 = arith.constant 0 : index
    %652 = vector.load %arg10[%c4_480, %c1_481, %c0_482, %c0_483] : memref<6x10x10x128xf32, #tpu.memory_space<vmem>>, vector<1x8x8x128xf32>
    %653 = vector.shape_cast %652 : vector<1x8x8x128xf32> to vector<8x8x128xf32>
    %654 = vector.shape_cast %651 : vector<128xf32> to vector<1x1x128xf32>
    %655 = vector.broadcast %654 : vector<1x1x128xf32> to vector<8x8x128xf32>
    %656 = arith.mulf %653, %655 : vector<8x8x128xf32>
    %657 = arith.addf %649, %656 : vector<8x8x128xf32>
    %c22_484 = arith.constant 22 : index
    %c0_485 = arith.constant 0 : index
    %658 = vector.load %arg5[%c22_484, %c0_485] : memref<27x128xf32, #tpu.memory_space<vmem>>, vector<1x128xf32>
    %659 = vector.shape_cast %658 : vector<1x128xf32> to vector<128xf32>
    %c4_486 = arith.constant 4 : index
    %c1_487 = arith.constant 1 : index
    %c1_488 = arith.constant 1 : index
    %c0_489 = arith.constant 0 : index
    %660 = vector.load %arg10[%c4_486, %c1_487, %c1_488, %c0_489] : memref<6x10x10x128xf32, #tpu.memory_space<vmem>>, vector<1x8x8x128xf32>
    %661 = vector.shape_cast %660 : vector<1x8x8x128xf32> to vector<8x8x128xf32>
    %662 = vector.shape_cast %659 : vector<128xf32> to vector<1x1x128xf32>
    %663 = vector.broadcast %662 : vector<1x1x128xf32> to vector<8x8x128xf32>
    %664 = arith.mulf %661, %663 : vector<8x8x128xf32>
    %665 = arith.addf %657, %664 : vector<8x8x128xf32>
    %c23_490 = arith.constant 23 : index
    %c0_491 = arith.constant 0 : index
    %666 = vector.load %arg5[%c23_490, %c0_491] : memref<27x128xf32, #tpu.memory_space<vmem>>, vector<1x128xf32>
    %667 = vector.shape_cast %666 : vector<1x128xf32> to vector<128xf32>
    %c4_492 = arith.constant 4 : index
    %c1_493 = arith.constant 1 : index
    %c2_494 = arith.constant 2 : index
    %c0_495 = arith.constant 0 : index
    %668 = vector.load %arg10[%c4_492, %c1_493, %c2_494, %c0_495] : memref<6x10x10x128xf32, #tpu.memory_space<vmem>>, vector<1x8x8x128xf32>
    %669 = vector.shape_cast %668 : vector<1x8x8x128xf32> to vector<8x8x128xf32>
    %670 = vector.shape_cast %667 : vector<128xf32> to vector<1x1x128xf32>
    %671 = vector.broadcast %670 : vector<1x1x128xf32> to vector<8x8x128xf32>
    %672 = arith.mulf %669, %671 : vector<8x8x128xf32>
    %673 = arith.addf %665, %672 : vector<8x8x128xf32>
    %c24_496 = arith.constant 24 : index
    %c0_497 = arith.constant 0 : index
    %674 = vector.load %arg5[%c24_496, %c0_497] : memref<27x128xf32, #tpu.memory_space<vmem>>, vector<1x128xf32>
    %675 = vector.shape_cast %674 : vector<1x128xf32> to vector<128xf32>
    %c4_498 = arith.constant 4 : index
    %c2_499 = arith.constant 2 : index
    %c0_500 = arith.constant 0 : index
    %c0_501 = arith.constant 0 : index
    %676 = vector.load %arg10[%c4_498, %c2_499, %c0_500, %c0_501] : memref<6x10x10x128xf32, #tpu.memory_space<vmem>>, vector<1x8x8x128xf32>
    %677 = vector.shape_cast %676 : vector<1x8x8x128xf32> to vector<8x8x128xf32>
    %678 = vector.shape_cast %675 : vector<128xf32> to vector<1x1x128xf32>
    %679 = vector.broadcast %678 : vector<1x1x128xf32> to vector<8x8x128xf32>
    %680 = arith.mulf %677, %679 : vector<8x8x128xf32>
    %681 = arith.addf %673, %680 : vector<8x8x128xf32>
    %c25_502 = arith.constant 25 : index
    %c0_503 = arith.constant 0 : index
    %682 = vector.load %arg5[%c25_502, %c0_503] : memref<27x128xf32, #tpu.memory_space<vmem>>, vector<1x128xf32>
    %683 = vector.shape_cast %682 : vector<1x128xf32> to vector<128xf32>
    %c4_504 = arith.constant 4 : index
    %c2_505 = arith.constant 2 : index
    %c1_506 = arith.constant 1 : index
    %c0_507 = arith.constant 0 : index
    %684 = vector.load %arg10[%c4_504, %c2_505, %c1_506, %c0_507] : memref<6x10x10x128xf32, #tpu.memory_space<vmem>>, vector<1x8x8x128xf32>
    %685 = vector.shape_cast %684 : vector<1x8x8x128xf32> to vector<8x8x128xf32>
    %686 = vector.shape_cast %683 : vector<128xf32> to vector<1x1x128xf32>
    %687 = vector.broadcast %686 : vector<1x1x128xf32> to vector<8x8x128xf32>
    %688 = arith.mulf %685, %687 : vector<8x8x128xf32>
    %689 = arith.addf %681, %688 : vector<8x8x128xf32>
    %c26_508 = arith.constant 26 : index
    %c0_509 = arith.constant 0 : index
    %690 = vector.load %arg5[%c26_508, %c0_509] : memref<27x128xf32, #tpu.memory_space<vmem>>, vector<1x128xf32>
    %691 = vector.shape_cast %690 : vector<1x128xf32> to vector<128xf32>
    %c4_510 = arith.constant 4 : index
    %c2_511 = arith.constant 2 : index
    %c2_512 = arith.constant 2 : index
    %c0_513 = arith.constant 0 : index
    %692 = vector.load %arg10[%c4_510, %c2_511, %c2_512, %c0_513] : memref<6x10x10x128xf32, #tpu.memory_space<vmem>>, vector<1x8x8x128xf32>
    %693 = vector.shape_cast %692 : vector<1x8x8x128xf32> to vector<8x8x128xf32>
    %694 = vector.shape_cast %691 : vector<128xf32> to vector<1x1x128xf32>
    %695 = vector.broadcast %694 : vector<1x1x128xf32> to vector<8x8x128xf32>
    %696 = arith.mulf %693, %695 : vector<8x8x128xf32>
    %697 = arith.addf %689, %696 : vector<8x8x128xf32>
    %698 = arith.addf %555, %626 : vector<8x8x128xf32>
    %699 = arith.addf %698, %697 : vector<8x8x128xf32>
    %700 = vector.shape_cast %38 : vector<128xf32> to vector<1x1x128xf32>
    %701 = vector.broadcast %700 : vector<1x1x128xf32> to vector<8x8x128xf32>
    %702 = arith.addf %699, %701 : vector<8x8x128xf32>
    %cst_514 = arith.constant 0.000000e+00 : f32
    %703 = vector.broadcast %cst_514 : f32 to vector<8x8x128xf32>
    %704 = arith.maximumf %702, %703 : vector<8x8x128xf32>
    %c2_515 = arith.constant 2 : index
    %c0_516 = arith.constant 0 : index
    %c0_517 = arith.constant 0 : index
    %c0_518 = arith.constant 0 : index
    %705 = vector.load %arg11[%c2_515, %c0_516, %c0_517, %c0_518] : memref<4x8x8x128xf32, #tpu.memory_space<vmem>>, vector<1x8x8x128xf32>
    %706 = vector.shape_cast %705 : vector<1x8x8x128xf32> to vector<8x8x128xf32>
    %707 = vector.shape_cast %704 : vector<8x8x128xf32> to vector<1x8x8x128xf32>
    tpu.vector_store %arg11[%c2_515, %c0_516, %c0_517, %c0_518], %707 {strides = array<i32>} : memref<4x8x8x128xf32, #tpu.memory_space<vmem>>, vector<1x8x8x128xf32>,
    %c0_519 = arith.constant 0 : index
    %c0_520 = arith.constant 0 : index
    %708 = vector.load %arg5[%c0_519, %c0_520] : memref<27x128xf32, #tpu.memory_space<vmem>>, vector<1x128xf32>
    %709 = vector.shape_cast %708 : vector<1x128xf32> to vector<128xf32>
    %c3_521 = arith.constant 3 : index
    %c0_522 = arith.constant 0 : index
    %c0_523 = arith.constant 0 : index
    %c0_524 = arith.constant 0 : index
    %710 = vector.load %arg10[%c3_521, %c0_522, %c0_523, %c0_524] : memref<6x10x10x128xf32, #tpu.memory_space<vmem>>, vector<1x8x8x128xf32>
    %711 = vector.shape_cast %710 : vector<1x8x8x128xf32> to vector<8x8x128xf32>
    %712 = vector.shape_cast %709 : vector<128xf32> to vector<1x1x128xf32>
    %713 = vector.broadcast %712 : vector<1x1x128xf32> to vector<8x8x128xf32>
    %714 = arith.mulf %711, %713 : vector<8x8x128xf32>
    %c1_525 = arith.constant 1 : index
    %c0_526 = arith.constant 0 : index
    %715 = vector.load %arg5[%c1_525, %c0_526] : memref<27x128xf32, #tpu.memory_space<vmem>>, vector<1x128xf32>
    %716 = vector.shape_cast %715 : vector<1x128xf32> to vector<128xf32>
    %c3_527 = arith.constant 3 : index
    %c0_528 = arith.constant 0 : index
    %c1_529 = arith.constant 1 : index
    %c0_530 = arith.constant 0 : index
    %717 = vector.load %arg10[%c3_527, %c0_528, %c1_529, %c0_530] : memref<6x10x10x128xf32, #tpu.memory_space<vmem>>, vector<1x8x8x128xf32>
    %718 = vector.shape_cast %717 : vector<1x8x8x128xf32> to vector<8x8x128xf32>
    %719 = vector.shape_cast %716 : vector<128xf32> to vector<1x1x128xf32>
    %720 = vector.broadcast %719 : vector<1x1x128xf32> to vector<8x8x128xf32>
    %721 = arith.mulf %718, %720 : vector<8x8x128xf32>
    %722 = arith.addf %714, %721 : vector<8x8x128xf32>
    %c2_531 = arith.constant 2 : index
    %c0_532 = arith.constant 0 : index
    %723 = vector.load %arg5[%c2_531, %c0_532] : memref<27x128xf32, #tpu.memory_space<vmem>>, vector<1x128xf32>
    %724 = vector.shape_cast %723 : vector<1x128xf32> to vector<128xf32>
    %c3_533 = arith.constant 3 : index
    %c0_534 = arith.constant 0 : index
    %c2_535 = arith.constant 2 : index
    %c0_536 = arith.constant 0 : index
    %725 = vector.load %arg10[%c3_533, %c0_534, %c2_535, %c0_536] : memref<6x10x10x128xf32, #tpu.memory_space<vmem>>, vector<1x8x8x128xf32>
    %726 = vector.shape_cast %725 : vector<1x8x8x128xf32> to vector<8x8x128xf32>
    %727 = vector.shape_cast %724 : vector<128xf32> to vector<1x1x128xf32>
    %728 = vector.broadcast %727 : vector<1x1x128xf32> to vector<8x8x128xf32>
    %729 = arith.mulf %726, %728 : vector<8x8x128xf32>
    %730 = arith.addf %722, %729 : vector<8x8x128xf32>
    %c3_537 = arith.constant 3 : index
    %c0_538 = arith.constant 0 : index
    %731 = vector.load %arg5[%c3_537, %c0_538] : memref<27x128xf32, #tpu.memory_space<vmem>>, vector<1x128xf32>
    %732 = vector.shape_cast %731 : vector<1x128xf32> to vector<128xf32>
    %c3_539 = arith.constant 3 : index
    %c1_540 = arith.constant 1 : index
    %c0_541 = arith.constant 0 : index
    %c0_542 = arith.constant 0 : index
    %733 = vector.load %arg10[%c3_539, %c1_540, %c0_541, %c0_542] : memref<6x10x10x128xf32, #tpu.memory_space<vmem>>, vector<1x8x8x128xf32>
    %734 = vector.shape_cast %733 : vector<1x8x8x128xf32> to vector<8x8x128xf32>
    %735 = vector.shape_cast %732 : vector<128xf32> to vector<1x1x128xf32>
    %736 = vector.broadcast %735 : vector<1x1x128xf32> to vector<8x8x128xf32>
    %737 = arith.mulf %734, %736 : vector<8x8x128xf32>
    %738 = arith.addf %730, %737 : vector<8x8x128xf32>
    %c4_543 = arith.constant 4 : index
    %c0_544 = arith.constant 0 : index
    %739 = vector.load %arg5[%c4_543, %c0_544] : memref<27x128xf32, #tpu.memory_space<vmem>>, vector<1x128xf32>
    %740 = vector.shape_cast %739 : vector<1x128xf32> to vector<128xf32>
    %c3_545 = arith.constant 3 : index
    %c1_546 = arith.constant 1 : index
    %c1_547 = arith.constant 1 : index
    %c0_548 = arith.constant 0 : index
    %741 = vector.load %arg10[%c3_545, %c1_546, %c1_547, %c0_548] : memref<6x10x10x128xf32, #tpu.memory_space<vmem>>, vector<1x8x8x128xf32>
    %742 = vector.shape_cast %741 : vector<1x8x8x128xf32> to vector<8x8x128xf32>
    %743 = vector.shape_cast %740 : vector<128xf32> to vector<1x1x128xf32>
    %744 = vector.broadcast %743 : vector<1x1x128xf32> to vector<8x8x128xf32>
    %745 = arith.mulf %742, %744 : vector<8x8x128xf32>
    %746 = arith.addf %738, %745 : vector<8x8x128xf32>
    %c5_549 = arith.constant 5 : index
    %c0_550 = arith.constant 0 : index
    %747 = vector.load %arg5[%c5_549, %c0_550] : memref<27x128xf32, #tpu.memory_space<vmem>>, vector<1x128xf32>
    %748 = vector.shape_cast %747 : vector<1x128xf32> to vector<128xf32>
    %c3_551 = arith.constant 3 : index
    %c1_552 = arith.constant 1 : index
    %c2_553 = arith.constant 2 : index
    %c0_554 = arith.constant 0 : index
    %749 = vector.load %arg10[%c3_551, %c1_552, %c2_553, %c0_554] : memref<6x10x10x128xf32, #tpu.memory_space<vmem>>, vector<1x8x8x128xf32>
    %750 = vector.shape_cast %749 : vector<1x8x8x128xf32> to vector<8x8x128xf32>
    %751 = vector.shape_cast %748 : vector<128xf32> to vector<1x1x128xf32>
    %752 = vector.broadcast %751 : vector<1x1x128xf32> to vector<8x8x128xf32>
    %753 = arith.mulf %750, %752 : vector<8x8x128xf32>
    %754 = arith.addf %746, %753 : vector<8x8x128xf32>
    %c6_555 = arith.constant 6 : index
    %c0_556 = arith.constant 0 : index
    %755 = vector.load %arg5[%c6_555, %c0_556] : memref<27x128xf32, #tpu.memory_space<vmem>>, vector<1x128xf32>
    %756 = vector.shape_cast %755 : vector<1x128xf32> to vector<128xf32>
    %c3_557 = arith.constant 3 : index
    %c2_558 = arith.constant 2 : index
    %c0_559 = arith.constant 0 : index
    %c0_560 = arith.constant 0 : index
    %757 = vector.load %arg10[%c3_557, %c2_558, %c0_559, %c0_560] : memref<6x10x10x128xf32, #tpu.memory_space<vmem>>, vector<1x8x8x128xf32>
    %758 = vector.shape_cast %757 : vector<1x8x8x128xf32> to vector<8x8x128xf32>
    %759 = vector.shape_cast %756 : vector<128xf32> to vector<1x1x128xf32>
    %760 = vector.broadcast %759 : vector<1x1x128xf32> to vector<8x8x128xf32>
    %761 = arith.mulf %758, %760 : vector<8x8x128xf32>
    %762 = arith.addf %754, %761 : vector<8x8x128xf32>
    %c7_561 = arith.constant 7 : index
    %c0_562 = arith.constant 0 : index
    %763 = vector.load %arg5[%c7_561, %c0_562] : memref<27x128xf32, #tpu.memory_space<vmem>>, vector<1x128xf32>
    %764 = vector.shape_cast %763 : vector<1x128xf32> to vector<128xf32>
    %c3_563 = arith.constant 3 : index
    %c2_564 = arith.constant 2 : index
    %c1_565 = arith.constant 1 : index
    %c0_566 = arith.constant 0 : index
    %765 = vector.load %arg10[%c3_563, %c2_564, %c1_565, %c0_566] : memref<6x10x10x128xf32, #tpu.memory_space<vmem>>, vector<1x8x8x128xf32>
    %766 = vector.shape_cast %765 : vector<1x8x8x128xf32> to vector<8x8x128xf32>
    %767 = vector.shape_cast %764 : vector<128xf32> to vector<1x1x128xf32>
    %768 = vector.broadcast %767 : vector<1x1x128xf32> to vector<8x8x128xf32>
    %769 = arith.mulf %766, %768 : vector<8x8x128xf32>
    %770 = arith.addf %762, %769 : vector<8x8x128xf32>
    %c8_567 = arith.constant 8 : index
    %c0_568 = arith.constant 0 : index
    %771 = vector.load %arg5[%c8_567, %c0_568] : memref<27x128xf32, #tpu.memory_space<vmem>>, vector<1x128xf32>
    %772 = vector.shape_cast %771 : vector<1x128xf32> to vector<128xf32>
    %c3_569 = arith.constant 3 : index
    %c2_570 = arith.constant 2 : index
    %c2_571 = arith.constant 2 : index
    %c0_572 = arith.constant 0 : index
    %773 = vector.load %arg10[%c3_569, %c2_570, %c2_571, %c0_572] : memref<6x10x10x128xf32, #tpu.memory_space<vmem>>, vector<1x8x8x128xf32>
    %774 = vector.shape_cast %773 : vector<1x8x8x128xf32> to vector<8x8x128xf32>
    %775 = vector.shape_cast %772 : vector<128xf32> to vector<1x1x128xf32>
    %776 = vector.broadcast %775 : vector<1x1x128xf32> to vector<8x8x128xf32>
    %777 = arith.mulf %774, %776 : vector<8x8x128xf32>
    %778 = arith.addf %770, %777 : vector<8x8x128xf32>
    %c9_573 = arith.constant 9 : index
    %c0_574 = arith.constant 0 : index
    %779 = vector.load %arg5[%c9_573, %c0_574] : memref<27x128xf32, #tpu.memory_space<vmem>>, vector<1x128xf32>
    %780 = vector.shape_cast %779 : vector<1x128xf32> to vector<128xf32>
    %c4_575 = arith.constant 4 : index
    %c0_576 = arith.constant 0 : index
    %c0_577 = arith.constant 0 : index
    %c0_578 = arith.constant 0 : index
    %781 = vector.load %arg10[%c4_575, %c0_576, %c0_577, %c0_578] : memref<6x10x10x128xf32, #tpu.memory_space<vmem>>, vector<1x8x8x128xf32>
    %782 = vector.shape_cast %781 : vector<1x8x8x128xf32> to vector<8x8x128xf32>
    %783 = vector.shape_cast %780 : vector<128xf32> to vector<1x1x128xf32>
    %784 = vector.broadcast %783 : vector<1x1x128xf32> to vector<8x8x128xf32>
    %785 = arith.mulf %782, %784 : vector<8x8x128xf32>
    %c10_579 = arith.constant 10 : index
    %c0_580 = arith.constant 0 : index
    %786 = vector.load %arg5[%c10_579, %c0_580] : memref<27x128xf32, #tpu.memory_space<vmem>>, vector<1x128xf32>
    %787 = vector.shape_cast %786 : vector<1x128xf32> to vector<128xf32>
    %c4_581 = arith.constant 4 : index
    %c0_582 = arith.constant 0 : index
    %c1_583 = arith.constant 1 : index
    %c0_584 = arith.constant 0 : index
    %788 = vector.load %arg10[%c4_581, %c0_582, %c1_583, %c0_584] : memref<6x10x10x128xf32, #tpu.memory_space<vmem>>, vector<1x8x8x128xf32>
    %789 = vector.shape_cast %788 : vector<1x8x8x128xf32> to vector<8x8x128xf32>
    %790 = vector.shape_cast %787 : vector<128xf32> to vector<1x1x128xf32>
    %791 = vector.broadcast %790 : vector<1x1x128xf32> to vector<8x8x128xf32>
    %792 = arith.mulf %789, %791 : vector<8x8x128xf32>
    %793 = arith.addf %785, %792 : vector<8x8x128xf32>
    %c11_585 = arith.constant 11 : index
    %c0_586 = arith.constant 0 : index
    %794 = vector.load %arg5[%c11_585, %c0_586] : memref<27x128xf32, #tpu.memory_space<vmem>>, vector<1x128xf32>
    %795 = vector.shape_cast %794 : vector<1x128xf32> to vector<128xf32>
    %c4_587 = arith.constant 4 : index
    %c0_588 = arith.constant 0 : index
    %c2_589 = arith.constant 2 : index
    %c0_590 = arith.constant 0 : index
    %796 = vector.load %arg10[%c4_587, %c0_588, %c2_589, %c0_590] : memref<6x10x10x128xf32, #tpu.memory_space<vmem>>, vector<1x8x8x128xf32>
    %797 = vector.shape_cast %796 : vector<1x8x8x128xf32> to vector<8x8x128xf32>
    %798 = vector.shape_cast %795 : vector<128xf32> to vector<1x1x128xf32>
    %799 = vector.broadcast %798 : vector<1x1x128xf32> to vector<8x8x128xf32>
    %800 = arith.mulf %797, %799 : vector<8x8x128xf32>
    %801 = arith.addf %793, %800 : vector<8x8x128xf32>
    %c12_591 = arith.constant 12 : index
    %c0_592 = arith.constant 0 : index
    %802 = vector.load %arg5[%c12_591, %c0_592] : memref<27x128xf32, #tpu.memory_space<vmem>>, vector<1x128xf32>
    %803 = vector.shape_cast %802 : vector<1x128xf32> to vector<128xf32>
    %c4_593 = arith.constant 4 : index
    %c1_594 = arith.constant 1 : index
    %c0_595 = arith.constant 0 : index
    %c0_596 = arith.constant 0 : index
    %804 = vector.load %arg10[%c4_593, %c1_594, %c0_595, %c0_596] : memref<6x10x10x128xf32, #tpu.memory_space<vmem>>, vector<1x8x8x128xf32>
    %805 = vector.shape_cast %804 : vector<1x8x8x128xf32> to vector<8x8x128xf32>
    %806 = vector.shape_cast %803 : vector<128xf32> to vector<1x1x128xf32>
    %807 = vector.broadcast %806 : vector<1x1x128xf32> to vector<8x8x128xf32>
    %808 = arith.mulf %805, %807 : vector<8x8x128xf32>
    %809 = arith.addf %801, %808 : vector<8x8x128xf32>
    %c13_597 = arith.constant 13 : index
    %c0_598 = arith.constant 0 : index
    %810 = vector.load %arg5[%c13_597, %c0_598] : memref<27x128xf32, #tpu.memory_space<vmem>>, vector<1x128xf32>
    %811 = vector.shape_cast %810 : vector<1x128xf32> to vector<128xf32>
    %c4_599 = arith.constant 4 : index
    %c1_600 = arith.constant 1 : index
    %c1_601 = arith.constant 1 : index
    %c0_602 = arith.constant 0 : index
    %812 = vector.load %arg10[%c4_599, %c1_600, %c1_601, %c0_602] : memref<6x10x10x128xf32, #tpu.memory_space<vmem>>, vector<1x8x8x128xf32>
    %813 = vector.shape_cast %812 : vector<1x8x8x128xf32> to vector<8x8x128xf32>
    %814 = vector.shape_cast %811 : vector<128xf32> to vector<1x1x128xf32>
    %815 = vector.broadcast %814 : vector<1x1x128xf32> to vector<8x8x128xf32>
    %816 = arith.mulf %813, %815 : vector<8x8x128xf32>
    %817 = arith.addf %809, %816 : vector<8x8x128xf32>
    %c14_603 = arith.constant 14 : index
    %c0_604 = arith.constant 0 : index
    %818 = vector.load %arg5[%c14_603, %c0_604] : memref<27x128xf32, #tpu.memory_space<vmem>>, vector<1x128xf32>
    %819 = vector.shape_cast %818 : vector<1x128xf32> to vector<128xf32>
    %c4_605 = arith.constant 4 : index
    %c1_606 = arith.constant 1 : index
    %c2_607 = arith.constant 2 : index
    %c0_608 = arith.constant 0 : index
    %820 = vector.load %arg10[%c4_605, %c1_606, %c2_607, %c0_608] : memref<6x10x10x128xf32, #tpu.memory_space<vmem>>, vector<1x8x8x128xf32>
    %821 = vector.shape_cast %820 : vector<1x8x8x128xf32> to vector<8x8x128xf32>
    %822 = vector.shape_cast %819 : vector<128xf32> to vector<1x1x128xf32>
    %823 = vector.broadcast %822 : vector<1x1x128xf32> to vector<8x8x128xf32>
    %824 = arith.mulf %821, %823 : vector<8x8x128xf32>
    %825 = arith.addf %817, %824 : vector<8x8x128xf32>
    %c15_609 = arith.constant 15 : index
    %c0_610 = arith.constant 0 : index
    %826 = vector.load %arg5[%c15_609, %c0_610] : memref<27x128xf32, #tpu.memory_space<vmem>>, vector<1x128xf32>
    %827 = vector.shape_cast %826 : vector<1x128xf32> to vector<128xf32>
    %c4_611 = arith.constant 4 : index
    %c2_612 = arith.constant 2 : index
    %c0_613 = arith.constant 0 : index
    %c0_614 = arith.constant 0 : index
    %828 = vector.load %arg10[%c4_611, %c2_612, %c0_613, %c0_614] : memref<6x10x10x128xf32, #tpu.memory_space<vmem>>, vector<1x8x8x128xf32>
    %829 = vector.shape_cast %828 : vector<1x8x8x128xf32> to vector<8x8x128xf32>
    %830 = vector.shape_cast %827 : vector<128xf32> to vector<1x1x128xf32>
    %831 = vector.broadcast %830 : vector<1x1x128xf32> to vector<8x8x128xf32>
    %832 = arith.mulf %829, %831 : vector<8x8x128xf32>
    %833 = arith.addf %825, %832 : vector<8x8x128xf32>
    %c16_615 = arith.constant 16 : index
    %c0_616 = arith.constant 0 : index
    %834 = vector.load %arg5[%c16_615, %c0_616] : memref<27x128xf32, #tpu.memory_space<vmem>>, vector<1x128xf32>
    %835 = vector.shape_cast %834 : vector<1x128xf32> to vector<128xf32>
    %c4_617 = arith.constant 4 : index
    %c2_618 = arith.constant 2 : index
    %c1_619 = arith.constant 1 : index
    %c0_620 = arith.constant 0 : index
    %836 = vector.load %arg10[%c4_617, %c2_618, %c1_619, %c0_620] : memref<6x10x10x128xf32, #tpu.memory_space<vmem>>, vector<1x8x8x128xf32>
    %837 = vector.shape_cast %836 : vector<1x8x8x128xf32> to vector<8x8x128xf32>
    %838 = vector.shape_cast %835 : vector<128xf32> to vector<1x1x128xf32>
    %839 = vector.broadcast %838 : vector<1x1x128xf32> to vector<8x8x128xf32>
    %840 = arith.mulf %837, %839 : vector<8x8x128xf32>
    %841 = arith.addf %833, %840 : vector<8x8x128xf32>
    %c17_621 = arith.constant 17 : index
    %c0_622 = arith.constant 0 : index
    %842 = vector.load %arg5[%c17_621, %c0_622] : memref<27x128xf32, #tpu.memory_space<vmem>>, vector<1x128xf32>
    %843 = vector.shape_cast %842 : vector<1x128xf32> to vector<128xf32>
    %c4_623 = arith.constant 4 : index
    %c2_624 = arith.constant 2 : index
    %c2_625 = arith.constant 2 : index
    %c0_626 = arith.constant 0 : index
    %844 = vector.load %arg10[%c4_623, %c2_624, %c2_625, %c0_626] : memref<6x10x10x128xf32, #tpu.memory_space<vmem>>, vector<1x8x8x128xf32>
    %845 = vector.shape_cast %844 : vector<1x8x8x128xf32> to vector<8x8x128xf32>
    %846 = vector.shape_cast %843 : vector<128xf32> to vector<1x1x128xf32>
    %847 = vector.broadcast %846 : vector<1x1x128xf32> to vector<8x8x128xf32>
    %848 = arith.mulf %845, %847 : vector<8x8x128xf32>
    %849 = arith.addf %841, %848 : vector<8x8x128xf32>
    %c18_627 = arith.constant 18 : index
    %c0_628 = arith.constant 0 : index
    %850 = vector.load %arg5[%c18_627, %c0_628] : memref<27x128xf32, #tpu.memory_space<vmem>>, vector<1x128xf32>
    %851 = vector.shape_cast %850 : vector<1x128xf32> to vector<128xf32>
    %c5_629 = arith.constant 5 : index
    %c0_630 = arith.constant 0 : index
    %c0_631 = arith.constant 0 : index
    %c0_632 = arith.constant 0 : index
    %852 = vector.load %arg10[%c5_629, %c0_630, %c0_631, %c0_632] : memref<6x10x10x128xf32, #tpu.memory_space<vmem>>, vector<1x8x8x128xf32>
    %853 = vector.shape_cast %852 : vector<1x8x8x128xf32> to vector<8x8x128xf32>
    %854 = vector.shape_cast %851 : vector<128xf32> to vector<1x1x128xf32>
    %855 = vector.broadcast %854 : vector<1x1x128xf32> to vector<8x8x128xf32>
    %856 = arith.mulf %853, %855 : vector<8x8x128xf32>
    %c19_633 = arith.constant 19 : index
    %c0_634 = arith.constant 0 : index
    %857 = vector.load %arg5[%c19_633, %c0_634] : memref<27x128xf32, #tpu.memory_space<vmem>>, vector<1x128xf32>
    %858 = vector.shape_cast %857 : vector<1x128xf32> to vector<128xf32>
    %c5_635 = arith.constant 5 : index
    %c0_636 = arith.constant 0 : index
    %c1_637 = arith.constant 1 : index
    %c0_638 = arith.constant 0 : index
    %859 = vector.load %arg10[%c5_635, %c0_636, %c1_637, %c0_638] : memref<6x10x10x128xf32, #tpu.memory_space<vmem>>, vector<1x8x8x128xf32>
    %860 = vector.shape_cast %859 : vector<1x8x8x128xf32> to vector<8x8x128xf32>
    %861 = vector.shape_cast %858 : vector<128xf32> to vector<1x1x128xf32>
    %862 = vector.broadcast %861 : vector<1x1x128xf32> to vector<8x8x128xf32>
    %863 = arith.mulf %860, %862 : vector<8x8x128xf32>
    %864 = arith.addf %856, %863 : vector<8x8x128xf32>
    %c20_639 = arith.constant 20 : index
    %c0_640 = arith.constant 0 : index
    %865 = vector.load %arg5[%c20_639, %c0_640] : memref<27x128xf32, #tpu.memory_space<vmem>>, vector<1x128xf32>
    %866 = vector.shape_cast %865 : vector<1x128xf32> to vector<128xf32>
    %c5_641 = arith.constant 5 : index
    %c0_642 = arith.constant 0 : index
    %c2_643 = arith.constant 2 : index
    %c0_644 = arith.constant 0 : index
    %867 = vector.load %arg10[%c5_641, %c0_642, %c2_643, %c0_644] : memref<6x10x10x128xf32, #tpu.memory_space<vmem>>, vector<1x8x8x128xf32>
    %868 = vector.shape_cast %867 : vector<1x8x8x128xf32> to vector<8x8x128xf32>
    %869 = vector.shape_cast %866 : vector<128xf32> to vector<1x1x128xf32>
    %870 = vector.broadcast %869 : vector<1x1x128xf32> to vector<8x8x128xf32>
    %871 = arith.mulf %868, %870 : vector<8x8x128xf32>
    %872 = arith.addf %864, %871 : vector<8x8x128xf32>
    %c21_645 = arith.constant 21 : index
    %c0_646 = arith.constant 0 : index
    %873 = vector.load %arg5[%c21_645, %c0_646] : memref<27x128xf32, #tpu.memory_space<vmem>>, vector<1x128xf32>
    %874 = vector.shape_cast %873 : vector<1x128xf32> to vector<128xf32>
    %c5_647 = arith.constant 5 : index
    %c1_648 = arith.constant 1 : index
    %c0_649 = arith.constant 0 : index
    %c0_650 = arith.constant 0 : index
    %875 = vector.load %arg10[%c5_647, %c1_648, %c0_649, %c0_650] : memref<6x10x10x128xf32, #tpu.memory_space<vmem>>, vector<1x8x8x128xf32>
    %876 = vector.shape_cast %875 : vector<1x8x8x128xf32> to vector<8x8x128xf32>
    %877 = vector.shape_cast %874 : vector<128xf32> to vector<1x1x128xf32>
    %878 = vector.broadcast %877 : vector<1x1x128xf32> to vector<8x8x128xf32>
    %879 = arith.mulf %876, %878 : vector<8x8x128xf32>
    %880 = arith.addf %872, %879 : vector<8x8x128xf32>
    %c22_651 = arith.constant 22 : index
    %c0_652 = arith.constant 0 : index
    %881 = vector.load %arg5[%c22_651, %c0_652] : memref<27x128xf32, #tpu.memory_space<vmem>>, vector<1x128xf32>
    %882 = vector.shape_cast %881 : vector<1x128xf32> to vector<128xf32>
    %c5_653 = arith.constant 5 : index
    %c1_654 = arith.constant 1 : index
    %c1_655 = arith.constant 1 : index
    %c0_656 = arith.constant 0 : index
    %883 = vector.load %arg10[%c5_653, %c1_654, %c1_655, %c0_656] : memref<6x10x10x128xf32, #tpu.memory_space<vmem>>, vector<1x8x8x128xf32>
    %884 = vector.shape_cast %883 : vector<1x8x8x128xf32> to vector<8x8x128xf32>
    %885 = vector.shape_cast %882 : vector<128xf32> to vector<1x1x128xf32>
    %886 = vector.broadcast %885 : vector<1x1x128xf32> to vector<8x8x128xf32>
    %887 = arith.mulf %884, %886 : vector<8x8x128xf32>
    %888 = arith.addf %880, %887 : vector<8x8x128xf32>
    %c23_657 = arith.constant 23 : index
    %c0_658 = arith.constant 0 : index
    %889 = vector.load %arg5[%c23_657, %c0_658] : memref<27x128xf32, #tpu.memory_space<vmem>>, vector<1x128xf32>
    %890 = vector.shape_cast %889 : vector<1x128xf32> to vector<128xf32>
    %c5_659 = arith.constant 5 : index
    %c1_660 = arith.constant 1 : index
    %c2_661 = arith.constant 2 : index
    %c0_662 = arith.constant 0 : index
    %891 = vector.load %arg10[%c5_659, %c1_660, %c2_661, %c0_662] : memref<6x10x10x128xf32, #tpu.memory_space<vmem>>, vector<1x8x8x128xf32>
    %892 = vector.shape_cast %891 : vector<1x8x8x128xf32> to vector<8x8x128xf32>
    %893 = vector.shape_cast %890 : vector<128xf32> to vector<1x1x128xf32>
    %894 = vector.broadcast %893 : vector<1x1x128xf32> to vector<8x8x128xf32>
    %895 = arith.mulf %892, %894 : vector<8x8x128xf32>
    %896 = arith.addf %888, %895 : vector<8x8x128xf32>
    %c24_663 = arith.constant 24 : index
    %c0_664 = arith.constant 0 : index
    %897 = vector.load %arg5[%c24_663, %c0_664] : memref<27x128xf32, #tpu.memory_space<vmem>>, vector<1x128xf32>
    %898 = vector.shape_cast %897 : vector<1x128xf32> to vector<128xf32>
    %c5_665 = arith.constant 5 : index
    %c2_666 = arith.constant 2 : index
    %c0_667 = arith.constant 0 : index
    %c0_668 = arith.constant 0 : index
    %899 = vector.load %arg10[%c5_665, %c2_666, %c0_667, %c0_668] : memref<6x10x10x128xf32, #tpu.memory_space<vmem>>, vector<1x8x8x128xf32>
    %900 = vector.shape_cast %899 : vector<1x8x8x128xf32> to vector<8x8x128xf32>
    %901 = vector.shape_cast %898 : vector<128xf32> to vector<1x1x128xf32>
    %902 = vector.broadcast %901 : vector<1x1x128xf32> to vector<8x8x128xf32>
    %903 = arith.mulf %900, %902 : vector<8x8x128xf32>
    %904 = arith.addf %896, %903 : vector<8x8x128xf32>
    %c25_669 = arith.constant 25 : index
    %c0_670 = arith.constant 0 : index
    %905 = vector.load %arg5[%c25_669, %c0_670] : memref<27x128xf32, #tpu.memory_space<vmem>>, vector<1x128xf32>
    %906 = vector.shape_cast %905 : vector<1x128xf32> to vector<128xf32>
    %c5_671 = arith.constant 5 : index
    %c2_672 = arith.constant 2 : index
    %c1_673 = arith.constant 1 : index
    %c0_674 = arith.constant 0 : index
    %907 = vector.load %arg10[%c5_671, %c2_672, %c1_673, %c0_674] : memref<6x10x10x128xf32, #tpu.memory_space<vmem>>, vector<1x8x8x128xf32>
    %908 = vector.shape_cast %907 : vector<1x8x8x128xf32> to vector<8x8x128xf32>
    %909 = vector.shape_cast %906 : vector<128xf32> to vector<1x1x128xf32>
    %910 = vector.broadcast %909 : vector<1x1x128xf32> to vector<8x8x128xf32>
    %911 = arith.mulf %908, %910 : vector<8x8x128xf32>
    %912 = arith.addf %904, %911 : vector<8x8x128xf32>
    %c26_675 = arith.constant 26 : index
    %c0_676 = arith.constant 0 : index
    %913 = vector.load %arg5[%c26_675, %c0_676] : memref<27x128xf32, #tpu.memory_space<vmem>>, vector<1x128xf32>
    %914 = vector.shape_cast %913 : vector<1x128xf32> to vector<128xf32>
    %c5_677 = arith.constant 5 : index
    %c2_678 = arith.constant 2 : index
    %c2_679 = arith.constant 2 : index
    %c0_680 = arith.constant 0 : index
    %915 = vector.load %arg10[%c5_677, %c2_678, %c2_679, %c0_680] : memref<6x10x10x128xf32, #tpu.memory_space<vmem>>, vector<1x8x8x128xf32>
    %916 = vector.shape_cast %915 : vector<1x8x8x128xf32> to vector<8x8x128xf32>
    %917 = vector.shape_cast %914 : vector<128xf32> to vector<1x1x128xf32>
    %918 = vector.broadcast %917 : vector<1x1x128xf32> to vector<8x8x128xf32>
    %919 = arith.mulf %916, %918 : vector<8x8x128xf32>
    %920 = arith.addf %912, %919 : vector<8x8x128xf32>
    %921 = arith.addf %778, %849 : vector<8x8x128xf32>
    %922 = arith.addf %921, %920 : vector<8x8x128xf32>
    %923 = vector.shape_cast %38 : vector<128xf32> to vector<1x1x128xf32>
    %924 = vector.broadcast %923 : vector<1x1x128xf32> to vector<8x8x128xf32>
    %925 = arith.addf %922, %924 : vector<8x8x128xf32>
    %cst_681 = arith.constant 0.000000e+00 : f32
    %926 = vector.broadcast %cst_681 : f32 to vector<8x8x128xf32>
    %927 = arith.maximumf %925, %926 : vector<8x8x128xf32>
    %c3_682 = arith.constant 3 : index
    %c0_683 = arith.constant 0 : index
    %c0_684 = arith.constant 0 : index
    %c0_685 = arith.constant 0 : index
    %928 = vector.load %arg11[%c3_682, %c0_683, %c0_684, %c0_685] : memref<4x8x8x128xf32, #tpu.memory_space<vmem>>, vector<1x8x8x128xf32>
    %929 = vector.shape_cast %928 : vector<1x8x8x128xf32> to vector<8x8x128xf32>
    %930 = vector.shape_cast %927 : vector<8x8x128xf32> to vector<1x8x8x128xf32>
    tpu.vector_store %arg11[%c3_682, %c0_683, %c0_684, %c0_685], %930 {strides = array<i32>} : memref<4x8x8x128xf32, #tpu.memory_space<vmem>>, vector<1x8x8x128xf32>,
    %c0_686 = arith.constant 0 : index
    %c0_687 = arith.constant 0 : index
    %c0_688 = arith.constant 0 : index
    %c0_689 = arith.constant 0 : index
    %931 = vector.load %arg11[%c0_686, %c0_687, %c0_688, %c0_689] : memref<4x8x8x128xf32, #tpu.memory_space<vmem>>, vector<4x8x8x128xf32>
    %932 = vector.shape_cast %931 : vector<4x8x8x128xf32> to vector<256x128xf32>
    %c0_690 = arith.constant 0 : index
    %c0_691 = arith.constant 0 : index
    %933 = vector.load %arg7[%c0_690, %c0_691] : memref<128x128xf32, #tpu.memory_space<vmem>>, vector<128x128xf32>
    %cst_692 = arith.constant dense<0.000000e+00> : vector<256x128xf32>
    %934 = tpu.matmul %932, %933, %cst_692 {dimension_numbers = #tpu.dot_dimension_numbers<[1], [0], [0], [1], [0, 0, 1, 1], [], []>} : vector<256x128xf32>, vector<128x128xf32>, vector<256x128xf32> -> vector<256x128xf32>
    %c0_693 = arith.constant 0 : index
    %c0_694 = arith.constant 0 : index
    %935 = vector.load %arg8[%c0_693, %c0_694] : memref<1x128xf32, #tpu.memory_space<vmem>>, vector<1x128xf32>
    %936 = vector.shape_cast %935 : vector<1x128xf32> to vector<128xf32>
    %937 = vector.shape_cast %936 : vector<128xf32> to vector<1x128xf32>
    %938 = vector.broadcast %937 : vector<1x128xf32> to vector<256x128xf32>
    %939 = arith.addf %934, %938 : vector<256x128xf32>
    %cst_695 = arith.constant 0.000000e+00 : f32
    %940 = vector.broadcast %cst_695 : f32 to vector<256x128xf32>
    %941 = arith.maximumf %939, %940 : vector<256x128xf32>
    %942 = vector.shape_cast %941 : vector<256x128xf32> to vector<4x8x8x128xf32>
    %c0_696 = arith.constant 0 : index
    %c0_697 = arith.constant 0 : index
    %c0_698 = arith.constant 0 : index
    %c0_699 = arith.constant 0 : index
    %c0_700 = arith.constant 0 : index
    %943 = vector.load %arg9[%c0_696, %c0_697, %c0_698, %c0_699, %c0_700] : memref<1x4x8x8x128xf32, #tpu.memory_space<vmem>>, vector<1x4x8x8x128xf32>
    %944 = vector.shape_cast %943 : vector<1x4x8x8x128xf32> to vector<4x8x8x128xf32>
    %945 = vector.shape_cast %942 : vector<4x8x8x128xf32> to vector<1x4x8x8x128xf32>
    tpu.vector_store %arg9[%c0_696, %c0_697, %c0_698, %c0_699, %c0_700], %945 {strides = array<i32>} : memref<1x4x8x8x128xf32, #tpu.memory_space<vmem>>, vector<1x4x8x8x128xf32>,
    return
  }
  func.func @transform_0(%arg0: i32, %arg1: i32) -> (i32, i32, i32, i32, i32) {
    %c0_i32 = arith.constant 0 : i32
    %c0_i32_0 = arith.constant 0 : i32
    %c0_i32_1 = arith.constant 0 : i32
    %c0_i32_2 = arith.constant 0 : i32
    return %arg0, %arg1, %c0_i32, %c0_i32_0, %c0_i32_1 : i32, i32, i32, i32, i32
  }
  func.func @transform_1(%arg0: i32, %arg1: i32) -> (i32, i32, i32, i32, i32) {
    %c4_i32 = arith.constant 4 : i32
    %0 = arith.muli %arg1, %c4_i32 : i32
    %c1_i32 = arith.constant 1 : i32
    %1 = arith.subi %0, %c1_i32 : i32
    %c0_i32 = arith.constant 0 : i32
    %2 = arith.maxsi %1, %c0_i32 : i32
    %c0_i32_0 = arith.constant 0 : i32
    %c0_i32_1 = arith.constant 0 : i32
    %c0_i32_2 = arith.constant 0 : i32
    %c0_i32_3 = arith.constant 0 : i32
    return %arg0, %2, %c0_i32_0, %c0_i32_1, %c0_i32_2 : i32, i32, i32, i32, i32
  }
  func.func @transform_2(%arg0: i32, %arg1: i32) -> (i32, i32, i32, i32, i32) {
    %c4_i32 = arith.constant 4 : i32
    %0 = arith.muli %arg1, %c4_i32 : i32
    %c4_i32_0 = arith.constant 4 : i32
    %1 = arith.addi %0, %c4_i32_0 : i32
    %c7_i32 = arith.constant 7 : i32
    %2 = arith.minsi %1, %c7_i32 : i32
    %c0_i32 = arith.constant 0 : i32
    %c0_i32_1 = arith.constant 0 : i32
    %c0_i32_2 = arith.constant 0 : i32
    %c0_i32_3 = arith.constant 0 : i32
    return %arg0, %2, %c0_i32, %c0_i32_1, %c0_i32_2 : i32, i32, i32, i32, i32
  }
  func.func @transform_3(%arg0: i32, %arg1: i32) -> (i32, i32) {
    %c0_i32 = arith.constant 0 : i32
    %c0_i32_0 = arith.constant 0 : i32
    %c0_i32_1 = arith.constant 0 : i32
    return %c0_i32, %c0_i32_0 : i32, i32
  }
  func.func @transform_4(%arg0: i32, %arg1: i32) -> (i32, i32) {
    %c0_i32 = arith.constant 0 : i32
    %c0_i32_0 = arith.constant 0 : i32
    %c0_i32_1 = arith.constant 0 : i32
    return %c0_i32, %c0_i32_0 : i32, i32
  }
  func.func @transform_5(%arg0: i32, %arg1: i32) -> (i32, i32) {
    %c0_i32 = arith.constant 0 : i32
    %c0_i32_0 = arith.constant 0 : i32
    %c0_i32_1 = arith.constant 0 : i32
    return %c0_i32, %c0_i32_0 : i32, i32
  }
  func.func @transform_6(%arg0: i32, %arg1: i32) -> (i32, i32) {
    %c0_i32 = arith.constant 0 : i32
    %c0_i32_0 = arith.constant 0 : i32
    %c0_i32_1 = arith.constant 0 : i32
    return %c0_i32, %c0_i32_0 : i32, i32
  }
  func.func @transform_7(%arg0: i32, %arg1: i32) -> (i32, i32, i32, i32, i32) {
    %c0_i32 = arith.constant 0 : i32
    %c0_i32_0 = arith.constant 0 : i32
    %c0_i32_1 = arith.constant 0 : i32
    %c0_i32_2 = arith.constant 0 : i32
    return %arg0, %arg1, %c0_i32, %c0_i32_0, %c0_i32_1 : i32, i32, i32, i32, i32
  }
}

</mosaic_0001>

<bundles_post_ra>
// kernel: tpu_custom_call.1
= control target key start
LH: loop header
LB: loop body
LE: loop exit
PB: predicated region body
PF: predicated region fallthrough
CT: control target
= control target key end

     0   :  { %s8710_s0 = inlined_call_operand.hbm [shape: f32[2,8,8,8,128], index: 0, kind: input, shape index: {}]   ;;  %s8711_s1 = inlined_call_operand.hbm [shape: f32[2,8,8,8,128], index: 1, kind: input, shape index: {}]   ;;  %s8712_s2 = inlined_call_operand.hbm [shape: f32[2,8,8,8,128], index: 2, kind: input, shape index: {}]   ;;  %s8713_s3 = inlined_call_operand.hbm [shape: f32[27,128], index: 3, kind: input, shape index: {}]   ;;  %s8714_s4 = inlined_call_operand.vmem [shape: f32[1,128], index: 4, kind: input, shape index: {}]   ;;  %s8715_s5 = inlined_call_operand.hbm [shape: f32[128,128], index: 5, kind: input, shape index: {}]   ;;  %s8716_s6 = inlined_call_operand.vmem [shape: f32[1,128], index: 6, kind: input, shape index: {}]   ;;  %s8717_s7 = inlined_call_operand.hbm [shape: f32[2,8,8,8,128], index: 7, kind: output, shape index: {}]  }
   0x1   :  { %9188 = sst [smem:[#allocation75_spill]] %s8710_s0 }
   0x2   :  { %9189 = sst [smem:[#allocation76_spill]] %s8711_s1 }
   0x3   :  { %9190 = sst [smem:[#allocation77_spill]] %s8712_s2 }
   0x4   :  { %9191 = sst [smem:[#allocation78_spill]] %s8713_s3 }
   0x5   :  { %9192 = sst [smem:[#allocation79_spill]] %s8714_s4 }
   0x6   :  { %9193 = sst [smem:[#allocation80_spill]] %s8715_s5 }
   0x7   :  { %9194 = sst [smem:[#allocation81_spill]] %s8716_s6 }
   0x8   :  { %9195 = sst [smem:[#allocation82_spill]] %s8717_s7 }
   0x9   :  { %12 = vsyncpa [#allocation5], 0 }
   0xa   :  { %14 = vsyncpa [#allocation5 + $0x1], 0 }
   0xb   :  { %15 = vsyncpa [#allocation8], 0 }
   0xc   :  { %17 = vsyncpa [#allocation8 + $0x1], 0 }
   0xd   :  { %18 = vsyncpa [#allocation11], 0 }
   0xe   :  { %19 = vsyncpa [#allocation6], 0 }
   0xf   :  { %21 = vsyncpa [#allocation6 + $0x1], 0  ;;  %s5396_s24 = smov 0   ;;  %s5398_s25 = smov 0  }
  0x10   :  { %s5400_s26 = smov 0   ;;  %s5402_s27 = smov 0  }
  0x11   :  { %s5404_s28 = smov 0   ;;  %s5406_s29 = smov 0  }
  0x12   :  { %s5408_s30 = smov 0   ;;  %s5410_s8 = smov 0  }
  0x13   :  { %s5412_s9 = smov 0   ;;  %s5414_s10 = smov 0  }
  0x14   :  { %s5416_s11 = smov 0   ;;  %s5418_s12 = smov 0  }
  0x15   :  { %s5420_s13 = smov 0   ;;  %s5422_s14 = smov 0  }
  0x16 LB: > { %9196 = sst [smem:[#allocation19_spill]] %s5290_s24  ;;  %s5467_s15 = sadd.s32 4294967295, %s5342_s14   ;;  %s5342_s14 = sphi %s5422_s14, %s27_s14   ;;  %s5338_s13 = sphi %s5420_s13, %s9936_s13   ;;  %s5334_s12 = sphi %s5418_s12, %s9935_s12   ;;  %s5330_s11 = sphi %s5416_s11, %s9934_s11   ;;  %s5326_s10 = sphi %s5414_s10, %s9933_s10   ;;  %s5322_s9 = sphi %s5412_s9, %s9943_s9   ;;  %s5318_s8 = sphi %s5410_s8, %s9942_s8   ;;  %s5314_s30 = sphi %s5408_s30, %s9941_s30   ;;  %s5310_s29 = sphi %s5406_s29, %s9940_s29   ;;  %s5306_s28 = sphi %s5404_s28, %s9939_s28   ;;  %s5302_s27 = sphi %s5402_s27, %s9938_s27   ;;  %s5298_s26 = sphi %s5400_s26, %s9937_s26   ;;  %s5294_s25 = sphi %s5398_s25, %s9930_s25   ;;  %s5290_s24 = sphi %s5396_s24, %s9929_s24  }
  0x17   : > { %9197 = sst [smem:[#allocation20_spill]] %s5294_s25  ;;  %p4465_p0 = scmp.ge.s32.totalorder %s5342_s14, 1 }
  0x18   : > { %9198 = sst [smem:[#allocation21_spill]] %s5298_s26  ;;  %p8719_p1 = scmp.eq.s32.totalorder %s5467_s15, 0 }
  0x19   : > { %9199 = sst [smem:[#allocation22_spill]] %s5306_s28  ;;  %p256_p3 = scmp.lt.s32.totalorder %s5342_s14, 5 }
  0x1a   : > { %9200 = sst [smem:[#allocation23_spill]] %s5326_s10  ;;  %s5344_s17 = smov [#allocation10]  }
  0x1b   : > { %9201 = sst [smem:[#allocation24_spill]] %s5330_s11  ;;  %p5473_p4 = pnand %p4465_p0, %p256_p3 }
  0x1c   : > { %9202 = sst [smem:[#allocation25_spill]] %s5334_s12  ;;  %s268_s18 = sshll.u32 %s5344_s17, 4  ;;  %s269_s18 = int_to_ptr.vmem [resolvable:$true] %s268_s18 }
  0x1d   : > { %9203 = sst [smem:[#allocation26_spill]] %s5338_s13  ;;  %p4832_p5 = pneg %p5473_p4 }
  0x1e   : > { %s9204_s16 = scalar_select %p5473_p4, 1, 0 }
  0x1f   : > { %p5481_p6 = pnand %p4832_p5, %p8719_p1  ;;  %s9207_s3 = sld [smem:[#allocation78_spill]] }
  0x20   : > { %9205 = sst [smem:[#allocation27_spill]] %s9204_s16 }
  0x21   : > { %p8739_p8 = pneg %p5481_p6 }
  0x25   : > { %s5038_s22 = scalar_lea.hbm %s9207_s3, 512 }
  0x26   : > { %p5039_p7 = scmp.ne.s32.totalorder %s9207_s3, %s5038_s22  ;;  %p5045_p11 = scmp.lt.u32.totalorder %s5038_s22, %s9207_s3 }
  0x28   : > { %p5041_p9 = pnand %p8739_p8, %p5039_p7 }
  0x2a   : > { %p5042_p10 = pneg %p5041_p9 }
  0x2c   : > { %p5047_p12 = pnand %p5045_p11, %p5042_p10 }
  0x2e   : > { %5050 = shalt.err (!%p5047_p12)
}
  0x2f   : > { %s5051_s20 = scalar_lea.vmem %s269_s18, 512  ;;  %p5059_p5 = scmp.lt.s32.totalorder %s269_s18, %s269_s18 }
  0x30   : > { %p5052_p13 = scmp.ne.s32.totalorder %s269_s18, %s5051_s20  ;;  %p5060_p2 = scmp.lt.s32.totalorder %s5051_s20, %s5051_s20 }
  0x32   : > { %p5054_p0 = pnand %p5052_p13, %p8739_p8  ;;  %p5061_p1 = por %p5060_p2, %p5059_p5 }
  0x34   : > { %p5055_p3 = pneg %p5054_p0 }
  0x36   : > { %p5062_p4 = pnand %p5061_p1, %p5055_p3 }
  0x38   : > { %5065 = shalt.err (!%p5062_p4)
}
  0x39   : > { %s8723_s7 = smov 128   ;;  %s8725_s11 = smov 8  }
  0x3a   : > { %4835 = dma.hbm_to_vmem [thread:$0]  (!%p5481_p6), %s9207_s3, 512, %s269_s18, [#allocation11], %s8723_s7, %s8723_s7, %s8725_s11  }
  0x3b   : > { %s36_s23 = sadd.s32 1, %s5334_s12  ;;  %s39_s17 = sadd.s32 1, %s5338_s13 }
  0x3c   : > { %p37_p1 = scmp.ge.s32.totalorder %s36_s23, 2  ;;  %p8738_p2 = scmp.eq.s32.totalorder %s5342_s14, 0 }
  0x3d   : > { %s4459_s20 = sshll.u32 %s5334_s12, 2  ;;  %s84_s6 = sadd.s32 1, %s5310_s29 }
  0x3e   : > { %s9945_s23 = smov (%p37_p1, %s36_s23), 0  ;;  %s9947_s17 = smov (!%p37_p1, %s39_s17), %s5338_s13 }
  0x3f   : > { %9208 = sst [smem:[#allocation28_spill]] %s9945_s23  ;;  %s44_s4 = ssub.s32 %s5334_s12, %s9945_s23 }
  0x40   : > { %s4460_s10 = sadd.s32 4294967295, %s4459_s20  ;;  %p41_p4 = scmp.ge.s32.totalorder %s9947_s17, 2 }
  0x41   : > { %p73_p7 = scmp.gt.s32.totalorder %s4460_s10, 0  ;;  %s4461_s18 = sshll.u32 %s9945_s23, 2 }
  0x42   : > { %p91_p9 = scmp.ne.s32.totalorder %s5310_s29, %s5306_s28  ;;  %s9949_s17 = smov (%p41_p4, %s9947_s17), 0 }
  0x43   : > { %9209 = sst [smem:[#allocation29_spill]] %s9949_s17  ;;  %s9951_s10 = smov (!%p73_p7, %s4460_s10), 0 }
  0x44   : > { %s5527_s21 = ssub.s32 %s5338_s13, %s9949_s17  ;;  %s4462_s22 = sadd.s32 4294967295, %s4461_s18 }
  0x45   : > { %9210 = sst [smem:[#allocation30_spill]] %s5527_s21  ;;  %s5530_s7 = sor.u32 %s44_s4, %s5527_s21 }
  0x46   : > { %p77_p10 = scmp.gt.s32.totalorder %s4462_s22, 0  ;;  %p5535_p12 = por %p91_p9, %p8738_p2 }
  0x47   : > { %p97_p13 = scmp.ne.s32.totalorder %s5306_s28, %s5302_s27  ;;  %s5541_s3 = sadd.s32 4, %s4459_s20 }
  0x48   : > { %s9953_s22 = smov (!%p77_p10, %s4462_s22), 0  ;;  %p9212_p3 = scmp.eq.s32.totalorder %s5467_s15, 0 }
  0x49   : > { %s80_s17 = ssub.s32 %s9951_s10, %s9953_s22  ;;  %s5551_s16 = sadd.s32 4, %s4461_s18 }
  0x4a   : > { %s81_s4 = sor.u32 %s80_s17, %s5527_s21  ;;  %p5547_p5 = por %p97_p13, %p9212_p3 }
  0x4b   : > { %p82_p1 = scmp.eq.s32.totalorder %s81_s4, 0  ;;  %p8737_p7 = scmp.lt.s32.totalorder %s5342_s14, 4 }
  0x4c   : > { %s9213_s23 = scalar_select %p5547_p5, 1, 0 }
  0x4d   : > { %s5556_s27 = scalar_select %p82_p1, %s5310_s29, %s84_s6  }
  0x4e   : > { %9214 = sst [smem:[#allocation31_spill]] %s9213_s23  ;;  %s5559_s20 = sshll.u32 %s5338_s13, 6 }
  0x4f   : > { %s325_s22 = sand.u32 1, %s5342_s14   ;;  %s327_s17 = sand.u32 1, %s5310_s29  }
  0x50   : > { %s4474_s28 = sshll.u32 %s327_s17, 6  ;;  %s4477_s2 = sshll.u32 %s9951_s10, 3 }
  0x51   : > { %s339_s21 = sadd.s32 %s4477_s2, %s5559_s20  ;;  %s329_s23 = scalar_lea.vmem [#allocation7], %s4474_s28 }
  0x52   : > { %s4479_s24 = sshll.u32 %s339_s21, 7  ;;  %s342_s4 = sshll.u32 %s329_s23, 4  ;;  %s5569_s4 = int_to_ptr.vmem [resolvable:$true] %s342_s4 }
  0x53   : > { %s9215_s1 = sld [smem:[#allocation76_spill]]  ;;  %p5575_p9 = pnand %p8737_p7, %p5535_p12 }
  0x54   : > { %s5347_s2 = smov [#allocation12]  }
  0x55   : > { %s284_s28 = sshll.u32 %s5347_s2, 4  ;;  %p5068_p13 = pneg %p5575_p9  ;;  %s5579_s28 = int_to_ptr.vmem [resolvable:$true] %s284_s28 }
  0x59   : > { %s5567_s18 = scalar_lea.hbm %s9215_s1, %s4479_s24  ;;  %s5581_s24 = scalar_lea.sflag [#allocation8], %s325_s22 }
  0x5a   : > { %s5066_s25 = scalar_lea.hbm %s5567_s18, 1024  ;;  %s5071_s11 = scalar_lea.hbm %s9215_s1, 16384 }
  0x5b   : > { %p5067_p10 = scmp.ne.s32.totalorder %s5567_s18, %s5066_s25  ;;  %p5072_p12 = scmp.lt.u32.totalorder %s5567_s18, %s9215_s1 }
  0x5c   : > { %p5073_p4 = scmp.lt.u32.totalorder %s5071_s11, %s5066_s25  ;;  %p5075_p7 = scmp.lt.u32.totalorder %s5066_s25, %s5567_s18 }
  0x5d   : > { %p5069_p3 = pnand %p5068_p13, %p5067_p10 }
  0x5e   : > { %p5074_p0 = por %p5073_p4, %p5072_p12 }
  0x5f   : > { %p5070_p1 = pneg %p5069_p3 }
  0x60   : > { %p5076_p2 = por %p5075_p7, %p5074_p0 }
  0x62   : > { %p5077_p11 = pnand %p5076_p2, %p5070_p1 }
  0x64   : > { %5080 = shalt.err (!%p5077_p11)
}
  0x65   : > { %s5081_s22 = scalar_lea.vmem %s5569_s4, 1024  ;;  %s5348_s17 = smov [#allocation7]  }
  0x66   : > { %p5082_p10 = scmp.ne.s32.totalorder %s5569_s4, %s5081_s22  ;;  %s5086_s2 = sshll.u32 %s5348_s17, 4  ;;  %s5087_s2 = int_to_ptr.vmem [resolvable:$false] %s5086_s2 }
  0x67   : > { %s5088_s26 = scalar_lea.vmem %s5087_s2, 2048  ;;  %p5089_p5 = scmp.lt.s32.totalorder %s5569_s4, %s5087_s2 }
  0x68   : > { %p5084_p3 = pnand %p5082_p10, %p5068_p13  ;;  %p5090_p4 = scmp.lt.s32.totalorder %s5088_s26, %s5081_s22 }
  0x6a   : > { %p5085_p8 = pneg %p5084_p3  ;;  %p5091_p12 = por %p5090_p4, %p5089_p5 }
  0x6c   : > { %p5092_p0 = pnand %p5091_p12, %p5085_p8 }
  0x6e   : > { %5095 = shalt.err (!%p5092_p0)
}
  0x6f   : > { %s9217_s25 = smov 8   ;;  %s9218_s10 = smov 128  }
  0x70   : > { %4845 = dma.hbm_to_vmem [thread:$0]  (!%p5575_p9), %s5567_s18, 1024, %s5569_s4, %s5581_s24, %s9218_s10, %s9218_s10, %s9217_s25  }
  0x71   : > { %s9219_s5 = sld [smem:[#allocation80_spill]]  ;;  %p9220_p8 = pneg %p5481_p6 }
  0x77   : > { %s5096_s21 = scalar_lea.hbm %s9219_s5, 2048 }
  0x78   : > { %p5097_p2 = scmp.ne.s32.totalorder %s9219_s5, %s5096_s21  ;;  %p5103_p7 = scmp.lt.u32.totalorder %s5096_s21, %s9219_s5 }
  0x7a   : > { %p5099_p11 = pnand %p5097_p2, %p9220_p8 }
  0x7c   : > { %p5100_p5 = pneg %p5099_p11 }
  0x7e   : > { %p5105_p13 = pnand %p5103_p7, %p5100_p5 }
  0x80   : > { %5108 = shalt.err (!%p5105_p13)
}
  0x81   : > { %s5109_s4 = scalar_lea.vmem %s5579_s28, 2048  ;;  %p9221_p1 = pmov %p9220_p8 }
  0x82   : > { %p5110_p9 = scmp.ne.s32.totalorder %s5579_s28, %s5109_s4  ;;  %p5117_p4 = scmp.lt.s32.totalorder %s5579_s28, %s5579_s28 }
  0x83   : > { %p5118_p12 = scmp.lt.s32.totalorder %s5109_s4, %s5109_s4 }
  0x84   : > { %p5112_p10 = pnand %p5110_p9, %p9221_p1 }
  0x85   : > { %p5119_p0 = por %p5118_p12, %p5117_p4 }
  0x86   : > { %p5113_p3 = pneg %p5112_p10 }
  0x88   : > { %p5120_p2 = pnand %p5119_p0, %p5113_p3 }
  0x8a   : > { %5123 = shalt.err (!%p5120_p2)
}
  0x8b   : > { %4838 = dma.hbm_to_vmem [thread:$0]  (!%p5481_p6), %s9219_s5, 2048, %s5579_s28, [#allocation11], %s9218_s10, %s9218_s10, %s9217_s25  }
  0x8c   : > { %s4458_s19 = sadd.s32 4294967294, %s5342_s14   ;;  %s48_s11 = sadd.s32 1, %s5322_s9 }
  0x8d   : > { %p55_p8 = scmp.ne.s32.totalorder %s5322_s9, %s5318_s8  ;;  %p9222_p11 = scmp.eq.s32.totalorder %s5530_s7, 0 }
  0x8e   : > { %p9223_p5 = scmp.eq.s32.totalorder %s5342_s14, 0  ;;  %p61_p13 = scmp.ne.s32.totalorder %s5318_s8, %s5314_s30 }
  0x8f   : > { %s5647_s23 = scalar_select %p9222_p11, %s5322_s9, %s48_s11  }
  0x90   : > { %p5651_p7 = por %p9223_p5, %p55_p8  ;;  %p9225_p9 = scmp.eq.s32.totalorder %s5467_s15, 3 }
  0x91   : > { %p249_p6 = scmp.eq.s32.totalorder %s4458_s19, 3  ;;  %p9227_p10 = scmp.eq.s32.totalorder %s5467_s15, 0 }
  0x92   : > { %p5659_p1 = por %p9225_p9, %p55_p8  ;;  %s301_s7 = sand.u32 1, %s5322_s9  }
  0x93   : > { %p5665_p3 = por %p9227_p10, %p61_p13  ;;  %p5670_p4 = por %p249_p6, %p61_p13 }
  0x94   : > { %s9226_s17 = scalar_select %p5659_p1, 1, 0 }
  0x95   : > { %s9229_s2 = scalar_select %p5670_p4, 1, 0 }
  0x96   : > { %s4469_s6 = sshll.u32 %s301_s7, 8  ;;  %s4638_s22 = sshll.u32 %s5334_s12, 5 }
  0x97   : > { %s312_s4 = sadd.s32 %s4638_s22, %s5559_s20  ;;  %s305_s26 = scalar_lea.vmem [#allocation4], %s4469_s6 }
  0x98   : > { %s4473_s18 = sshll.u32 %s312_s4, 7  ;;  %s315_s11 = sshll.u32 %s305_s26, 4  ;;  %s5681_s11 = int_to_ptr.vmem [resolvable:$true] %s315_s11 }
  0x99   : > { %s9230_s0 = sld [smem:[#allocation75_spill]]  ;;  %p9231_p12 = scmp.lt.s32.totalorder %s5342_s14, 4 }
  0x9a   : > { %s5691_s6 = scalar_lea.sflag [#allocation5], %s301_s7 }
  0x9b   : > { %p5687_p0 = pnand %p9231_p12, %p5651_p7 }
  0x9d   : > { %p5126_p8 = pneg %p5687_p0 }
  0x9f   : > { %s5679_s19 = scalar_lea.hbm %s9230_s0, %s4473_s18  ;;  %s5129_s21 = scalar_lea.hbm %s9230_s0, 16384 }
  0xa0   : > { %s5124_s22 = scalar_lea.hbm %s5679_s19, 4096  ;;  %p5130_p7 = scmp.lt.u32.totalorder %s5679_s19, %s9230_s0 }
  0xa1   : > { %p5125_p2 = scmp.ne.s32.totalorder %s5679_s19, %s5124_s22  ;;  %p5131_p13 = scmp.lt.u32.totalorder %s5129_s21, %s5124_s22 }
  0xa2   : > { %p5133_p6 = scmp.lt.u32.totalorder %s5124_s22, %s5679_s19 }
  0xa3   : > { %p5127_p11 = pnand %p5126_p8, %p5125_p2  ;;  %p5132_p9 = por %p5131_p13, %p5130_p7 }
  0xa5   : > { %p5128_p5 = pneg %p5127_p11  ;;  %p5134_p10 = por %p5133_p6, %p5132_p9 }
  0xa7   : > { %p5135_p12 = pnand %p5134_p10, %p5128_p5 }
  0xa9   : > { %5138 = shalt.err (!%p5135_p12)
}
  0xaa   : > { %s5139_s7 = scalar_lea.vmem %s5681_s11, 4096  ;;  %s5349_s26 = smov [#allocation4]  }
  0xab   : > { %p5140_p2 = scmp.ne.s32.totalorder %s5681_s11, %s5139_s7  ;;  %s5144_s1 = sshll.u32 %s5349_s26, 4  ;;  %s5145_s1 = int_to_ptr.vmem [resolvable:$false] %s5144_s1 }
  0xac   : > { %s5146_s5 = scalar_lea.vmem %s5145_s1, 8192  ;;  %p5147_p1 = scmp.lt.s32.totalorder %s5681_s11, %s5145_s1 }
  0xad   : > { %p5142_p11 = pnand %p5140_p2, %p5126_p8  ;;  %p5148_p7 = scmp.lt.s32.totalorder %s5146_s5, %s5139_s7 }
  0xaf   : > { %p5143_p4 = pneg %p5142_p11  ;;  %p5149_p13 = por %p5148_p7, %p5147_p1 }
  0xb1   : > { %p5150_p9 = pnand %p5149_p13, %p5143_p4 }
  0xb3   : > { %5153 = shalt.err (!%p5150_p9)
}
  0xb4   : > { %s9233_s22 = sld [smem:[#allocation21_spill]]  ;;  %s9234_s21 = sld [smem:[#allocation20_spill]] }
  0xb5   : > { %s9235_s4 = sld [smem:[#allocation19_spill]]  ;;  %s9236_s18 = sld [smem:[#allocation30_spill]] }
  0xb6   : > { %4842 = dma.hbm_to_vmem [thread:$0]  (!%p5687_p0), %s5679_s19, 4096, %s5681_s11, %s5691_s6, %s9218_s10, %s9218_s10, %s9217_s25  }
  0xb7   : > { %p9237_p1 = scmp.lt.s32.totalorder %s5541_s3, 7  ;;  %p9238_p4 = scmp.lt.s32.totalorder %s5551_s16, 7 }
  0xb8   : > { %p9239_p6 = scmp.eq.s32.totalorder %s5342_s14, 0  ;;  %p9241_p2 = scmp.eq.s32.totalorder %s5467_s15, 0 }
  0xb9   : > { %s9955_s3 = smov (!%p9237_p1, %s5541_s3), 7  ;;  %s9957_s16 = smov (!%p9238_p4, %s5551_s16), 7 }
  0xba   : > { %s120_s13 = sadd.s32 1, %s9233_s22  ;;  %p127_p8 = scmp.ne.s32.totalorder %s9233_s22, %s9234_s21 }
  0xbb   : > { %s116_s7 = ssub.s32 %s9955_s3, %s9957_s16  ;;  %p133_p5 = scmp.ne.s32.totalorder %s9234_s21, %s9235_s4 }
  0xbc   : > { %s117_s26 = sor.u32 %s116_s7, %s9236_s18  ;;  %p5736_p10 = por %p127_p8, %p9239_p6 }
  0xbd   : > { %p118_p12 = scmp.eq.s32.totalorder %s117_s26, 0  ;;  %p5742_p11 = por %p133_p5, %p9241_p2 }
  0xbe   : > { %s354_s19 = sand.u32 1, %s9233_s22   ;;  %s4482_s6 = sshll.u32 %s9955_s3, 3 }
  0xbf   : > { %s9242_s11 = scalar_select %p5742_p11, 1, 0 }
  0xc0   : > { %s9959_s22 = smov (!%p118_p12, %s9233_s22), %s120_s13  ;;  %s4480_s16 = sshll.u32 %s354_s19, 6 }
  0xc1   : > { %s366_s5 = sadd.s32 %s4482_s6, %s5559_s20  ;;  %s9243_s7 = sld [smem:[#allocation77_spill]] }
  0xc2   : > { %s4484_s21 = sshll.u32 %s366_s5, 7  ;;  %s356_s26 = scalar_lea.vmem [#allocation9], %s4480_s16 }
  0xc3   : > { %s369_s12 = sshll.u32 %s356_s26, 4  ;;  %p9244_p0 = scmp.lt.s32.totalorder %s5342_s14, 4  ;;  %s5756_s12 = int_to_ptr.vmem [resolvable:$true] %s369_s12 }
  0xc5   : > { %p5762_p7 = pnand %p9244_p0, %p5736_p10 }
  0xc7   : > { %s5754_s0 = scalar_lea.hbm %s9243_s7, %s4484_s21  ;;  %p5156_p9 = pneg %p5762_p7 }
  0xc8   : > { %s5154_s20 = scalar_lea.hbm %s5754_s0, 1024  ;;  %s5159_s6 = scalar_lea.hbm %s9243_s7, 16384 }
  0xc9   : > { %p5155_p13 = scmp.ne.s32.totalorder %s5754_s0, %s5154_s20  ;;  %p5160_p8 = scmp.lt.u32.totalorder %s5754_s0, %s9243_s7 }
  0xca   : > { %p5161_p5 = scmp.lt.u32.totalorder %s5159_s6, %s5154_s20  ;;  %p5163_p10 = scmp.lt.u32.totalorder %s5154_s20, %s5754_s0 }
  0xcb   : > { %p5157_p1 = pnand %p5156_p9, %p5155_p13 }
  0xcc   : > { %p5162_p6 = por %p5161_p5, %p5160_p8 }
  0xcd   : > { %p5158_p4 = pneg %p5157_p1 }
  0xce   : > { %p5164_p12 = por %p5163_p10, %p5162_p6 }
  0xd0   : > { %p5165_p2 = pnand %p5164_p12, %p5158_p4 }
  0xd2   : > { %5168 = shalt.err (!%p5165_p2)
}
  0xd3   : > { %s5169_s5 = scalar_lea.vmem %s5756_s12, 1024  ;;  %s5350_s21 = smov [#allocation9]  }
  0xd4   : > { %p5170_p0 = scmp.ne.s32.totalorder %s5756_s12, %s5169_s5  ;;  %s5174_s4 = sshll.u32 %s5350_s21, 4  ;;  %s5175_s4 = int_to_ptr.vmem [resolvable:$false] %s5174_s4 }
  0xd5   : > { %s5176_s18 = scalar_lea.vmem %s5175_s4, 2048  ;;  %p5177_p11 = scmp.lt.s32.totalorder %s5756_s12, %s5175_s4 }
  0xd6   : > { %p5172_p13 = pnand %p5170_p0, %p5156_p9  ;;  %p5178_p8 = scmp.lt.s32.totalorder %s5176_s18, %s5169_s5 }
  0xd8   : > { %p5173_p1 = pneg %p5172_p13  ;;  %p5179_p5 = por %p5178_p8, %p5177_p11 }
  0xda   : > { %p5180_p6 = pnand %p5179_p5, %p5173_p1 }
  0xdc   : > { %5183 = shalt.err (!%p5180_p6)
}
  0xdd   : > { %4848 = dma.hbm_to_vmem [thread:$0]  (!%p5762_p7), %s5754_s0, 1024, %s5756_s12, %s5581_s24, %s9218_s10, %s9218_s10, %s9217_s25  }
  0xde   : > { %s9246_s26 = sld [smem:[#allocation27_spill]] }
  0xe4   : > { %p9247_p9 = scmp.ne.s32.totalorder %s9246_s26, 0 }
  0xe6   : > { %381 = sbr.rel (%p9247_p9) target bundleno = 1093 (0x445), region = 48 }
  0xed   : > { %s5798_s20 = sand.u32 1, %s5318_s8  }
  0xee   : > { %s4486_s13 = sshll.u32 %s5798_s20, 8  ;;  %s384_s19 = scalar_lea.sflag [#allocation5], %s5798_s20 }
  0xef   : > { %s5802_s6 = scalar_lea.vmem [#allocation4], %s4486_s13 }
  0xf0   : > { %5269 = dma.done.wait (%p5665_p3), %s384_s19, 4096  }
  0xf1   : > { %5271 = vsyncadd (%p5665_p3), %s384_s19, 4294963200  ;;  %s9248_s0 = sld [smem:[#allocation22_spill]]  ;;  %s9249_s12 = sld [smem:[#allocation31_spill]] }
  0xf2   : > { %s392_s24 = sand.u32 1, %s5467_s15  }
  0xf3   : > { %s393_s3 = scalar_lea.sflag [#allocation8], %s392_s24 }
  0xf7   : > { %s394_s25 = sand.u32 1, %s9248_s0   ;;  %p9250_p11 = scmp.ne.s32.totalorder %s9249_s12, 0 }
  0xf8   : > { %s4487_s10 = sshll.u32 %s394_s25, 6 }
  0xf9   : > { %s5810_s1 = scalar_lea.vmem [#allocation7], %s4487_s10 }
  0xfa   : > { %5273 = dma.done.wait (%p9250_p11), %s393_s3, 1024  }
  0xfb   : > { %5275 = vsyncadd (%p9250_p11), %s393_s3, 4294966272  ;;  %s9251_s16 = sld [smem:[#allocation20_spill]]  ;;  %p9252_p3 = scmp.ne.s32.totalorder %s9242_s11, 0 }
 0x101   : > { %s403_s5 = sand.u32 1, %s9251_s16  }
 0x102   : > { %s4488_s21 = sshll.u32 %s403_s5, 6 }
 0x103   : > { %s5817_s28 = scalar_lea.vmem [#allocation9], %s4488_s21 }
 0x104   : > { %5277 = dma.done.wait (%p9252_p3), %s393_s3, 1024  }
 0x105   : > { %5279 = vsyncadd (%p9252_p3), %s393_s3, 4294966272  ;;  %p9253_p7 = scmp.eq.s32.totalorder %s5467_s15, 0 }
 0x107   : > { %5281 = dma.done.wait (%p9253_p7), [#allocation11], 2560   ;;  %p9254_p4 = pmov %p9253_p7 }
 0x108   : > { %s9255_s4 = sld [smem:[#allocation23_spill]]  ;;  %s5832_s0 = scalar_lea.vmem [#allocation13], %s4486_s13 }
 0x109   : > { %5283 = vsyncadd (%p9254_p4), [#allocation11], 4294964736 }
 0x10e   : > { %s4492_s18 = sshll.u32 %s9255_s4, 2  ;;  %p4494_p10 = scmp.ne.s32.totalorder %s9255_s4, 0 }
 0x10f   : > { %s5828_s26 = sadd.s32 4294967295, %s4492_s18  ;;  %s5830_s19 = sadd.s32 4, %s4492_s18  ;;  %v5351_v0 = vmov (!%p4494_p10), 0.0  }
 0x110   : > { %470 = sbr.rel (%p4494_p10) target bundleno = 332 (0x14c), region = 72  ;;  %471 = vst [vmem:[#allocation2] sm:$0xff] (!%p4494_p10), %v5351_v0  ;;  %472 = vst [vmem:[#allocation2 + $0x8] sm:$0x3] (!%p4494_p10), %v5351_v0 }
 0x111   : > { %473 = vst [vmem:[#allocation2 + $0x10] sm:$0xff] (!%p4494_p10), %v5351_v0  ;;  %474 = vst [vmem:[#allocation2 + $0x18] sm:$0x3] (!%p4494_p10), %v5351_v0 }
 0x112   : > { %475 = vst [vmem:[#allocation2 + $0x20] sm:$0xff] (!%p4494_p10), %v5351_v0  ;;  %476 = vst [vmem:[#allocation2 + $0x28] sm:$0x3] (!%p4494_p10), %v5351_v0 }
 0x113   : > { %477 = vst [vmem:[#allocation2 + $0x30] sm:$0xff] (!%p4494_p10), %v5351_v0  ;;  %478 = vst [vmem:[#allocation2 + $0x38] sm:$0x3] (!%p4494_p10), %v5351_v0 }
 0x114   : > { %479 = vst [vmem:[#allocation2 + $0x40] sm:$0xff] (!%p4494_p10), %v5351_v0  ;;  %480 = vst [vmem:[#allocation2 + $0x48] sm:$0x3] (!%p4494_p10), %v5351_v0 }
 0x115   : > { %481 = vst [vmem:[#allocation2 + $0x50] sm:$0xff] (!%p4494_p10), %v5351_v0  ;;  %482 = vst [vmem:[#allocation2 + $0x58] sm:$0x3] (!%p4494_p10), %v5351_v0 }
 0x116   : > { %483 = vst [vmem:[#allocation2 + $0x60] sm:$0xff] (!%p4494_p10), %v5351_v0  ;;  %484 = vst [vmem:[#allocation2 + $0x68] sm:$0x3] (!%p4494_p10), %v5351_v0 }
 0x117   : > { %485 = vst [vmem:[#allocation2 + $0x70] sm:$0xff] %v5351_v0  ;;  %486 = vst [vmem:[#allocation2 + $0x78] sm:$0x3] %v5351_v0 }
 0x118   : > { %487 = vst [vmem:[#allocation2 + $0x80] sm:$0xff] %v5351_v0  ;;  %488 = vst [vmem:[#allocation2 + $0x88] sm:$0x3] %v5351_v0 }
 0x119   : > { %489 = vst [vmem:[#allocation2 + $0x90] sm:$0xff] %v5351_v0  ;;  %490 = vst [vmem:[#allocation2 + $0x98] sm:$0x3] %v5351_v0 }
 0x11a   : > { %491 = vst [vmem:[#allocation2 + $0xa0] sm:$0xff] %v5351_v0  ;;  %492 = vst [vmem:[#allocation2 + $0xa8] sm:$0x3] %v5351_v0 }
 0x11b   : > { %493 = vst [vmem:[#allocation2 + $0xb0] sm:$0xff] %v5351_v0  ;;  %494 = vst [vmem:[#allocation2 + $0xb8] sm:$0x3] %v5351_v0 }
 0x11c   : > { %495 = vst [vmem:[#allocation2 + $0xc0] sm:$0xff] %v5351_v0  ;;  %496 = vst [vmem:[#allocation2 + $0xc8] sm:$0x3] %v5351_v0 }
 0x11d   : > { %497 = vst [vmem:[#allocation2 + $0xd0] sm:$0xff] %v5351_v0  ;;  %498 = vst [vmem:[#allocation2 + $0xd8] sm:$0x3] %v5351_v0 }
 0x11e   : > { %499 = vst [vmem:[#allocation2 + $0xe0] sm:$0xff] %v5351_v0  ;;  %500 = vst [vmem:[#allocation2 + $0xe8] sm:$0x3] %v5351_v0 }
 0x11f   : > { %501 = vst [vmem:[#allocation2 + $0xf0] sm:$0xff] %v5351_v0  ;;  %502 = vst [vmem:[#allocation2 + $0xf8] sm:$0x3] %v5351_v0 }
 0x120   : > { %503 = vst [vmem:[#allocation2 + $0x100] sm:$0xff] %v5351_v0  ;;  %504 = vst [vmem:[#allocation2 + $0x108] sm:$0x3] %v5351_v0 }
 0x121   : > { %505 = vst [vmem:[#allocation2 + $0x110] sm:$0xff] %v5351_v0  ;;  %506 = vst [vmem:[#allocation2 + $0x118] sm:$0x3] %v5351_v0 }
 0x122   : > { %507 = vst [vmem:[#allocation2 + $0x120] sm:$0xff] %v5351_v0  ;;  %508 = vst [vmem:[#allocation2 + $0x128] sm:$0x3] %v5351_v0 }
 0x123   : > { %509 = vst [vmem:[#allocation2 + $0x130] sm:$0xff] %v5351_v0  ;;  %510 = vst [vmem:[#allocation2 + $0x138] sm:$0x3] %v5351_v0 }
 0x124   : > { %511 = vst [vmem:[#allocation2 + $0x140] sm:$0xff] %v5351_v0  ;;  %512 = vst [vmem:[#allocation2 + $0x148] sm:$0x3] %v5351_v0 }
 0x125   : > { %513 = vst [vmem:[#allocation2 + $0x150] sm:$0xff] %v5351_v0  ;;  %514 = vst [vmem:[#allocation2 + $0x158] sm:$0x3] %v5351_v0 }
 0x126   : > { %515 = vst [vmem:[#allocation2 + $0x160] sm:$0xff] %v5351_v0  ;;  %516 = vst [vmem:[#allocation2 + $0x168] sm:$0x3] %v5351_v0 }
 0x127   : > { %517 = vst [vmem:[#allocation2 + $0x170] sm:$0xff] %v5351_v0  ;;  %518 = vst [vmem:[#allocation2 + $0x178] sm:$0x3] %v5351_v0 }
 0x128   : > { %519 = vst [vmem:[#allocation2 + $0x180] sm:$0xff] %v5351_v0  ;;  %520 = vst [vmem:[#allocation2 + $0x188] sm:$0x3] %v5351_v0 }
 0x129   : > { %521 = vst [vmem:[#allocation2 + $0x190] sm:$0xff] %v5351_v0  ;;  %522 = vst [vmem:[#allocation2 + $0x198] sm:$0x3] %v5351_v0 }
 0x12a   : > { %523 = vst [vmem:[#allocation2 + $0x1a0] sm:$0xff] %v5351_v0  ;;  %524 = vst [vmem:[#allocation2 + $0x1a8] sm:$0x3] %v5351_v0 }
 0x12b   : > { %525 = vst [vmem:[#allocation2 + $0x1b0] sm:$0xff] %v5351_v0  ;;  %526 = vst [vmem:[#allocation2 + $0x1b8] sm:$0x3] %v5351_v0 }
 0x12c   : > { %527 = vst [vmem:[#allocation2 + $0x1c0] sm:$0xff] %v5351_v0  ;;  %528 = vst [vmem:[#allocation2 + $0x1c8] sm:$0x3] %v5351_v0 }
 0x12d   : > { %529 = vst [vmem:[#allocation2 + $0x1d0] sm:$0xff] %v5351_v0  ;;  %530 = vst [vmem:[#allocation2 + $0x1d8] sm:$0x3] %v5351_v0 }
 0x12e   : > { %531 = vst [vmem:[#allocation2 + $0x1e0] sm:$0xff] %v5351_v0  ;;  %532 = vst [vmem:[#allocation2 + $0x1e8] sm:$0x3] %v5351_v0 }
 0x12f   : > { %533 = vst [vmem:[#allocation2 + $0x1f0] sm:$0xff] %v5351_v0  ;;  %534 = vst [vmem:[#allocation2 + $0x1f8] sm:$0x3] %v5351_v0 }
 0x130   : > { %535 = vst [vmem:[#allocation2 + $0x200] sm:$0xff] %v5351_v0  ;;  %536 = vst [vmem:[#allocation2 + $0x208] sm:$0x3] %v5351_v0 }
 0x131   : > { %537 = vst [vmem:[#allocation2 + $0x210] sm:$0xff] %v5351_v0  ;;  %538 = vst [vmem:[#allocation2 + $0x218] sm:$0x3] %v5351_v0 }
 0x132   : > { %539 = vst [vmem:[#allocation2 + $0x220] sm:$0xff] %v5351_v0  ;;  %540 = vst [vmem:[#allocation2 + $0x228] sm:$0x3] %v5351_v0 }
 0x133   : > { %541 = vst [vmem:[#allocation2 + $0x230] sm:$0xff] %v5351_v0  ;;  %542 = vst [vmem:[#allocation2 + $0x238] sm:$0x3] %v5351_v0 }
 0x134   : > { %543 = vst [vmem:[#allocation2 + $0x240] sm:$0xff] %v5351_v0  ;;  %544 = vst [vmem:[#allocation2 + $0x248] sm:$0x3] %v5351_v0 }
 0x135   : > { %545 = vst [vmem:[#allocation2 + $0x250] sm:$0xff] %v5351_v0  ;;  %546 = vst [vmem:[#allocation2 + $0x258] sm:$0x3] %v5351_v0 }
 0x136   : > { %547 = vst [vmem:[#allocation2 + $0x260] sm:$0xff] %v5351_v0  ;;  %548 = vst [vmem:[#allocation2 + $0x268] sm:$0x3] %v5351_v0 }
 0x137   : > { %549 = vst [vmem:[#allocation2 + $0x270] sm:$0xff] %v5351_v0  ;;  %550 = vst [vmem:[#allocation2 + $0x278] sm:$0x3] %v5351_v0 }
 0x138   : > { %551 = vst [vmem:[#allocation2 + $0x280] sm:$0xff] %v5351_v0  ;;  %552 = vst [vmem:[#allocation2 + $0x288] sm:$0x3] %v5351_v0 }
 0x139   : > { %553 = vst [vmem:[#allocation2 + $0x290] sm:$0xff] %v5351_v0  ;;  %554 = vst [vmem:[#allocation2 + $0x298] sm:$0x3] %v5351_v0 }
 0x13a   : > { %555 = vst [vmem:[#allocation2 + $0x2a0] sm:$0xff] %v5351_v0  ;;  %556 = vst [vmem:[#allocation2 + $0x2a8] sm:$0x3] %v5351_v0 }
 0x13b   : > { %557 = vst [vmem:[#allocation2 + $0x2b0] sm:$0xff] %v5351_v0  ;;  %558 = vst [vmem:[#allocation2 + $0x2b8] sm:$0x3] %v5351_v0 }
 0x13c   : > { %559 = vst [vmem:[#allocation2 + $0x2c0] sm:$0xff] %v5351_v0  ;;  %560 = vst [vmem:[#allocation2 + $0x2c8] sm:$0x3] %v5351_v0 }
 0x13d   : > { %561 = vst [vmem:[#allocation2 + $0x2d0] sm:$0xff] %v5351_v0  ;;  %562 = vst [vmem:[#allocation2 + $0x2d8] sm:$0x3] %v5351_v0 }
 0x13e   : > { %563 = vst [vmem:[#allocation2 + $0x2e0] sm:$0xff] %v5351_v0  ;;  %564 = vst [vmem:[#allocation2 + $0x2e8] sm:$0x3] %v5351_v0 }
 0x13f   : > { %565 = vst [vmem:[#allocation2 + $0x2f0] sm:$0xff] %v5351_v0  ;;  %566 = vst [vmem:[#allocation2 + $0x2f8] sm:$0x3] %v5351_v0 }
 0x140   : > { %567 = vst [vmem:[#allocation2 + $0x300] sm:$0xff] %v5351_v0  ;;  %568 = vst [vmem:[#allocation2 + $0x308] sm:$0x3] %v5351_v0 }
 0x141   : > { %569 = vst [vmem:[#allocation2 + $0x310] sm:$0xff] %v5351_v0  ;;  %570 = vst [vmem:[#allocation2 + $0x318] sm:$0x3] %v5351_v0 }
 0x142   : > { %571 = vst [vmem:[#allocation2 + $0x320] sm:$0xff] %v5351_v0  ;;  %572 = vst [vmem:[#allocation2 + $0x328] sm:$0x3] %v5351_v0 }
 0x143   : > { %573 = vst [vmem:[#allocation2 + $0x330] sm:$0xff] %v5351_v0  ;;  %574 = vst [vmem:[#allocation2 + $0x338] sm:$0x3] %v5351_v0 }
 0x144   : > { %575 = vst [vmem:[#allocation2 + $0x340] sm:$0xff] %v5351_v0  ;;  %576 = vst [vmem:[#allocation2 + $0x348] sm:$0x3] %v5351_v0 }
 0x145   : > { %577 = vst [vmem:[#allocation2 + $0x350] sm:$0xff] %v5351_v0  ;;  %578 = vst [vmem:[#allocation2 + $0x358] sm:$0x3] %v5351_v0 }
 0x146   : > { %579 = vst [vmem:[#allocation2 + $0x360] sm:$0xff] %v5351_v0  ;;  %580 = vst [vmem:[#allocation2 + $0x368] sm:$0x3] %v5351_v0 }
 0x147   : > { %581 = vst [vmem:[#allocation2 + $0x370] sm:$0xff] %v5351_v0  ;;  %582 = vst [vmem:[#allocation2 + $0x378] sm:$0x3] %v5351_v0 }
 0x148   : > { %583 = vst [vmem:[#allocation2 + $0x380] sm:$0xff] %v5351_v0  ;;  %584 = vst [vmem:[#allocation2 + $0x388] sm:$0x3] %v5351_v0 }
 0x149   : > { %585 = vst [vmem:[#allocation2 + $0x390] sm:$0xff] %v5351_v0  ;;  %586 = vst [vmem:[#allocation2 + $0x398] sm:$0x3] %v5351_v0 }
 0x14a   : > { %587 = vst [vmem:[#allocation2 + $0x3a0] sm:$0xff] %v5351_v0  ;;  %588 = vst [vmem:[#allocation2 + $0x3a8] sm:$0x3] %v5351_v0 }
 0x14b   : > { %589 = vst [vmem:[#allocation2 + $0x3b0] sm:$0xff] %v5351_v0  ;;  %590 = vst [vmem:[#allocation2 + $0x3b8] sm:$0x3] %v5351_v0 }
 0x14c PF: > { %p4495_p12 = scmp.lt.s32.totalorder %s5828_s26, 0 }
 0x14d   : > { %v595_v1 = vld [vmem:[%s5810_s1] sm:$0xff] (!%p4495_p12)  ;;  %v596_v2 = vld [vmem:[%s5810_s1 + $0x8] sm:$0xff] (!%p4495_p12)  ;;  %v597_v3 = vld [vmem:[%s5810_s1 + $0x10] sm:$0xff] (!%p4495_p12) }
 0x14e   : > { %594 = sbr.rel (%p4495_p12) target bundleno = 341 (0x155), region = 76  ;;  %604 = vst [vmem:[#allocation2 + $0x11] sm:$0xff] (!%p4495_p12), %v595_v1  ;;  %605 = vst [vmem:[#allocation2 + $0x21] sm:$0xff] (!%p4495_p12), %v596_v2  ;;  %v598_v4 = vld [vmem:[%s5810_s1 + $0x18] sm:$0xff] (!%p4495_p12)  ;;  %v599_v5 = vld [vmem:[%s5810_s1 + $0x20] sm:$0xff] (!%p4495_p12) }
 0x14f   : > { %606 = vst [vmem:[#allocation2 + $0x31] sm:$0xff] (!%p4495_p12), %v597_v3  ;;  %v600_v6 = vld [vmem:[%s5810_s1 + $0x28] sm:$0xff] (!%p4495_p12)  ;;  %607 = vst [vmem:[#allocation2 + $0x41] sm:$0xff] (!%p4495_p12), %v598_v4  ;;  %v601_v7 = vld [vmem:[%s5810_s1 + $0x30] sm:$0xff] (!%p4495_p12) }
 0x150   : > { %608 = vst [vmem:[#allocation2 + $0x51] sm:$0xff] (!%p4495_p12), %v599_v5  ;;  %609 = vst [vmem:[#allocation2 + $0x61] sm:$0xff] (!%p4495_p12), %v600_v6  ;;  %v602_v8 = vld [vmem:[%s5810_s1 + $0x38] sm:$0xff] (!%p4495_p12) }
 0x151   : > { %610 = vst [vmem:[#allocation2 + $0x71] sm:$0xff] (!%p4495_p12), %v601_v7  ;;  %611 = vst [vmem:[#allocation2 + $0x81] sm:$0xff] (!%p4495_p12), %v602_v8 }
 0x155 PF: > { %v612_v9 = vld [vmem:[%s5802_s6] sm:$0xff]  ;;  %v613_v10 = vld [vmem:[%s5802_s6 + $0x8] sm:$0xff]  ;;  %v614_v11 = vld [vmem:[%s5802_s6 + $0x10] sm:$0xff]  ;;  %p4520_p2 = scmp.ge.s32.totalorder %s5830_s19, 8 }
 0x156   : > { %621 = vst [vmem:[#allocation2 + $0xb1] sm:$0xff] %v612_v9  ;;  %622 = vst [vmem:[#allocation2 + $0xc1] sm:$0xff] %v613_v10  ;;  %v615_v12 = vld [vmem:[%s5802_s6 + $0x18] sm:$0xff]  ;;  %v616_v13 = vld [vmem:[%s5802_s6 + $0x20] sm:$0xff] }
 0x157   : > { %623 = vst [vmem:[#allocation2 + $0xd1] sm:$0xff] %v614_v11  ;;  %v617_v14 = vld [vmem:[%s5802_s6 + $0x28] sm:$0xff]  ;;  %624 = vst [vmem:[#allocation2 + $0xe1] sm:$0xff] %v615_v12  ;;  %v618_v15 = vld [vmem:[%s5802_s6 + $0x30] sm:$0xff] }
 0x158   : > { %625 = vst [vmem:[#allocation2 + $0xf1] sm:$0xff] %v616_v13  ;;  %626 = vst [vmem:[#allocation2 + $0x101] sm:$0xff] %v617_v14  ;;  %v619_v16 = vld [vmem:[%s5802_s6 + $0x38] sm:$0xff]  ;;  %v4496_v17 = vld [vmem:[%s5802_s6 + $0x40] sm:$0xff] }
 0x159   : > { %627 = vst [vmem:[#allocation2 + $0x111] sm:$0xff] %v618_v15  ;;  %628 = vst [vmem:[#allocation2 + $0x121] sm:$0xff] %v619_v16  ;;  %v4497_v18 = vld [vmem:[%s5802_s6 + $0x48] sm:$0xff]  ;;  %v4498_v19 = vld [vmem:[%s5802_s6 + $0x50] sm:$0xff] }
 0x15a   : > { %639 = vst [vmem:[#allocation2 + $0x151] sm:$0xff] %v4496_v17  ;;  %v4499_v20 = vld [vmem:[%s5802_s6 + $0x58] sm:$0xff]  ;;  %640 = vst [vmem:[#allocation2 + $0x161] sm:$0xff] %v4497_v18  ;;  %v4500_v21 = vld [vmem:[%s5802_s6 + $0x60] sm:$0xff] }
 0x15b   : > { %641 = vst [vmem:[#allocation2 + $0x171] sm:$0xff] %v4498_v19  ;;  %642 = vst [vmem:[#allocation2 + $0x181] sm:$0xff] %v4499_v20  ;;  %v4501_v22 = vld [vmem:[%s5802_s6 + $0x68] sm:$0xff]  ;;  %v4502_v23 = vld [vmem:[%s5802_s6 + $0x70] sm:$0xff] }
 0x15c   : > { %643 = vst [vmem:[#allocation2 + $0x191] sm:$0xff] %v4500_v21  ;;  %644 = vst [vmem:[#allocation2 + $0x1a1] sm:$0xff] %v4501_v22  ;;  %v4503_v24 = vld [vmem:[%s5802_s6 + $0x78] sm:$0xff]  ;;  %v4504_v25 = vld [vmem:[%s5802_s6 + $0x80] sm:$0xff] }
 0x15d   : > { %645 = vst [vmem:[#allocation2 + $0x1b1] sm:$0xff] %v4502_v23  ;;  %v4505_v26 = vld [vmem:[%s5802_s6 + $0x88] sm:$0xff]  ;;  %646 = vst [vmem:[#allocation2 + $0x1c1] sm:$0xff] %v4503_v24  ;;  %v4506_v27 = vld [vmem:[%s5802_s6 + $0x90] sm:$0xff] }
 0x15e   : > { %657 = vst [vmem:[#allocation2 + $0x1f1] sm:$0xff] %v4504_v25  ;;  %658 = vst [vmem:[#allocation2 + $0x201] sm:$0xff] %v4505_v26  ;;  %v4507_v28 = vld [vmem:[%s5802_s6 + $0x98] sm:$0xff]  ;;  %v4508_v29 = vld [vmem:[%s5802_s6 + $0xa0] sm:$0xff] }
 0x15f   : > { %659 = vst [vmem:[#allocation2 + $0x211] sm:$0xff] %v4506_v27  ;;  %660 = vst [vmem:[#allocation2 + $0x221] sm:$0xff] %v4507_v28  ;;  %v4509_v30 = vld [vmem:[%s5802_s6 + $0xa8] sm:$0xff]  ;;  %v4510_v31 = vld [vmem:[%s5802_s6 + $0xb0] sm:$0xff]  ;;  %686 = sbr.rel (%p4520_p2) target bundleno = 362 (0x16a), region = 80 }
 0x160   : > { %661 = vst [vmem:[#allocation2 + $0x231] sm:$0xff] %v4508_v29  ;;  %v4511_v32 = vld [vmem:[%s5802_s6 + $0xb8] sm:$0xff]  ;;  %662 = vst [vmem:[#allocation2 + $0x241] sm:$0xff] %v4509_v30  ;;  %v4512_v33 = vld [vmem:[%s5802_s6 + $0xc0] sm:$0xff] }
 0x161   : > { %663 = vst [vmem:[#allocation2 + $0x251] sm:$0xff] %v4510_v31  ;;  %664 = vst [vmem:[#allocation2 + $0x261] sm:$0xff] %v4511_v32  ;;  %v4513_v34 = vld [vmem:[%s5802_s6 + $0xc8] sm:$0xff]  ;;  %v4514_v35 = vld [vmem:[%s5802_s6 + $0xd0] sm:$0xff] }
 0x162   : > { %675 = vst [vmem:[#allocation2 + $0x291] sm:$0xff] %v4512_v33  ;;  %676 = vst [vmem:[#allocation2 + $0x2a1] sm:$0xff] %v4513_v34  ;;  %v4515_v36 = vld [vmem:[%s5802_s6 + $0xd8] sm:$0xff]  ;;  %v4516_v37 = vld [vmem:[%s5802_s6 + $0xe0] sm:$0xff] }
 0x163   : > { %677 = vst [vmem:[#allocation2 + $0x2b1] sm:$0xff] %v4514_v35  ;;  %v4517_v38 = vld [vmem:[%s5802_s6 + $0xe8] sm:$0xff]  ;;  %678 = vst [vmem:[#allocation2 + $0x2c1] sm:$0xff] %v4515_v36  ;;  %v4518_v39 = vld [vmem:[%s5802_s6 + $0xf0] sm:$0xff] }
 0x164   : > { %679 = vst [vmem:[#allocation2 + $0x2d1] sm:$0xff] %v4516_v37  ;;  %680 = vst [vmem:[#allocation2 + $0x2e1] sm:$0xff] %v4517_v38  ;;  %v4519_v40 = vld [vmem:[%s5802_s6 + $0xf8] sm:$0xff]  ;;  %v687_v41 = vld [vmem:[%s5817_s28] sm:$0xff] (!%p4520_p2) }
 0x165   : > { %681 = vst [vmem:[#allocation2 + $0x2f1] sm:$0xff] %v4518_v39  ;;  %682 = vst [vmem:[#allocation2 + $0x301] sm:$0xff] %v4519_v40  ;;  %v688_v42 = vld [vmem:[%s5817_s28 + $0x8] sm:$0xff] (!%p4520_p2)  ;;  %v689_v43 = vld [vmem:[%s5817_s28 + $0x10] sm:$0xff] (!%p4520_p2) }
 0x166   : > { %696 = vst [vmem:[#allocation2 + $0x331] sm:$0xff] %v687_v41  ;;  %697 = vst [vmem:[#allocation2 + $0x341] sm:$0xff] %v688_v42  ;;  %v690_v44 = vld [vmem:[%s5817_s28 + $0x18] sm:$0xff]  ;;  %v691_v45 = vld [vmem:[%s5817_s28 + $0x20] sm:$0xff] }
 0x167   : > { %698 = vst [vmem:[#allocation2 + $0x351] sm:$0xff] %v689_v43  ;;  %v692_v46 = vld [vmem:[%s5817_s28 + $0x28] sm:$0xff]  ;;  %699 = vst [vmem:[#allocation2 + $0x361] sm:$0xff] %v690_v44  ;;  %v693_v47 = vld [vmem:[%s5817_s28 + $0x30] sm:$0xff] }
 0x168   : > { %700 = vst [vmem:[#allocation2 + $0x371] sm:$0xff] %v691_v45  ;;  %701 = vst [vmem:[#allocation2 + $0x381] sm:$0xff] %v692_v46  ;;  %v694_v48 = vld [vmem:[%s5817_s28 + $0x38] sm:$0xff] }
 0x169   : > { %702 = vst [vmem:[#allocation2 + $0x391] sm:$0xff] %v693_v47  ;;  %703 = vst [vmem:[#allocation2 + $0x3a1] sm:$0xff] %v694_v48 }
 0x16a PF: > { %s9256_s15 = sld [smem:[#allocation23_spill]] }
 0x170   : > { %p705_p0 = scmp.gt.s32.totalorder %s9256_s15, 0 }
 0x172   : > { %p706_p13 = pnand %p4520_p2, %p705_p0 }
 0x173   : > { %v5352_v49 = vmov (!%p706_p13), 0.0  }
 0x174   : > { %709 = sbr.rel (%p706_p13) target bundleno = 379 (0x17b), region = 84  ;;  %711 = vst [vmem:[#allocation2 + $0x331] sm:$0xff] (!%p706_p13), %v5352_v49  ;;  %712 = vst [vmem:[#allocation2 + $0x341] sm:$0xff] (!%p706_p13), %v5352_v49 }
 0x175   : > { %713 = vst [vmem:[#allocation2 + $0x351] sm:$0xff] (!%p706_p13), %v5352_v49  ;;  %714 = vst [vmem:[#allocation2 + $0x361] sm:$0xff] (!%p706_p13), %v5352_v49 }
 0x176   : > { %715 = vst [vmem:[#allocation2 + $0x371] sm:$0xff] (!%p706_p13), %v5352_v49  ;;  %716 = vst [vmem:[#allocation2 + $0x381] sm:$0xff] (!%p706_p13), %v5352_v49 }
 0x177   : > { %717 = vst [vmem:[#allocation2 + $0x391] sm:$0xff] (!%p706_p13), %v5352_v49  ;;  %718 = vst [vmem:[#allocation2 + $0x3a1] sm:$0xff] (!%p706_p13), %v5352_v49 }
 0x17b PF: > { %v3970_v50 = vld [vmem:[#allocation12] sm:$0xff]  ;;  %v3971_v51 = vld [vmem:[#allocation12 + $0x8] sm:$0xff]  ;;  %v3972_v52 = vld [vmem:[#allocation12 + $0x10] sm:$0xff]  ;;  %s9287_s6 = sld [smem:[#allocation79_spill]]  ;;  %s9907_s21 = sld [smem:[#allocation81_spill]] }
 0x17c   : > { %v4768_v53 = vpack.c.bf16 %v3971_v51, %v3970_v50  ;;  %v3973_v54 = vld [vmem:[#allocation12 + $0x18] sm:$0xff]  ;;  %v3974_v55 = vld [vmem:[#allocation12 + $0x20] sm:$0xff]  ;;  %v3975_v57 = vld [vmem:[#allocation12 + $0x28] sm:$0xff]  ;;  %s9922_s28 = sld [smem:[#allocation23_spill]]  ;;  %s9923_s4 = sld [smem:[#allocation24_spill]] }
 0x17d   : > { %v4772_v56 = vpack.c.bf16 %v3973_v54, %v3972_v52  ;;  %v3976_v58 = vld [vmem:[#allocation12 + $0x30] sm:$0xff]  ;;  %v3977_v59 = vld [vmem:[#allocation12 + $0x38] sm:$0xff]  ;;  %v3978_v60 = vld [vmem:[#allocation12 + $0x40] sm:$0xff]  ;;  %v4776_v2 = vpack.c.bf16 %v3975_v57, %v3974_v55  ;;  %s4299_s11 = sshll.u32 %s5832_s0, 4  ;;  %s9924_s24 = sld [smem:[#allocation82_spill]]  ;;  %s8630_s11 = int_to_ptr.vmem [resolvable:$true] %s4299_s11 }
 0x17e   : > { %4769 = vmatprep.subr.bf16.mxu0 %v4768_v53  ;;  %4800 = vmatprep.subr.bf16.mxu1 %v4768_v53  ;;  %v3979_v61 = vld [vmem:[#allocation12 + $0x48] sm:$0xff]  ;;  %v3980_v62 = vld [vmem:[#allocation12 + $0x50] sm:$0xff]  ;;  %v3981_v63 = vld [vmem:[#allocation12 + $0x58] sm:$0xff]  ;;  %v6012_v6 = vpack.c.bf16 %v3977_v59, %v3976_v58  ;;  %s4283_s10 = scalar_lea.sflag [#allocation6], %s5798_s20  ;;  %s5184_s1 = scalar_lea.vmem %s8630_s11, 4096 }
 0x17f   : > { %4771 = vmatpush3.bf16.msra.mxu0 %v4768_v53  ;;  %4808 = vmatpush3.bf16.msra.mxu1 %v4768_v53  ;;  %v3982_v0 = vld [vmem:[#allocation12 + $0x60] sm:$0xff]  ;;  %v3983_v1 = vld [vmem:[#allocation12 + $0x68] sm:$0xff]  ;;  %v3984_v3 = vld [vmem:[#allocation12 + $0x70] sm:$0xff]  ;;  %v6016_v10 = vpack.c.bf16 %v3979_v61, %v3978_v60  ;;  %v6018_v11 = vpack.c.bf16 %v3981_v63, %v3980_v62  ;;  %p5185_p1 = scmp.ne.s32.totalorder %s8630_s11, %s5184_s1  ;;  %p9926_p8 = scmp.ne.s32.totalorder %s9226_s17, 0 }
 0x180   : > { %4773 = vmatprep.subr.bf16.mxu0 %v4772_v56  ;;  %4801 = vmatprep.subr.bf16.mxu1 %v4772_v56  ;;  %v3985_v4 = vld [vmem:[#allocation12 + $0x78] sm:$0xff]  ;;  %v6010_v5 = vld [vmem:[#allocation10] ss:$0 sm:$0xff]  ;;  %v6014_v8 = vld [vmem:[#allocation10 + $0x1] ss:$0 sm:$0xff]  ;;  %v6026_v17 = vpack.c.bf16 %v3983_v1, %v3982_v0  ;;  %s5353_s16 = smov [#allocation13]  }
 0x181   : > { %9257 = vst [vmem:[#allocation32_spill] sm:$0xff] %v6010_v5  ;;  %v721_v7 = vld [vmem:[#allocation2] sm:$0xff]  ;;  %9258 = vst [vmem:[#allocation33_spill] sm:$0xff] %v6014_v8  ;;  %v6028_v18 = vpack.c.bf16 %v3985_v4, %v3984_v3  ;;  %v801_v20 = vld [vmem:[#allocation2 + $0x10] sm:$0xff]  ;;  %p5186_p5 = pnand %p5185_p1, %p9926_p8  ;;  %s5188_s5 = sshll.u32 %s5353_s16, 4  ;;  %s5189_s5 = int_to_ptr.vmem [resolvable:$false] %s5188_s5 }
 0x182   : > { %v742_v9 = vld [vmem:[#allocation2 + $0x1] sm:$0xff]  ;;  %v733_v12 = vmul.f32 %v6010_v5, %v721_v7  ;;  %v830_v22 = vld [vmem:[#allocation2 + $0x11] sm:$0xff]  ;;  %v734_v33 = vmul.f32 %v6010_v5, %v801_v20  ;;  %v6056_v41 = vld [vmem:[#allocation10 + $0x9] ss:$0 sm:$0xff]  ;;  %s4639_s18 = sshll.u32 %s9922_s28, 5  ;;  %s4634_s26 = sshll.u32 %s9923_s4, 6 }
 0x183   : > { %v754_v13 = vmul.f32 %v6014_v8, %v742_v9  ;;  %v6022_v14 = vld [vmem:[#allocation10 + $0x2] ss:$0 sm:$0xff]  ;;  %v6024_v16 = vld [vmem:[#allocation10 + $0x3] ss:$0 sm:$0xff]  ;;  %4775 = vmatpush3.bf16.msra.mxu0 %v4772_v56  ;;  %4809 = vmatpush3.bf16.msra.mxu1 %v4772_v56  ;;  %v6031_v21 = vld [vmem:[#allocation10 + $0x4] ss:$0 sm:$0xff]  ;;  %v755_v34 = vmul.f32 %v6014_v8, %v830_v22  ;;  %s4296_s19 = sadd.s32 %s4639_s18, %s4634_s26  ;;  %s9925_s3 = smov %s9924_s24 }
 0x184   : > { %9259 = vst [vmem:[#allocation34_spill] sm:$0xff] %v6022_v14  ;;  %v771_v15 = vld [vmem:[#allocation2 + $0x2] sm:$0xff]  ;;  %4777 = vmatprep.subr.bf16.mxu0 %v4776_v2  ;;  %4802 = vmatprep.subr.bf16.mxu1 %v4776_v2  ;;  %v813_v24 = vmul.f32 %v6024_v16, %v801_v20  ;;  %v842_v25 = vmul.f32 %v6031_v21, %v830_v22  ;;  %v859_v27 = vld [vmem:[#allocation2 + $0x12] sm:$0xff]  ;;  %9263 = vst [vmem:[#allocation38_spill] sm:$0xff] %v6056_v41  ;;  %s4635_s15 = sshll.u32 %s4296_s19, 7  ;;  %p5187_p6 = pneg %p5186_p5 }
 0x185   : > { %v783_v19 = vmul.f32 %v6022_v14, %v771_v15  ;;  %v762_v23 = vadd.f32 %v754_v13, %v733_v12  ;;  %v6035_v26 = vld [vmem:[#allocation10 + $0x5] ss:$0 sm:$0xff]  ;;  %v6037_v28 = vld [vmem:[#allocation10 + $0x6] ss:$0 sm:$0xff]  ;;  %v6040_v31 = vld [vmem:[#allocation10 + $0x7] ss:$0 sm:$0xff]  ;;  %v784_v35 = vmul.f32 %v6022_v14, %v859_v27  ;;  %v763_v47 = vadd.f32 %v755_v34, %v734_v33  ;;  %s8628_s25 = scalar_lea.hbm %s9924_s24, %s4635_s15  ;;  %p5191_p9 = scmp.lt.s32.totalorder %s8630_s11, %s5189_s5 }
 0x186   : > { %9260 = vst [vmem:[#allocation35_spill] sm:$0xff] %v6035_v26  ;;  %v871_v29 = vmul.f32 %v6035_v26, %v859_v27  ;;  %v889_v30 = vld [vmem:[#allocation2 + $0x20] sm:$0xff]  ;;  %v6052_v39 = vld [vmem:[#allocation10 + $0x8] ss:$0 sm:$0xff]  ;;  %v6063_v45 = vld [vmem:[#allocation10 + $0xa] ss:$0 sm:$0xff] }
 0x187   : > { %v6042_v32 = vld [vmem:[#allocation2 + $0x21] sm:$0xff]  ;;  %v791_v36 = vadd.f32 %v783_v19, %v762_v23  ;;  %v901_v37 = vmul.f32 %v6037_v28, %v889_v30  ;;  %v814_v42 = vmul.f32 %v6024_v16, %v889_v30  ;;  %4779 = vmatpush3.bf16.msra.mxu0 %v4776_v2  ;;  %4810 = vmatpush3.bf16.msra.mxu1 %v4776_v2  ;;  %v6071_v52 = vld [vmem:[#allocation10 + $0xb] ss:$0 sm:$0xff]  ;;  %v6073_v54 = vld [vmem:[#allocation10 + $0xc] ss:$0 sm:$0xff] }
 0x188   : > { %9261 = vst [vmem:[#allocation36_spill] sm:$0xff] %v6042_v32  ;;  %v6050_v38 = vmul.f32 %v6040_v31, %v6042_v32  ;;  %v6054_v40 = vld [vmem:[#allocation2 + $0x22] sm:$0xff]  ;;  %9264 = vst [vmem:[#allocation39_spill] sm:$0xff] %v6063_v45  ;;  %v843_v48 = vmul.f32 %v6031_v21, %v6042_v32  ;;  %4781 = vmatprep.subr.bf16.mxu0 %v6012_v6  ;;  %4803 = vmatprep.subr.bf16.mxu1 %v6012_v6  ;;  %v1056_v56 = vld [vmem:[#allocation2 + $0xb0] sm:$0xff] }
 0x189   : > { %9262 = vst [vmem:[#allocation37_spill] sm:$0xff] %v6054_v40  ;;  %v6061_v43 = vmul.f32 %v6052_v39, %v6054_v40  ;;  %v977_v44 = vld [vmem:[#allocation2 + $0xa0] sm:$0xff]  ;;  %v821_v49 = vadd.f32 %v813_v24, %v791_v36  ;;  %v6076_v57 = vld [vmem:[#allocation10 + $0xd] ss:$0 sm:$0xff]  ;;  %v1085_v58 = vld [vmem:[#allocation2 + $0xb1] sm:$0xff]  ;;  %v792_v59 = vadd.f32 %v784_v35, %v763_v47  ;;  %v6080_v60 = vmul.f32 %v6035_v26, %v6054_v40 }
 0x18a   : > { %v998_v46 = vld [vmem:[#allocation2 + $0xa1] sm:$0xff]  ;;  %v989_v50 = vmul.f32 %v6056_v41, %v977_v44  ;;  %v6083_v61 = vmul.f32 %v6010_v5, %v889_v30  ;;  %v1068_v0 = vmul.f32 %v6073_v54, %v1056_v56  ;;  %v1097_v1 = vmul.f32 %v6076_v57, %v1085_v58  ;;  %v6087_v2 = vld [vmem:[#allocation10 + $0xe] ss:$0 sm:$0xff]  ;;  %v6089_v3 = vld [vmem:[#allocation2 + $0xb2] sm:$0xff] }
 0x18b   : > { %v1010_v51 = vmul.f32 %v6063_v45, %v998_v46  ;;  %v1027_v53 = vld [vmem:[#allocation2 + $0xa2] sm:$0xff]  ;;  %v850_v62 = vadd.f32 %v842_v25, %v821_v49  ;;  %v6091_v4 = vld [vmem:[#allocation10 + $0xf] ss:$0 sm:$0xff]  ;;  %4783 = vmatpush3.bf16.msra.mxu0 %v6012_v6  ;;  %4811 = vmatpush3.bf16.msra.mxu1 %v6012_v6  ;;  %v1126_v7 = vmul.f32 %v6087_v2, %v6089_v3  ;;  %v6099_v12 = vld [vmem:[#allocation10 + $0x10] ss:$0 sm:$0xff] }
 0x18c   : > { %v1039_v55 = vmul.f32 %v6071_v52, %v1027_v53  ;;  %9265 = vst [vmem:[#allocation40_spill] sm:$0xff] %v6083_v61  ;;  %v6097_v9 = vld [vmem:[#allocation2 + $0xc0] sm:$0xff]  ;;  %v822_v15 = vadd.f32 %v814_v42, %v792_v59  ;;  %v6104_v19 = vmul.f32 %v6056_v41, %v1056_v56  ;;  %4785 = vmatprep.subr.bf16.mxu0 %v6016_v10  ;;  %v6110_v23 = vld [vmem:[#allocation10 + $0x11] ss:$0 sm:$0xff]  ;;  %v6114_v25 = vld [vmem:[#allocation10 + $0x12] ss:$0 sm:$0xff] }
 0x18d   : > { %v1018_v63 = vadd.f32 %v1010_v51, %v989_v50  ;;  %9266 = vst [vmem:[#allocation41_spill] sm:$0xff] %v6097_v9  ;;  %v6101_v13 = vld [vmem:[#allocation2 + $0xc1] sm:$0xff]  ;;  %4804 = vmatprep.subr.bf16.mxu1 %v6016_v10  ;;  %v879_v20 = vadd.f32 %v871_v29, %v850_v62  ;;  %v1156_v6 = vmul.f32 %v6091_v4, %v6097_v9  ;;  %9269 = vst [vmem:[#allocation44_spill] sm:$0xff] %v6114_v25  ;;  %v6122_v34 = vld [vmem:[#allocation10 + $0x13] ss:$0 sm:$0xff] }
 0x18e   : > { %9267 = vst [vmem:[#allocation42_spill] sm:$0xff] %v6101_v13  ;;  %v6112_v24 = vld [vmem:[#allocation2 + $0xc2] sm:$0xff]  ;;  %v1185_v27 = vmul.f32 %v6099_v12, %v6101_v13  ;;  %v6124_v35 = vadd.f32 %v843_v48, %v822_v15  ;;  %v6127_v36 = vmul.f32 %v6063_v45, %v1085_v58  ;;  %v6131_v49 = vld [vmem:[#allocation10 + $0x14] ss:$0 sm:$0xff]  ;;  %v6133_v51 = vld [vmem:[#allocation10 + $0x15] ss:$0 sm:$0xff] }
 0x18f   : > { %v1047_v22 = vadd.f32 %v1039_v55, %v1018_v63  ;;  %9268 = vst [vmem:[#allocation43_spill] sm:$0xff] %v6112_v24  ;;  %v6120_v30 = vmul.f32 %v6110_v23, %v6112_v24  ;;  %v1232_v33 = vld [vmem:[#allocation2 + $0x140] sm:$0xff]  ;;  %v909_v42 = vadd.f32 %v901_v37, %v879_v20  ;;  %4787 = vmatpush3.bf16.msra.mxu0 %v6016_v10  ;;  %v6138_v53 = vld [vmem:[#allocation2 + $0x150] sm:$0xff]  ;;  %v6153_v15 = vld [vmem:[#allocation10 + $0x18] ss:$0 sm:$0xff] }
 0x190   : > { %v1253_v29 = vld [vmem:[#allocation2 + $0x141] sm:$0xff]  ;;  %v1244_v46 = vmul.f32 %v6114_v25, %v1232_v33  ;;  %4812 = vmatpush3.bf16.msra.mxu1 %v6016_v10  ;;  %v6140_v55 = vld [vmem:[#allocation10 + $0x16] ss:$0 sm:$0xff]  ;;  %v2346_v56 = vmul.f32 %v6010_v5, %v1232_v33  ;;  %4789 = vmatprep.subr.bf16.mxu0 %v6018_v11  ;;  %v6149_v63 = vld [vmem:[#allocation10 + $0x17] ss:$0 sm:$0xff]  ;;  %9272 = vst [vmem:[#allocation47_spill] sm:$0xff] %v6153_v15 }
 0x191   : > { %v1076_v44 = vadd.f32 %v1068_v0, %v1047_v22  ;;  %v1265_v47 = vmul.f32 %v6122_v34, %v1253_v29  ;;  %v1282_v50 = vld [vmem:[#allocation2 + $0x142] sm:$0xff]  ;;  %9270 = vst [vmem:[#allocation45_spill] sm:$0xff] %v6140_v55  ;;  %v6142_v37 = vld [vmem:[#allocation2 + $0x151] sm:$0xff]  ;;  %v2367_v58 = vmul.f32 %v6014_v8, %v1253_v29  ;;  %4805 = vmatprep.subr.bf16.mxu1 %v6018_v11  ;;  %9271 = vst [vmem:[#allocation46_spill] sm:$0xff] %v6149_v63 }
 0x192   : > { %v1294_v48 = vmul.f32 %v6131_v49, %v1282_v50  ;;  %v938_v59 = vadd.f32 %v6050_v38, %v909_v42  ;;  %v6151_v0 = vld [vmem:[#allocation2 + $0x152] sm:$0xff]  ;;  %v1323_v20 = vmul.f32 %v6133_v51, %v6138_v53  ;;  %v1352_v22 = vmul.f32 %v6140_v55, %v6142_v37  ;;  %v6161_v29 = vld [vmem:[#allocation2 + $0x160] sm:$0xff]  ;;  %v6170_v40 = vld [vmem:[#allocation10 + $0x1a] ss:$0 sm:$0xff] }
 0x193   : > { %v1105_v62 = vadd.f32 %v1097_v1, %v1076_v44  ;;  %v1273_v10 = vadd.f32 %v1265_v47, %v1244_v46  ;;  %v1381_v33 = vmul.f32 %v6149_v63, %v6151_v0  ;;  %9273 = vst [vmem:[#allocation48_spill] sm:$0xff] %v6161_v29  ;;  %v6163_v38 = vld [vmem:[#allocation10 + $0x19] ss:$0 sm:$0xff]  ;;  %v2375_v1 = vadd.f32 %v2367_v58, %v2346_v56  ;;  %v6168_v61 = vld [vmem:[#allocation2 + $0x161] sm:$0xff] }
 0x194   : > { %9274 = vst [vmem:[#allocation49_spill] sm:$0xff] %v6163_v38  ;;  %v967_v42 = vadd.f32 %v6061_v43, %v938_v59  ;;  %v1411_v47 = vmul.f32 %v6153_v15, %v6161_v29  ;;  %9275 = vst [vmem:[#allocation50_spill] sm:$0xff] %v6168_v61  ;;  %v6172_v32 = vld [vmem:[#allocation2 + $0x162] sm:$0xff]  ;;  %4791 = vmatpush3.bf16.msra.mxu0 %v6018_v11  ;;  %4813 = vmatpush3.bf16.msra.mxu1 %v6018_v11 }
 0x195   : > { %v1134_v44 = vadd.f32 %v1126_v7, %v1105_v62  ;;  %v1302_v46 = vadd.f32 %v1294_v48, %v1273_v10  ;;  %9276 = vst [vmem:[#allocation51_spill] sm:$0xff] %v6170_v40  ;;  %9277 = vst [vmem:[#allocation52_spill] sm:$0xff] %v6172_v32  ;;  %v1440_v56 = vmul.f32 %v6163_v38, %v6168_v61  ;;  %4793 = vmatprep.subr.bf16.mxu0 %v6026_v17  ;;  %v2587_v62 = vld [vmem:[#allocation2 + $0x1e0] sm:$0xff] }
 0x196   : > { %v1469_v43 = vmul.f32 %v6170_v40, %v6172_v32  ;;  %v2396_v7 = vmul.f32 %v6022_v14, %v1282_v50  ;;  %4806 = vmatprep.subr.bf16.mxu1 %v6026_v17  ;;  %v2425_v59 = vmul.f32 %v6024_v16, %v6138_v53  ;;  %v2608_v10 = vld [vmem:[#allocation2 + $0x1e1] sm:$0xff]  ;;  %v2454_v8 = vmul.f32 %v6031_v21, %v6142_v37 }
 0x197   : > { %v1164_v48 = vadd.f32 %v1156_v6, %v1134_v44  ;;  %v1331_v58 = vadd.f32 %v1323_v20, %v1302_v46  ;;  %v2483_v5 = vmul.f32 %v6035_v26, %v6151_v0  ;;  %v2512_v50 = vmul.f32 %v6037_v28, %v6161_v29  ;;  %v2637_v14 = vld [vmem:[#allocation2 + $0x1e2] sm:$0xff]  ;;  %v6207_v26 = vld [vmem:[#allocation2 + $0x1f2] sm:$0xff] }
 0x198   : > { %v2404_v11 = vadd.f32 %v2396_v7, %v2375_v1  ;;  %v2541_v6 = vmul.f32 %v6040_v31, %v6168_v61  ;;  %v2570_v20 = vmul.f32 %v6052_v39, %v6172_v32  ;;  %4795 = vmatpush3.bf16.msra.mxu0 %v6026_v17  ;;  %4814 = vmatpush3.bf16.msra.mxu1 %v6026_v17 }
 0x199   : > { %v1193_v24 = vadd.f32 %v1185_v27, %v1164_v48  ;;  %v1360_v13 = vadd.f32 %v1352_v22, %v1331_v58  ;;  %v2599_v44 = vmul.f32 %v6056_v41, %v2587_v62  ;;  %v2620_v46 = vmul.f32 %v6063_v45, %v2608_v10  ;;  %4797 = vmatprep.subr.bf16.mxu0 %v6028_v18  ;;  %v6203_v48 = vld [vmem:[#allocation2 + $0x1f0] sm:$0xff] }
 0x19a   : > { %v2433_v1 = vadd.f32 %v2425_v59, %v2404_v11  ;;  %4807 = vmatprep.subr.bf16.mxu1 %v6028_v18  ;;  %v2649_v7 = vmul.f32 %v6071_v52, %v2637_v14  ;;  %9278 = vst [vmem:[#allocation53_spill] sm:$0xff] %v6203_v48  ;;  %v6205_v58 = vld [vmem:[#allocation2 + $0x1f1] sm:$0xff]  ;;  %9280 = vst [vmem:[#allocation55_spill] sm:$0xff] %v6207_v26  ;;  %v2678_v62 = vmul.f32 %v6073_v54, %v6203_v48  ;;  %v6213_v11 = vld [vmem:[#allocation2 + $0x200] sm:$0xff] }
 0x19b   : > { %v1222_v27 = vadd.f32 %v6120_v30, %v1193_v24  ;;  %v1389_v22 = vadd.f32 %v1381_v33, %v1360_v13  ;;  %9279 = vst [vmem:[#allocation54_spill] sm:$0xff] %v6205_v58  ;;  %v2628_v59 = vadd.f32 %v2620_v46, %v2599_v44  ;;  %v2707_v10 = vmul.f32 %v6076_v57, %v6205_v58  ;;  %v2841_v24 = vld [vmem:[#allocation2 + $0x280] sm:$0xff] }
 0x19c   : > { %v2462_v17 = vadd.f32 %v2454_v8, %v2433_v1  ;;  %9281 = vst [vmem:[#allocation56_spill] sm:$0xff] %v6213_v11  ;;  %v2862_v13 = vld [vmem:[#allocation2 + $0x281] sm:$0xff]  ;;  %v2736_v33 = vmul.f32 %v6087_v2, %v6207_v26  ;;  %v2765_v45 = vmul.f32 %v6091_v4, %v6213_v11  ;;  %4799 = vmatpush3.bf16.msra.mxu0 %v6028_v18  ;;  %v6231_v26 = vld [vmem:[#allocation2 + $0x290] sm:$0xff] }
 0x19d   : > { %v1419_v30 = vadd.f32 %v1411_v47, %v1389_v22  ;;  %v1485_v14 = vadd.f32 %v1222_v27, %v967_v42  ;;  %v6219_v8 = vld [vmem:[#allocation2 + $0x201] sm:$0xff]  ;;  %4815 = vmatpush3.bf16.msra.mxu1 %v6028_v18  ;;  %v2657_v46 = vadd.f32 %v2649_v7, %v2628_v59  ;;  %v2853_v22 = vmul.f32 %v6114_v25, %v2841_v24  ;;  %v6236_v7 = vld [vmem:[#allocation2 + $0x291] sm:$0xff] }
 0x19e   : > { %v2891_v1 = vld [vmem:[#allocation2 + $0x282] sm:$0xff]  ;;  %v2491_v44 = vadd.f32 %v2483_v5, %v2462_v17  ;;  %v2794_v58 = vmul.f32 %v6099_v12, %v6219_v8  ;;  %v2874_v11 = vmul.f32 %v6122_v34, %v2862_v13  ;;  %9282 = vst [vmem:[#allocation57_spill] sm:$0xff] %v6231_v26  ;;  %v2932_v18 = vmul.f32 %v6133_v51, %v6231_v26  ;;  %v6238_v17 = vld [vmem:[#allocation2 + $0x292] sm:$0xff] }
 0x19f   : > { %v6225_v47 = vld [vmem:[#allocation2 + $0x202] sm:$0xff]  ;;  %v1448_v42 = vadd.f32 %v1440_v56, %v1419_v30  ;;  %v2686_v48 = vadd.f32 %v2678_v62, %v2657_v46  ;;  %v2903_v5 = vmul.f32 %v6131_v49, %v2891_v1  ;;  %9283 = vst [vmem:[#allocation58_spill] sm:$0xff] %v6236_v7  ;;  %9284 = vst [vmem:[#allocation59_spill] sm:$0xff] %v6238_v17  ;;  %v6251_v62 = vld [vmem:[%s9287_s6] ss:$0 sm:$0xff] }
 0x1a0   : > { %v2823_v27 = vmul.f32 %v6110_v23, %v6225_v47  ;;  %v2520_v41 = vadd.f32 %v2512_v50, %v2491_v44  ;;  %v2882_v59 = vadd.f32 %v2874_v11, %v2853_v22  ;;  %v2961_v24 = vmul.f32 %v6140_v55, %v6236_v7  ;;  %v6244_v30 = vld [vmem:[#allocation2 + $0x2a0] sm:$0xff]  ;;  %v6263_v26 = vld [vmem:[#allocation2 + $0x30] sm:$0xff] }
 0x1a1   : > { %v1477_v56 = vadd.f32 %v1469_v43, %v1448_v42  ;;  %v2990_v13 = vmul.f32 %v6149_v63, %v6238_v17  ;;  %9285 = vst [vmem:[#allocation60_spill] sm:$0xff] %v6244_v30  ;;  %v6246_v50 = vld [vmem:[#allocation2 + $0x2a1] sm:$0xff]  ;;  %v2715_v44 = vadd.f32 %v2707_v10, %v2686_v48  ;;  %v3020_v43 = vmul.f32 %v6153_v15, %v6244_v30 }
 0x1a2   : > { %9286 = vst [vmem:[#allocation61_spill] sm:$0xff] %v6246_v50  ;;  %v2549_v1 = vadd.f32 %v2541_v6, %v2520_v41  ;;  %v3049_v11 = vmul.f32 %v6163_v38, %v6246_v50  ;;  %v6257_v46 = vld [vmem:[#allocation2 + $0x2a2] sm:$0xff]  ;;  %v2911_v22 = vadd.f32 %v2903_v5, %v2882_v59  ;;  %v880_v7 = vadd.f32 %v6080_v60, %v6124_v35  ;;  %v6265_v41 = vld [vmem:[#allocation2 + $0x31] sm:$0xff] }
 0x1a3   : > { %9288 = vst [vmem:[#allocation62_spill] sm:$0xff] %v6257_v46  ;;  %v1493_v42 = vadd.f32 %v1485_v14, %v1477_v56  ;;  %v3078_v17 = vmul.f32 %v6170_v40, %v6257_v46  ;;  %9289 = vst [vmem:[#allocation63_spill] sm:$0xff] %v6263_v26  ;;  %v2744_v48 = vadd.f32 %v2736_v33, %v2715_v44  ;;  %v6271_v14 = vld [vmem:[#allocation2 + $0x32] sm:$0xff] }
 0x1a4   : > { %9290 = vst [vmem:[#allocation64_spill] sm:$0xff] %v6265_v41  ;;  %v2578_v6 = vadd.f32 %v2570_v20, %v2549_v1  ;;  %v902_v10 = vmul.f32 %v6037_v28, %v6263_v26  ;;  %v931_v50 = vmul.f32 %v6040_v31, %v6265_v41  ;;  %9291 = vst [vmem:[#allocation65_spill] sm:$0xff] %v6271_v14  ;;  %v9292_v26 = vld [vmem:[#allocation42_spill] sm:$0xff] }
 0x1a5   : > { %v1507_v5 = vadd.f32 %v6251_v62, %v1493_v42  ;;  %v2940_v56 = vadd.f32 %v2932_v18, %v2911_v22  ;;  %v960_v60 = vmul.f32 %v6052_v39, %v6271_v14  ;;  %v1019_v35 = vadd.f32 %v6127_v36, %v6104_v19  ;;  %v9293_v18 = vld [vmem:[#allocation43_spill] sm:$0xff]  ;;  %v6286_v14 = vld [vmem:[#allocation2 + $0xd0] sm:$0xff] }
 0x1a6   : > { %v2773_v59 = vadd.f32 %v2765_v45, %v2744_v48  ;;  %v910_v20 = vadd.f32 %v902_v10, %v880_v7  ;;  %v1040_v33 = vmul.f32 %v6071_v52, %v6089_v3  ;;  %v1069_v1 = vmul.f32 %v6073_v54, %v6097_v9  ;;  %9294 = vst [vmem:[#allocation66_spill] sm:$0xff] %v6286_v14  ;;  %v6290_v3 = vld [vmem:[#allocation2 + $0xd1] sm:$0xff] }
 0x1a7   : > { %v1515_v44 = vmax.f32 %v1507_v5, 0.0  ;;  %v2969_v41 = vadd.f32 %v2961_v24, %v2940_v56  ;;  %v1098_v42 = vmul.f32 %v6076_v57, %v9292_v26  ;;  %v1127_v22 = vmul.f32 %v6087_v2, %v9293_v18  ;;  %9295 = vst [vmem:[#allocation67_spill] sm:$0xff] %v6290_v3  ;;  %v6292_v7 = vld [vmem:[#allocation2 + $0xd2] sm:$0xff] }
 0x1a8   : > { %v2802_v46 = vadd.f32 %v2794_v58, %v2773_v59  ;;  %v939_v19 = vadd.f32 %v931_v50, %v910_v20  ;;  %v1048_v45 = vadd.f32 %v1040_v33, %v1019_v35  ;;  %v1157_v36 = vmul.f32 %v6091_v4, %v6286_v14  ;;  %9296 = vst [vmem:[#allocation68_spill] sm:$0xff] %v6292_v7 }
 0x1a9   : > { %4720 = vmatprep.mubr.f32.mxu0 %v1515_v44  ;;  %v2998_v24 = vadd.f32 %v2990_v13, %v2969_v41  ;;  %v1186_v48 = vmul.f32 %v6099_v12, %v6290_v3  ;;  %v1215_v10 = vmul.f32 %v6110_v23, %v6292_v7  ;;  %v1245_v58 = vmul.f32 %v6114_v25, %v6138_v53 }
 0x1aa   : > { %v2831_v50 = vadd.f32 %v2823_v27, %v2802_v46  ;;  %v968_v5 = vadd.f32 %v960_v60, %v939_v19  ;;  %v1077_v56 = vadd.f32 %v1069_v1, %v1048_v45  ;;  %v1266_v35 = vmul.f32 %v6122_v34, %v6142_v37  ;;  %v6310_v46 = vld [vmem:[#allocation2 + $0x170] sm:$0xff] }
 0x1ab   : > { %v3028_v59 = vadd.f32 %v3020_v43, %v2998_v24  ;;  %v1295_v20 = vmul.f32 %v6131_v49, %v6151_v0  ;;  %v1324_v13 = vmul.f32 %v6133_v51, %v6161_v29  ;;  %v1353_v41 = vmul.f32 %v6140_v55, %v6168_v61  ;;  %9297 = vst [vmem:[#allocation69_spill] sm:$0xff] %v6310_v46  ;;  %v6312_v60 = vld [vmem:[#allocation2 + $0x171] sm:$0xff] }
 0x1ac   : > { %v3094_v33 = vadd.f32 %v2831_v50, %v2578_v6  ;;  %v1106_v44 = vadd.f32 %v1098_v42, %v1077_v56  ;;  %v1274_v7 = vadd.f32 %v1266_v35, %v1245_v58  ;;  %v1382_v27 = vmul.f32 %v6149_v63, %v6172_v32  ;;  %9298 = vst [vmem:[#allocation70_spill] sm:$0xff] %v6312_v60  ;;  %v6314_v43 = vld [vmem:[#allocation2 + $0x172] sm:$0xff]  ;;  %v9300_v58 = vld [vmem:[#allocation32_spill] sm:$0xff]  ;;  %v9301_v56 = vld [vmem:[#allocation33_spill] sm:$0xff] }
 0x1ad   : > { %9299 = vst [vmem:[#allocation71_spill] sm:$0xff] %v6314_v43  ;;  %v3057_v1 = vadd.f32 %v3049_v11, %v3028_v59  ;;  %v1412_v19 = vmul.f32 %v6153_v15, %v6310_v46  ;;  %v1441_v45 = vmul.f32 %v6163_v38, %v6312_v60  ;;  %v1470_v6 = vmul.f32 %v6170_v40, %v6314_v43  ;;  %v9302_v11 = vld [vmem:[#allocation34_spill] sm:$0xff] }
 0x1ae   : > { %v1135_v42 = vadd.f32 %v1127_v22, %v1106_v44  ;;  %v1303_v24 = vadd.f32 %v1295_v20, %v1274_v7  ;;  %v2347_v50 = vmul.f32 %v9300_v58, %v6138_v53  ;;  %v2368_v35 = vmul.f32 %v9301_v56, %v6142_v37  ;;  %v9303_v7 = vld [vmem:[#allocation35_spill] sm:$0xff] }
 0x1af   : > { %v3086_v3 = vadd.f32 %v3078_v17, %v3057_v1  ;;  %v2397_v59 = vmul.f32 %v9302_v11, %v6151_v0  ;;  %v2426_v14 = vmul.f32 %v6024_v16, %v6161_v29  ;;  %v2455_v18 = vmul.f32 %v6031_v21, %v6168_v61  ;;  %v9304_v61 = vld [vmem:[#allocation53_spill] sm:$0xff] }
 0x1b0   : > { %v1165_v26 = vadd.f32 %v1157_v36, %v1135_v42  ;;  %v1332_v9 = vadd.f32 %v1324_v13, %v1303_v24  ;;  %v2376_v22 = vadd.f32 %v2368_v35, %v2347_v50  ;;  %v2484_v20 = vmul.f32 %v9303_v7, %v6172_v32  ;;  %v9305_v36 = vld [vmem:[#allocation38_spill] sm:$0xff]  ;;  %v9307_v50 = vld [vmem:[#allocation39_spill] sm:$0xff] }
 0x1b1   : > { %v3102_v53 = vadd.f32 %v3094_v33, %v3086_v3  ;;  %v2513_v37 = vmul.f32 %v6037_v28, %v6310_v46  ;;  %v2542_v17 = vmul.f32 %v6040_v31, %v6312_v60  ;;  %v2571_v0 = vmul.f32 %v6052_v39, %v6314_v43  ;;  %v9306_v24 = vld [vmem:[#allocation54_spill] sm:$0xff]  ;;  %v9308_v33 = vld [vmem:[#allocation55_spill] sm:$0xff]  ;;  %v9309_v46 = vld [vmem:[#allocation56_spill] sm:$0xff] }
 0x1b2   : > { %v1194_v44 = vadd.f32 %v1186_v48, %v1165_v26  ;;  %v1361_v1 = vadd.f32 %v1353_v41, %v1332_v9  ;;  %v2405_v58 = vadd.f32 %v2397_v59, %v2376_v22  ;;  %v2600_v13 = vmul.f32 %v9305_v36, %v9304_v61  ;;  %v6351_v9 = vld [vmem:[#allocation2 + $0x210] sm:$0xff] }
 0x1b3   : > { %v3110_v42 = vadd.f32 %v6251_v62, %v3102_v53  ;;  %v2621_v3 = vmul.f32 %v9307_v50, %v9306_v24  ;;  %v2650_v35 = vmul.f32 %v6071_v52, %v9308_v33  ;;  %v2679_v60 = vmul.f32 %v6073_v54, %v9309_v46  ;;  %9310 = vst [vmem:[#allocation33_spill] sm:$0xff] %v6351_v9  ;;  %v6357_v22 = vld [vmem:[#allocation2 + $0x211] sm:$0xff] }
 0x1b4   : > { %v1223_v32 = vadd.f32 %v1215_v10, %v1194_v44  ;;  %v1390_v29 = vadd.f32 %v1382_v27, %v1361_v1  ;;  %v2434_v43 = vadd.f32 %v2426_v14, %v2405_v58  ;;  %v2708_v26 = vmul.f32 %v6076_v57, %v6219_v8  ;;  %9311 = vst [vmem:[#allocation34_spill] sm:$0xff] %v6357_v22  ;;  %v6361_v27 = vld [vmem:[#allocation2 + $0x212] sm:$0xff]  ;;  %v9313_v1 = vld [vmem:[#allocation57_spill] sm:$0xff] }
 0x1b5   : > { %v3118_v61 = vmax.f32 %v3110_v42, 0.0  ;;  %v2629_v48 = vadd.f32 %v2621_v3, %v2600_v13  ;;  %v2737_v41 = vmul.f32 %v6087_v2, %v6225_v47  ;;  %v2766_v59 = vmul.f32 %v6091_v4, %v6351_v9  ;;  %9312 = vst [vmem:[#allocation35_spill] sm:$0xff] %v6361_v27  ;;  %v9314_v42 = vld [vmem:[#allocation58_spill] sm:$0xff] }
 0x1b6   : > { %v1420_v53 = vadd.f32 %v1412_v19, %v1390_v29  ;;  %v1486_v24 = vadd.f32 %v1223_v32, %v968_v5  ;;  %v2463_v10 = vadd.f32 %v2455_v18, %v2434_v43  ;;  %v2795_v14 = vmul.f32 %v6099_v12, %v6357_v22  ;;  %v9315_v32 = vld [vmem:[#allocation59_spill] sm:$0xff] }
 0x1b7   : > { %4744 = vmatprep.mubr.f32.mxu1 %v3118_v61  ;;  %v2658_v58 = vadd.f32 %v2650_v35, %v2629_v48  ;;  %v2824_v44 = vmul.f32 %v6110_v23, %v6361_v27  ;;  %v2854_v13 = vmul.f32 %v6114_v25, %v9313_v1  ;;  %v2875_v3 = vmul.f32 %v6122_v34, %v9314_v42  ;;  %v9316_v35 = vld [vmem:[#allocation61_spill] sm:$0xff]  ;;  %v9317_v48 = vld [vmem:[#allocation62_spill] sm:$0xff] }
 0x1b8   : > { %v1449_v33 = vadd.f32 %v1441_v45, %v1420_v53  ;;  %v2492_v29 = vadd.f32 %v2484_v20, %v2463_v10  ;;  %v2904_v18 = vmul.f32 %v6131_v49, %v9315_v32  ;;  %v2933_v5 = vmul.f32 %v6133_v51, %v6244_v30  ;;  %v6377_v1 = vld [vmem:[#allocation2 + $0x2b0] sm:$0xff]  ;;  %v9324_v30 = vld [vmem:[#allocation40_spill] sm:$0xff] }
 0x1b9   : > { %v2687_v43 = vadd.f32 %v2679_v60, %v2658_v58  ;;  %v2883_v19 = vadd.f32 %v2875_v3, %v2854_v13  ;;  %v2962_v61 = vmul.f32 %v6140_v55, %v9316_v35  ;;  %v2991_v27 = vmul.f32 %v6149_v63, %v9317_v48  ;;  %9318 = vst [vmem:[#allocation53_spill] sm:$0xff] %v6377_v1  ;;  %v6379_v22 = vld [vmem:[#allocation2 + $0x2b1] sm:$0xff]  ;;  %v9321_v3 = vld [vmem:[#allocation36_spill] sm:$0xff] }
 0x1ba   : > { %9319 = vst [vmem:[#allocation38_spill] sm:$0xff] %v6379_v22  ;;  %v1478_v45 = vadd.f32 %v1470_v6, %v1449_v33  ;;  %v2521_v20 = vadd.f32 %v2513_v37, %v2492_v29  ;;  %v3021_v53 = vmul.f32 %v6153_v15, %v6377_v1  ;;  %v3050_v10 = vmul.f32 %v6163_v38, %v6379_v22  ;;  %v6385_v60 = vld [vmem:[#allocation2 + $0x2b2] sm:$0xff]  ;;  %v9322_v6 = vld [vmem:[#allocation37_spill] sm:$0xff] }
 0x1bb   : > { %9320 = vst [vmem:[#allocation54_spill] sm:$0xff] %v6385_v60  ;;  %v2716_v58 = vadd.f32 %v2708_v26, %v2687_v43  ;;  %v2912_v13 = vadd.f32 %v2904_v18, %v2883_v19  ;;  %v3079_v42 = vmul.f32 %v6170_v40, %v6385_v60  ;;  %v756_v32 = vmul.f32 %v9301_v56, %v9321_v3  ;;  %v9323_v33 = vld [vmem:[#allocation63_spill] sm:$0xff]  ;;  %v9325_v26 = vld [vmem:[#allocation64_spill] sm:$0xff] }
 0x1bc   : > { %v1494_v48 = vadd.f32 %v1486_v24, %v1478_v45  ;;  %v2550_v35 = vadd.f32 %v2542_v17, %v2521_v20  ;;  %v785_v37 = vmul.f32 %v9302_v11, %v9322_v6  ;;  %v815_v29 = vmul.f32 %v6024_v16, %v9323_v33  ;;  %v6398_v43 = vld [vmem:[#allocation2 + $0x40] sm:$0xff]  ;;  %v9327_v24 = vld [vmem:[#allocation65_spill] sm:$0xff]  ;;  %v9331_v6 = vld [vmem:[#allocation42_spill] sm:$0xff] }
 0x1bd   : > { %v2745_v1 = vadd.f32 %v2737_v41, %v2716_v58  ;;  %v2941_v22 = vadd.f32 %v2933_v5, %v2912_v13  ;;  %v764_v9 = vadd.f32 %v756_v32, %v9324_v30  ;;  %v844_v18 = vmul.f32 %v6031_v21, %v9325_v26  ;;  %9326 = vst [vmem:[#allocation39_spill] sm:$0xff] %v6398_v43  ;;  %v6405_v20 = vld [vmem:[#allocation2 + $0x41] sm:$0xff] }
 0x1be   : > { %v1508_v19 = vadd.f32 %v6251_v62, %v1494_v48  ;;  %v2579_v3 = vadd.f32 %v2571_v0, %v2550_v35  ;;  %v873_v17 = vmul.f32 %v9303_v7, %v9327_v24  ;;  %v903_v45 = vmul.f32 %v6037_v28, %v6398_v43  ;;  %9328 = vst [vmem:[#allocation55_spill] sm:$0xff] %v6405_v20  ;;  %v6409_v13 = vld [vmem:[#allocation2 + $0x42] sm:$0xff] }
 0x1bf   : > { %v2774_v41 = vadd.f32 %v2766_v59, %v2745_v1  ;;  %v2970_v5 = vadd.f32 %v2962_v61, %v2941_v22  ;;  %v793_v58 = vadd.f32 %v785_v37, %v764_v9  ;;  %v932_v30 = vmul.f32 %v6040_v31, %v6405_v20  ;;  %9329 = vst [vmem:[#allocation56_spill] sm:$0xff] %v6409_v13  ;;  %v9330_v35 = vld [vmem:[#allocation41_spill] sm:$0xff]  ;;  %v9332_v22 = vld [vmem:[#allocation43_spill] sm:$0xff]  ;;  %v9333_v1 = vld [vmem:[#allocation66_spill] sm:$0xff] }
 0x1c0   : > { %v1516_v32 = vmax.f32 %v1508_v19, 0.0  ;;  %v961_v0 = vmul.f32 %v6052_v39, %v6409_v13  ;;  %v991_v48 = vmul.f32 %v9305_v36, %v9330_v35  ;;  %v1012_v43 = vmul.f32 %v9307_v50, %v9331_v6  ;;  %v9334_v19 = vld [vmem:[#allocation67_spill] sm:$0xff]  ;;  %v9335_v20 = vld [vmem:[#allocation68_spill] sm:$0xff] }
 0x1c1   : > { %v2803_v24 = vadd.f32 %v2795_v14, %v2774_v41  ;;  %v2999_v26 = vadd.f32 %v2991_v27, %v2970_v5  ;;  %v823_v59 = vadd.f32 %v815_v29, %v793_v58  ;;  %v1041_v9 = vmul.f32 %v6071_v52, %v9332_v22  ;;  %v6425_v33 = vld [vmem:[#allocation2 + $0xe0] sm:$0xff] }
 0x1c2   : > { %4721 = vmatmul.mubr.f32.vlgmr.msra.gmra.mrb[0].mxu0 %v1516_v32  ;;  %v1020_v61 = vadd.f32 %v1012_v43, %v991_v48  ;;  %v1070_v37 = vmul.f32 %v6073_v54, %v9333_v1  ;;  %v1099_v13 = vmul.f32 %v6076_v57, %v9334_v19  ;;  %v1128_v35 = vmul.f32 %v6087_v2, %v9335_v20  ;;  %v6429_v41 = vld [vmem:[#allocation2 + $0xe1] sm:$0xff] }
 0x1c3   : > { %9336 = vst [vmem:[#allocation57_spill] sm:$0xff] %v6425_v33  ;;  %v2832_v6 = vadd.f32 %v2824_v44, %v2803_v24  ;;  %v3029_v14 = vadd.f32 %v3021_v53, %v2999_v26  ;;  %v852_v27 = vadd.f32 %v844_v18, %v823_v59  ;;  %v1158_v29 = vmul.f32 %v6091_v4, %v6425_v33  ;;  %v6431_v43 = vld [vmem:[#allocation2 + $0xe2] sm:$0xff]  ;;  %v9340_v18 = vld [vmem:[#allocation50_spill] sm:$0xff] }
 0x1c4   : > { %9337 = vst [vmem:[#allocation58_spill] sm:$0xff] %v6429_v41  ;;  %9338 = vst [vmem:[#allocation59_spill] sm:$0xff] %v6431_v43  ;;  %v1049_v5 = vadd.f32 %v1041_v9, %v1020_v61  ;;  %v1187_v58 = vmul.f32 %v6099_v12, %v6429_v41  ;;  %v1216_v32 = vmul.f32 %v6110_v23, %v6431_v43  ;;  %v9339_v48 = vld [vmem:[#allocation48_spill] sm:$0xff]  ;;  %v9342_v9 = vld [vmem:[#allocation69_spill] sm:$0xff] }
 0x1c5   : > { %v1246_v22 = vmul.f32 %v6114_v25, %v9339_v48  ;;  %v3058_v44 = vadd.f32 %v3050_v10, %v3029_v14  ;;  %v3095_v53 = vadd.f32 %v2832_v6, %v2579_v3  ;;  %v881_v26 = vadd.f32 %v873_v17, %v852_v27  ;;  %v9341_v33 = vld [vmem:[#allocation52_spill] sm:$0xff]  ;;  %v9343_v41 = vld [vmem:[#allocation70_spill] sm:$0xff]  ;;  %v9344_v25 = vld [vmem:[#allocation71_spill] sm:$0xff] }
 0x1c6   : > { %v1267_v24 = vmul.f32 %v6122_v34, %v9340_v18  ;;  %v1078_v59 = vadd.f32 %v1070_v37, %v1049_v5  ;;  %v1296_v20 = vmul.f32 %v6131_v49, %v9341_v33  ;;  %v1325_v61 = vmul.f32 %v6133_v51, %v9342_v9  ;;  %v6449_v3 = vld [vmem:[#allocation2 + $0x180] sm:$0xff] }
 0x1c7   : > { %v1354_v19 = vmul.f32 %v6140_v55, %v9343_v41  ;;  %v3087_v43 = vadd.f32 %v3079_v42, %v3058_v44  ;;  %v911_v1 = vadd.f32 %v903_v45, %v881_v26  ;;  %v1383_v10 = vmul.f32 %v6149_v63, %v9344_v25  ;;  %v6451_v17 = vld [vmem:[#allocation2 + $0x181] sm:$0xff] }
 0x1c8   : > { %v1275_v60 = vadd.f32 %v1267_v24, %v1246_v22  ;;  %v6453_v37 = vld [vmem:[#allocation2 + $0x182] sm:$0xff]  ;;  %v1107_v6 = vadd.f32 %v1099_v13, %v1078_v59  ;;  %v1413_v14 = vmul.f32 %v6153_v15, %v6449_v3  ;;  %v1442_v27 = vmul.f32 %v6163_v38, %v6451_v17 }
 0x1c9   : > { %9345 = vst [vmem:[#allocation36_spill] sm:$0xff] %v6453_v37  ;;  %v1471_v42 = vmul.f32 %v6170_v40, %v6453_v37  ;;  %v3103_v45 = vadd.f32 %v3095_v53, %v3087_v43  ;;  %v940_v5 = vadd.f32 %v932_v30, %v911_v1  ;;  %v9346_v44 = vld [vmem:[#allocation32_spill] sm:$0xff]  ;;  %v2369_v63 = vmul.f32 %v9301_v56, %v9340_v18 }
 0x1ca   : > { %v1304_v22 = vadd.f32 %v1296_v20, %v1275_v60  ;;  %v2348_v26 = vmul.f32 %v9346_v44, %v9339_v48  ;;  %v1136_v24 = vadd.f32 %v1128_v35, %v1107_v6  ;;  %v2398_v13 = vmul.f32 %v9302_v11, %v9341_v33  ;;  %v9348_v6 = vld [vmem:[#allocation34_spill] sm:$0xff] }
 0x1cb   : > { %v2427_v59 = vmul.f32 %v6024_v16, %v9342_v9  ;;  %v3111_v38 = vadd.f32 %v6251_v62, %v3103_v45  ;;  %v969_v15 = vadd.f32 %v961_v0, %v940_v5  ;;  %v2456_v60 = vmul.f32 %v6031_v21, %v9343_v41 }
 0x1cc   : > { %v1333_v40 = vadd.f32 %v1325_v61, %v1304_v22  ;;  %v1166_v20 = vadd.f32 %v1158_v29, %v1136_v24  ;;  %v2377_v30 = vadd.f32 %v2369_v63, %v2348_v26  ;;  %v2485_v1 = vmul.f32 %v9303_v7, %v9344_v25  ;;  %v9349_v26 = vld [vmem:[#allocation35_spill] sm:$0xff]  ;;  %v6492_v24 = vld [vmem:[#allocation2 + $0x220] sm:$0xff] }
 0x1cd   : > { %v2514_v35 = vmul.f32 %v6037_v28, %v6449_v3  ;;  %v3119_v43 = vmax.f32 %v3111_v38, 0.0  ;;  %v2543_v48 = vmul.f32 %v6040_v31, %v6451_v17  ;;  %v2572_v0 = vmul.f32 %v6052_v39, %v6453_v37  ;;  %9350 = vst [vmem:[#allocation37_spill] sm:$0xff] %v6492_v24  ;;  %v9358_v37 = vld [vmem:[#allocation38_spill] sm:$0xff] }
 0x1ce   : > { %v1362_v33 = vadd.f32 %v1354_v19, %v1333_v40  ;;  %v1195_v53 = vadd.f32 %v1187_v58, %v1166_v20  ;;  %v2406_v18 = vadd.f32 %v2398_v13, %v2377_v30  ;;  %v2601_v29 = vmul.f32 %v9305_v36, %v9309_v46  ;;  %v9347_v40 = vld [vmem:[#allocation33_spill] sm:$0xff] }
 0x1cf   : > { %v2622_v63 = vmul.f32 %v9307_v50, %v6219_v8  ;;  %4745 = vmatmul.mubr.f32.vlgmr.msra.gmra.mrb[0].mxu1 %v3119_v43  ;;  %v2651_v38 = vmul.f32 %v6071_v52, %v6225_v47  ;;  %v2680_v19 = vmul.f32 %v6073_v54, %v9347_v40  ;;  %v2709_v45 = vmul.f32 %v6076_v57, %v9348_v6  ;;  %v6494_v8 = vld [vmem:[#allocation2 + $0x221] sm:$0xff] }
 0x1d0   : > { %v1391_v61 = vadd.f32 %v1383_v10, %v1362_v33  ;;  %v1224_v5 = vadd.f32 %v1216_v32, %v1195_v53  ;;  %v2435_v58 = vadd.f32 %v2427_v59, %v2406_v18  ;;  %v2738_v46 = vmul.f32 %v6087_v2, %v9349_v26  ;;  %9351 = vst [vmem:[#allocation40_spill] sm:$0xff] %v6494_v8  ;;  %v6496_v10 = vld [vmem:[#allocation2 + $0x222] sm:$0xff] }
 0x1d1   : > { %v2630_v22 = vadd.f32 %v2622_v63, %v2601_v29  ;;  %9352 = vst [vmem:[#allocation41_spill] sm:$0xff] %v6496_v10  ;;  %v2767_v47 = vmul.f32 %v6091_v4, %v6492_v24  ;;  %v2796_v20 = vmul.f32 %v6099_v12, %v6494_v8  ;;  %v2825_v32 = vmul.f32 %v6110_v23, %v6496_v10  ;;  %v9353_v33 = vld [vmem:[#allocation60_spill] sm:$0xff]  ;;  %v9355_v63 = vld [vmem:[#allocation61_spill] sm:$0xff] }
 0x1d2   : > { %v1421_v13 = vadd.f32 %v1413_v14, %v1391_v61  ;;  %v1487_v59 = vadd.f32 %v1224_v5, %v969_v15  ;;  %v2464_v30 = vadd.f32 %v2456_v60, %v2435_v58  ;;  %v9354_v53 = vld [vmem:[#allocation44_spill] sm:$0xff]  ;;  %v2876_v26 = vmul.f32 %v6122_v34, %v9355_v63  ;;  %v9356_v14 = vld [vmem:[#allocation62_spill] sm:$0xff]  ;;  %v9357_v24 = vld [vmem:[#allocation53_spill] sm:$0xff] }
 0x1d3   : > { %v2659_v43 = vadd.f32 %v2651_v38, %v2630_v22  ;;  %v2855_v18 = vmul.f32 %v9354_v53, %v9353_v33  ;;  %v2905_v61 = vmul.f32 %v6131_v49, %v9356_v14  ;;  %v2934_v6 = vmul.f32 %v6133_v51, %v9357_v24  ;;  %v9359_v60 = vld [vmem:[#allocation54_spill] sm:$0xff]  ;;  %v6516_v58 = vld [vmem:[#allocation2 + $0x2c0] sm:$0xff]  ;;  %v9363_v33 = vld [vmem:[#allocation47_spill] sm:$0xff] }
 0x1d4   : > { %v1450_v29 = vadd.f32 %v1442_v27, %v1421_v13  ;;  %v2493_v8 = vadd.f32 %v2485_v1, %v2464_v30  ;;  %v2963_v15 = vmul.f32 %v6140_v55, %v9358_v37  ;;  %v9360_v38 = vld [vmem:[#allocation46_spill] sm:$0xff]  ;;  %9361 = vst [vmem:[#allocation42_spill] sm:$0xff] %v6516_v58  ;;  %v6518_v27 = vld [vmem:[#allocation2 + $0x2c1] sm:$0xff]  ;;  %v3022_v63 = vmul.f32 %v9363_v33, %v6516_v58 }
 0x1d5   : > { %v2688_v40 = vadd.f32 %v2680_v19, %v2659_v43  ;;  %v2992_v5 = vmul.f32 %v9360_v38, %v9359_v60  ;;  %9362 = vst [vmem:[#allocation43_spill] sm:$0xff] %v6518_v27  ;;  %v2884_v13 = vadd.f32 %v2876_v26, %v2855_v18  ;;  %v9364_v14 = vld [vmem:[#allocation49_spill] sm:$0xff]  ;;  %v9366_v43 = vld [vmem:[#allocation51_spill] sm:$0xff] }
 0x1d6   : > { %v1479_v22 = vadd.f32 %v1471_v42, %v1450_v29  ;;  %v3051_v24 = vmul.f32 %v9364_v14, %v6518_v27  ;;  %v6524_v1 = vld [vmem:[#allocation2 + $0x2c2] sm:$0xff]  ;;  %v2522_v19 = vadd.f32 %v2514_v35, %v2493_v8  ;;  %v9367_v60 = vld [vmem:[#allocation63_spill] sm:$0xff] }
 0x1d7   : > { %9365 = vst [vmem:[#allocation48_spill] sm:$0xff] %v6524_v1  ;;  %v2717_v30 = vadd.f32 %v2709_v45, %v2688_v40  ;;  %v3080_v37 = vmul.f32 %v9366_v43, %v6524_v1  ;;  %v736_v10 = vmul.f32 %v9346_v44, %v9367_v60  ;;  %v2913_v55 = vadd.f32 %v2905_v61, %v2884_v13  ;;  %v9368_v42 = vld [vmem:[#allocation64_spill] sm:$0xff]  ;;  %v9369_v18 = vld [vmem:[#allocation65_spill] sm:$0xff]  ;;  %v9370_v14 = vld [vmem:[#allocation39_spill] sm:$0xff] }
 0x1d8   : > { %v1495_v38 = vadd.f32 %v1487_v59, %v1479_v22  ;;  %v757_v26 = vmul.f32 %v9301_v56, %v9368_v42  ;;  %v786_v29 = vmul.f32 %v9302_v11, %v9369_v18  ;;  %v2551_v58 = vadd.f32 %v2543_v48, %v2522_v19  ;;  %v9371_v40 = vld [vmem:[#allocation55_spill] sm:$0xff]  ;;  %v9372_v59 = vld [vmem:[#allocation56_spill] sm:$0xff]  ;;  %v6541_v60 = vld [vmem:[#allocation2 + $0x50] sm:$0xff] }
 0x1d9   : > { %v2746_v27 = vadd.f32 %v2738_v46, %v2717_v30  ;;  %v816_v35 = vmul.f32 %v6024_v16, %v9370_v14  ;;  %v845_v45 = vmul.f32 %v6031_v21, %v9371_v40  ;;  %v2942_v1 = vadd.f32 %v2934_v6, %v2913_v55  ;;  %9373 = vst [vmem:[#allocation50_spill] sm:$0xff] %v6541_v60  ;;  %v6543_v56 = vld [vmem:[#allocation2 + $0x51] sm:$0xff] }
 0x1da   : > { %v1509_v8 = vadd.f32 %v6251_v62, %v1495_v38  ;;  %v765_v44 = vadd.f32 %v757_v26, %v736_v10  ;;  %v874_v61 = vmul.f32 %v9303_v7, %v9372_v59  ;;  %9374 = vst [vmem:[#allocation52_spill] sm:$0xff] %v6543_v56  ;;  %v2580_v22 = vadd.f32 %v2572_v0, %v2551_v58  ;;  %v6549_v19 = vld [vmem:[#allocation2 + $0x52] sm:$0xff]  ;;  %v9378_v58 = vld [vmem:[#allocation68_spill] sm:$0xff] }
 0x1db   : > { %v2775_v48 = vadd.f32 %v2767_v47, %v2746_v27  ;;  %v904_v46 = vmul.f32 %v6037_v28, %v6541_v60  ;;  %v933_v13 = vmul.f32 %v6040_v31, %v6543_v56  ;;  %9375 = vst [vmem:[#allocation69_spill] sm:$0xff] %v6549_v19  ;;  %v2971_v55 = vadd.f32 %v2963_v15, %v2942_v1  ;;  %v9376_v42 = vld [vmem:[#allocation66_spill] sm:$0xff]  ;;  %v9377_v0 = vld [vmem:[#allocation67_spill] sm:$0xff]  ;;  %v9379_v60 = vld [vmem:[#allocation57_spill] sm:$0xff] }
 0x1dc   : > { %v1517_v38 = vmax.f32 %v1509_v8, 0.0  ;;  %v794_v6 = vadd.f32 %v786_v29, %v765_v44  ;;  %v962_v10 = vmul.f32 %v6052_v39, %v6549_v19  ;;  %v992_v26 = vmul.f32 %v9305_v36, %v9376_v42  ;;  %v9380_v1 = vld [vmem:[#allocation58_spill] sm:$0xff]  ;;  %v6601_v19 = vld [vmem:[#allocation10] ss:$0 sm:$0xff] }
 0x1dd   : > { %v2804_v30 = vadd.f32 %v2796_v20, %v2775_v48  ;;  %v1013_v47 = vmul.f32 %v9307_v50, %v9377_v0  ;;  %v1042_v27 = vmul.f32 %v6071_v52, %v9378_v58  ;;  %v3000_v18 = vadd.f32 %v2992_v5, %v2971_v55  ;;  %v6563_v8 = vld [vmem:[#allocation2 + $0xf0] sm:$0xff]  ;;  %v9382_v48 = vld [vmem:[#allocation59_spill] sm:$0xff] }
 0x1de   : > { %4723 = vmatprep.mubr.f32.mxu0 %v1517_v38  ;;  %v824_v56 = vadd.f32 %v816_v35, %v794_v6  ;;  %v1071_v15 = vmul.f32 %v6073_v54, %v9379_v60  ;;  %v1100_v29 = vmul.f32 %v6076_v57, %v9380_v1  ;;  %9381 = vst [vmem:[#allocation70_spill] sm:$0xff] %v6563_v8  ;;  %v6569_v58 = vld [vmem:[#allocation2 + $0xf1] sm:$0xff] }
 0x1df   : > { %v2833_v20 = vadd.f32 %v2825_v32, %v2804_v30  ;;  %v1021_v44 = vadd.f32 %v1013_v47, %v992_v26  ;;  %v1129_v42 = vmul.f32 %v6087_v2, %v9382_v48  ;;  %v1159_v0 = vmul.f32 %v6091_v4, %v6563_v8  ;;  %9383 = vst [vmem:[#allocation71_spill] sm:$0xff] %v6569_v58  ;;  %v6571_v5 = vld [vmem:[#allocation2 + $0xf2] sm:$0xff] }
 0x1e0   : > { %9384 = vst [vmem:[#allocation32_spill] sm:$0xff] %v6571_v5  ;;  %v3030_v35 = vadd.f32 %v3022_v63, %v3000_v18  ;;  %v853_v38 = vadd.f32 %v845_v45, %v824_v56  ;;  %v1188_v55 = vmul.f32 %v6099_v12, %v6569_v58  ;;  %v1217_v6 = vmul.f32 %v6110_v23, %v6571_v5  ;;  %v9385_v5 = vld [vmem:[#allocation45_spill] sm:$0xff]  ;;  %v6589_v58 = vld [vmem:[#allocation2 + $0x190] sm:$0xff] }
 0x1e1   : > { %v3096_v32 = vadd.f32 %v2833_v20, %v2580_v22  ;;  %v1050_v30 = vadd.f32 %v1042_v27, %v1021_v44  ;;  %v1247_v26 = vmul.f32 %v9354_v53, %v9342_v9  ;;  %v1268_v47 = vmul.f32 %v6122_v34, %v9343_v41  ;;  %v9386_v27 = vld [vmem:[#allocation36_spill] sm:$0xff]  ;;  %v9387_v20 = vld [vmem:[#allocation46_spill] sm:$0xff] }
 0x1e2   : > { %v3059_v8 = vadd.f32 %v3051_v24, %v3030_v35  ;;  %v882_v48 = vadd.f32 %v874_v61, %v853_v38  ;;  %v1297_v63 = vmul.f32 %v6131_v49, %v9344_v25  ;;  %v1326_v45 = vmul.f32 %v6133_v51, %v6449_v3  ;;  %v6591_v1 = vld [vmem:[#allocation2 + $0x191] sm:$0xff]  ;;  %v9388_v38 = vld [vmem:[#allocation49_spill] sm:$0xff] }
 0x1e3   : > { %v1079_v56 = vadd.f32 %v1071_v15, %v1050_v30  ;;  %v1276_v18 = vadd.f32 %v1268_v47, %v1247_v26  ;;  %v1355_v22 = vmul.f32 %v9385_v5, %v6451_v17  ;;  %v1384_v44 = vmul.f32 %v9387_v20, %v9386_v27  ;;  %v6597_v15 = vld [vmem:[#allocation2 + $0x192] sm:$0xff] }
 0x1e4   : > { %v3088_v24 = vadd.f32 %v3080_v37, %v3059_v8  ;;  %v912_v61 = vadd.f32 %v904_v46, %v882_v48  ;;  %v1414_v35 = vmul.f32 %v9363_v33, %v6589_v58  ;;  %v1443_v60 = vmul.f32 %v9388_v38, %v6591_v1  ;;  %v6605_v8 = vld [vmem:[#allocation10 + $0x1] ss:$0 sm:$0xff] }
 0x1e5   : > { %v1108_v30 = vadd.f32 %v1100_v29, %v1079_v56  ;;  %v1305_v26 = vadd.f32 %v1297_v63, %v1276_v18  ;;  %v1472_v47 = vmul.f32 %v9366_v43, %v6597_v15  ;;  %v2349_v59 = vmul.f32 %v6601_v19, %v9342_v9 }
 0x1e6   : > { %v3104_v37 = vadd.f32 %v3096_v32, %v3088_v24  ;;  %v941_v46 = vadd.f32 %v933_v13, %v912_v61  ;;  %v2370_v48 = vmul.f32 %v6605_v8, %v9343_v41  ;;  %v2399_v40 = vmul.f32 %v9302_v11, %v9344_v25 }
 0x1e7   : > { %v1137_v29 = vadd.f32 %v1129_v42, %v1108_v30  ;;  %v1334_v63 = vadd.f32 %v1326_v45, %v1305_v26  ;;  %v2428_v56 = vmul.f32 %v6024_v16, %v6449_v3  ;;  %v2457_v18 = vmul.f32 %v6031_v21, %v6451_v17  ;;  %v9389_v45 = vld [vmem:[#allocation33_spill] sm:$0xff]  ;;  %v9390_v26 = vld [vmem:[#allocation34_spill] sm:$0xff] }
 0x1e8   : > { %v3112_v9 = vadd.f32 %v6251_v62, %v3104_v37  ;;  %v970_v32 = vadd.f32 %v962_v10, %v941_v46  ;;  %v2378_v13 = vadd.f32 %v2370_v48, %v2349_v59  ;;  %v2486_v24 = vmul.f32 %v9303_v7, %v9386_v27  ;;  %v9392_v37 = vld [vmem:[#allocation37_spill] sm:$0xff] }
 0x1e9   : > { %v1167_v61 = vadd.f32 %v1159_v0, %v1137_v29  ;;  %v1363_v41 = vadd.f32 %v1355_v22, %v1334_v63  ;;  %v2515_v25 = vmul.f32 %v6037_v28, %v6589_v58  ;;  %v2544_v11 = vmul.f32 %v6040_v31, %v6591_v1  ;;  %v9391_v0 = vld [vmem:[#allocation35_spill] sm:$0xff] }
 0x1ea   : > { %v3120_v42 = vmax.f32 %v3112_v9, 0.0  ;;  %v2407_v16 = vadd.f32 %v2399_v40, %v2378_v13  ;;  %v2573_v21 = vmul.f32 %v6052_v39, %v6597_v15  ;;  %v2602_v10 = vmul.f32 %v9305_v36, %v9389_v45  ;;  %v9393_v40 = vld [vmem:[#allocation40_spill] sm:$0xff]  ;;  %v9394_v39 = vld [vmem:[#allocation41_spill] sm:$0xff]  ;;  %v6636_v36 = vld [vmem:[#allocation2 + $0x230] sm:$0xff] }
 0x1eb   : > { %v1196_v59 = vadd.f32 %v1188_v55, %v1167_v61  ;;  %v1392_v30 = vadd.f32 %v1384_v44, %v1363_v41  ;;  %v2623_v7 = vmul.f32 %v9307_v50, %v9390_v26  ;;  %v2652_v22 = vmul.f32 %v6071_v52, %v9391_v0  ;;  %9395 = vst [vmem:[#allocation60_spill] sm:$0xff] %v6636_v36  ;;  %v6640_v52 = vld [vmem:[#allocation2 + $0x231] sm:$0xff] }
 0x1ec   : > { %4747 = vmatprep.mubr.f32.mxu1 %v3120_v42  ;;  %v2436_v28 = vadd.f32 %v2428_v56, %v2407_v16  ;;  %v2681_v31 = vmul.f32 %v6073_v54, %v9392_v37  ;;  %v2710_v46 = vmul.f32 %v6076_v57, %v9393_v40  ;;  %v2739_v48 = vmul.f32 %v6087_v2, %v9394_v39  ;;  %v6642_v63 = vld [vmem:[#allocation2 + $0x232] sm:$0xff]  ;;  %v9398_v2 = vld [vmem:[#allocation53_spill] sm:$0xff] }
 0x1ed   : > { %v1225_v55 = vadd.f32 %v1217_v6, %v1196_v59  ;;  %v1422_v44 = vadd.f32 %v1414_v35, %v1392_v30  ;;  %v2631_v29 = vadd.f32 %v2623_v7, %v2602_v10  ;;  %v2768_v50 = vmul.f32 %v6091_v4, %v6636_v36  ;;  %9396 = vst [vmem:[#allocation44_spill] sm:$0xff] %v6640_v52  ;;  %v9399_v61 = vld [vmem:[#allocation38_spill] sm:$0xff]  ;;  %v9402_v45 = vld [vmem:[#allocation43_spill] sm:$0xff] }
 0x1ee   : > { %9397 = vst [vmem:[#allocation61_spill] sm:$0xff] %v6642_v63  ;;  %v2465_v56 = vadd.f32 %v2457_v18, %v2436_v28  ;;  %v2797_v54 = vmul.f32 %v6099_v12, %v6640_v52  ;;  %v6648_v57 = vmul.f32 %v6110_v23, %v6642_v63  ;;  %v2856_v6 = vmul.f32 %v9354_v53, %v9398_v2  ;;  %v9400_v42 = vld [vmem:[#allocation54_spill] sm:$0xff]  ;;  %v9403_v53 = vld [vmem:[#allocation48_spill] sm:$0xff]  ;;  %v9407_v28 = vld [vmem:[#allocation55_spill] sm:$0xff] }
 0x1ef   : > { %v1451_v35 = vadd.f32 %v1443_v60, %v1422_v44  ;;  %v1488_v9 = vadd.f32 %v1225_v55, %v970_v32  ;;  %v2660_v13 = vadd.f32 %v2652_v22, %v2631_v29  ;;  %v2877_v4 = vmul.f32 %v6122_v34, %v9399_v61  ;;  %v9401_v16 = vld [vmem:[#allocation42_spill] sm:$0xff]  ;;  %v6686_v55 = vld [vmem:[#allocation10 + $0x3] ss:$0 sm:$0xff]  ;;  %v6697_v61 = vld [vmem:[#allocation10 + $0x5] ss:$0 sm:$0xff] }
 0x1f0   : > { %v2494_v41 = vadd.f32 %v2486_v24, %v2465_v56  ;;  %v2906_v18 = vmul.f32 %v6131_v49, %v9400_v42  ;;  %v2935_v12 = vmul.f32 %v6133_v51, %v9401_v16  ;;  %v2964_v23 = vmul.f32 %v9385_v5, %v9402_v45  ;;  %v6662_v32 = vld [vmem:[#allocation2 + $0x2d0] sm:$0xff]  ;;  %9410 = vst [vmem:[#allocation64_spill] sm:$0xff] %v6686_v55  ;;  %v6701_v42 = vld [vmem:[#allocation10 + $0x6] ss:$0 sm:$0xff]  ;;  %v6803_v45 = vld [vmem:[#allocation10 + $0x19] ss:$0 sm:$0xff] }
 0x1f1   : > { %v1480_v10 = vadd.f32 %v1472_v47, %v1451_v35  ;;  %v2689_v59 = vadd.f32 %v2681_v31, %v2660_v13  ;;  %v2885_v30 = vadd.f32 %v2877_v4, %v2856_v6  ;;  %v2993_v60 = vmul.f32 %v9387_v20, %v9403_v53  ;;  %9404 = vst [vmem:[#allocation62_spill] sm:$0xff] %v6662_v32  ;;  %v6664_v26 = vld [vmem:[#allocation2 + $0x2d1] sm:$0xff]  ;;  %v6682_v31 = vld [vmem:[#allocation10 + $0x2] ss:$0 sm:$0xff]  ;;  %v6691_v6 = vld [vmem:[#allocation10 + $0x4] ss:$0 sm:$0xff] }
 0x1f2   : > { %9405 = vst [vmem:[#allocation47_spill] sm:$0xff] %v6664_v26  ;;  %v6666_v34 = vld [vmem:[#allocation2 + $0x2d2] sm:$0xff]  ;;  %v2523_v24 = vadd.f32 %v2515_v25, %v2494_v41  ;;  %v3023_v49 = vmul.f32 %v9363_v33, %v6662_v32  ;;  %v6672_v51 = vmul.f32 %v9388_v38, %v6664_v26  ;;  %v737_v0 = vmul.f32 %v6601_v19, %v9370_v14  ;;  %v9409_v33 = vld [vmem:[#allocation56_spill] sm:$0xff]  ;;  %v9415_v4 = vld [vmem:[#allocation69_spill] sm:$0xff] }
 0x1f3   : > { %9406 = vst [vmem:[#allocation51_spill] sm:$0xff] %v6666_v34  ;;  %v6676_v5 = vmul.f32 %v9366_v43, %v6666_v34  ;;  %v1496_v47 = vadd.f32 %v1488_v9, %v1480_v10  ;;  %v2718_v20 = vadd.f32 %v2710_v46, %v2689_v59  ;;  %v2914_v7 = vadd.f32 %v2906_v18, %v2885_v30  ;;  %v9411_v44 = vld [vmem:[#allocation50_spill] sm:$0xff]  ;;  %v9413_v14 = vld [vmem:[#allocation52_spill] sm:$0xff] }
 0x1f4   : > { %v2552_v22 = vadd.f32 %v2544_v11, %v2523_v24  ;;  %v758_v25 = vmul.f32 %v6605_v8, %v9407_v28  ;;  %9408 = vst [vmem:[#allocation63_spill] sm:$0xff] %v6682_v31  ;;  %v787_v38 = vmul.f32 %v6682_v31, %v9409_v33  ;;  %v817_v29 = vmul.f32 %v6686_v55, %v9411_v44  ;;  %v6695_v35 = vld [vmem:[#allocation2 + $0x60] sm:$0xff]  ;;  %v9419_v28 = vld [vmem:[#allocation58_spill] sm:$0xff] }
 0x1f5   : > { %v1510_v46 = vadd.f32 %v6251_v62, %v1496_v47  ;;  %v2747_v56 = vadd.f32 %v2739_v48, %v2718_v20  ;;  %v2943_v2 = vadd.f32 %v2935_v12, %v2914_v7  ;;  %9412 = vst [vmem:[#allocation65_spill] sm:$0xff] %v6691_v6  ;;  %v846_v11 = vmul.f32 %v6691_v6, %v9413_v14  ;;  %v6707_v18 = vld [vmem:[#allocation2 + $0x61] sm:$0xff]  ;;  %v9422_v14 = vld [vmem:[#allocation71_spill] sm:$0xff]  ;;  %v6762_v34 = vld [vmem:[#allocation10 + $0x11] ss:$0 sm:$0xff] }
 0x1f6   : > { %9414 = vst [vmem:[#allocation39_spill] sm:$0xff] %v6695_v35  ;;  %v2581_v9 = vadd.f32 %v2573_v21, %v2552_v22  ;;  %v766_v13 = vadd.f32 %v758_v25, %v737_v0  ;;  %v875_v41 = vmul.f32 %v6697_v61, %v9415_v4  ;;  %v6705_v48 = vmul.f32 %v6701_v42, %v6695_v35  ;;  %v6709_v30 = vld [vmem:[#allocation10 + $0x7] ss:$0 sm:$0xff]  ;;  %v6717_v20 = vld [vmem:[#allocation10 + $0x8] ss:$0 sm:$0xff] }
 0x1f7   : > { %9416 = vst [vmem:[#allocation66_spill] sm:$0xff] %v6707_v18  ;;  %v1518_v12 = vmax.f32 %v1510_v46, 0.0  ;;  %v2776_v10 = vadd.f32 %v2768_v50, %v2747_v56  ;;  %v2972_v59 = vadd.f32 %v2964_v23, %v2943_v2  ;;  %v6713_v21 = vmul.f32 %v6709_v30, %v6707_v18  ;;  %v6715_v24 = vld [vmem:[#allocation2 + $0x62] sm:$0xff]  ;;  %v6727_v23 = vld [vmem:[#allocation10 + $0xa] ss:$0 sm:$0xff]  ;;  %v9420_v56 = vld [vmem:[#allocation59_spill] sm:$0xff] }
 0x1f8   : > { %9417 = vst [vmem:[#allocation67_spill] sm:$0xff] %v6715_v24  ;;  %v795_v47 = vadd.f32 %v787_v38, %v766_v13  ;;  %v6721_v7 = vmul.f32 %v6717_v20, %v6715_v24  ;;  %v6723_v0 = vld [vmem:[#allocation10 + $0x9] ss:$0 sm:$0xff]  ;;  %v1014_v25 = vmul.f32 %v6727_v23, %v9419_v28  ;;  %v6731_v38 = vld [vmem:[#allocation10 + $0xb] ss:$0 sm:$0xff]  ;;  %v9421_v24 = vld [vmem:[#allocation70_spill] sm:$0xff] }
 0x1f9   : > { %v9418_v22 = vld [vmem:[#allocation57_spill] sm:$0xff]  ;;  %4724 = vmatmul.mubr.f32.gmra.mrb[2].mxu0 %v1518_v12  ;;  %v2805_v33 = vadd.f32 %v2797_v54, %v2776_v10  ;;  %v3001_v46 = vadd.f32 %v2993_v60, %v2972_v59  ;;  %v1043_v2 = vmul.f32 %v6731_v38, %v9420_v56  ;;  %v9423_v54 = vld [vmem:[#allocation32_spill] sm:$0xff]  ;;  %v6771_v26 = vld [vmem:[#allocation10 + $0x13] ss:$0 sm:$0xff]  ;;  %9436 = vst [vmem:[#allocation38_spill] sm:$0xff] %v6803_v45 }
 0x1fa   : > { %v993_v50 = vmul.f32 %v6723_v0, %v9418_v22  ;;  %v6735_v13 = vld [vmem:[#allocation10 + $0xc] ss:$0 sm:$0xff]  ;;  %v825_v35 = vadd.f32 %v817_v29, %v795_v47  ;;  %v6739_v4 = vld [vmem:[#allocation10 + $0xd] ss:$0 sm:$0xff]  ;;  %v6743_v12 = vld [vmem:[#allocation10 + $0xe] ss:$0 sm:$0xff] }
 0x1fb   : > { %v1072_v18 = vmul.f32 %v6735_v13, %v9421_v24  ;;  %v1101_v28 = vmul.f32 %v6739_v4, %v9422_v14  ;;  %v1130_v60 = vmul.f32 %v6743_v12, %v9423_v54  ;;  %v6747_v10 = vld [vmem:[#allocation2 + $0x100] sm:$0xff]  ;;  %v2834_v56 = vadd.f32 %v6648_v57, %v2805_v33  ;;  %v6752_v24 = vld [vmem:[#allocation10 + $0xf] ss:$0 sm:$0xff]  ;;  %v6756_v47 = vld [vmem:[#allocation10 + $0x10] ss:$0 sm:$0xff]  ;;  %9428 = vst [vmem:[#allocation49_spill] sm:$0xff] %v6771_v26 }
 0x1fc   : > { %v1022_v22 = vadd.f32 %v1014_v25, %v993_v50  ;;  %9424 = vst [vmem:[#allocation68_spill] sm:$0xff] %v6747_v10  ;;  %v6749_v59 = vld [vmem:[#allocation2 + $0x101] sm:$0xff]  ;;  %v3031_v44 = vadd.f32 %v3023_v49, %v3001_v46  ;;  %v1160_v29 = vmul.f32 %v6752_v24, %v6747_v10  ;;  %v854_v54 = vadd.f32 %v846_v11, %v825_v35  ;;  %v6766_v49 = vld [vmem:[#allocation10 + $0x12] ss:$0 sm:$0xff]  ;;  %v6775_v11 = vld [vmem:[#allocation10 + $0x14] ss:$0 sm:$0xff] }
 0x1fd   : > { %9425 = vst [vmem:[#allocation45_spill] sm:$0xff] %v6749_v59  ;;  %v1189_v50 = vmul.f32 %v6756_v47, %v6749_v59  ;;  %v6760_v25 = vld [vmem:[#allocation2 + $0x102] sm:$0xff]  ;;  %9427 = vst [vmem:[#allocation46_spill] sm:$0xff] %v6766_v49  ;;  %v1248_v33 = vmul.f32 %v6766_v49, %v6449_v3  ;;  %v3097_v10 = vadd.f32 %v2834_v56, %v2581_v9  ;;  %v6783_v53 = vld [vmem:[#allocation10 + $0x16] ss:$0 sm:$0xff] }
 0x1fe   : > { %9426 = vst [vmem:[#allocation36_spill] sm:$0xff] %v6760_v25  ;;  %v1051_v14 = vadd.f32 %v1043_v2, %v1022_v22  ;;  %v1218_v57 = vmul.f32 %v6762_v34, %v6760_v25  ;;  %v3060_v46 = vadd.f32 %v6672_v51, %v3031_v44  ;;  %v1269_v59 = vmul.f32 %v6771_v26, %v6451_v17  ;;  %v6779_v25 = vld [vmem:[#allocation10 + $0x15] ss:$0 sm:$0xff]  ;;  %v6787_v44 = vld [vmem:[#allocation2 + $0x1a0] sm:$0xff]  ;;  %v6790_v26 = vld [vmem:[#allocation10 + $0x17] ss:$0 sm:$0xff] }
 0x1ff   : > { %9429 = vst [vmem:[#allocation33_spill] sm:$0xff] %v6775_v11  ;;  %v1298_v35 = vmul.f32 %v6775_v11, %v9386_v27  ;;  %v883_v2 = vadd.f32 %v875_v41, %v854_v54  ;;  %9430 = vst [vmem:[#allocation34_spill] sm:$0xff] %v6779_v25  ;;  %v1327_v32 = vmul.f32 %v6779_v25, %v6589_v58  ;;  %v6794_v41 = vld [vmem:[#allocation10 + $0x18] ss:$0 sm:$0xff]  ;;  %v6798_v54 = vld [vmem:[#allocation2 + $0x1a1] sm:$0xff] }
 0x200   : > { %v1080_v22 = vadd.f32 %v1072_v18, %v1051_v14  ;;  %9431 = vst [vmem:[#allocation35_spill] sm:$0xff] %v6783_v53  ;;  %v1356_v51 = vmul.f32 %v6783_v53, %v6591_v1  ;;  %v3089_v9 = vadd.f32 %v6676_v5, %v3060_v46  ;;  %v1277_v56 = vadd.f32 %v1269_v59, %v1248_v33  ;;  %v6800_v25 = vld [vmem:[#allocation2 + $0x1a2] sm:$0xff] }
 0x201   : > { %9432 = vst [vmem:[#allocation37_spill] sm:$0xff] %v6790_v26  ;;  %v1385_v14 = vmul.f32 %v6790_v26, %v6597_v15  ;;  %9433 = vst [vmem:[#allocation40_spill] sm:$0xff] %v6794_v41  ;;  %v1415_v18 = vmul.f32 %v6794_v41, %v6787_v44  ;;  %v913_v53 = vadd.f32 %v6705_v48, %v883_v2 }
 0x202   : > { %9434 = vst [vmem:[#allocation41_spill] sm:$0xff] %v6798_v54  ;;  %9435 = vst [vmem:[#allocation53_spill] sm:$0xff] %v6800_v25  ;;  %v1109_v11 = vadd.f32 %v1101_v28, %v1080_v22  ;;  %v1444_v5 = vmul.f32 %v6803_v45, %v6798_v54  ;;  %v1473_v59 = vmul.f32 %v9366_v43, %v6800_v25 }
 0x203   : > { %v3105_v33 = vadd.f32 %v3097_v10, %v3089_v9  ;;  %v1306_v46 = vadd.f32 %v1298_v35, %v1277_v56  ;;  %v2350_v41 = vmul.f32 %v6601_v19, %v6449_v3  ;;  %v2371_v26 = vmul.f32 %v6605_v8, %v6451_v17 }
 0x204   : > { %v942_v49 = vadd.f32 %v6713_v21, %v913_v53  ;;  %v1138_v48 = vadd.f32 %v1130_v60, %v1109_v11  ;;  %v2400_v28 = vmul.f32 %v6682_v31, %v9386_v27  ;;  %v2429_v2 = vmul.f32 %v6686_v55, %v6589_v58 }
 0x205   : > { %v3113_v22 = vadd.f32 %v6251_v62, %v3105_v33  ;;  %v1335_v43 = vadd.f32 %v1327_v32, %v1306_v46  ;;  %v2379_v10 = vadd.f32 %v2371_v26, %v2350_v41  ;;  %v2458_v35 = vmul.f32 %v6691_v6, %v6591_v1 }
 0x206   : > { %v971_v3 = vadd.f32 %v6721_v7, %v942_v49  ;;  %v1168_v9 = vadd.f32 %v1160_v29, %v1138_v48  ;;  %v2487_v17 = vmul.f32 %v6697_v61, %v6597_v15  ;;  %v2516_v53 = vmul.f32 %v6701_v42, %v6787_v44  ;;  %v6842_v48 = vld [vmem:[#allocation2 + $0x240] sm:$0xff] }
 0x207   : > { %v3121_v27 = vmax.f32 %v3113_v22, 0.0  ;;  %v1364_v21 = vadd.f32 %v1356_v51, %v1335_v43  ;;  %v2408_v60 = vadd.f32 %v2400_v28, %v2379_v10  ;;  %v2545_v11 = vmul.f32 %v6709_v30, %v6798_v54  ;;  %9437 = vst [vmem:[#allocation54_spill] sm:$0xff] %v6842_v48 }
 0x208   : > { %v1197_v32 = vadd.f32 %v1189_v50, %v1168_v9  ;;  %v2574_v26 = vmul.f32 %v6717_v20, %v6800_v25  ;;  %v2603_v7 = vmul.f32 %v6723_v0, %v9392_v37  ;;  %v2624_v29 = vmul.f32 %v6727_v23, %v9393_v40  ;;  %v6844_v40 = vld [vmem:[#allocation2 + $0x241] sm:$0xff]  ;;  %v9440_v9 = vld [vmem:[#allocation46_spill] sm:$0xff] }
 0x209   : > { %4748 = vmatmul.mubr.f32.gmra.mrb[2].mxu1 %v3121_v27  ;;  %v1393_v49 = vadd.f32 %v1385_v14, %v1364_v21  ;;  %v2437_v56 = vadd.f32 %v2429_v2, %v2408_v60  ;;  %v2653_v51 = vmul.f32 %v6731_v38, %v9394_v39  ;;  %v2682_v41 = vmul.f32 %v6735_v13, %v6636_v36  ;;  %v6866_v36 = vld [vmem:[#allocation2 + $0x2e0] sm:$0xff] }
 0x20a   : > { %v1226_v33 = vadd.f32 %v1218_v57, %v1197_v32  ;;  %v2632_v50 = vadd.f32 %v2624_v29, %v2603_v7  ;;  %v2711_v46 = vmul.f32 %v6739_v4, %v6640_v52  ;;  %v2740_v37 = vmul.f32 %v6743_v12, %v6642_v63  ;;  %9438 = vst [vmem:[#allocation42_spill] sm:$0xff] %v6844_v40  ;;  %v6850_v57 = vld [vmem:[#allocation2 + $0x242] sm:$0xff] }
 0x20b   : > { %v1423_v14 = vadd.f32 %v1415_v18, %v1393_v49  ;;  %v2466_v28 = vadd.f32 %v2458_v35, %v2437_v56  ;;  %v2769_v39 = vmul.f32 %v6752_v24, %v6842_v48  ;;  %v2798_v2 = vmul.f32 %v6756_v47, %v6844_v40  ;;  %9439 = vst [vmem:[#allocation55_spill] sm:$0xff] %v6850_v57  ;;  %v9441_v18 = vld [vmem:[#allocation43_spill] sm:$0xff]  ;;  %v9442_v35 = vld [vmem:[#allocation49_spill] sm:$0xff]  ;;  %v9443_v7 = vld [vmem:[#allocation48_spill] sm:$0xff] }
 0x20c   : > { %v1489_v22 = vadd.f32 %v1226_v33, %v971_v3  ;;  %v2661_v43 = vadd.f32 %v2653_v51, %v2632_v50  ;;  %v2827_v10 = vmul.f32 %v6762_v34, %v6850_v57  ;;  %v2857_v27 = vmul.f32 %v9440_v9, %v9401_v16  ;;  %v9444_v29 = vld [vmem:[#allocation33_spill] sm:$0xff]  ;;  %v9445_v40 = vld [vmem:[#allocation62_spill] sm:$0xff]  ;;  %v9447_v3 = vld [vmem:[#allocation47_spill] sm:$0xff]  ;;  %9451 = vst [vmem:[#allocation56_spill] sm:$0xff] %v6866_v36 }
 0x20d   : > { %v1452_v21 = vadd.f32 %v1444_v5, %v1423_v14  ;;  %v2495_v60 = vadd.f32 %v2487_v17, %v2466_v28  ;;  %v2878_v32 = vmul.f32 %v9442_v35, %v9441_v18  ;;  %v2907_v49 = vmul.f32 %v9444_v29, %v9443_v7  ;;  %v9446_v48 = vld [vmem:[#allocation34_spill] sm:$0xff]  ;;  %v9448_v51 = vld [vmem:[#allocation35_spill] sm:$0xff]  ;;  %v9450_v57 = vld [vmem:[#allocation37_spill] sm:$0xff] }
 0x20e   : > { %v2690_v56 = vadd.f32 %v2682_v41, %v2661_v43  ;;  %v2936_v63 = vmul.f32 %v9446_v48, %v9445_v40  ;;  %v2965_v33 = vmul.f32 %v9448_v51, %v9447_v3  ;;  %v9449_v50 = vld [vmem:[#allocation51_spill] sm:$0xff]  ;;  %v9452_v14 = vld [vmem:[#allocation40_spill] sm:$0xff]  ;;  %v9456_v40 = vld [vmem:[#allocation50_spill] sm:$0xff] }
 0x20f   : > { %v2994_v52 = vmul.f32 %v9450_v57, %v9449_v50  ;;  %v1481_v16 = vadd.f32 %v1473_v59, %v1452_v21  ;;  %v2524_v5 = vadd.f32 %v2516_v53, %v2495_v60  ;;  %v2886_v17 = vadd.f32 %v2878_v32, %v2857_v27  ;;  %v6870_v18 = vld [vmem:[#allocation2 + $0x2e1] sm:$0xff]  ;;  %v6876_v3 = vld [vmem:[#allocation10 + $0x1a] ss:$0 sm:$0xff] }
 0x210   : > { %v3024_v28 = vmul.f32 %v9452_v14, %v6866_v36  ;;  %9453 = vst [vmem:[#allocation57_spill] sm:$0xff] %v6870_v18  ;;  %v6872_v41 = vld [vmem:[#allocation2 + $0x2e2] sm:$0xff]  ;;  %v2719_v43 = vadd.f32 %v2711_v46, %v2690_v56  ;;  %v3053_v7 = vmul.f32 %v6803_v45, %v6870_v18  ;;  %9455 = vst [vmem:[#allocation59_spill] sm:$0xff] %v6876_v3  ;;  %v9459_v56 = vld [vmem:[#allocation39_spill] sm:$0xff] }
 0x211   : > { %9454 = vst [vmem:[#allocation58_spill] sm:$0xff] %v6872_v41  ;;  %v3082_v50 = vmul.f32 %v6876_v3, %v6872_v41  ;;  %v738_v59 = vmul.f32 %v6601_v19, %v9456_v40  ;;  %v1497_v53 = vadd.f32 %v1489_v22, %v1481_v16  ;;  %v2553_v27 = vadd.f32 %v2545_v11, %v2524_v5  ;;  %v9457_v60 = vld [vmem:[#allocation52_spill] sm:$0xff]  ;;  %v9458_v14 = vld [vmem:[#allocation69_spill] sm:$0xff]  ;;  %v9460_v45 = vld [vmem:[#allocation66_spill] sm:$0xff] }
 0x212   : > { %v2915_v21 = vadd.f32 %v2907_v49, %v2886_v17  ;;  %v759_v32 = vmul.f32 %v6605_v8, %v9457_v60  ;;  %v2748_v36 = vadd.f32 %v2740_v37, %v2719_v43  ;;  %v788_v46 = vmul.f32 %v6682_v31, %v9458_v14  ;;  %v6891_v11 = vld [vmem:[#allocation2 + $0x70] sm:$0xff]  ;;  %v9463_v37 = vld [vmem:[#allocation67_spill] sm:$0xff]  ;;  %v9467_v60 = vld [vmem:[#allocation32_spill] sm:$0xff] }
 0x213   : > { %v818_v18 = vmul.f32 %v6686_v55, %v9459_v56  ;;  %v847_v57 = vmul.f32 %v6691_v6, %v9460_v45  ;;  %v1511_v41 = vadd.f32 %v6251_v62, %v1497_v53  ;;  %v2582_v3 = vadd.f32 %v2574_v26, %v2553_v27  ;;  %9461 = vst [vmem:[#allocation46_spill] sm:$0xff] %v6891_v11  ;;  %v6893_v49 = vld [vmem:[#allocation2 + $0x71] sm:$0xff] }
 0x214   : > { %v2944_v40 = vadd.f32 %v2936_v63, %v2915_v21  ;;  %v767_v22 = vadd.f32 %v759_v32, %v738_v59  ;;  %9462 = vst [vmem:[#allocation43_spill] sm:$0xff] %v6893_v49  ;;  %v2777_v16 = vadd.f32 %v2769_v39, %v2748_v36  ;;  %v876_v5 = vmul.f32 %v6697_v61, %v9463_v37  ;;  %v6901_v43 = vld [vmem:[#allocation2 + $0x72] sm:$0xff]  ;;  %v9468_v37 = vld [vmem:[#allocation68_spill] sm:$0xff] }
 0x215   : > { %v906_v17 = vmul.f32 %v6701_v42, %v6891_v11  ;;  %v935_v14 = vmul.f32 %v6709_v30, %v6893_v49  ;;  %9464 = vst [vmem:[#allocation49_spill] sm:$0xff] %v6901_v43  ;;  %v1519_v62 = vmax.f32 %v1511_v41, 0.0  ;;  %v964_v59 = vmul.f32 %v6717_v20, %v6901_v43  ;;  %v9465_v27 = vld [vmem:[#allocation70_spill] sm:$0xff]  ;;  %v9466_v39 = vld [vmem:[#allocation71_spill] sm:$0xff]  ;;  %v9469_v41 = vld [vmem:[#allocation45_spill] sm:$0xff] }
 0x216   : > { %v2973_v26 = vadd.f32 %v2965_v33, %v2944_v40  ;;  %v796_v63 = vadd.f32 %v788_v46, %v767_v22  ;;  %v2806_v53 = vadd.f32 %v2798_v2, %v2777_v16  ;;  %v994_v36 = vmul.f32 %v6723_v0, %v9465_v27  ;;  %v6915_v40 = vld [vmem:[#allocation2 + $0x110] sm:$0xff]  ;;  %v9471_v16 = vld [vmem:[#allocation36_spill] sm:$0xff] }
 0x217   : > { %v1015_v21 = vmul.f32 %v6727_v23, %v9466_v39  ;;  %v1044_v32 = vmul.f32 %v6731_v38, %v9467_v60  ;;  %4726 = vmatprep.mubr.f32.mxu0 %v1519_v62  ;;  %v1073_v33 = vmul.f32 %v6735_v13, %v9468_v37  ;;  %v1102_v46 = vmul.f32 %v6739_v4, %v9469_v41  ;;  %v6921_v60 = vld [vmem:[#allocation2 + $0x111] sm:$0xff] }
 0x218   : > { %v3002_v49 = vadd.f32 %v2994_v52, %v2973_v26  ;;  %v826_v11 = vadd.f32 %v818_v18, %v796_v63  ;;  %9470 = vst [vmem:[#allocation48_spill] sm:$0xff] %v6915_v40  ;;  %v2835_v2 = vadd.f32 %v2827_v10, %v2806_v53  ;;  %v1131_v27 = vmul.f32 %v6743_v12, %v9471_v16  ;;  %v6923_v52 = vld [vmem:[#allocation2 + $0x112] sm:$0xff] }
 0x219   : > { %v1023_v22 = vadd.f32 %v1015_v21, %v994_v36  ;;  %v1161_v39 = vmul.f32 %v6752_v24, %v6915_v40  ;;  %9472 = vst [vmem:[#allocation33_spill] sm:$0xff] %v6921_v60  ;;  %9473 = vst [vmem:[#allocation34_spill] sm:$0xff] %v6923_v52  ;;  %v1190_v26 = vmul.f32 %v6756_v47, %v6921_v60  ;;  %v9478_v60 = vld [vmem:[#allocation38_spill] sm:$0xff] }
 0x21a   : > { %v3032_v18 = vadd.f32 %v3024_v28, %v3002_v49  ;;  %v855_v62 = vadd.f32 %v847_v57, %v826_v11  ;;  %v1219_v63 = vmul.f32 %v6762_v34, %v6923_v52  ;;  %v3098_v10 = vadd.f32 %v2835_v2, %v2582_v3  ;;  %v6943_v52 = vld [vmem:[#allocation2 + $0x1b1] sm:$0xff] }
 0x21b   : > { %v1052_v53 = vadd.f32 %v1044_v32, %v1023_v22  ;;  %v1249_v36 = vmul.f32 %v9440_v9, %v6589_v58  ;;  %v1270_v21 = vmul.f32 %v9442_v35, %v6591_v1  ;;  %v1299_v28 = vmul.f32 %v9444_v29, %v6597_v15  ;;  %v9474_v32 = vld [vmem:[#allocation37_spill] sm:$0xff]  ;;  %v6941_v22 = vld [vmem:[#allocation2 + $0x1b0] sm:$0xff]  ;;  %9476 = vst [vmem:[#allocation50_spill] sm:$0xff] %v6943_v52 }
 0x21c   : > { %v3061_v40 = vadd.f32 %v3053_v7, %v3032_v18  ;;  %v884_v16 = vadd.f32 %v876_v5, %v855_v62  ;;  %v1328_v57 = vmul.f32 %v9446_v48, %v6787_v44  ;;  %v1357_v3 = vmul.f32 %v9448_v51, %v6798_v54  ;;  %9475 = vst [vmem:[#allocation35_spill] sm:$0xff] %v6941_v22  ;;  %v9477_v18 = vld [vmem:[#allocation40_spill] sm:$0xff] }
 0x21d   : > { %v1081_v11 = vadd.f32 %v1073_v33, %v1052_v53  ;;  %v1278_v49 = vadd.f32 %v1270_v21, %v1249_v36  ;;  %v1386_v2 = vmul.f32 %v9474_v32, %v6800_v25  ;;  %v1416_v62 = vmul.f32 %v9477_v18, %v6941_v22  ;;  %v6949_v33 = vld [vmem:[#allocation2 + $0x1b2] sm:$0xff] }
 0x21e   : > { %v3090_v7 = vadd.f32 %v3082_v50, %v3061_v40  ;;  %v914_v5 = vadd.f32 %v906_v17, %v884_v16  ;;  %v1445_v41 = vmul.f32 %v9478_v60, %v6943_v52  ;;  %9479 = vst [vmem:[#allocation52_spill] sm:$0xff] %v6949_v33  ;;  %v9480_v21 = vld [vmem:[#allocation59_spill] sm:$0xff]  ;;  %v2351_v43 = vmul.f32 %v6601_v19, %v6589_v58  ;;  %v6966_v58 = vld [vmem:[%s9287_s6] ss:$0 sm:$0xff] }
 0x21f   : > { %v1110_v53 = vadd.f32 %v1102_v46, %v1081_v11  ;;  %v1307_v36 = vadd.f32 %v1299_v28, %v1278_v49  ;;  %v1474_v37 = vmul.f32 %v9480_v21, %v6949_v33  ;;  %v2372_v50 = vmul.f32 %v6605_v8, %v6591_v1 }
 0x220   : > { %v3106_v45 = vadd.f32 %v3098_v10, %v3090_v7  ;;  %v943_v56 = vadd.f32 %v935_v14, %v914_v5  ;;  %v2401_v17 = vmul.f32 %v6682_v31, %v6597_v15  ;;  %v2430_v46 = vmul.f32 %v6686_v55, %v6787_v44 }
 0x221   : > { %v1139_v40 = vadd.f32 %v1131_v27, %v1110_v53  ;;  %v1336_v16 = vadd.f32 %v1328_v57, %v1307_v36  ;;  %v2459_v28 = vmul.f32 %v6691_v6, %v6798_v54  ;;  %v2380_v1 = vadd.f32 %v2372_v50, %v2351_v43  ;;  %v9481_v36 = vld [vmem:[#allocation60_spill] sm:$0xff] }
 0x222   : > { %v3114_v14 = vadd.f32 %v6966_v58, %v3106_v45  ;;  %v972_v10 = vadd.f32 %v964_v59, %v943_v56  ;;  %v2488_v15 = vmul.f32 %v6697_v61, %v6800_v25  ;;  %v2517_v11 = vmul.f32 %v6701_v42, %v6941_v22  ;;  %v9482_v59 = vld [vmem:[#allocation44_spill] sm:$0xff] }
 0x223   : > { %v1169_v27 = vadd.f32 %v1161_v39, %v1139_v40  ;;  %v1365_v57 = vadd.f32 %v1357_v3, %v1336_v16  ;;  %v2546_v49 = vmul.f32 %v6709_v30, %v6943_v52  ;;  %v2409_v5 = vadd.f32 %v2401_v17, %v2380_v1  ;;  %v9483_v3 = vld [vmem:[#allocation61_spill] sm:$0xff]  ;;  %v9484_v16 = vld [vmem:[#allocation54_spill] sm:$0xff] }
 0x224   : > { %v3122_v7 = vmax.f32 %v3114_v14, 0.0  ;;  %v2575_v53 = vmul.f32 %v6717_v20, %v6949_v33  ;;  %v2604_v45 = vmul.f32 %v6723_v0, %v9481_v36  ;;  %v2625_v39 = vmul.f32 %v6727_v23, %v9482_v59  ;;  %v9485_v17 = vld [vmem:[#allocation42_spill] sm:$0xff]  ;;  %v9486_v33 = vld [vmem:[#allocation55_spill] sm:$0xff] }
 0x225   : > { %v1198_v56 = vadd.f32 %v1190_v26, %v1169_v27  ;;  %v1394_v43 = vadd.f32 %v1386_v2, %v1365_v57  ;;  %v2654_v50 = vmul.f32 %v6731_v38, %v9483_v3  ;;  %v2438_v40 = vadd.f32 %v2430_v46, %v2409_v5  ;;  %v6989_v36 = vld [vmem:[#allocation2 + $0x250] sm:$0xff] }
 0x226   : > { %4750 = vmatprep.mubr.f32.mxu1 %v3122_v7  ;;  %v2683_v14 = vmul.f32 %v6735_v13, %v9484_v16  ;;  %v2712_v1 = vmul.f32 %v6739_v4, %v9485_v17  ;;  %v2741_v52 = vmul.f32 %v6743_v12, %v9486_v33  ;;  %9487 = vst [vmem:[#allocation69_spill] sm:$0xff] %v6989_v36  ;;  %v6993_v59 = vld [vmem:[#allocation2 + $0x251] sm:$0xff] }
 0x227   : > { %v1227_v26 = vadd.f32 %v1219_v63, %v1198_v56  ;;  %v1424_v2 = vadd.f32 %v1416_v62, %v1394_v43  ;;  %v2633_v27 = vadd.f32 %v2625_v39, %v2604_v45  ;;  %v2770_v57 = vmul.f32 %v6752_v24, %v6989_v36  ;;  %9488 = vst [vmem:[#allocation70_spill] sm:$0xff] %v6993_v59  ;;  %v6995_v46 = vld [vmem:[#allocation2 + $0x252] sm:$0xff] }
 0x228   : > { %9489 = vst [vmem:[#allocation71_spill] sm:$0xff] %v6995_v46  ;;  %v2467_v7 = vadd.f32 %v2459_v28, %v2438_v40  ;;  %v2799_v5 = vmul.f32 %v6756_v47, %v6993_v59  ;;  %v2828_v3 = vmul.f32 %v6762_v34, %v6995_v46  ;;  %v9490_v33 = vld [vmem:[#allocation62_spill] sm:$0xff]  ;;  %v9491_v56 = vld [vmem:[#allocation47_spill] sm:$0xff]  ;;  %v9493_v28 = vld [vmem:[#allocation56_spill] sm:$0xff] }
 0x229   : > { %v2858_v17 = vmul.f32 %v9440_v9, %v9490_v33  ;;  %v1453_v63 = vadd.f32 %v1445_v41, %v1424_v2  ;;  %v1490_v62 = vadd.f32 %v1227_v26, %v972_v10  ;;  %v2662_v45 = vadd.f32 %v2654_v50, %v2633_v27  ;;  %v9492_v36 = vld [vmem:[#allocation51_spill] sm:$0xff]  ;;  %v9494_v59 = vld [vmem:[#allocation57_spill] sm:$0xff]  ;;  %v9495_v33 = vld [vmem:[#allocation58_spill] sm:$0xff] }
 0x22a   : > { %v2879_v43 = vmul.f32 %v9442_v35, %v9491_v56  ;;  %v2496_v39 = vadd.f32 %v2488_v15, %v2467_v7  ;;  %v2908_v16 = vmul.f32 %v9444_v29, %v9492_v36  ;;  %v2937_v40 = vmul.f32 %v9446_v48, %v9493_v28  ;;  %v7013_v10 = vld [vmem:[#allocation2 + $0x2f0] sm:$0xff]  ;;  %v9499_v7 = vld [vmem:[#allocation39_spill] sm:$0xff] }
 0x22b   : > { %v2966_v22 = vmul.f32 %v9448_v51, %v9494_v59  ;;  %v1482_v46 = vadd.f32 %v1474_v37, %v1453_v63  ;;  %v2691_v25 = vadd.f32 %v2683_v14, %v2662_v45  ;;  %v2995_v41 = vmul.f32 %v9474_v32, %v9495_v33  ;;  %9496 = vst [vmem:[#allocation32_spill] sm:$0xff] %v7013_v10  ;;  %v7015_v50 = vld [vmem:[#allocation2 + $0x2f1] sm:$0xff] }
 0x22c   : > { %v2887_v54 = vadd.f32 %v2879_v43, %v2858_v17  ;;  %9497 = vst [vmem:[#allocation60_spill] sm:$0xff] %v7015_v50  ;;  %v7017_v15 = vld [vmem:[#allocation2 + $0x2f2] sm:$0xff]  ;;  %v2525_v26 = vadd.f32 %v2517_v11, %v2496_v39  ;;  %v3025_v36 = vmul.f32 %v9477_v18, %v7013_v10  ;;  %v3054_v2 = vmul.f32 %v9478_v60, %v7015_v50 }
 0x22d   : > { %9498 = vst [vmem:[#allocation44_spill] sm:$0xff] %v7017_v15  ;;  %v3083_v37 = vmul.f32 %v9480_v21, %v7017_v15  ;;  %v1498_v14 = vadd.f32 %v1490_v62, %v1482_v46  ;;  %v2720_v17 = vadd.f32 %v2712_v1, %v2691_v25  ;;  %v739_v63 = vmul.f32 %v6601_v19, %v9499_v7  ;;  %v9500_v56 = vld [vmem:[#allocation66_spill] sm:$0xff]  ;;  %v9501_v11 = vld [vmem:[#allocation67_spill] sm:$0xff]  ;;  %v9505_v1 = vld [vmem:[#allocation49_spill] sm:$0xff] }
 0x22e   : > { %v2916_v27 = vadd.f32 %v2908_v16, %v2887_v54  ;;  %v2554_v45 = vadd.f32 %v2546_v49, %v2525_v26  ;;  %v760_v43 = vmul.f32 %v6605_v8, %v9500_v56  ;;  %v789_v39 = vmul.f32 %v6682_v31, %v9501_v11  ;;  %v9502_v10 = vld [vmem:[#allocation46_spill] sm:$0xff]  ;;  %v9503_v46 = vld [vmem:[#allocation43_spill] sm:$0xff]  ;;  %v7036_v54 = vld [vmem:[#allocation2 + $0x80] sm:$0xff] }
 0x22f   : > { %v819_v33 = vmul.f32 %v6686_v55, %v9502_v10  ;;  %v1512_v50 = vadd.f32 %v6966_v58, %v1498_v14  ;;  %v2749_v59 = vadd.f32 %v2741_v52, %v2720_v17  ;;  %v848_v25 = vmul.f32 %v6691_v6, %v9503_v46  ;;  %9504 = vst [vmem:[#allocation61_spill] sm:$0xff] %v7036_v54  ;;  %v7042_v7 = vld [vmem:[#allocation2 + $0x81] sm:$0xff] }
 0x230   : > { %v2945_v15 = vadd.f32 %v2937_v40, %v2916_v27  ;;  %v2583_v16 = vadd.f32 %v2575_v53, %v2554_v45  ;;  %v768_v49 = vadd.f32 %v760_v43, %v739_v63  ;;  %v877_v62 = vmul.f32 %v6697_v61, %v9505_v1  ;;  %9506 = vst [vmem:[#allocation62_spill] sm:$0xff] %v7042_v7  ;;  %v7046_v40 = vld [vmem:[#allocation2 + $0x82] sm:$0xff]  ;;  %v9513_v1 = vld [vmem:[#allocation34_spill] sm:$0xff] }
 0x231   : > { %v907_v26 = vmul.f32 %v6701_v42, %v7036_v54  ;;  %v1520_v56 = vmax.f32 %v1512_v50, 0.0  ;;  %v2778_v11 = vadd.f32 %v2770_v57, %v2749_v59  ;;  %v936_v52 = vmul.f32 %v6709_v30, %v7042_v7  ;;  %9507 = vst [vmem:[#allocation47_spill] sm:$0xff] %v7046_v40  ;;  %v9508_v27 = vld [vmem:[#allocation68_spill] sm:$0xff]  ;;  %v9509_v45 = vld [vmem:[#allocation45_spill] sm:$0xff] }
 0x232   : > { %v2974_v14 = vadd.f32 %v2966_v22, %v2945_v15  ;;  %v797_v17 = vadd.f32 %v789_v39, %v768_v49  ;;  %v965_v53 = vmul.f32 %v6717_v20, %v7046_v40  ;;  %v995_v63 = vmul.f32 %v6723_v0, %v9508_v27  ;;  %v9510_v57 = vld [vmem:[#allocation36_spill] sm:$0xff]  ;;  %v9512_v49 = vld [vmem:[#allocation33_spill] sm:$0xff] }
 0x233   : > { %v1016_v43 = vmul.f32 %v6727_v23, %v9509_v45  ;;  %4727 = vmatmul.mubr.f32.gmra.mrb[4].mxu0 %v1520_v56  ;;  %v2807_v54 = vadd.f32 %v2799_v5, %v2778_v11  ;;  %v1045_v22 = vmul.f32 %v6731_v38, %v9510_v57  ;;  %v9511_v59 = vld [vmem:[#allocation48_spill] sm:$0xff]  ;;  %v1103_v40 = vmul.f32 %v6739_v4, %v9512_v49  ;;  %v9519_v49 = vld [vmem:[#allocation35_spill] sm:$0xff] }
 0x234   : > { %v3003_v50 = vadd.f32 %v2995_v41, %v2974_v14  ;;  %v1074_v15 = vmul.f32 %v6735_v13, %v9511_v59  ;;  %v827_v7 = vadd.f32 %v819_v33, %v797_v17  ;;  %v1132_v27 = vmul.f32 %v6743_v12, %v9513_v1  ;;  %v7062_v46 = vld [vmem:[#allocation2 + $0x120] sm:$0xff] }
 0x235   : > { %v1024_v39 = vadd.f32 %v1016_v43, %v995_v63  ;;  %9514 = vst [vmem:[#allocation51_spill] sm:$0xff] %v7062_v46  ;;  %v7064_v45 = vld [vmem:[#allocation2 + $0x121] sm:$0xff]  ;;  %v2836_v5 = vadd.f32 %v2828_v3, %v2807_v54  ;;  %v1162_v56 = vmul.f32 %v6752_v24, %v7062_v46  ;;  %v1250_v43 = vmul.f32 %v9440_v9, %v6787_v44 }
 0x236   : > { %9515 = vst [vmem:[#allocation56_spill] sm:$0xff] %v7064_v45  ;;  %v3033_v41 = vadd.f32 %v3025_v36, %v3003_v50  ;;  %v1191_v11 = vmul.f32 %v6756_v47, %v7064_v45  ;;  %v7070_v33 = vld [vmem:[#allocation2 + $0x122] sm:$0xff]  ;;  %v856_v14 = vadd.f32 %v848_v25, %v827_v7  ;;  %v1329_v25 = vmul.f32 %v9446_v48, %v9519_v49  ;;  %v9520_v7 = vld [vmem:[#allocation50_spill] sm:$0xff] }
 0x237   : > { %9516 = vst [vmem:[#allocation39_spill] sm:$0xff] %v7070_v33  ;;  %v1053_v17 = vadd.f32 %v1045_v22, %v1024_v39  ;;  %v1220_v63 = vmul.f32 %v6762_v34, %v7070_v33  ;;  %v3099_v1 = vadd.f32 %v2836_v5, %v2583_v16  ;;  %v9517_v3 = vld [vmem:[#allocation41_spill] sm:$0xff]  ;;  %v1358_v22 = vmul.f32 %v9448_v51, %v9520_v7  ;;  %v7084_v39 = vld [vmem:[#allocation2 + $0x1c0] sm:$0xff] }
 0x238   : > { %v3062_v57 = vadd.f32 %v3054_v2, %v3033_v41  ;;  %v1271_v36 = vmul.f32 %v9442_v35, %v9517_v3  ;;  %v9518_v54 = vld [vmem:[#allocation53_spill] sm:$0xff]  ;;  %v885_v46 = vadd.f32 %v877_v62, %v856_v14  ;;  %v9521_v2 = vld [vmem:[#allocation52_spill] sm:$0xff]  ;;  %v1417_v5 = vmul.f32 %v9477_v18, %v7084_v39 }
 0x239   : > { %v1300_v50 = vmul.f32 %v9444_v29, %v9518_v54  ;;  %v1082_v45 = vadd.f32 %v1074_v15, %v1053_v17  ;;  %v1387_v16 = vmul.f32 %v9474_v32, %v9521_v2  ;;  %v7090_v41 = vld [vmem:[#allocation2 + $0x1c1] sm:$0xff] }
 0x23a   : > { %v3091_v33 = vadd.f32 %v3083_v37, %v3062_v57  ;;  %v1279_v59 = vadd.f32 %v1271_v36, %v1250_v43  ;;  %v7092_v62 = vld [vmem:[#allocation2 + $0x1c2] sm:$0xff]  ;;  %v915_v15 = vadd.f32 %v907_v26, %v885_v46  ;;  %v1446_v17 = vmul.f32 %v9478_v60, %v7090_v41 }
 0x23b   : > { %9522 = vst [vmem:[#allocation66_spill] sm:$0xff] %v7092_v62  ;;  %v1111_v14 = vadd.f32 %v1103_v40, %v1082_v45  ;;  %v1475_v10 = vmul.f32 %v9480_v21, %v7092_v62  ;;  %v2352_v57 = vmul.f32 %v6601_v19, %v6787_v44  ;;  %v2373_v36 = vmul.f32 %v6605_v8, %v9517_v3 }
 0x23c   : > { %v3107_v37 = vadd.f32 %v3099_v1, %v3091_v33  ;;  %v1308_v43 = vadd.f32 %v1300_v50, %v1279_v59  ;;  %v944_v18 = vadd.f32 %v936_v52, %v915_v15  ;;  %v2402_v46 = vmul.f32 %v6682_v31, %v9518_v54 }
 0x23d   : > { %v1140_v32 = vadd.f32 %v1132_v27, %v1111_v14  ;;  %v2431_v26 = vmul.f32 %v6686_v55, %v9519_v49  ;;  %v2381_v21 = vadd.f32 %v2373_v36, %v2352_v57  ;;  %v2460_v1 = vmul.f32 %v6691_v6, %v9520_v7  ;;  %v9523_v14 = vld [vmem:[#allocation54_spill] sm:$0xff] }
 0x23e   : > { %v3115_v40 = vadd.f32 %v6966_v58, %v3107_v37  ;;  %v1337_v45 = vadd.f32 %v1329_v25, %v1308_v43  ;;  %v973_v59 = vadd.f32 %v965_v53, %v944_v18  ;;  %v2489_v33 = vmul.f32 %v6697_v61, %v9521_v2  ;;  %v9525_v43 = vld [vmem:[#allocation55_spill] sm:$0xff] }
 0x23f   : > { %v1170_v44 = vadd.f32 %v1162_v56, %v1140_v32  ;;  %v2518_v52 = vmul.f32 %v6701_v42, %v7084_v39  ;;  %v2410_v54 = vadd.f32 %v2402_v46, %v2381_v21  ;;  %v2547_v50 = vmul.f32 %v6709_v30, %v7090_v41  ;;  %v9524_v32 = vld [vmem:[#allocation42_spill] sm:$0xff]  ;;  %v9526_v21 = vld [vmem:[#allocation69_spill] sm:$0xff] }
 0x240   : > { %v3123_v27 = vmax.f32 %v3115_v40, 0.0  ;;  %v1366_v3 = vadd.f32 %v1358_v22, %v1337_v45  ;;  %v2576_v25 = vmul.f32 %v6717_v20, %v7092_v62  ;;  %v2605_v18 = vmul.f32 %v6723_v0, %v9523_v14  ;;  %v9527_v46 = vld [vmem:[#allocation70_spill] sm:$0xff]  ;;  %v9528_v45 = vld [vmem:[#allocation71_spill] sm:$0xff]  ;;  %v7129_v14 = vld [vmem:[#allocation2 + $0x260] sm:$0xff] }
 0x241   : > { %v1199_v15 = vadd.f32 %v1191_v11, %v1170_v44  ;;  %v2626_v53 = vmul.f32 %v6727_v23, %v9524_v32  ;;  %v2439_v37 = vadd.f32 %v2431_v26, %v2410_v54  ;;  %v2655_v22 = vmul.f32 %v6731_v38, %v9525_v43  ;;  %9529 = vst [vmem:[#allocation67_spill] sm:$0xff] %v7129_v14  ;;  %v7131_v32 = vld [vmem:[#allocation2 + $0x261] sm:$0xff] }
 0x242   : > { %4751 = vmatmul.mubr.f32.gmra.mrb[4].mxu1 %v3123_v27  ;;  %v1395_v56 = vadd.f32 %v1387_v16, %v1366_v3  ;;  %v2684_v57 = vmul.f32 %v6735_v13, %v9526_v21  ;;  %v2713_v40 = vmul.f32 %v6739_v4, %v9527_v46  ;;  %v2742_v44 = vmul.f32 %v6743_v12, %v9528_v45  ;;  %v7153_v21 = vld [vmem:[#allocation2 + $0x300] sm:$0xff]  ;;  %v9545_v62 = vld [vmem:[#allocation49_spill] sm:$0xff] }
 0x243   : > { %v1228_v36 = vadd.f32 %v1220_v63, %v1199_v15  ;;  %v2634_v11 = vadd.f32 %v2626_v53, %v2605_v18  ;;  %9530 = vst [vmem:[#allocation68_spill] sm:$0xff] %v7131_v32  ;;  %v2468_v26 = vadd.f32 %v2460_v1, %v2439_v37  ;;  %v2771_v27 = vmul.f32 %v6752_v24, %v7129_v14  ;;  %v7137_v63 = vld [vmem:[#allocation2 + $0x262] sm:$0xff] }
 0x244   : > { %v1425_v16 = vadd.f32 %v1417_v5, %v1395_v56  ;;  %v2800_v3 = vmul.f32 %v6756_v47, %v7131_v32  ;;  %9531 = vst [vmem:[#allocation45_spill] sm:$0xff] %v7137_v63  ;;  %v2829_v18 = vmul.f32 %v6762_v34, %v7137_v63  ;;  %v2859_v53 = vmul.f32 %v9440_v9, %v9493_v28  ;;  %v9532_v5 = vld [vmem:[#allocation57_spill] sm:$0xff]  ;;  %v9533_v56 = vld [vmem:[#allocation58_spill] sm:$0xff]  ;;  %v9534_v32 = vld [vmem:[#allocation32_spill] sm:$0xff] }
 0x245   : > { %v1491_v54 = vadd.f32 %v1228_v36, %v973_v59  ;;  %v2663_v15 = vadd.f32 %v2655_v22, %v2634_v11  ;;  %v2497_v45 = vadd.f32 %v2489_v33, %v2468_v26  ;;  %v2880_v1 = vmul.f32 %v9442_v35, %v9532_v5  ;;  %v9535_v59 = vld [vmem:[#allocation60_spill] sm:$0xff]  ;;  %v9537_v11 = vld [vmem:[#allocation37_spill] sm:$0xff]  ;;  %9538 = vst [vmem:[#allocation36_spill] sm:$0xff] %v7153_v21 }
 0x246   : > { %v1454_v43 = vadd.f32 %v1446_v17, %v1425_v16  ;;  %v2909_v37 = vmul.f32 %v9444_v29, %v9533_v56  ;;  %v2938_v46 = vmul.f32 %v9446_v48, %v9534_v32  ;;  %v2967_v22 = vmul.f32 %v9448_v51, %v9535_v59  ;;  %v9536_v36 = vld [vmem:[#allocation44_spill] sm:$0xff]  ;;  %v9542_v59 = vld [vmem:[#allocation59_spill] sm:$0xff] }
 0x247   : > { %v2692_v14 = vadd.f32 %v2684_v57, %v2663_v15  ;;  %v2996_v63 = vmul.f32 %v9537_v11, %v9536_v36  ;;  %v2526_v17 = vadd.f32 %v2518_v52, %v2497_v45  ;;  %v2888_v33 = vadd.f32 %v2880_v1, %v2859_v53  ;;  %v9539_v16 = vld [vmem:[#allocation40_spill] sm:$0xff]  ;;  %v9543_v36 = vld [vmem:[#allocation46_spill] sm:$0xff]  ;;  %v9544_v53 = vld [vmem:[#allocation43_spill] sm:$0xff] }
 0x248   : > { %v1483_v28 = vadd.f32 %v1475_v10, %v1454_v43  ;;  %v3026_v26 = vmul.f32 %v9539_v16, %v7153_v21  ;;  %v7157_v5 = vld [vmem:[#allocation2 + $0x301] sm:$0xff]  ;;  %v740_v11 = vmul.f32 %v6601_v19, %v9543_v36  ;;  %v761_v43 = vmul.f32 %v6605_v8, %v9544_v53  ;;  %v896_v1 = vld [vmem:[#allocation2 + $0x90] sm:$0xff] }
 0x249   : > { %9540 = vst [vmem:[#allocation41_spill] sm:$0xff] %v7157_v5  ;;  %v7159_v57 = vld [vmem:[#allocation2 + $0x302] sm:$0xff]  ;;  %v2721_v15 = vadd.f32 %v2713_v40, %v2692_v14  ;;  %v3055_v56 = vmul.f32 %v9478_v60, %v7157_v5  ;;  %v2555_v52 = vadd.f32 %v2547_v50, %v2526_v17  ;;  %v2917_v45 = vadd.f32 %v2909_v37, %v2888_v33  ;;  %v925_v21 = vld [vmem:[#allocation2 + $0x91] sm:$0xff] }
 0x24a   : > { %9541 = vst [vmem:[#allocation53_spill] sm:$0xff] %v7159_v57  ;;  %v3084_v32 = vmul.f32 %v9542_v59, %v7159_v57  ;;  %v1499_v10 = vadd.f32 %v1491_v54, %v1483_v28  ;;  %v790_v40 = vmul.f32 %v6682_v31, %v9545_v62  ;;  %v9546_v14 = vld [vmem:[#allocation61_spill] sm:$0xff]  ;;  %v9547_v60 = vld [vmem:[#allocation62_spill] sm:$0xff]  ;;  %v769_v36 = vadd.f32 %v761_v43, %v740_v11  ;;  %v9548_v17 = vld [vmem:[#allocation47_spill] sm:$0xff] }
 0x24b   : > { %v2750_v16 = vadd.f32 %v2742_v44, %v2721_v15  ;;  %v820_v5 = vmul.f32 %v6686_v55, %v9546_v14  ;;  %v849_v57 = vmul.f32 %v6691_v6, %v9547_v60  ;;  %v954_v59 = vld [vmem:[#allocation2 + $0x92] sm:$0xff]  ;;  %v2584_v50 = vadd.f32 %v2576_v25, %v2555_v52  ;;  %v9549_v31 = vld [vmem:[#allocation48_spill] sm:$0xff] }
 0x24c   : > { %v1513_v54 = vadd.f32 %v6966_v58, %v1499_v10  ;;  %v2946_v37 = vadd.f32 %v2938_v46, %v2917_v45  ;;  %v878_v33 = vmul.f32 %v6697_v61, %v9548_v17  ;;  %v908_v44 = vmul.f32 %v6701_v42, %v896_v1  ;;  %v1151_v60 = vld [vmem:[#allocation2 + $0x130] sm:$0xff]  ;;  %v9550_v46 = vld [vmem:[#allocation33_spill] sm:$0xff] }
 0x24d   : > { %v2779_v28 = vadd.f32 %v2771_v27, %v2750_v16  ;;  %v937_v62 = vmul.f32 %v6709_v30, %v925_v21  ;;  %v798_v14 = vadd.f32 %v790_v40, %v769_v36  ;;  %v966_v55 = vmul.f32 %v6717_v20, %v954_v59  ;;  %v9551_v11 = vld [vmem:[#allocation34_spill] sm:$0xff]  ;;  %v9553_v59 = vld [vmem:[#allocation56_spill] sm:$0xff] }
 0x24e   : > { %v1521_v15 = vmax.f32 %v1513_v54, 0.0  ;;  %v2975_v53 = vadd.f32 %v2967_v22, %v2946_v37  ;;  %v996_v25 = vmul.f32 %v6723_v0, %v9549_v31  ;;  %v1017_v27 = vmul.f32 %v6727_v23, %v9550_v46  ;;  %v1180_v10 = vld [vmem:[#allocation2 + $0x131] sm:$0xff] }
 0x24f   : > { %v2808_v6 = vadd.f32 %v2800_v3, %v2779_v28  ;;  %v1046_v16 = vmul.f32 %v6731_v38, %v9551_v11  ;;  %v1209_v52 = vld [vmem:[#allocation2 + $0x132] sm:$0xff]  ;;  %v828_v45 = vadd.f32 %v820_v5, %v798_v14  ;;  %v1104_v3 = vmul.f32 %v6739_v4, %v9553_v59 }
 0x250   : > { %4729 = vmatprep.mubr.f32.mxu0 %v1521_v15  ;;  %v3004_v21 = vadd.f32 %v2996_v63, %v2975_v53  ;;  %v9552_v22 = vld [vmem:[#allocation51_spill] sm:$0xff]  ;;  %v1025_v40 = vadd.f32 %v1017_v27, %v996_v25  ;;  %v1163_v37 = vmul.f32 %v6752_v24, %v1151_v60  ;;  %v1192_v17 = vmul.f32 %v6756_v47, %v1180_v10  ;;  %v9555_v46 = vld [vmem:[#allocation66_spill] sm:$0xff]  ;;  %v9556_v27 = vld [vmem:[#allocation37_spill] sm:$0xff] }
 0x251   : > { %v1075_v43 = vmul.f32 %v6735_v13, %v9552_v22  ;;  %v2837_v1 = vadd.f32 %v2829_v18, %v2808_v6  ;;  %v9554_v31 = vld [vmem:[#allocation39_spill] sm:$0xff]  ;;  %v857_v28 = vadd.f32 %v849_v57, %v828_v45  ;;  %v1221_v63 = vmul.f32 %v6762_v34, %v1209_v52  ;;  %v9558_v45 = vld [vmem:[#allocation38_spill] sm:$0xff] }
 0x252   : > { %v1133_v54 = vmul.f32 %v6743_v12, %v9554_v31  ;;  %v3034_v36 = vadd.f32 %v3026_v26, %v3004_v21  ;;  %v1054_v15 = vadd.f32 %v1046_v16, %v1025_v40  ;;  %v1251_v53 = vmul.f32 %v9440_v9, %v9519_v49  ;;  %v1406_v16 = vld [vmem:[#allocation2 + $0x1d0] sm:$0xff]  ;;  %v9559_v31 = vld [vmem:[#allocation59_spill] sm:$0xff] }
 0x253   : > { %v3100_v5 = vadd.f32 %v2837_v1, %v2584_v50  ;;  %v1272_v6 = vmul.f32 %v9442_v35, %v9520_v7  ;;  %v886_v14 = vadd.f32 %v878_v33, %v857_v28  ;;  %v1301_v25 = vmul.f32 %v9444_v29, %v9521_v2  ;;  %v1435_v10 = vld [vmem:[#allocation2 + $0x1d1] sm:$0xff] }
 0x254   : > { %v3063_v18 = vadd.f32 %v3055_v56, %v3034_v36  ;;  %v1330_v26 = vmul.f32 %v9446_v48, %v7084_v39  ;;  %v1083_v57 = vadd.f32 %v1075_v43, %v1054_v15  ;;  %v1359_v50 = vmul.f32 %v9448_v51, %v7090_v41  ;;  %v9557_v56 = vld [vmem:[#allocation40_spill] sm:$0xff]  ;;  %v1464_v59 = vld [vmem:[#allocation2 + $0x1d2] sm:$0xff] }
 0x255   : > { %v1280_v60 = vadd.f32 %v1272_v6, %v1251_v53  ;;  %v1388_v11 = vmul.f32 %v9556_v27, %v9555_v46  ;;  %v916_v21 = vadd.f32 %v908_v44, %v886_v14  ;;  %v1418_v33 = vmul.f32 %v9557_v56, %v1406_v16  ;;  %v9561_v14 = vld [vmem:[#allocation64_spill] sm:$0xff] }
 0x256   : > { %v3092_v52 = vadd.f32 %v3084_v32, %v3063_v18  ;;  %v1447_v22 = vmul.f32 %v9558_v45, %v1435_v10  ;;  %v1112_v1 = vadd.f32 %v1104_v3, %v1083_v57  ;;  %v1476_v43 = vmul.f32 %v9559_v31, %v1464_v59  ;;  %v9560_v32 = vld [vmem:[#allocation63_spill] sm:$0xff]  ;;  %v9562_v3 = vld [vmem:[#allocation65_spill] sm:$0xff] }
 0x257   : > { %v1309_v40 = vadd.f32 %v1301_v25, %v1280_v60  ;;  %v2353_v36 = vmul.f32 %v6601_v19, %v9519_v49  ;;  %v945_v15 = vadd.f32 %v937_v62, %v916_v21  ;;  %v2374_v53 = vmul.f32 %v6605_v8, %v9520_v7 }
 0x258   : > { %v3108_v28 = vadd.f32 %v3100_v5, %v3092_v52  ;;  %v2403_v44 = vmul.f32 %v9560_v32, %v9521_v2  ;;  %v1141_v6 = vadd.f32 %v1133_v54, %v1112_v1  ;;  %v2432_v45 = vmul.f32 %v9561_v14, %v7084_v39  ;;  %v9564_v1 = vld [vmem:[#allocation70_spill] sm:$0xff] }
 0x259   : > { %v1338_v18 = vadd.f32 %v1330_v26, %v1309_v40  ;;  %v2461_v25 = vmul.f32 %v9562_v3, %v7090_v41  ;;  %v974_v60 = vadd.f32 %v966_v55, %v945_v15  ;;  %v2382_v19 = vadd.f32 %v2374_v53, %v2353_v36  ;;  %v9563_v41 = vld [vmem:[#allocation69_spill] sm:$0xff]  ;;  %v2760_v55 = vld [vmem:[#allocation2 + $0x270] sm:$0xff] }
 0x25a   : > { %v3116_v57 = vadd.f32 %v6966_v58, %v3108_v28  ;;  %v2490_v49 = vmul.f32 %v6697_v61, %v9555_v46  ;;  %v1171_v62 = vadd.f32 %v1163_v37, %v1141_v6  ;;  %v2519_v7 = vmul.f32 %v6701_v42, %v1406_v16  ;;  %v9565_v37 = vld [vmem:[#allocation71_spill] sm:$0xff] }
 0x25b   : > { %v1367_v8 = vadd.f32 %v1359_v50, %v1338_v18  ;;  %v7226_v2 = vmul.f32 %v6709_v30, %v1435_v10  ;;  %v2411_v5 = vadd.f32 %v2403_v44, %v2382_v19  ;;  %v7229_v39 = vmul.f32 %v6717_v20, %v1464_v59  ;;  %v2789_v50 = vld [vmem:[#allocation2 + $0x271] sm:$0xff]  ;;  %v9567_v10 = vld [vmem:[#allocation68_spill] sm:$0xff] }
 0x25c   : > { %v3124_v54 = vmax.f32 %v3116_v57, 0.0  ;;  %v2606_v26 = vmul.f32 %v6723_v0, %v9563_v41  ;;  %v1200_v52 = vadd.f32 %v1192_v17, %v1171_v62  ;;  %v2627_v61 = vmul.f32 %v6727_v23, %v9564_v1  ;;  %v2818_v30 = vld [vmem:[#allocation2 + $0x272] sm:$0xff]  ;;  %v9568_v0 = vld [vmem:[#allocation45_spill] sm:$0xff]  ;;  %v1532_v57 = vld [vmem:[#allocation2 + $0xa0] sm:$0xff] }
 0x25d   : > { %v1396_v21 = vadd.f32 %v1388_v11, %v1367_v8  ;;  %v2656_v42 = vmul.f32 %v6731_v38, %v9565_v37  ;;  %v2440_v46 = vadd.f32 %v2432_v45, %v2411_v5  ;;  %v9566_v16 = vld [vmem:[#allocation67_spill] sm:$0xff]  ;;  %v2714_v59 = vmul.f32 %v6739_v4, %v9567_v10  ;;  %v7254_v4 = vld [vmem:[#allocation10] ss:$0 sm:$0xff]  ;;  %v9574_v8 = vld [vmem:[#allocation53_spill] sm:$0xff] }
 0x25e   : > { %4753 = vmatprep.mubr.f32.mxu1 %v3124_v54  ;;  %v2685_v20 = vmul.f32 %v6735_v13, %v9566_v16  ;;  %v2743_v17 = vmul.f32 %v6743_v12, %v9568_v0  ;;  %v1229_v11 = vadd.f32 %v1221_v63, %v1200_v52  ;;  %v2635_v36 = vadd.f32 %v2627_v61, %v2606_v26  ;;  %v9569_v13 = vld [vmem:[#allocation32_spill] sm:$0xff]  ;;  %v3044_v44 = vld [vmem:[#allocation2 + $0x311] sm:$0xff] }
 0x25f   : > { %v1426_v40 = vadd.f32 %v1418_v33, %v1396_v21  ;;  %v7244_v23 = vmul.f32 %v6752_v24, %v2760_v55  ;;  %v2469_v38 = vadd.f32 %v2461_v25, %v2440_v46  ;;  %v7247_v28 = vmul.f32 %v6756_v47, %v2789_v50  ;;  %v9570_v33 = vld [vmem:[#allocation60_spill] sm:$0xff]  ;;  %v3015_v24 = vld [vmem:[#allocation2 + $0x310] sm:$0xff]  ;;  %v9573_v25 = vld [vmem:[#allocation41_spill] sm:$0xff] }
 0x260   : > { %v7250_v45 = vmul.f32 %v6762_v34, %v2818_v30  ;;  %v2860_v15 = vmul.f32 %v9440_v9, %v9569_v13  ;;  %v1492_v12 = vadd.f32 %v1229_v11, %v974_v60  ;;  %v2664_v63 = vadd.f32 %v2656_v42, %v2635_v36  ;;  %v3073_v6 = vld [vmem:[#allocation2 + $0x312] sm:$0xff]  ;;  %v9571_v47 = vld [vmem:[#allocation44_spill] sm:$0xff]  ;;  %v7307_v11 = vld [vmem:[#allocation10 + $0xa] ss:$0 sm:$0xff] }
 0x261   : > { %v1455_v53 = vadd.f32 %v1447_v22, %v1426_v40  ;;  %v2881_v32 = vmul.f32 %v9442_v35, %v9570_v33  ;;  %v2498_v18 = vadd.f32 %v2490_v49, %v2469_v38  ;;  %v2910_v14 = vmul.f32 %v9444_v29, %v9571_v47  ;;  %v9572_v34 = vld [vmem:[#allocation36_spill] sm:$0xff]  ;;  %v7312_v13 = vld [vmem:[#allocation10 + $0x8] ss:$0 sm:$0xff] }
 0x262   : > { %v2939_v3 = vmul.f32 %v9446_v48, %v9572_v34  ;;  %v2968_v9 = vmul.f32 %v9448_v51, %v9573_v25  ;;  %v7264_v22 = vld [vmem:[#allocation10 + $0x1] ss:$0 sm:$0xff]  ;;  %v2693_v62 = vadd.f32 %v2685_v20, %v2664_v63  ;;  %v2997_v54 = vmul.f32 %v9556_v27, %v9574_v8  ;;  %v7268_v49 = vld [vmem:[#allocation10 + $0x2] ss:$0 sm:$0xff]  ;;  %v7270_v29 = vld [vmem:[#allocation10 + $0x3] ss:$0 sm:$0xff] }
 0x263   : > { %v1553_v60 = vld [vmem:[#allocation2 + $0xa1] sm:$0xff]  ;;  %v1484_v19 = vadd.f32 %v1476_v43, %v1455_v53  ;;  %v2889_v35 = vadd.f32 %v2881_v32, %v2860_v15  ;;  %v2527_v41 = vadd.f32 %v2519_v7, %v2498_v18  ;;  %v7273_v48 = vmul.f32 %v9557_v56, %v3015_v24  ;;  %v9575_v51 = vld [vmem:[#allocation38_spill] sm:$0xff]  ;;  %v7334_v34 = vld [vmem:[#allocation10 + $0xd] ss:$0 sm:$0xff] }
 0x264   : > { %v1582_v5 = vld [vmem:[#allocation2 + $0xa2] sm:$0xff]  ;;  %v7276_v26 = vmul.f32 %v9575_v51, %v3044_v44  ;;  %v7279_v55 = vmul.f32 %v9559_v31, %v3073_v6  ;;  %v7281_v43 = vld [vmem:[#allocation2 + $0xb0] sm:$0xff]  ;;  %v2722_v1 = vadd.f32 %v2714_v59, %v2693_v62  ;;  %v1544_v7 = vmul.f32 %v7254_v4, %v1532_v57  ;;  %v7325_v44 = vld [vmem:[#allocation10 + $0xc] ss:$0 sm:$0xff] }
 0x265   : > { %9576 = vst [vmem:[#allocation35_spill] sm:$0xff] %v7281_v43  ;;  %v7283_v52 = vld [vmem:[#allocation10 + $0x4] ss:$0 sm:$0xff]  ;;  %v7285_v27 = vld [vmem:[#allocation2 + $0xb1] sm:$0xff]  ;;  %v1500_v21 = vadd.f32 %v1492_v12, %v1484_v19  ;;  %v2918_v61 = vadd.f32 %v2910_v14, %v2889_v35  ;;  %v7288_v37 = vld [vmem:[#allocation10 + $0x5] ss:$0 sm:$0xff]  ;;  %v2556_v46 = vadd.f32 %v7226_v2, %v2527_v41  ;;  %v1565_v16 = vmul.f32 %v7264_v22, %v1553_v60 }
 0x266   : > { %9577 = vst [vmem:[#allocation50_spill] sm:$0xff] %v7285_v27  ;;  %v7290_v56 = vld [vmem:[#allocation2 + $0xb2] sm:$0xff]  ;;  %v7292_v42 = vld [vmem:[#allocation10 + $0x6] ss:$0 sm:$0xff]  ;;  %v7296_v31 = vld [vmem:[#allocation10 + $0x9] ss:$0 sm:$0xff]  ;;  %v1594_v20 = vmul.f32 %v7268_v49, %v1582_v5  ;;  %v1623_v10 = vmul.f32 %v7270_v29, %v7281_v43  ;;  %v2751_v36 = vadd.f32 %v2743_v17, %v2722_v1  ;;  %v1652_v2 = vmul.f32 %v7283_v52, %v7285_v27 }
 0x267   : > { %9578 = vst [vmem:[#allocation52_spill] sm:$0xff] %v7290_v56  ;;  %v7294_v50 = vld [vmem:[#allocation2 + $0xc0] sm:$0xff]  ;;  %v1514_v40 = vadd.f32 %v6966_v58, %v1500_v21  ;;  %v2947_v38 = vadd.f32 %v2939_v3, %v2918_v61  ;;  %v7316_v12 = vld [vmem:[#allocation10 + $0xb] ss:$0 sm:$0xff]  ;;  %v2585_v63 = vadd.f32 %v7229_v39, %v2556_v46  ;;  %v1573_v33 = vadd.f32 %v1565_v16, %v1544_v7  ;;  %v7327_v6 = vld [vmem:[#allocation2 + $0x150] sm:$0xff] }
 0x268   : > { %9579 = vst [vmem:[#allocation54_spill] sm:$0xff] %v7294_v50  ;;  %v1785_v30 = vld [vmem:[#allocation2 + $0x140] sm:$0xff]  ;;  %v1681_v32 = vmul.f32 %v7288_v37, %v7290_v56  ;;  %v7323_v17 = vmul.f32 %v7292_v42, %v7294_v50  ;;  %9582 = vst [vmem:[#allocation57_spill] sm:$0xff] %v7327_v6  ;;  %v2780_v47 = vadd.f32 %v7244_v23, %v2751_v36  ;;  %v7336_v3 = vld [vmem:[#allocation2 + $0x151] sm:$0xff] }
 0x269   : > { %v7303_v59 = vld [vmem:[#allocation10 + $0x7] ss:$0 sm:$0xff]  ;;  %v1522_v18 = vmax.f32 %v1514_v40, 0.0  ;;  %v2976_v14 = vadd.f32 %v2968_v9, %v2947_v38  ;;  %9583 = vst [vmem:[#allocation58_spill] sm:$0xff] %v7336_v3  ;;  %v7338_v25 = vld [vmem:[#allocation10 + $0xe] ss:$0 sm:$0xff]  ;;  %v1602_v60 = vadd.f32 %v1594_v20, %v1573_v33  ;;  %v1797_v23 = vmul.f32 %v7296_v31, %v1785_v30 }
 0x26a   : > { %v7305_v0 = vld [vmem:[#allocation2 + $0xc1] sm:$0xff]  ;;  %v7340_v57 = vld [vmem:[#allocation2 + $0x152] sm:$0xff]  ;;  %v7348_v62 = vld [vmem:[#allocation10 + $0xf] ss:$0 sm:$0xff]  ;;  %v2809_v41 = vadd.f32 %v7247_v28, %v2780_v47  ;;  %v1876_v1 = vmul.f32 %v7325_v44, %v7327_v6  ;;  %v1905_v40 = vmul.f32 %v7334_v34, %v7336_v3 }
 0x26b   : > { %9580 = vst [vmem:[#allocation42_spill] sm:$0xff] %v7305_v0  ;;  %v7314_v15 = vld [vmem:[#allocation2 + $0xc2] sm:$0xff]  ;;  %v7332_v39 = vmul.f32 %v7303_v59, %v7305_v0  ;;  %9584 = vst [vmem:[#allocation46_spill] sm:$0xff] %v7340_v57  ;;  %v7352_v8 = vld [vmem:[#allocation10 + $0x10] ss:$0 sm:$0xff]  ;;  %4730 = vmatmul.mubr.f32.gmra.mrb[6].mxu0 %v1522_v18  ;;  %v3005_v51 = vadd.f32 %v2997_v54, %v2976_v14  ;;  %v1631_v16 = vadd.f32 %v1623_v10, %v1602_v60 }
 0x26c   : > { %9581 = vst [vmem:[#allocation55_spill] sm:$0xff] %v7314_v15  ;;  %v1806_v53 = vld [vmem:[#allocation2 + $0x141] sm:$0xff]  ;;  %v7344_v19 = vmul.f32 %v7312_v13, %v7314_v15  ;;  %v7360_v61 = vld [vmem:[#allocation10 + $0x11] ss:$0 sm:$0xff]  ;;  %v7364_v30 = vld [vmem:[#allocation10 + $0x12] ss:$0 sm:$0xff]  ;;  %v1934_v28 = vmul.f32 %v7338_v25, %v7340_v57 }
 0x26d   : > { %v1835_v24 = vld [vmem:[#allocation2 + $0x142] sm:$0xff]  ;;  %v1818_v9 = vmul.f32 %v7307_v11, %v1806_v53  ;;  %v7370_v54 = vld [vmem:[#allocation10 + $0x13] ss:$0 sm:$0xff]  ;;  %v7372_v38 = vld [vmem:[#allocation10 + $0x14] ss:$0 sm:$0xff]  ;;  %v2838_v53 = vadd.f32 %v7250_v45, %v2809_v41  ;;  %v3035_v33 = vadd.f32 %v7273_v48, %v3005_v51  ;;  %v1660_v60 = vadd.f32 %v1652_v2, %v1631_v16 }
 0x26e   : > { %v7350_v35 = vld [vmem:[#allocation2 + $0x160] sm:$0xff]  ;;  %v1847_v21 = vmul.f32 %v7316_v12, %v1835_v24  ;;  %v7380_v47 = vld [vmem:[#allocation10 + $0x15] ss:$0 sm:$0xff]  ;;  %v7382_v14 = vld [vmem:[#allocation10 + $0x16] ss:$0 sm:$0xff] }
 0x26f   : > { %9585 = vst [vmem:[#allocation43_spill] sm:$0xff] %v7350_v35  ;;  %v7354_v5 = vld [vmem:[#allocation2 + $0x161] sm:$0xff]  ;;  %v1826_v20 = vadd.f32 %v1818_v9, %v1797_v23  ;;  %v1963_v24 = vmul.f32 %v7348_v62, %v7350_v35  ;;  %v7389_v48 = vld [vmem:[#allocation2 + $0x1f0] sm:$0xff]  ;;  %v7393_v51 = vld [vmem:[#allocation10 + $0x18] ss:$0 sm:$0xff]  ;;  %v3101_v35 = vadd.f32 %v2838_v53, %v2585_v63 }
 0x270   : > { %9586 = vst [vmem:[#allocation49_spill] sm:$0xff] %v7354_v5  ;;  %v7362_v7 = vld [vmem:[#allocation2 + $0x162] sm:$0xff]  ;;  %v1992_v10 = vmul.f32 %v7352_v8, %v7354_v5  ;;  %v7391_v41 = vld [vmem:[#allocation10 + $0x17] ss:$0 sm:$0xff]  ;;  %9589 = vst [vmem:[#allocation47_spill] sm:$0xff] %v7393_v51  ;;  %v3064_v5 = vadd.f32 %v7276_v26, %v3035_v33  ;;  %v2130_v6 = vmul.f32 %v7380_v47, %v7389_v48 }
 0x271   : > { %9587 = vst [vmem:[#allocation61_spill] sm:$0xff] %v7362_v7  ;;  %v2039_v46 = vld [vmem:[#allocation2 + $0x1e0] sm:$0xff]  ;;  %v1855_v23 = vadd.f32 %v1847_v21, %v1826_v20  ;;  %v7386_v9 = vmul.f32 %v7360_v61, %v7362_v7  ;;  %9588 = vst [vmem:[#allocation62_spill] sm:$0xff] %v7391_v41  ;;  %v7398_v21 = vld [vmem:[#allocation2 + $0x1f1] sm:$0xff]  ;;  %v1689_v7 = vadd.f32 %v1681_v32, %v1660_v60 }
 0x272   : > { %v2060_v36 = vld [vmem:[#allocation2 + $0x1e1] sm:$0xff]  ;;  %v2051_v45 = vmul.f32 %v7364_v30, %v2039_v46  ;;  %v7400_v16 = vld [vmem:[#allocation10 + $0x19] ss:$0 sm:$0xff]  ;;  %v7402_v20 = vld [vmem:[#allocation10 + $0x1a] ss:$0 sm:$0xff]  ;;  %v2159_v15 = vmul.f32 %v7382_v14, %v7398_v21  ;;  %v3093_v53 = vadd.f32 %v7279_v55, %v3064_v5 }
 0x273   : > { %v2089_v18 = vld [vmem:[#allocation2 + $0x1e2] sm:$0xff]  ;;  %v2072_v57 = vmul.f32 %v7370_v54, %v2060_v36  ;;  %9590 = vst [vmem:[#allocation48_spill] sm:$0xff] %v7400_v16  ;;  %9591 = vst [vmem:[#allocation33_spill] sm:$0xff] %v7402_v20  ;;  %v1884_v3 = vadd.f32 %v1876_v1, %v1855_v23  ;;  %v7408_v26 = vld [vmem:[#allocation2 + $0x1f2] sm:$0xff]  ;;  %v1718_v23 = vadd.f32 %v7323_v17, %v1689_v7 }
 0x274   : > { %v2101_v2 = vmul.f32 %v7372_v38, %v2089_v18  ;;  %v7410_v63 = vld [vmem:[#allocation2 + $0x200] sm:$0xff]  ;;  %v2188_v0 = vmul.f32 %v7391_v41, %v7408_v26  ;;  %v3169_v27 = vmul.f32 %v7264_v22, %v2060_v36  ;;  %v3198_v41 = vmul.f32 %v7268_v49, %v2089_v18 }
 0x275   : > { %v2080_v33 = vadd.f32 %v2072_v57, %v2051_v45  ;;  %v2218_v32 = vmul.f32 %v7393_v51, %v7410_v63  ;;  %v7417_v1 = vld [vmem:[#allocation2 + $0x201] sm:$0xff]  ;;  %v1913_v50 = vadd.f32 %v1905_v40, %v1884_v3  ;;  %v3109_v57 = vadd.f32 %v3101_v35, %v3093_v53 }
 0x276   : > { %9592 = vst [vmem:[#allocation34_spill] sm:$0xff] %v7417_v1  ;;  %v7419_v60 = vld [vmem:[#allocation2 + $0x202] sm:$0xff]  ;;  %v2247_v56 = vmul.f32 %v7400_v16, %v7417_v1  ;;  %v3148_v45 = vmul.f32 %v7254_v4, %v2039_v46  ;;  %v1747_v43 = vadd.f32 %v7332_v39, %v1718_v23  ;;  %v3227_v17 = vmul.f32 %v7270_v29, %v7389_v48 }
 0x277   : > { %9593 = vst [vmem:[#allocation51_spill] sm:$0xff] %v7419_v60  ;;  %v7426_v55 = vmul.f32 %v7402_v20, %v7419_v60  ;;  %v2109_v5 = vadd.f32 %v2101_v2, %v2080_v33  ;;  %v1942_v51 = vadd.f32 %v1934_v28, %v1913_v50  ;;  %v3117_v3 = vadd.f32 %v6966_v58, %v3109_v57  ;;  %v3389_v2 = vld [vmem:[#allocation2 + $0x280] sm:$0xff] }
 0x278   : > { %v3177_v40 = vadd.f32 %v3169_v27, %v3148_v45  ;;  %v3256_v35 = vmul.f32 %v7283_v52, %v7398_v21  ;;  %v3410_v53 = vld [vmem:[#allocation2 + $0x281] sm:$0xff]  ;;  %v1776_v46 = vadd.f32 %v7344_v19, %v1747_v43  ;;  %v3285_v50 = vmul.f32 %v7288_v37, %v7408_v26 }
 0x279   : > { %v2138_v7 = vadd.f32 %v2130_v6, %v2109_v5  ;;  %v1971_v36 = vadd.f32 %v1963_v24, %v1942_v51  ;;  %v3314_v39 = vmul.f32 %v7292_v42, %v7410_v63  ;;  %v3439_v28 = vld [vmem:[#allocation2 + $0x282] sm:$0xff]  ;;  %v3125_v18 = vmax.f32 %v3117_v3, 0.0  ;;  %v7448_v24 = vld [vmem:[#allocation2 + $0x290] sm:$0xff] }
 0x27a   : > { %v3206_v23 = vadd.f32 %v3198_v41, %v3177_v40  ;;  %v3343_v27 = vmul.f32 %v7303_v59, %v7417_v1  ;;  %v3372_v57 = vmul.f32 %v7312_v13, %v7419_v60  ;;  %v3401_v43 = vmul.f32 %v7296_v31, %v3389_v2  ;;  %9594 = vst [vmem:[#allocation56_spill] sm:$0xff] %v7448_v24  ;;  %v7450_v51 = vld [vmem:[#allocation2 + $0x291] sm:$0xff]  ;;  %v7457_v3 = vld [vmem:[#allocation2 + $0x2a0] sm:$0xff] }
 0x27b   : > { %v2167_v33 = vadd.f32 %v2159_v15, %v2138_v7  ;;  %v2000_v6 = vadd.f32 %v1992_v10, %v1971_v36  ;;  %v3422_v19 = vmul.f32 %v7307_v11, %v3410_v53  ;;  %9595 = vst [vmem:[#allocation39_spill] sm:$0xff] %v7450_v51  ;;  %4754 = vmatmul.mubr.f32.gmra.mrb[6].mxu1 %v3125_v18  ;;  %v7455_v10 = vld [vmem:[#allocation2 + $0x292] sm:$0xff]  ;;  %9597 = vst [vmem:[#allocation37_spill] sm:$0xff] %v7457_v3  ;;  %v3643_v7 = vld [vmem:[#allocation2 + $0x320] sm:$0xff] }
 0x27c   : > { %v3235_v45 = vadd.f32 %v3227_v17, %v3206_v23  ;;  %v3451_v15 = vmul.f32 %v7316_v12, %v3439_v28  ;;  %v3480_v41 = vmul.f32 %v7325_v44, %v7448_v24  ;;  %9596 = vst [vmem:[#allocation66_spill] sm:$0xff] %v7455_v10  ;;  %v3509_v53 = vmul.f32 %v7334_v34, %v7450_v51  ;;  %v7464_v17 = vld [vmem:[#allocation2 + $0x2a1] sm:$0xff] }
 0x27d   : > { %v2196_v5 = vadd.f32 %v2188_v0, %v2167_v33  ;;  %v2029_v40 = vadd.f32 %v7386_v9, %v2000_v6  ;;  %v3430_v2 = vadd.f32 %v3422_v19, %v3401_v43  ;;  %v3538_v0 = vmul.f32 %v7338_v25, %v7455_v10  ;;  %9598 = vst [vmem:[#allocation40_spill] sm:$0xff] %v7464_v17  ;;  %v3664_v36 = vld [vmem:[#allocation2 + $0x321] sm:$0xff] }
 0x27e   : > { %v3693_v28 = vld [vmem:[#allocation2 + $0x322] sm:$0xff]  ;;  %v3264_v33 = vadd.f32 %v3256_v35, %v3235_v45  ;;  %v3567_v23 = vmul.f32 %v7348_v62, %v7457_v3  ;;  %v3596_v24 = vmul.f32 %v7352_v8, %v7464_v17  ;;  %v3655_v10 = vmul.f32 %v7364_v30, %v3643_v7  ;;  %v7479_v45 = vld [vmem:[#allocation2 + $0x331] sm:$0xff] }
 0x27f   : > { %v2226_v18 = vadd.f32 %v2218_v32, %v2196_v5  ;;  %v7470_v9 = vld [vmem:[#allocation2 + $0x2a2] sm:$0xff]  ;;  %v2292_v6 = vadd.f32 %v2029_v40, %v1776_v46  ;;  %v3459_v43 = vadd.f32 %v3451_v15, %v3430_v2  ;;  %v3676_v32 = vmul.f32 %v7370_v54, %v3664_v36  ;;  %v7477_v5 = vld [vmem:[#allocation2 + $0x330] sm:$0xff]  ;;  %9601 = vst [vmem:[#allocation64_spill] sm:$0xff] %v7479_v45 }
 0x280   : > { %9599 = vst [vmem:[#allocation59_spill] sm:$0xff] %v7470_v9  ;;  %v3625_v19 = vmul.f32 %v7360_v61, %v7470_v9  ;;  %v3293_v60 = vadd.f32 %v3285_v50, %v3264_v33  ;;  %v3705_v35 = vmul.f32 %v7372_v38, %v3693_v28  ;;  %9600 = vst [vmem:[#allocation63_spill] sm:$0xff] %v7477_v5  ;;  %v7481_v17 = vld [vmem:[#allocation2 + $0x332] sm:$0xff]  ;;  %v7489_v7 = vld [vmem:[#allocation2 + $0x340] sm:$0xff] }
 0x281   : > { %v2255_v51 = vadd.f32 %v2247_v56, %v2226_v18  ;;  %9602 = vst [vmem:[#allocation65_spill] sm:$0xff] %v7481_v17  ;;  %v3488_v3 = vadd.f32 %v3480_v41, %v3459_v43  ;;  %v3735_v46 = vmul.f32 %v7380_v47, %v7477_v5  ;;  %v3764_v15 = vmul.f32 %v7382_v14, %v7479_v45  ;;  %v9603_v56 = vld [vmem:[#allocation62_spill] sm:$0xff]  ;;  %v9605_v28 = vld [vmem:[#allocation47_spill] sm:$0xff]  ;;  %v7494_v33 = vld [vmem:[#allocation2 + $0x341] sm:$0xff] }
 0x282   : > { %v3793_v50 = vmul.f32 %v9603_v56, %v7481_v17  ;;  %9604 = vst [vmem:[#allocation69_spill] sm:$0xff] %v7489_v7  ;;  %v3322_v2 = vadd.f32 %v3314_v39, %v3293_v60  ;;  %v3684_v36 = vadd.f32 %v3676_v32, %v3655_v10  ;;  %v3823_v18 = vmul.f32 %v9605_v28, %v7489_v7  ;;  %v7496_v41 = vld [vmem:[#allocation2 + $0x342] sm:$0xff]  ;;  %v9608_v5 = vld [vmem:[#allocation35_spill] sm:$0xff] }
 0x283   : > { %v2284_v40 = vadd.f32 %v7426_v55, %v2255_v51  ;;  %9606 = vst [vmem:[#allocation70_spill] sm:$0xff] %v7494_v33  ;;  %9607 = vst [vmem:[#allocation71_spill] sm:$0xff] %v7496_v41  ;;  %v3517_v43 = vadd.f32 %v3509_v53, %v3488_v3  ;;  %v3852_v45 = vmul.f32 %v7400_v16, %v7494_v33  ;;  %v9609_v51 = vld [vmem:[#allocation50_spill] sm:$0xff]  ;;  %v9610_v7 = vld [vmem:[#allocation52_spill] sm:$0xff] }
 0x284   : > { %v3881_v17 = vmul.f32 %v7402_v20, %v7496_v41  ;;  %v1545_v9 = vmul.f32 %v7254_v4, %v9608_v5  ;;  %v3351_v60 = vadd.f32 %v3343_v27, %v3322_v2  ;;  %v3713_v39 = vadd.f32 %v3705_v35, %v3684_v36  ;;  %v9611_v3 = vld [vmem:[#allocation54_spill] sm:$0xff] }
 0x285   : > { %v2300_v55 = vadd.f32 %v2292_v6, %v2284_v40  ;;  %v1566_v10 = vmul.f32 %v7264_v22, %v9609_v51  ;;  %v3546_v32 = vadd.f32 %v3538_v0, %v3517_v43  ;;  %v1595_v28 = vmul.f32 %v7268_v49, %v9610_v7  ;;  %v9612_v33 = vld [vmem:[#allocation42_spill] sm:$0xff]  ;;  %v9615_v0 = vld [vmem:[#allocation55_spill] sm:$0xff] }
 0x286   : > { %v1624_v53 = vmul.f32 %v7270_v29, %v9611_v3  ;;  %v1653_v16 = vmul.f32 %v7283_v52, %v9612_v33  ;;  %v3380_v20 = vadd.f32 %v3372_v57, %v3351_v60  ;;  %v3743_v5 = vadd.f32 %v3735_v46, %v3713_v39  ;;  %v7513_v27 = vld [vmem:[#allocation2 + $0xd0] sm:$0xff]  ;;  %v9617_v60 = vld [vmem:[#allocation57_spill] sm:$0xff] }
 0x287   : > { %v2308_v41 = vadd.f32 %v6966_v58, %v2300_v55  ;;  %v1574_v6 = vadd.f32 %v1566_v10, %v1545_v9  ;;  %9613 = vst [vmem:[#allocation67_spill] sm:$0xff] %v7513_v27  ;;  %v7515_v35 = vld [vmem:[#allocation2 + $0xd1] sm:$0xff]  ;;  %v3575_v40 = vadd.f32 %v3567_v23, %v3546_v32  ;;  %v1682_v2 = vmul.f32 %v7288_v37, %v9615_v0 }
 0x288   : > { %9614 = vst [vmem:[#allocation68_spill] sm:$0xff] %v7515_v35  ;;  %v1711_v7 = vmul.f32 %v7292_v42, %v7513_v27  ;;  %v1740_v36 = vmul.f32 %v7303_v59, %v7515_v35  ;;  %v7523_v43 = vld [vmem:[#allocation2 + $0xd2] sm:$0xff]  ;;  %v3772_v57 = vadd.f32 %v3764_v15, %v3743_v5  ;;  %v1798_v23 = vmul.f32 %v7296_v31, %v9617_v60 }
 0x289   : > { %9616 = vst [vmem:[#allocation45_spill] sm:$0xff] %v7523_v43  ;;  %v2316_v58 = vmax.f32 %v2308_v41, 0.0  ;;  %v1603_v46 = vadd.f32 %v1595_v28, %v1574_v6  ;;  %v1769_v9 = vmul.f32 %v7312_v13, %v7523_v43  ;;  %v3604_v55 = vadd.f32 %v3596_v24, %v3575_v40  ;;  %v9618_v39 = vld [vmem:[#allocation58_spill] sm:$0xff]  ;;  %v9620_v0 = vld [vmem:[#allocation43_spill] sm:$0xff]  ;;  %v9621_v28 = vld [vmem:[#allocation49_spill] sm:$0xff] }
 0x28a   : > { %v1819_v51 = vmul.f32 %v7307_v11, %v9618_v39  ;;  %v9619_v10 = vld [vmem:[#allocation46_spill] sm:$0xff]  ;;  %v3801_v35 = vadd.f32 %v3793_v50, %v3772_v57  ;;  %v1877_v15 = vmul.f32 %v7325_v44, %v9620_v0  ;;  %v1906_v41 = vmul.f32 %v7334_v34, %v9621_v28  ;;  %v9623_v40 = vld [vmem:[#allocation61_spill] sm:$0xff] }
 0x28b   : > { %v1848_v32 = vmul.f32 %v7316_v12, %v9619_v10  ;;  %4732 = vmatprep.mubr.f32.mxu0 %v2316_v58  ;;  %v1632_v27 = vadd.f32 %v1624_v53, %v1603_v46  ;;  %v7537_v5 = vld [vmem:[#allocation2 + $0x170] sm:$0xff]  ;;  %v3633_v24 = vadd.f32 %v3625_v19, %v3604_v55  ;;  %v1935_v60 = vmul.f32 %v7338_v25, %v9623_v40 }
 0x28c   : > { %9622 = vst [vmem:[#allocation32_spill] sm:$0xff] %v7537_v5  ;;  %v1827_v6 = vadd.f32 %v1819_v51, %v1798_v23  ;;  %v1964_v39 = vmul.f32 %v7348_v62, %v7537_v5  ;;  %v7543_v10 = vld [vmem:[#allocation2 + $0x171] sm:$0xff]  ;;  %v3831_v53 = vadd.f32 %v3823_v18, %v3801_v35  ;;  %v2052_v23 = vmul.f32 %v7364_v30, %v7389_v48 }
 0x28d   : > { %9624 = vst [vmem:[#allocation60_spill] sm:$0xff] %v7543_v10  ;;  %v7545_v50 = vld [vmem:[#allocation2 + $0x172] sm:$0xff]  ;;  %v1661_v58 = vadd.f32 %v1653_v16, %v1632_v27  ;;  %v1993_v57 = vmul.f32 %v7352_v8, %v7543_v10  ;;  %v3897_v19 = vadd.f32 %v3633_v24, %v3380_v20  ;;  %v2073_v51 = vmul.f32 %v7370_v54, %v7398_v21  ;;  %v9630_v10 = vld [vmem:[#allocation48_spill] sm:$0xff] }
 0x28e   : > { %9625 = vst [vmem:[#allocation44_spill] sm:$0xff] %v7545_v50  ;;  %v2022_v46 = vmul.f32 %v7360_v61, %v7545_v50  ;;  %v1856_v55 = vadd.f32 %v1848_v32, %v1827_v6  ;;  %v3860_v5 = vadd.f32 %v3852_v45, %v3831_v53  ;;  %v2102_v18 = vmul.f32 %v7372_v38, %v7408_v26  ;;  %v9626_v32 = vld [vmem:[#allocation51_spill] sm:$0xff]  ;;  %v7563_v6 = vld [vmem:[#allocation2 + $0x210] sm:$0xff] }
 0x28f   : > { %v1690_v40 = vadd.f32 %v1682_v2, %v1661_v58  ;;  %v2131_v16 = vmul.f32 %v7380_v47, %v7410_v63  ;;  %v2081_v35 = vadd.f32 %v2073_v51, %v2052_v23  ;;  %v2160_v20 = vmul.f32 %v7382_v14, %v7417_v1  ;;  %9627 = vst [vmem:[#allocation36_spill] sm:$0xff] %v7563_v6  ;;  %v7565_v50 = vld [vmem:[#allocation2 + $0x211] sm:$0xff]  ;;  %v9632_v51 = vld [vmem:[#allocation33_spill] sm:$0xff] }
 0x290   : > { %v1885_v27 = vadd.f32 %v1877_v15, %v1856_v55  ;;  %v2189_v24 = vmul.f32 %v9603_v56, %v9626_v32  ;;  %9628 = vst [vmem:[#allocation41_spill] sm:$0xff] %v7565_v50  ;;  %v3889_v45 = vadd.f32 %v3881_v17, %v3860_v5  ;;  %v9629_v53 = vld [vmem:[#allocation47_spill] sm:$0xff]  ;;  %v2248_v28 = vmul.f32 %v9630_v10, %v7565_v50 }
 0x291   : > { %v1719_v2 = vadd.f32 %v1711_v7, %v1690_v40  ;;  %v2219_v58 = vmul.f32 %v9629_v53, %v7563_v6  ;;  %v7571_v15 = vld [vmem:[#allocation2 + $0x212] sm:$0xff]  ;;  %v2110_v23 = vadd.f32 %v2102_v18, %v2081_v35  ;;  %v3149_v43 = vmul.f32 %v7254_v4, %v7389_v48  ;;  %v7588_v48 = vld [vmem:[%s9287_s6] ss:$0 sm:$0xff] }
 0x292   : > { %9631 = vst [vmem:[#allocation53_spill] sm:$0xff] %v7571_v15  ;;  %v1914_v55 = vadd.f32 %v1906_v41, %v1885_v27  ;;  %v2277_v0 = vmul.f32 %v9632_v51, %v7571_v15  ;;  %v3905_v33 = vadd.f32 %v3897_v19, %v3889_v45  ;;  %v3170_v17 = vmul.f32 %v7264_v22, %v7398_v21 }
 0x293   : > { %v1748_v3 = vadd.f32 %v1740_v36, %v1719_v2  ;;  %v3199_v7 = vmul.f32 %v7268_v49, %v7408_v26  ;;  %v2139_v40 = vadd.f32 %v2131_v16, %v2110_v23  ;;  %v3228_v41 = vmul.f32 %v7270_v29, %v7410_v63  ;;  %v9633_v23 = vld [vmem:[#allocation56_spill] sm:$0xff] }
 0x294   : > { %v1943_v5 = vadd.f32 %v1935_v60, %v1914_v55  ;;  %v3257_v18 = vmul.f32 %v7283_v52, %v7417_v1  ;;  %v3913_v36 = vadd.f32 %v7588_v48, %v3905_v33  ;;  %v3178_v21 = vadd.f32 %v3170_v17, %v3149_v43 }
 0x295   : > { %v1777_v19 = vadd.f32 %v1769_v9, %v1748_v3  ;;  %v3286_v26 = vmul.f32 %v7288_v37, %v9626_v32  ;;  %v2168_v16 = vadd.f32 %v2160_v20, %v2139_v40  ;;  %v3315_v27 = vmul.f32 %v7292_v42, %v7563_v6  ;;  %v9634_v9 = vld [vmem:[#allocation39_spill] sm:$0xff]  ;;  %v9635_v20 = vld [vmem:[#allocation66_spill] sm:$0xff]  ;;  %v9636_v40 = vld [vmem:[#allocation37_spill] sm:$0xff] }
 0x296   : > { %v1972_v60 = vadd.f32 %v1964_v39, %v1943_v5  ;;  %v3344_v35 = vmul.f32 %v7303_v59, %v7565_v50  ;;  %v3921_v45 = vmax.f32 %v3913_v36, 0.0  ;;  %v3207_v2 = vadd.f32 %v3199_v7, %v3178_v21  ;;  %v9637_v7 = vld [vmem:[#allocation40_spill] sm:$0xff] }
 0x297   : > { %v3373_v55 = vmul.f32 %v7312_v13, %v7571_v15  ;;  %v3402_v33 = vmul.f32 %v7296_v31, %v9633_v23  ;;  %v2197_v43 = vadd.f32 %v2189_v24, %v2168_v16  ;;  %v3423_v39 = vmul.f32 %v7307_v11, %v9634_v9  ;;  %v9638_v15 = vld [vmem:[#allocation59_spill] sm:$0xff]  ;;  %v7611_v23 = vld [vmem:[#allocation2 + $0x2b0] sm:$0xff] }
 0x298   : > { %v2001_v3 = vadd.f32 %v1993_v57, %v1972_v60  ;;  %v3452_v17 = vmul.f32 %v7316_v12, %v9635_v20  ;;  %4756 = vmatprep.mubr.f32.mxu1 %v3921_v45  ;;  %v3236_v5 = vadd.f32 %v3228_v41, %v3207_v2  ;;  %v3481_v36 = vmul.f32 %v7325_v44, %v9636_v40  ;;  %v7615_v9 = vld [vmem:[#allocation2 + $0x2b1] sm:$0xff] }
 0x299   : > { %v3510_v21 = vmul.f32 %v7334_v34, %v9637_v7  ;;  %v3539_v50 = vmul.f32 %v7338_v25, %v9638_v15  ;;  %9639 = vst [vmem:[#allocation38_spill] sm:$0xff] %v7611_v23  ;;  %v2227_v24 = vadd.f32 %v2219_v58, %v2197_v43  ;;  %v3431_v60 = vadd.f32 %v3423_v39, %v3402_v33  ;;  %v7617_v41 = vld [vmem:[#allocation2 + $0x2b2] sm:$0xff] }
 0x29a   : > { %v2030_v57 = vadd.f32 %v2022_v46, %v2001_v3  ;;  %v3568_v16 = vmul.f32 %v7348_v62, %v7611_v23  ;;  %9640 = vst [vmem:[#allocation35_spill] sm:$0xff] %v7615_v9  ;;  %9641 = vst [vmem:[#allocation50_spill] sm:$0xff] %v7617_v41  ;;  %v3265_v45 = vadd.f32 %v3257_v18, %v3236_v5  ;;  %v9642_v15 = vld [vmem:[#allocation63_spill] sm:$0xff]  ;;  %v9643_v3 = vld [vmem:[#allocation64_spill] sm:$0xff] }
 0x29b   : > { %v3597_v2 = vmul.f32 %v7352_v8, %v7615_v9  ;;  %v3626_v20 = vmul.f32 %v7360_v61, %v7617_v41  ;;  %v3656_v7 = vmul.f32 %v7364_v30, %v9642_v15  ;;  %v2256_v46 = vadd.f32 %v2248_v28, %v2227_v24  ;;  %v9644_v23 = vld [vmem:[#allocation65_spill] sm:$0xff]  ;;  %v9646_v9 = vld [vmem:[#allocation70_spill] sm:$0xff]  ;;  %v9647_v15 = vld [vmem:[#allocation71_spill] sm:$0xff] }
 0x29c   : > { %v2293_v58 = vadd.f32 %v2030_v57, %v1777_v19  ;;  %v3460_v33 = vadd.f32 %v3452_v17, %v3431_v60  ;;  %v3677_v43 = vmul.f32 %v7370_v54, %v9643_v3  ;;  %v3294_v39 = vadd.f32 %v3286_v26, %v3265_v45  ;;  %v9645_v18 = vld [vmem:[#allocation69_spill] sm:$0xff]  ;;  %v7635_v19 = vld [vmem:[#allocation2 + $0x350] sm:$0xff] }
 0x29d   : > { %v3706_v40 = vmul.f32 %v7372_v38, %v9644_v23  ;;  %v3736_v5 = vmul.f32 %v7380_v47, %v9645_v18  ;;  %v3765_v6 = vmul.f32 %v7382_v14, %v9646_v9  ;;  %v2285_v41 = vadd.f32 %v2277_v0, %v2256_v46  ;;  %9648 = vst [vmem:[#allocation52_spill] sm:$0xff] %v7635_v19  ;;  %v7637_v17 = vld [vmem:[#allocation2 + $0x351] sm:$0xff] }
 0x29e   : > { %v3489_v32 = vadd.f32 %v3481_v36, %v3460_v33  ;;  %v3685_v1 = vadd.f32 %v3677_v43, %v3656_v7  ;;  %v3794_v28 = vmul.f32 %v9603_v56, %v9647_v15  ;;  %9649 = vst [vmem:[#allocation57_spill] sm:$0xff] %v7637_v17  ;;  %v7639_v26 = vld [vmem:[#allocation2 + $0x352] sm:$0xff]  ;;  %v3323_v57 = vadd.f32 %v3315_v27, %v3294_v39 }
 0x29f   : > { %9650 = vst [vmem:[#allocation58_spill] sm:$0xff] %v7639_v26  ;;  %v3824_v23 = vmul.f32 %v9629_v53, %v7635_v19  ;;  %v3853_v24 = vmul.f32 %v9630_v10, %v7637_v17  ;;  %v3882_v0 = vmul.f32 %v9632_v51, %v7639_v26  ;;  %v2301_v36 = vadd.f32 %v2293_v58, %v2285_v41  ;;  %v9651_v45 = vld [vmem:[#allocation54_spill] sm:$0xff]  ;;  %v9653_v27 = vld [vmem:[#allocation55_spill] sm:$0xff]  ;;  %v9655_v41 = vld [vmem:[#allocation68_spill] sm:$0xff] }
 0x2a0   : > { %v3518_v7 = vadd.f32 %v3510_v21, %v3489_v32  ;;  %v3714_v60 = vadd.f32 %v3706_v40, %v3685_v1  ;;  %v1546_v46 = vmul.f32 %v7254_v4, %v9651_v45  ;;  %v3352_v33 = vadd.f32 %v3344_v35, %v3323_v57  ;;  %v9652_v3 = vld [vmem:[#allocation42_spill] sm:$0xff]  ;;  %v9654_v19 = vld [vmem:[#allocation67_spill] sm:$0xff]  ;;  %v7658_v32 = vld [vmem:[#allocation2 + $0xe0] sm:$0xff] }
 0x2a1   : > { %v1567_v43 = vmul.f32 %v7264_v22, %v9652_v3  ;;  %v1596_v39 = vmul.f32 %v7268_v49, %v9653_v27  ;;  %v1625_v15 = vmul.f32 %v7270_v29, %v9654_v19  ;;  %v2309_v17 = vadd.f32 %v7588_v48, %v2301_v36  ;;  %9656 = vst [vmem:[#allocation46_spill] sm:$0xff] %v7658_v32  ;;  %v9657_v21 = vld [vmem:[#allocation45_spill] sm:$0xff] }
 0x2a2   : > { %v3547_v9 = vadd.f32 %v3539_v50, %v3518_v7  ;;  %v3744_v26 = vadd.f32 %v3736_v5, %v3714_v60  ;;  %v1654_v1 = vmul.f32 %v7283_v52, %v9655_v41  ;;  %v3381_v40 = vadd.f32 %v3373_v55, %v3352_v33  ;;  %v7664_v45 = vld [vmem:[#allocation2 + $0xe1] sm:$0xff]  ;;  %v9660_v60 = vld [vmem:[#allocation43_spill] sm:$0xff] }
 0x2a3   : > { %v1575_v35 = vadd.f32 %v1567_v43, %v1546_v46  ;;  %v1683_v58 = vmul.f32 %v7288_v37, %v9657_v21  ;;  %v1712_v57 = vmul.f32 %v7292_v42, %v7658_v32  ;;  %9658 = vst [vmem:[#allocation56_spill] sm:$0xff] %v7664_v45  ;;  %v2317_v3 = vmax.f32 %v2309_v17, 0.0  ;;  %v7668_v5 = vld [vmem:[#allocation2 + $0xe2] sm:$0xff] }
 0x2a4   : > { %v3576_v27 = vadd.f32 %v3568_v16, %v3547_v9  ;;  %v3773_v36 = vadd.f32 %v3765_v6, %v3744_v26  ;;  %v1741_v50 = vmul.f32 %v7303_v59, %v7664_v45  ;;  %9659 = vst [vmem:[#allocation39_spill] sm:$0xff] %v7668_v5  ;;  %v1770_v55 = vmul.f32 %v7312_v13, %v7668_v5  ;;  %v9661_v33 = vld [vmem:[#allocation49_spill] sm:$0xff]  ;;  %v9663_v9 = vld [vmem:[#allocation32_spill] sm:$0xff] }
 0x2a5   : > { %v1604_v7 = vadd.f32 %v1596_v39, %v1575_v35  ;;  %v1799_v46 = vmul.f32 %v7296_v31, %v9660_v60  ;;  %v1820_v43 = vmul.f32 %v7307_v11, %v9661_v33  ;;  %4733 = vmatmul.mubr.f32.gmra.mrb[8].mxu0 %v2317_v3  ;;  %v9662_v16 = vld [vmem:[#allocation61_spill] sm:$0xff]  ;;  %v1878_v26 = vmul.f32 %v7325_v44, %v9663_v9  ;;  %v9664_v35 = vld [vmem:[#allocation60_spill] sm:$0xff] }
 0x2a6   : > { %v3605_v32 = vadd.f32 %v3597_v2, %v3576_v27  ;;  %v3802_v17 = vadd.f32 %v3794_v28, %v3773_v36  ;;  %v1849_v6 = vmul.f32 %v7316_v12, %v9662_v16  ;;  %v1907_v5 = vmul.f32 %v7334_v34, %v9664_v35  ;;  %v9665_v21 = vld [vmem:[#allocation44_spill] sm:$0xff] }
 0x2a7   : > { %v1633_v45 = vadd.f32 %v1625_v15, %v1604_v7  ;;  %v1828_v39 = vadd.f32 %v1820_v43, %v1799_v46  ;;  %v1936_v60 = vmul.f32 %v7338_v25, %v9665_v21  ;;  %v7684_v41 = vld [vmem:[#allocation2 + $0x180] sm:$0xff]  ;;  %v2053_v43 = vmul.f32 %v7364_v30, %v7410_v63 }
 0x2a8   : > { %9666 = vst [vmem:[#allocation66_spill] sm:$0xff] %v7684_v41  ;;  %v7686_v33 = vld [vmem:[#allocation2 + $0x181] sm:$0xff]  ;;  %v3634_v2 = vadd.f32 %v3626_v20, %v3605_v32  ;;  %v3832_v28 = vadd.f32 %v3824_v23, %v3802_v17  ;;  %v1965_v3 = vmul.f32 %v7348_v62, %v7684_v41  ;;  %v9669_v20 = vld [vmem:[#allocation34_spill] sm:$0xff]  ;;  %v9670_v32 = vld [vmem:[#allocation51_spill] sm:$0xff] }
 0x2a9   : > { %9667 = vst [vmem:[#allocation63_spill] sm:$0xff] %v7686_v33  ;;  %v1994_v27 = vmul.f32 %v7352_v8, %v7686_v33  ;;  %v7692_v15 = vld [vmem:[#allocation2 + $0x182] sm:$0xff]  ;;  %v1662_v36 = vadd.f32 %v1654_v1, %v1633_v45  ;;  %v1857_v7 = vadd.f32 %v1849_v6, %v1828_v39  ;;  %v2074_v23 = vmul.f32 %v7370_v54, %v9669_v20 }
 0x2aa   : > { %9668 = vst [vmem:[#allocation64_spill] sm:$0xff] %v7692_v15  ;;  %v2023_v46 = vmul.f32 %v7360_v61, %v7692_v15  ;;  %v3861_v16 = vadd.f32 %v3853_v24, %v3832_v28  ;;  %v3898_v21 = vadd.f32 %v3634_v2, %v3381_v40  ;;  %v2103_v17 = vmul.f32 %v7372_v38, %v9670_v32  ;;  %v9671_v35 = vld [vmem:[#allocation36_spill] sm:$0xff]  ;;  %v9672_v45 = vld [vmem:[#allocation41_spill] sm:$0xff] }
 0x2ab   : > { %v1691_v41 = vadd.f32 %v1683_v58, %v1662_v36  ;;  %v1886_v33 = vadd.f32 %v1878_v26, %v1857_v7  ;;  %v2132_v1 = vmul.f32 %v7380_v47, %v9671_v35  ;;  %v2161_v6 = vmul.f32 %v7382_v14, %v9672_v45  ;;  %v7706_v39 = vld [vmem:[#allocation2 + $0x220] sm:$0xff]  ;;  %v9673_v24 = vld [vmem:[#allocation53_spill] sm:$0xff] }
 0x2ac   : > { %v3890_v15 = vadd.f32 %v3882_v0, %v3861_v16  ;;  %v2082_v9 = vadd.f32 %v2074_v23, %v2053_v43  ;;  %v2190_v40 = vmul.f32 %v9603_v56, %v9673_v24  ;;  %v2220_v2 = vmul.f32 %v9629_v53, %v7706_v39  ;;  %v7712_v28 = vld [vmem:[#allocation2 + $0x221] sm:$0xff] }
 0x2ad   : > { %v7714_v58 = vld [vmem:[#allocation2 + $0x222] sm:$0xff]  ;;  %v1720_v26 = vadd.f32 %v1712_v57, %v1691_v41  ;;  %v1915_v36 = vadd.f32 %v1907_v5, %v1886_v33  ;;  %v2249_v7 = vmul.f32 %v9630_v10, %v7712_v28  ;;  %v3150_v16 = vmul.f32 %v7254_v4, %v7410_v63 }
 0x2ae   : > { %v2278_v19 = vmul.f32 %v9632_v51, %v7714_v58  ;;  %v3906_v0 = vadd.f32 %v3898_v21, %v3890_v15  ;;  %v2111_v43 = vadd.f32 %v2103_v17, %v2082_v9  ;;  %v3171_v23 = vmul.f32 %v7264_v22, %v9669_v20 }
 0x2af   : > { %v1749_v53 = vadd.f32 %v1741_v50, %v1720_v26  ;;  %v1944_v56 = vadd.f32 %v1936_v60, %v1915_v36  ;;  %v3200_v41 = vmul.f32 %v7268_v49, %v9670_v32  ;;  %v3229_v57 = vmul.f32 %v7270_v29, %v9671_v35  ;;  %v9674_v36 = vld [vmem:[#allocation37_spill] sm:$0xff] }
 0x2b0   : > { %v3914_v5 = vadd.f32 %v7588_v48, %v3906_v0  ;;  %v2140_v33 = vadd.f32 %v2132_v1, %v2111_v43  ;;  %v3179_v51 = vadd.f32 %v3171_v23, %v3150_v16  ;;  %v3258_v21 = vmul.f32 %v7283_v52, %v9672_v45  ;;  %v9676_v43 = vld [vmem:[#allocation59_spill] sm:$0xff] }
 0x2b1   : > { %v1778_v9 = vadd.f32 %v1770_v55, %v1749_v53  ;;  %v1973_v63 = vadd.f32 %v1965_v3, %v1944_v56  ;;  %v3287_v15 = vmul.f32 %v7288_v37, %v9673_v24  ;;  %v3316_v50 = vmul.f32 %v7292_v42, %v7706_v39  ;;  %v9675_v56 = vld [vmem:[#allocation40_spill] sm:$0xff] }
 0x2b2   : > { %v3922_v60 = vmax.f32 %v3914_v5, 0.0  ;;  %v2169_v20 = vadd.f32 %v2161_v6, %v2140_v33  ;;  %v3208_v32 = vadd.f32 %v3200_v41, %v3179_v51  ;;  %v3345_v17 = vmul.f32 %v7303_v59, %v7712_v28  ;;  %v9677_v51 = vld [vmem:[#allocation38_spill] sm:$0xff]  ;;  %v9678_v41 = vld [vmem:[#allocation35_spill] sm:$0xff] }
 0x2b3   : > { %v2002_v26 = vadd.f32 %v1994_v27, %v1973_v63  ;;  %v3374_v1 = vmul.f32 %v7312_v13, %v7714_v58  ;;  %v3403_v53 = vmul.f32 %v7296_v31, %v9674_v36  ;;  %v3424_v55 = vmul.f32 %v7307_v11, %v9675_v56  ;;  %v9679_v33 = vld [vmem:[#allocation50_spill] sm:$0xff]  ;;  %v7751_v36 = vld [vmem:[#allocation2 + $0x2c0] sm:$0xff] }
 0x2b4   : > { %4757 = vmatmul.mubr.f32.gmra.mrb[8].mxu1 %v3922_v60  ;;  %v2198_v3 = vadd.f32 %v2190_v40, %v2169_v20  ;;  %v3237_v0 = vadd.f32 %v3229_v57, %v3208_v32  ;;  %v3453_v6 = vmul.f32 %v7316_v12, %v9676_v43  ;;  %v3482_v16 = vmul.f32 %v7325_v44, %v9677_v51  ;;  %v7753_v56 = vld [vmem:[#allocation2 + $0x2c1] sm:$0xff] }
 0x2b5   : > { %v2031_v23 = vadd.f32 %v2023_v46, %v2002_v26  ;;  %v3432_v27 = vadd.f32 %v3424_v55, %v3403_v53  ;;  %v3511_v5 = vmul.f32 %v7334_v34, %v9678_v41  ;;  %v3540_v63 = vmul.f32 %v7338_v25, %v9679_v33  ;;  %9680 = vst [vmem:[#allocation65_spill] sm:$0xff] %v7751_v36  ;;  %v7759_v46 = vld [vmem:[#allocation2 + $0x2c2] sm:$0xff] }
 0x2b6   : > { %9681 = vst [vmem:[#allocation69_spill] sm:$0xff] %v7753_v56  ;;  %v2228_v40 = vadd.f32 %v2220_v2, %v2198_v3  ;;  %v3266_v57 = vadd.f32 %v3258_v21, %v3237_v0  ;;  %v3569_v60 = vmul.f32 %v7348_v62, %v7751_v36  ;;  %v3598_v20 = vmul.f32 %v7352_v8, %v7753_v56  ;;  %v9683_v2 = vld [vmem:[#allocation70_spill] sm:$0xff]  ;;  %v9684_v3 = vld [vmem:[#allocation71_spill] sm:$0xff]  ;;  %v9685_v56 = vld [vmem:[#allocation52_spill] sm:$0xff] }
 0x2b7   : > { %9682 = vst [vmem:[#allocation54_spill] sm:$0xff] %v7759_v46  ;;  %v2294_v32 = vadd.f32 %v2031_v23, %v1778_v9  ;;  %v3461_v26 = vadd.f32 %v3453_v6, %v3432_v27  ;;  %v3627_v53 = vmul.f32 %v7360_v61, %v7759_v46  ;;  %v3657_v55 = vmul.f32 %v7364_v30, %v9645_v18  ;;  %v9686_v9 = vld [vmem:[#allocation57_spill] sm:$0xff]  ;;  %v9687_v23 = vld [vmem:[#allocation58_spill] sm:$0xff]  ;;  %v7775_v51 = vld [vmem:[#allocation2 + $0x360] sm:$0xff] }
 0x2b8   : > { %v2257_v43 = vadd.f32 %v2249_v7, %v2228_v40  ;;  %v3295_v33 = vadd.f32 %v3287_v15, %v3266_v57  ;;  %v3678_v21 = vmul.f32 %v7370_v54, %v9683_v2  ;;  %v3707_v0 = vmul.f32 %v7372_v38, %v9684_v3  ;;  %v9688_v27 = vld [vmem:[#allocation62_spill] sm:$0xff]  ;;  %9689 = vst [vmem:[#allocation42_spill] sm:$0xff] %v7775_v51  ;;  %v9690_v40 = vld [vmem:[#allocation47_spill] sm:$0xff]  ;;  %v7779_v2 = vld [vmem:[#allocation2 + $0x361] sm:$0xff] }
 0x2b9   : > { %v3490_v36 = vadd.f32 %v3482_v16, %v3461_v26  ;;  %v3737_v41 = vmul.f32 %v7380_v47, %v9685_v56  ;;  %v3766_v6 = vmul.f32 %v7382_v14, %v9686_v9  ;;  %v3795_v46 = vmul.f32 %v9688_v27, %v9687_v23  ;;  %9691 = vst [vmem:[#allocation55_spill] sm:$0xff] %v7779_v2  ;;  %v7781_v16 = vld [vmem:[#allocation2 + $0x362] sm:$0xff]  ;;  %v9694_v23 = vld [vmem:[#allocation67_spill] sm:$0xff] }
 0x2ba   : > { %v2286_v18 = vadd.f32 %v2278_v19, %v2257_v43  ;;  %v3324_v7 = vadd.f32 %v3316_v50, %v3295_v33  ;;  %v3686_v15 = vadd.f32 %v3678_v21, %v3657_v55  ;;  %v3825_v57 = vmul.f32 %v9690_v40, %v7775_v51  ;;  %9692 = vst [vmem:[#allocation43_spill] sm:$0xff] %v7781_v16  ;;  %v9693_v9 = vld [vmem:[#allocation33_spill] sm:$0xff]  ;;  %v9695_v55 = vld [vmem:[#allocation68_spill] sm:$0xff] }
 0x2bb   : > { %v3519_v26 = vadd.f32 %v3511_v5, %v3490_v36  ;;  %v3854_v3 = vmul.f32 %v9630_v10, %v7779_v2  ;;  %v3883_v56 = vmul.f32 %v9693_v9, %v7781_v16  ;;  %v1547_v27 = vmul.f32 %v7254_v4, %v9694_v23  ;;  %v9696_v51 = vld [vmem:[#allocation45_spill] sm:$0xff]  ;;  %v9697_v5 = vld [vmem:[#allocation46_spill] sm:$0xff]  ;;  %v9698_v2 = vld [vmem:[#allocation56_spill] sm:$0xff] }
 0x2bc   : > { %v2302_v19 = vadd.f32 %v2294_v32, %v2286_v18  ;;  %v3353_v50 = vadd.f32 %v3345_v17, %v3324_v7  ;;  %v3715_v33 = vadd.f32 %v3707_v0, %v3686_v15  ;;  %v1568_v43 = vmul.f32 %v7264_v22, %v9695_v55  ;;  %v7798_v17 = vld [vmem:[#allocation2 + $0xf0] sm:$0xff]  ;;  %v9705_v55 = vld [vmem:[#allocation44_spill] sm:$0xff] }
 0x2bd   : > { %v3548_v21 = vadd.f32 %v3540_v63, %v3519_v26  ;;  %v1597_v40 = vmul.f32 %v7268_v49, %v9696_v51  ;;  %v1626_v36 = vmul.f32 %v7270_v29, %v9697_v5  ;;  %v1655_v10 = vmul.f32 %v7283_v52, %v9698_v2  ;;  %9699 = vst [vmem:[#allocation49_spill] sm:$0xff] %v7798_v17  ;;  %v7800_v0 = vld [vmem:[#allocation2 + $0xf1] sm:$0xff] }
 0x2be   : > { %v2310_v16 = vadd.f32 %v7588_v48, %v2302_v19  ;;  %v3382_v9 = vadd.f32 %v3374_v1, %v3353_v50  ;;  %v3745_v4 = vadd.f32 %v3737_v41, %v3715_v33  ;;  %v1576_v32 = vadd.f32 %v1568_v43, %v1547_v27  ;;  %9700 = vst [vmem:[#allocation61_spill] sm:$0xff] %v7800_v0  ;;  %v9701_v63 = vld [vmem:[#allocation39_spill] sm:$0xff]  ;;  %v9703_v19 = vld [vmem:[#allocation32_spill] sm:$0xff] }
 0x2bf   : > { %v3577_v22 = vadd.f32 %v3569_v60, %v3548_v21  ;;  %v1684_v23 = vmul.f32 %v7288_v37, %v9701_v63  ;;  %v1713_v51 = vmul.f32 %v7292_v42, %v7798_v17  ;;  %v1742_v18 = vmul.f32 %v7303_v59, %v7800_v0  ;;  %v7808_v7 = vld [vmem:[#allocation2 + $0xf2] sm:$0xff]  ;;  %v9704_v50 = vld [vmem:[#allocation60_spill] sm:$0xff] }
 0x2c0   : > { %9702 = vst [vmem:[#allocation34_spill] sm:$0xff] %v7808_v7  ;;  %v2318_v15 = vmax.f32 %v2310_v16, 0.0  ;;  %v3774_v1 = vadd.f32 %v3766_v6, %v3745_v4  ;;  %v1605_v41 = vadd.f32 %v1597_v40, %v1576_v32  ;;  %v1771_v27 = vmul.f32 %v7312_v13, %v7808_v7  ;;  %v9706_v17 = vld [vmem:[#allocation66_spill] sm:$0xff]  ;;  %v9707_v40 = vld [vmem:[#allocation63_spill] sm:$0xff]  ;;  %v7860_v7 = vld [vmem:[#allocation10] ss:$0 sm:$0xff] }
 0x2c1   : > { %v3606_v26 = vadd.f32 %v3598_v20, %v3577_v22  ;;  %v1800_v60 = vmul.f32 %v7296_v31, %v9703_v19  ;;  %v1821_v33 = vmul.f32 %v7307_v11, %v9704_v50  ;;  %v1850_v43 = vmul.f32 %v7316_v12, %v9705_v55  ;;  %v7822_v4 = vld [vmem:[#allocation2 + $0x190] sm:$0xff]  ;;  %v9709_v22 = vld [vmem:[#allocation64_spill] sm:$0xff] }
 0x2c2   : > { %4735 = vmatprep.mubr.f32.mxu0 %v2318_v15  ;;  %v3803_v21 = vadd.f32 %v3795_v46, %v3774_v1  ;;  %v1634_v0 = vadd.f32 %v1626_v36, %v1605_v41  ;;  %v1879_v6 = vmul.f32 %v7325_v44, %v9706_v17  ;;  %v1908_v16 = vmul.f32 %v7334_v34, %v9707_v40  ;;  %v7828_v55 = vld [vmem:[#allocation2 + $0x191] sm:$0xff] }
 0x2c3   : > { %9708 = vst [vmem:[#allocation51_spill] sm:$0xff] %v7822_v4  ;;  %v3635_v20 = vadd.f32 %v3627_v53, %v3606_v26  ;;  %v1829_v32 = vadd.f32 %v1821_v33, %v1800_v60  ;;  %v1937_v19 = vmul.f32 %v7338_v25, %v9709_v22  ;;  %v1966_v50 = vmul.f32 %v7348_v62, %v7822_v4  ;;  %v7830_v46 = vld [vmem:[#allocation2 + $0x192] sm:$0xff] }
 0x2c4   : > { %9710 = vst [vmem:[#allocation36_spill] sm:$0xff] %v7828_v55  ;;  %9711 = vst [vmem:[#allocation41_spill] sm:$0xff] %v7830_v46  ;;  %v3833_v36 = vadd.f32 %v3825_v57, %v3803_v21  ;;  %v1663_v15 = vadd.f32 %v1655_v10, %v1634_v0  ;;  %v1995_v1 = vmul.f32 %v7352_v8, %v7828_v55  ;;  %v9714_v55 = vld [vmem:[#allocation48_spill] sm:$0xff] }
 0x2c5   : > { %v2024_v41 = vmul.f32 %v7360_v61, %v7830_v46  ;;  %v3899_v53 = vadd.f32 %v3635_v20, %v3382_v9  ;;  %v1858_v26 = vadd.f32 %v1850_v43, %v1829_v32  ;;  %v2054_v60 = vmul.f32 %v7364_v30, %v9671_v35  ;;  %v9712_v43 = vld [vmem:[#allocation62_spill] sm:$0xff] }
 0x2c6   : > { %v2075_v33 = vmul.f32 %v7370_v54, %v9672_v45  ;;  %v3862_v4 = vadd.f32 %v3854_v3, %v3833_v36  ;;  %v1692_v22 = vadd.f32 %v1684_v23, %v1663_v15  ;;  %v2104_v57 = vmul.f32 %v7372_v38, %v9673_v24  ;;  %v7848_v32 = vld [vmem:[#allocation2 + $0x230] sm:$0xff]  ;;  %v9713_v36 = vld [vmem:[#allocation47_spill] sm:$0xff] }
 0x2c7   : > { %v2133_v10 = vmul.f32 %v7380_v47, %v7706_v39  ;;  %v1887_v0 = vadd.f32 %v1879_v6, %v1858_v26  ;;  %v2162_v9 = vmul.f32 %v7382_v14, %v7712_v28  ;;  %v2191_v20 = vmul.f32 %v9712_v43, %v7714_v58  ;;  %v7850_v46 = vld [vmem:[#allocation2 + $0x231] sm:$0xff] }
 0x2c8   : > { %v2083_v21 = vadd.f32 %v2075_v33, %v2054_v60  ;;  %v3891_v3 = vadd.f32 %v3883_v56, %v3862_v4  ;;  %v1721_v23 = vadd.f32 %v1713_v51, %v1692_v22  ;;  %v2221_v15 = vmul.f32 %v9713_v36, %v7848_v32  ;;  %v7856_v6 = vld [vmem:[#allocation2 + $0x232] sm:$0xff]  ;;  %v9715_v33 = vld [vmem:[#allocation33_spill] sm:$0xff]  ;;  %v7864_v4 = vld [vmem:[#allocation10 + $0x1] ss:$0 sm:$0xff] }
 0x2c9   : > { %v2250_v40 = vmul.f32 %v9714_v55, %v7850_v46  ;;  %v1916_v26 = vadd.f32 %v1908_v16, %v1887_v0  ;;  %v2279_v17 = vmul.f32 %v9715_v33, %v7856_v6  ;;  %v3151_v63 = vmul.f32 %v7860_v7, %v9671_v35 }
 0x2ca   : > { %v2112_v60 = vadd.f32 %v2104_v57, %v2083_v21  ;;  %v3907_v56 = vadd.f32 %v3899_v53, %v3891_v3  ;;  %v1750_v51 = vadd.f32 %v1742_v18, %v1721_v23  ;;  %v3172_v22 = vmul.f32 %v7864_v4, %v9672_v45 }
 0x2cb   : > { %v3201_v2 = vmul.f32 %v7268_v49, %v9673_v24  ;;  %v1945_v16 = vadd.f32 %v1937_v19, %v1916_v26  ;;  %v3230_v0 = vmul.f32 %v7270_v29, %v7706_v39  ;;  %v3259_v21 = vmul.f32 %v7283_v52, %v7712_v28 }
 0x2cc   : > { %v2141_v57 = vadd.f32 %v2133_v10, %v2112_v60  ;;  %v3915_v35 = vadd.f32 %v7588_v48, %v3907_v56  ;;  %v1779_v53 = vadd.f32 %v1771_v27, %v1750_v51  ;;  %v3180_v18 = vadd.f32 %v3172_v22, %v3151_v63  ;;  %v9716_v10 = vld [vmem:[#allocation38_spill] sm:$0xff]  ;;  %v9717_v60 = vld [vmem:[#allocation35_spill] sm:$0xff]  ;;  %v9719_v56 = vld [vmem:[#allocation65_spill] sm:$0xff] }
 0x2cd   : > { %v3288_v3 = vmul.f32 %v7288_v37, %v7714_v58  ;;  %v1974_v23 = vadd.f32 %v1966_v50, %v1945_v16  ;;  %v3317_v49 = vmul.f32 %v7292_v42, %v7848_v32  ;;  %v3346_v24 = vmul.f32 %v7303_v59, %v7850_v46  ;;  %v9718_v50 = vld [vmem:[#allocation50_spill] sm:$0xff] }
 0x2ce   : > { %v2170_v45 = vadd.f32 %v2162_v9, %v2141_v57  ;;  %v3923_v19 = vmax.f32 %v3915_v35, 0.0  ;;  %v3209_v29 = vadd.f32 %v3201_v2, %v3180_v18  ;;  %v3375_v52 = vmul.f32 %v7312_v13, %v7856_v6  ;;  %v9720_v2 = vld [vmem:[#allocation69_spill] sm:$0xff]  ;;  %v9721_v13 = vld [vmem:[#allocation54_spill] sm:$0xff] }
 0x2cf   : > { %v3404_v27 = vmul.f32 %v7296_v31, %v9716_v10  ;;  %v2003_v63 = vadd.f32 %v1995_v1, %v1974_v23  ;;  %v3425_v37 = vmul.f32 %v7307_v11, %v9717_v60  ;;  %v3454_v9 = vmul.f32 %v7316_v12, %v9718_v50  ;;  %v7895_v31 = vld [vmem:[#allocation2 + $0x2d0] sm:$0xff]  ;;  %v9729_v10 = vld [vmem:[#allocation55_spill] sm:$0xff] }
 0x2d0   : > { %v2199_v26 = vadd.f32 %v2191_v20, %v2170_v45  ;;  %4759 = vmatprep.mubr.f32.mxu1 %v3923_v19  ;;  %v3238_v42 = vadd.f32 %v3230_v0, %v3209_v29  ;;  %v3483_v59 = vmul.f32 %v7325_v44, %v9719_v56  ;;  %v3512_v51 = vmul.f32 %v7334_v34, %v9720_v2  ;;  %v7899_v12 = vld [vmem:[#allocation2 + $0x2d1] sm:$0xff] }
 0x2d1   : > { %v3541_v22 = vmul.f32 %v7338_v25, %v9721_v13  ;;  %9722 = vst [vmem:[#allocation53_spill] sm:$0xff] %v7895_v31  ;;  %v2032_v1 = vadd.f32 %v2024_v41, %v2003_v63  ;;  %v3433_v16 = vadd.f32 %v3425_v37, %v3404_v27  ;;  %v3570_v11 = vmul.f32 %v7348_v62, %v7895_v31  ;;  %v7901_v57 = vld [vmem:[#allocation2 + $0x2d2] sm:$0xff]  ;;  %v9725_v25 = vld [vmem:[#allocation52_spill] sm:$0xff]  ;;  %v9726_v62 = vld [vmem:[#allocation57_spill] sm:$0xff] }
 0x2d2   : > { %v2229_v20 = vadd.f32 %v2221_v15, %v2199_v26  ;;  %9723 = vst [vmem:[#allocation37_spill] sm:$0xff] %v7899_v12  ;;  %9724 = vst [vmem:[#allocation40_spill] sm:$0xff] %v7901_v57  ;;  %v3267_v0 = vadd.f32 %v3259_v21, %v3238_v42  ;;  %v7905_v44 = vmul.f32 %v7352_v8, %v7899_v12  ;;  %v9727_v19 = vld [vmem:[#allocation58_spill] sm:$0xff]  ;;  %v9734_v42 = vld [vmem:[#allocation56_spill] sm:$0xff] }
 0x2d3   : > { %v7909_v34 = vmul.f32 %v7360_v61, %v7901_v57  ;;  %v3658_v41 = vmul.f32 %v7364_v30, %v9725_v25  ;;  %v2295_v35 = vadd.f32 %v2032_v1, %v1779_v53  ;;  %v3462_v18 = vadd.f32 %v3454_v9, %v3433_v16  ;;  %v9728_v29 = vld [vmem:[#allocation42_spill] sm:$0xff]  ;;  %v9730_v30 = vld [vmem:[#allocation43_spill] sm:$0xff]  ;;  %v7947_v1 = vld [vmem:[#allocation10 + $0x3] ss:$0 sm:$0xff] }
 0x2d4   : > { %v2258_v15 = vadd.f32 %v2250_v40, %v2229_v20  ;;  %v3679_v23 = vmul.f32 %v7370_v54, %v9726_v62  ;;  %v3296_v45 = vadd.f32 %v3288_v3, %v3267_v0  ;;  %v3708_v21 = vmul.f32 %v7372_v38, %v9727_v19  ;;  %v7923_v53 = vld [vmem:[#allocation2 + $0x370] sm:$0xff]  ;;  %v9736_v20 = vld [vmem:[#allocation49_spill] sm:$0xff]  ;;  %v7952_v25 = vld [vmem:[#allocation10 + $0x4] ss:$0 sm:$0xff] }
 0x2d5   : > { %v3738_v8 = vmul.f32 %v7380_v47, %v9728_v29  ;;  %v3767_v61 = vmul.f32 %v7382_v14, %v9729_v10  ;;  %v3491_v63 = vadd.f32 %v3483_v59, %v3462_v18  ;;  %v3796_v40 = vmul.f32 %v9712_v43, %v9730_v30  ;;  %9731 = vst [vmem:[#allocation59_spill] sm:$0xff] %v7923_v53  ;;  %v7925_v60 = vld [vmem:[#allocation2 + $0x371] sm:$0xff]  ;;  %v7943_v59 = vld [vmem:[#allocation10 + $0x2] ss:$0 sm:$0xff] }
 0x2d6   : > { %v2287_v27 = vadd.f32 %v2279_v17, %v2258_v15  ;;  %v3687_v26 = vadd.f32 %v3679_v23, %v3658_v41  ;;  %9732 = vst [vmem:[#allocation70_spill] sm:$0xff] %v7925_v60  ;;  %v7927_v54 = vld [vmem:[#allocation2 + $0x372] sm:$0xff]  ;;  %v3325_v3 = vadd.f32 %v3317_v49, %v3296_v45  ;;  %v3826_v38 = vmul.f32 %v9713_v36, %v7923_v53  ;;  %v7956_v41 = vld [vmem:[#allocation2 + $0x100] sm:$0xff]  ;;  %v7958_v15 = vpop.f32.mrb[0].mxu0 }
 0x2d7   : > { %9733 = vst [vmem:[#allocation71_spill] sm:$0xff] %v7927_v54  ;;  %v7933_v47 = vmul.f32 %v9714_v55, %v7925_v60  ;;  %v7937_v14 = vmul.f32 %v9715_v33, %v7927_v54  ;;  %v3520_v43 = vadd.f32 %v3512_v51, %v3491_v63  ;;  %v1548_v50 = vmul.f32 %v7860_v7, %v9697_v5  ;;  %v9735_v36 = vld [vmem:[#allocation39_spill] sm:$0xff]  ;;  %v9738_v5 = vld [vmem:[#allocation61_spill] sm:$0xff]  ;;  %v7962_v23 = vld [vmem:[#allocation10 + $0x5] ss:$0 sm:$0xff] }
 0x2d8   : > { %v2303_v17 = vadd.f32 %v2295_v35, %v2287_v27  ;;  %v3716_v37 = vadd.f32 %v3708_v21, %v3687_v26  ;;  %v3354_v9 = vadd.f32 %v3346_v24, %v3325_v3  ;;  %v1569_v49 = vmul.f32 %v7864_v4, %v9734_v42  ;;  %9737 = vst [vmem:[#allocation67_spill] sm:$0xff] %v7952_v25  ;;  %v7960_v35 = vpop.f32.mrb[0].mxu1  ;;  %v9742_v45 = vld [vmem:[#allocation34_spill] sm:$0xff]  ;;  %v7974_v27 = vpop.f32.mrb[1].mxu0  ;;  %v7988_v42 = vld [vmem:[#allocation10 + $0x8] ss:$0 sm:$0xff] }
 0x2d9   : > { %v1598_v55 = vmul.f32 %v7943_v59, %v9735_v36  ;;  %v1627_v33 = vmul.f32 %v7947_v1, %v9736_v20  ;;  %v3549_v16 = vadd.f32 %v3541_v22, %v3520_v43  ;;  %v1656_v24 = vmul.f32 %v7952_v25, %v9738_v5  ;;  %9739 = vst [vmem:[#allocation68_spill] sm:$0xff] %v7956_v41  ;;  %v7966_v22 = vld [vmem:[#allocation10 + $0x6] ss:$0 sm:$0xff]  ;;  %v7976_v63 = vpop.f32.mrb[1].mxu1  ;;  %v7994_v36 = vld [vmem:[#allocation10 + $0x9] ss:$0 sm:$0xff] }
 0x2da   : > { %v2311_v51 = vadd.f32 %v7588_v48, %v2303_v17  ;;  %v3746_v0 = vadd.f32 %v3738_v8, %v3716_v37  ;;  %9740 = vst [vmem:[#allocation45_spill] sm:$0xff] %v7958_v15  ;;  %9741 = vst [vmem:[#allocation46_spill] sm:$0xff] %v7960_v35  ;;  %v3383_v18 = vadd.f32 %v3375_v52, %v3354_v9  ;;  %v7972_v8 = vld [vmem:[#allocation2 + $0x101] sm:$0xff]  ;;  %v8009_v15 = vld [vmem:[#allocation10 + $0xc] ss:$0 sm:$0xff] }
 0x2db   : > { %v1577_v62 = vadd.f32 %v1569_v49, %v1548_v50  ;;  %v1685_v19 = vmul.f32 %v7962_v23, %v9742_v45  ;;  %v7970_v21 = vmul.f32 %v7966_v22, %v7956_v41  ;;  %9743 = vst [vmem:[#allocation32_spill] sm:$0xff] %v7972_v8  ;;  %9744 = vst [vmem:[#allocation60_spill] sm:$0xff] %v7974_v27  ;;  %v7978_v17 = vld [vmem:[#allocation10 + $0x7] ss:$0 sm:$0xff]  ;;  %v7986_v50 = vpop.f32.mrb[2].mxu0 }
 0x2dc   : > { %9745 = vst [vmem:[#allocation44_spill] sm:$0xff] %v7976_v63  ;;  %v2319_v26 = vmax.f32 %v2311_v51, 0.0  ;;  %v3578_v52 = vadd.f32 %v3570_v11, %v3549_v16  ;;  %v3775_v3 = vadd.f32 %v3767_v61, %v3746_v0  ;;  %v7982_v43 = vmul.f32 %v7978_v17, %v7972_v8  ;;  %v7984_v37 = vld [vmem:[#allocation2 + $0x102] sm:$0xff]  ;;  %9747 = vst [vmem:[#allocation47_spill] sm:$0xff] %v7986_v50  ;;  %v9748_v11 = vld [vmem:[#allocation66_spill] sm:$0xff]  ;;  %v8002_v63 = vpop.f32.mrb[3].mxu0 }
 0x2dd   : > { %9746 = vst [vmem:[#allocation62_spill] sm:$0xff] %v7984_v37  ;;  %v1606_v9 = vadd.f32 %v1598_v55, %v1577_v62  ;;  %v7992_v49 = vmul.f32 %v7988_v42, %v7984_v37  ;;  %v1801_v61 = vmul.f32 %v7994_v36, %v9748_v11  ;;  %v7998_v51 = vld [vmem:[#allocation10 + $0xa] ss:$0 sm:$0xff]  ;;  %v9749_v16 = vld [vmem:[#allocation63_spill] sm:$0xff]  ;;  %9750 = vst [vmem:[#allocation48_spill] sm:$0xff] %v8002_v63 }
 0x2de   : > { %v1822_v0 = vmul.f32 %v7998_v51, %v9749_v16  ;;  %4736 = vmatmul.mubr.f32.gmra.mrb[10].mxu0 %v2319_v26  ;;  %v3607_v55 = vadd.f32 %v7905_v44, %v3578_v52  ;;  %v3804_v62 = vadd.f32 %v3796_v40, %v3775_v3  ;;  %v8005_v50 = vld [vmem:[#allocation10 + $0xb] ss:$0 sm:$0xff]  ;;  %v9751_v27 = vld [vmem:[#allocation64_spill] sm:$0xff]  ;;  %v9752_v37 = vld [vmem:[#allocation51_spill] sm:$0xff]  ;;  %v3152_v10 = vmul.f32 %v7860_v7, %v7706_v39 }
 0x2df   : > { %v1851_v35 = vmul.f32 %v8005_v50, %v9751_v27  ;;  %v1880_v11 = vmul.f32 %v8009_v15, %v9752_v37  ;;  %v1635_v8 = vadd.f32 %v1627_v33, %v1606_v9  ;;  %v8013_v45 = vld [vmem:[#allocation10 + $0xd] ss:$0 sm:$0xff]  ;;  %v9753_v16 = vld [vmem:[#allocation36_spill] sm:$0xff]  ;;  %v8017_v63 = vld [vmem:[#allocation10 + $0xe] ss:$0 sm:$0xff] }
 0x2e0   : > { %v1830_v41 = vadd.f32 %v1822_v0, %v1801_v61  ;;  %v1909_v26 = vmul.f32 %v8013_v45, %v9753_v16  ;;  %v9754_v44 = vld [vmem:[#allocation41_spill] sm:$0xff]  ;;  %v8021_v52 = vld [vmem:[#allocation2 + $0x1a0] sm:$0xff]  ;;  %v3636_v3 = vadd.f32 %v7909_v34, %v3607_v55  ;;  %v3834_v5 = vadd.f32 %v3826_v38, %v3804_v62  ;;  %v8030_v9 = vld [vmem:[#allocation10 + $0x10] ss:$0 sm:$0xff] }
 0x2e1   : > { %v1938_v40 = vmul.f32 %v8017_v63, %v9754_v44  ;;  %9755 = vst [vmem:[#allocation33_spill] sm:$0xff] %v8021_v52  ;;  %v8023_v27 = vld [vmem:[#allocation2 + $0x1a1] sm:$0xff]  ;;  %v8026_v37 = vld [vmem:[#allocation10 + $0xf] ss:$0 sm:$0xff]  ;;  %v1664_v44 = vadd.f32 %v1656_v24, %v1635_v8  ;;  %v8036_v20 = vld [vmem:[#allocation10 + $0x11] ss:$0 sm:$0xff] }
 0x2e2   : > { %9756 = vst [vmem:[#allocation38_spill] sm:$0xff] %v8023_v27  ;;  %v1967_v33 = vmul.f32 %v8026_v37, %v8021_v52  ;;  %v1996_v61 = vmul.f32 %v8030_v9, %v8023_v27  ;;  %v8034_v0 = vld [vmem:[#allocation2 + $0x1a2] sm:$0xff]  ;;  %v1859_v16 = vadd.f32 %v1851_v35, %v1830_v41  ;;  %v8040_v38 = vld [vmem:[#allocation10 + $0x12] ss:$0 sm:$0xff]  ;;  %v3863_v62 = vadd.f32 %v7933_v47, %v3834_v5  ;;  %v8045_v54 = vld [vmem:[#allocation10 + $0x13] ss:$0 sm:$0xff] }
 0x2e3   : > { %9757 = vst [vmem:[#allocation35_spill] sm:$0xff] %v8034_v0  ;;  %v2025_v34 = vmul.f32 %v8036_v20, %v8034_v0  ;;  %v2055_v55 = vmul.f32 %v8040_v38, %v7706_v39  ;;  %v3900_v52 = vadd.f32 %v3636_v3, %v3383_v18  ;;  %9758 = vst [vmem:[#allocation50_spill] sm:$0xff] %v8045_v54  ;;  %v8049_v24 = vld [vmem:[#allocation10 + $0x14] ss:$0 sm:$0xff]  ;;  %v8053_v0 = vld [vmem:[#allocation10 + $0x15] ss:$0 sm:$0xff] }
 0x2e4   : > { %v2076_v27 = vmul.f32 %v8045_v54, %v7712_v28  ;;  %9759 = vst [vmem:[#allocation65_spill] sm:$0xff] %v8049_v24  ;;  %v2105_v41 = vmul.f32 %v8049_v24, %v7714_v58  ;;  %v1693_v35 = vadd.f32 %v1685_v19, %v1664_v44  ;;  %v1888_v8 = vadd.f32 %v1880_v11, %v1859_v16  ;;  %v8057_v53 = vld [vmem:[#allocation10 + $0x16] ss:$0 sm:$0xff]  ;;  %v8061_v5 = vld [vmem:[#allocation2 + $0x240] sm:$0xff]  ;;  %v8063_v18 = vpop.f32.mrb[2].mxu1 }
 0x2e5   : > { %9760 = vst [vmem:[#allocation69_spill] sm:$0xff] %v8053_v0  ;;  %v2134_v60 = vmul.f32 %v8053_v0, %v7848_v32  ;;  %9761 = vst [vmem:[#allocation54_spill] sm:$0xff] %v8057_v53  ;;  %v2163_v47 = vmul.f32 %v8057_v53, %v7850_v46  ;;  %v3892_v3 = vadd.f32 %v7937_v14, %v3863_v62  ;;  %v8066_v24 = vld [vmem:[#allocation10 + $0x17] ss:$0 sm:$0xff]  ;;  %v8070_v11 = vld [vmem:[#allocation10 + $0x18] ss:$0 sm:$0xff] }
 0x2e6   : > { %9762 = vst [vmem:[#allocation52_spill] sm:$0xff] %v8063_v18  ;;  %v2084_v30 = vadd.f32 %v2076_v27, %v2055_v55  ;;  %9763 = vst [vmem:[#allocation57_spill] sm:$0xff] %v8066_v24  ;;  %v2192_v19 = vmul.f32 %v8066_v24, %v7856_v6  ;;  %v2222_v16 = vmul.f32 %v8070_v11, %v8061_v5  ;;  %v8074_v44 = vld [vmem:[#allocation2 + $0x241] sm:$0xff]  ;;  %v8078_v0 = vpop.f32.mrb[3].mxu1  ;;  %v8081_v27 = vld [vmem:[#allocation10 + $0x19] ss:$0 sm:$0xff] }
 0x2e7   : > { %9764 = vst [vmem:[#allocation58_spill] sm:$0xff] %v8070_v11  ;;  %v8076_v53 = vld [vmem:[#allocation2 + $0x242] sm:$0xff]  ;;  %9766 = vst [vmem:[#allocation56_spill] sm:$0xff] %v8078_v0  ;;  %v1722_v18 = vadd.f32 %v7970_v21, %v1693_v35  ;;  %v1917_v14 = vadd.f32 %v1909_v26, %v1888_v8  ;;  %v2251_v55 = vmul.f32 %v8081_v27, %v8074_v44  ;;  %v8085_v62 = vld [vmem:[#allocation10 + $0x1a] ss:$0 sm:$0xff] }
 0x2e8   : > { %9765 = vst [vmem:[#allocation42_spill] sm:$0xff] %v8076_v53  ;;  %9767 = vst [vmem:[#allocation39_spill] sm:$0xff] %v8081_v27  ;;  %v2280_v24 = vmul.f32 %v8085_v62, %v8076_v53  ;;  %v3908_v11 = vadd.f32 %v3900_v52, %v3892_v3  ;;  %v2113_v54 = vadd.f32 %v2105_v41, %v2084_v30 }
 0x2e9   : > { %9768 = vst [vmem:[#allocation66_spill] sm:$0xff] %v8085_v62  ;;  %v3173_v0 = vmul.f32 %v7864_v4, %v7712_v28  ;;  %v1751_v21 = vadd.f32 %v7982_v43, %v1722_v18  ;;  %v1946_v26 = vadd.f32 %v1938_v40, %v1917_v14  ;;  %v3202_v35 = vmul.f32 %v7943_v59, %v7714_v58 }
 0x2ea   : > { %v3231_v8 = vmul.f32 %v7947_v1, %v7848_v32  ;;  %v3916_v27 = vadd.f32 %v7588_v48, %v3908_v11  ;;  %v2142_v62 = vadd.f32 %v2134_v60, %v2113_v54  ;;  %v3260_v30 = vmul.f32 %v7952_v25, %v7850_v46 }
 0x2eb   : > { %v3181_v52 = vadd.f32 %v3173_v0, %v3152_v10  ;;  %v1780_v39 = vadd.f32 %v7992_v49, %v1751_v21  ;;  %v1975_v41 = vadd.f32 %v1967_v33, %v1946_v26  ;;  %v3289_v28 = vmul.f32 %v7962_v23, %v7856_v6 }
 0x2ec   : > { %v3318_v43 = vmul.f32 %v7966_v22, %v8061_v5  ;;  %v3924_v58 = vmax.f32 %v3916_v27, 0.0  ;;  %v2171_v40 = vadd.f32 %v2163_v47, %v2142_v62  ;;  %v3347_v3 = vmul.f32 %v7978_v17, %v8074_v44  ;;  %v8122_v62 = vld [vmem:[#allocation2 + $0x2e0] sm:$0xff] }
 0x2ed   : > { %v3210_v18 = vadd.f32 %v3202_v35, %v3181_v52  ;;  %v2004_v60 = vadd.f32 %v1996_v61, %v1975_v41  ;;  %v3376_v10 = vmul.f32 %v7988_v42, %v8076_v53  ;;  %v3405_v54 = vmul.f32 %v7994_v36, %v9719_v56  ;;  %9769 = vst [vmem:[#allocation63_spill] sm:$0xff] %v8122_v62 }
 0x2ee   : > { %v3426_v49 = vmul.f32 %v7998_v51, %v9720_v2  ;;  %4760 = vmatmul.mubr.f32.gmra.mrb[10].mxu1 %v3924_v58  ;;  %v2200_v33 = vadd.f32 %v2192_v19, %v2171_v40  ;;  %v3455_v47 = vmul.f32 %v8005_v50, %v9721_v13  ;;  %v3484_v11 = vmul.f32 %v8009_v15, %v7895_v31  ;;  %v8124_v2 = vld [vmem:[#allocation2 + $0x2e1] sm:$0xff] }
 0x2ef   : > { %v3239_v0 = vadd.f32 %v3231_v8, %v3210_v18  ;;  %v2033_v14 = vadd.f32 %v2025_v34, %v2004_v60  ;;  %v3513_v27 = vmul.f32 %v8013_v45, %v7899_v12  ;;  %v3542_v56 = vmul.f32 %v8017_v63, %v7901_v57  ;;  %9770 = vst [vmem:[#allocation64_spill] sm:$0xff] %v8124_v2  ;;  %v8130_v34 = vld [vmem:[#allocation2 + $0x2e2] sm:$0xff]  ;;  %v9774_v60 = vld [vmem:[#allocation43_spill] sm:$0xff] }
 0x2f0   : > { %v3434_v61 = vadd.f32 %v3426_v49, %v3405_v54  ;;  %v2230_v19 = vadd.f32 %v2222_v16, %v2200_v33  ;;  %v3571_v13 = vmul.f32 %v8026_v37, %v8122_v62  ;;  %v3600_v26 = vmul.f32 %v8030_v9, %v8124_v2  ;;  %9771 = vst [vmem:[#allocation72_spill] sm:$0xff] %v8130_v34  ;;  %v9772_v16 = vld [vmem:[#allocation55_spill] sm:$0xff]  ;;  %v9775_v54 = vld [vmem:[#allocation65_spill] sm:$0xff]  ;;  %v8146_v12 = vld [vmem:[#allocation2 + $0x380] sm:$0xff] }
 0x2f1   : > { %v3268_v21 = vadd.f32 %v3260_v30, %v3239_v0  ;;  %v2296_v35 = vadd.f32 %v2033_v14, %v1780_v39  ;;  %v3629_v52 = vmul.f32 %v8036_v20, %v8130_v34  ;;  %v3659_v41 = vmul.f32 %v8040_v38, %v9728_v29  ;;  %v9773_v30 = vld [vmem:[#allocation50_spill] sm:$0xff]  ;;  %v9776_v0 = vld [vmem:[#allocation59_spill] sm:$0xff]  ;;  %v9777_v2 = vld [vmem:[#allocation69_spill] sm:$0xff]  ;;  %9782 = vst [vmem:[#allocation55_spill] sm:$0xff] %v8146_v12 }
 0x2f2   : > { %v3463_v8 = vadd.f32 %v3455_v47, %v3434_v61  ;;  %v2259_v58 = vadd.f32 %v2251_v55, %v2230_v19  ;;  %v3680_v18 = vmul.f32 %v9773_v30, %v9772_v16  ;;  %v3709_v49 = vmul.f32 %v9775_v54, %v9774_v60  ;;  %v9778_v39 = vld [vmem:[#allocation70_spill] sm:$0xff]  ;;  %v9780_v61 = vld [vmem:[#allocation71_spill] sm:$0xff]  ;;  %v9781_v34 = vld [vmem:[#allocation57_spill] sm:$0xff] }
 0x2f3   : > { %v3297_v40 = vadd.f32 %v3289_v28, %v3268_v21  ;;  %v3739_v62 = vmul.f32 %v9777_v2, %v9776_v0  ;;  %v9779_v47 = vld [vmem:[#allocation54_spill] sm:$0xff]  ;;  %v3797_v57 = vmul.f32 %v9781_v34, %v9780_v61  ;;  %v8150_v16 = vld [vmem:[#allocation2 + $0x381] sm:$0xff]  ;;  %v9786_v60 = vld [vmem:[#allocation39_spill] sm:$0xff] }
 0x2f4   : > { %v3492_v33 = vadd.f32 %v3484_v11, %v3463_v8  ;;  %v3768_v14 = vmul.f32 %v9779_v47, %v9778_v39  ;;  %v2288_v29 = vadd.f32 %v2280_v24, %v2259_v58  ;;  %v3688_v28 = vadd.f32 %v3680_v18, %v3659_v41  ;;  %v9783_v19 = vld [vmem:[#allocation58_spill] sm:$0xff]  ;;  %9784 = vst [vmem:[#allocation50_spill] sm:$0xff] %v8150_v16  ;;  %v8152_v11 = vld [vmem:[#allocation2 + $0x382] sm:$0xff] }
 0x2f5   : > { %v3326_v55 = vadd.f32 %v3318_v43, %v3297_v40  ;;  %v3827_v21 = vmul.f32 %v9783_v19, %v8146_v12  ;;  %9785 = vst [vmem:[#allocation43_spill] sm:$0xff] %v8152_v11  ;;  %v3856_v0 = vmul.f32 %v9786_v60, %v8150_v16  ;;  %v9787_v39 = vld [vmem:[#allocation66_spill] sm:$0xff]  ;;  %v9788_v61 = vld [vmem:[#allocation49_spill] sm:$0xff]  ;;  %v9792_v16 = vld [vmem:[#allocation32_spill] sm:$0xff] }
 0x2f6   : > { %v3521_v8 = vadd.f32 %v3513_v27, %v3492_v33  ;;  %v3885_v31 = vmul.f32 %v9787_v39, %v8152_v11  ;;  %v1549_v34 = vmul.f32 %v7860_v7, %v9788_v61  ;;  %v2304_v24 = vadd.f32 %v2296_v35, %v2288_v29  ;;  %v9789_v58 = vld [vmem:[#allocation61_spill] sm:$0xff]  ;;  %v9790_v12 = vld [vmem:[#allocation34_spill] sm:$0xff]  ;;  %v9791_v27 = vld [vmem:[#allocation68_spill] sm:$0xff] }
 0x2f7   : > { %v3355_v43 = vadd.f32 %v3347_v3, %v3326_v55  ;;  %v3717_v41 = vadd.f32 %v3709_v49, %v3688_v28  ;;  %v1570_v40 = vmul.f32 %v7864_v4, %v9789_v58  ;;  %v1599_v19 = vmul.f32 %v7943_v59, %v9790_v12  ;;  %v8169_v3 = vld [vmem:[#allocation2 + $0x110] sm:$0xff] }
 0x2f8   : > { %v3550_v18 = vadd.f32 %v3542_v56, %v3521_v8  ;;  %v1628_v33 = vmul.f32 %v7947_v1, %v9791_v27  ;;  %v1657_v60 = vmul.f32 %v7952_v25, %v9792_v16  ;;  %v2312_v11 = vadd.f32 %v7588_v48, %v2304_v24  ;;  %9793 = vst [vmem:[#allocation65_spill] sm:$0xff] %v8169_v3  ;;  %v8171_v49 = vld [vmem:[#allocation2 + $0x111] sm:$0xff] }
 0x2f9   : > { %v3384_v39 = vadd.f32 %v3376_v10, %v3355_v43  ;;  %v3747_v61 = vadd.f32 %v3739_v62, %v3717_v41  ;;  %v1578_v35 = vadd.f32 %v1570_v40, %v1549_v34  ;;  %9794 = vst [vmem:[#allocation69_spill] sm:$0xff] %v8171_v49  ;;  %v9795_v56 = vld [vmem:[#allocation62_spill] sm:$0xff]  ;;  %v1715_v12 = vmul.f32 %v7966_v22, %v8169_v3  ;;  %v9797_v43 = vld [vmem:[#allocation51_spill] sm:$0xff]  ;;  %v9798_v41 = vld [vmem:[#allocation36_spill] sm:$0xff] }
 0x2fa   : > { %v3579_v29 = vadd.f32 %v3571_v13, %v3550_v18  ;;  %v1686_v55 = vmul.f32 %v7962_v23, %v9795_v56  ;;  %v1744_v28 = vmul.f32 %v7978_v17, %v8171_v49  ;;  %v8179_v8 = vld [vmem:[#allocation2 + $0x112] sm:$0xff]  ;;  %v2320_v48 = vmax.f32 %v2312_v11, 0.0  ;;  %v9799_v40 = vld [vmem:[#allocation41_spill] sm:$0xff] }
 0x2fb   : > { %9796 = vst [vmem:[#allocation54_spill] sm:$0xff] %v8179_v8  ;;  %v3776_v10 = vadd.f32 %v3768_v14, %v3747_v61  ;;  %v1607_v62 = vadd.f32 %v1599_v19, %v1578_v35  ;;  %v1773_v34 = vmul.f32 %v7988_v42, %v8179_v8  ;;  %v1802_v13 = vmul.f32 %v7994_v36, %v9797_v43  ;;  %v9800_v56 = vld [vmem:[#allocation33_spill] sm:$0xff]  ;;  %v9801_v19 = vld [vmem:[#allocation38_spill] sm:$0xff] }
 0x2fc   : > { %v3608_v24 = vadd.f32 %v3600_v26, %v3579_v29  ;;  %v1823_v58 = vmul.f32 %v7998_v51, %v9798_v41  ;;  %v1852_v18 = vmul.f32 %v8005_v50, %v9799_v40  ;;  %4738 = vmatprep.mubr.f32.mxu0 %v2320_v48  ;;  %v1881_v14 = vmul.f32 %v8009_v15, %v9800_v56  ;;  %v8193_v61 = vld [vmem:[#allocation2 + $0x1b0] sm:$0xff]  ;;  %v9803_v29 = vld [vmem:[#allocation35_spill] sm:$0xff] }
 0x2fd   : > { %v3805_v49 = vadd.f32 %v3797_v57, %v3776_v10  ;;  %v1636_v3 = vadd.f32 %v1628_v33, %v1607_v62  ;;  %v1910_v11 = vmul.f32 %v8013_v45, %v9801_v19  ;;  %9802 = vst [vmem:[#allocation49_spill] sm:$0xff] %v8193_v61  ;;  %v1939_v43 = vmul.f32 %v8017_v63, %v9803_v29  ;;  %v8199_v40 = vld [vmem:[#allocation2 + $0x1b1] sm:$0xff] }
 0x2fe   : > { %v3637_v26 = vadd.f32 %v3629_v52, %v3608_v24  ;;  %v1831_v35 = vadd.f32 %v1823_v58, %v1802_v13  ;;  %v1968_v41 = vmul.f32 %v8026_v37, %v8193_v61  ;;  %9804 = vst [vmem:[#allocation61_spill] sm:$0xff] %v8199_v40  ;;  %v8201_v57 = vld [vmem:[#allocation2 + $0x1b2] sm:$0xff]  ;;  %v1997_v10 = vmul.f32 %v8030_v9, %v8199_v40 }
 0x2ff   : > { %9805 = vst [vmem:[#allocation34_spill] sm:$0xff] %v8201_v57  ;;  %v3835_v33 = vadd.f32 %v3827_v21, %v3805_v49  ;;  %v1665_v48 = vadd.f32 %v1657_v60, %v1636_v3  ;;  %v2026_v62 = vmul.f32 %v8036_v20, %v8201_v57  ;;  %v2056_v13 = vmul.f32 %v8040_v38, %v7848_v32  ;;  %v8221_v57 = vld [vmem:[#allocation2 + $0x251] sm:$0xff] }
 0x300   : > { %v3901_v52 = vadd.f32 %v3637_v26, %v3384_v39  ;;  %v1860_v24 = vadd.f32 %v1852_v18, %v1831_v35  ;;  %v2077_v58 = vmul.f32 %v9773_v30, %v7850_v46  ;;  %v2106_v21 = vmul.f32 %v9775_v54, %v7856_v6  ;;  %v9806_v18 = vld [vmem:[#allocation57_spill] sm:$0xff]  ;;  %v8219_v35 = vld [vmem:[#allocation2 + $0x250] sm:$0xff]  ;;  %9808 = vst [vmem:[#allocation36_spill] sm:$0xff] %v8221_v57  ;;  %v9810_v40 = vld [vmem:[#allocation39_spill] sm:$0xff] }
 0x301   : > { %v3864_v61 = vadd.f32 %v3856_v0, %v3835_v33  ;;  %v1694_v29 = vadd.f32 %v1686_v55, %v1665_v48  ;;  %v2135_v60 = vmul.f32 %v9777_v2, %v8061_v5  ;;  %v2164_v39 = vmul.f32 %v9779_v47, %v8074_v44  ;;  %9807 = vst [vmem:[#allocation51_spill] sm:$0xff] %v8219_v35  ;;  %v9809_v33 = vld [vmem:[#allocation58_spill] sm:$0xff] }
 0x302   : > { %v1889_v3 = vadd.f32 %v1881_v14, %v1860_v24  ;;  %v2085_v49 = vadd.f32 %v2077_v58, %v2056_v13  ;;  %v2193_v26 = vmul.f32 %v9806_v18, %v8076_v53  ;;  %v2223_v48 = vmul.f32 %v9809_v33, %v8219_v35  ;;  %v8227_v14 = vld [vmem:[#allocation2 + $0x252] sm:$0xff] }
 0x303   : > { %v3893_v0 = vadd.f32 %v3885_v31, %v3864_v61  ;;  %v1723_v55 = vadd.f32 %v1715_v12, %v1694_v29  ;;  %v2252_v19 = vmul.f32 %v9810_v40, %v8221_v57  ;;  %9811 = vst [vmem:[#allocation41_spill] sm:$0xff] %v8227_v14  ;;  %v9812_v58 = vld [vmem:[#allocation66_spill] sm:$0xff]  ;;  %v3153_v8 = vmul.f32 %v7860_v7, %v7848_v32  ;;  %v8244_v32 = vld [vmem:[%s9287_s6] ss:$0 sm:$0xff] }
 0x304   : > { %v1918_v24 = vadd.f32 %v1910_v11, %v1889_v3  ;;  %v2114_v13 = vadd.f32 %v2106_v21, %v2085_v49  ;;  %v2281_v56 = vmul.f32 %v9812_v58, %v8227_v14  ;;  %v3174_v31 = vmul.f32 %v7864_v4, %v7850_v46 }
 0x305   : > { %v3909_v16 = vadd.f32 %v3901_v52, %v3893_v0  ;;  %v1752_v27 = vadd.f32 %v1744_v28, %v1723_v55  ;;  %v3203_v12 = vmul.f32 %v7943_v59, %v7856_v6  ;;  %v3232_v11 = vmul.f32 %v7947_v1, %v8061_v5 }
 0x306   : > { %v1947_v61 = vadd.f32 %v1939_v43, %v1918_v24  ;;  %v2143_v29 = vadd.f32 %v2135_v60, %v2114_v13  ;;  %v3261_v21 = vmul.f32 %v7952_v25, %v8074_v44  ;;  %v3182_v46 = vadd.f32 %v3174_v31, %v3153_v8  ;;  %v9813_v13 = vld [vmem:[#allocation53_spill] sm:$0xff] }
 0x307   : > { %v3917_v28 = vadd.f32 %v8244_v32, %v3909_v16  ;;  %v1781_v52 = vadd.f32 %v1773_v34, %v1752_v27  ;;  %v3290_v6 = vmul.f32 %v7962_v23, %v8076_v53  ;;  %v3319_v3 = vmul.f32 %v7966_v22, %v8219_v35  ;;  %v9814_v34 = vld [vmem:[#allocation37_spill] sm:$0xff] }
 0x308   : > { %v1976_v43 = vadd.f32 %v1968_v41, %v1947_v61  ;;  %v2172_v60 = vadd.f32 %v2164_v39, %v2143_v29  ;;  %v3348_v49 = vmul.f32 %v7978_v17, %v8221_v57  ;;  %v3211_v55 = vadd.f32 %v3203_v12, %v3182_v46  ;;  %v9815_v39 = vld [vmem:[#allocation40_spill] sm:$0xff]  ;;  %v9816_v29 = vld [vmem:[#allocation63_spill] sm:$0xff] }
 0x309   : > { %v3925_v0 = vmax.f32 %v3917_v28, 0.0  ;;  %v3377_v24 = vmul.f32 %v7988_v42, %v8227_v14  ;;  %v3406_v16 = vmul.f32 %v7994_v36, %v9813_v13  ;;  %v3427_v41 = vmul.f32 %v7998_v51, %v9814_v34  ;;  %v9817_v12 = vld [vmem:[#allocation64_spill] sm:$0xff]  ;;  %v8267_v13 = vld [vmem:[#allocation2 + $0x2f0] sm:$0xff] }
 0x30a   : > { %v2005_v27 = vadd.f32 %v1997_v10, %v1976_v43  ;;  %v2201_v8 = vadd.f32 %v2193_v26, %v2172_v60  ;;  %v3456_v31 = vmul.f32 %v8005_v50, %v9815_v39  ;;  %v3240_v61 = vadd.f32 %v3232_v11, %v3211_v55  ;;  %v9818_v14 = vld [vmem:[#allocation72_spill] sm:$0xff]  ;;  %9819 = vst [vmem:[#allocation53_spill] sm:$0xff] %v8267_v13  ;;  %v8271_v34 = vld [vmem:[#allocation2 + $0x2f1] sm:$0xff] }
 0x30b   : > { %4762 = vmatprep.mubr.f32.mxu1 %v3925_v0  ;;  %v3485_v28 = vmul.f32 %v8009_v15, %v9816_v29  ;;  %v3514_v46 = vmul.f32 %v8013_v45, %v9817_v12  ;;  %v3543_v57 = vmul.f32 %v8017_v63, %v9818_v14  ;;  %v3435_v43 = vadd.f32 %v3427_v41, %v3406_v16  ;;  %v8273_v11 = vld [vmem:[#allocation2 + $0x2f2] sm:$0xff] }
 0x30c   : > { %v2034_v10 = vadd.f32 %v2026_v62, %v2005_v27  ;;  %v2231_v26 = vadd.f32 %v2223_v48, %v2201_v8  ;;  %v3572_v60 = vmul.f32 %v8026_v37, %v8267_v13  ;;  %9820 = vst [vmem:[#allocation37_spill] sm:$0xff] %v8271_v34  ;;  %9821 = vst [vmem:[#allocation40_spill] sm:$0xff] %v8273_v11  ;;  %v9822_v14 = vld [vmem:[#allocation59_spill] sm:$0xff]  ;;  %v9823_v27 = vld [vmem:[#allocation70_spill] sm:$0xff] }
 0x30d   : > { %v3269_v0 = vadd.f32 %v3261_v21, %v3240_v61  ;;  %v3601_v55 = vmul.f32 %v8030_v9, %v8271_v34  ;;  %v3630_v39 = vmul.f32 %v8036_v20, %v8273_v11  ;;  %v3660_v12 = vmul.f32 %v8040_v38, %v9822_v14  ;;  %v9824_v13 = vld [vmem:[#allocation71_spill] sm:$0xff]  ;;  %v9826_v34 = vld [vmem:[#allocation50_spill] sm:$0xff]  ;;  %v8289_v11 = vpop.f32.mrb[4].mxu0 }
 0x30e   : > { %v2260_v62 = vadd.f32 %v2252_v19, %v2231_v26  ;;  %v2297_v48 = vadd.f32 %v2034_v10, %v1781_v52  ;;  %v3464_v16 = vadd.f32 %v3456_v31, %v3435_v43  ;;  %v3681_v8 = vmul.f32 %v9773_v30, %v9823_v27  ;;  %v9825_v21 = vld [vmem:[#allocation55_spill] sm:$0xff]  ;;  %9827 = vst [vmem:[#allocation59_spill] sm:$0xff] %v8289_v11  ;;  %v8293_v10 = vld [vmem:[#allocation2 + $0x390] sm:$0xff]  ;;  %v9833_v27 = vld [vmem:[#allocation68_spill] sm:$0xff] }
 0x30f   : > { %v3298_v41 = vadd.f32 %v3290_v6, %v3269_v0  ;;  %v3710_v29 = vmul.f32 %v9775_v54, %v9824_v13  ;;  %v3740_v61 = vmul.f32 %v9777_v2, %v9825_v21  ;;  %v3769_v35 = vmul.f32 %v9779_v47, %v9826_v34  ;;  %v9828_v52 = vld [vmem:[#allocation43_spill] sm:$0xff]  ;;  %9829 = vst [vmem:[#allocation70_spill] sm:$0xff] %v8293_v10  ;;  %v8299_v13 = vpop.f32.mrb[5].mxu0 }
 0x310   : > { %v2289_v53 = vadd.f32 %v2281_v56, %v2260_v62  ;;  %v3493_v14 = vadd.f32 %v3485_v28, %v3464_v16  ;;  %v3689_v19 = vadd.f32 %v3681_v8, %v3660_v12  ;;  %v3798_v31 = vmul.f32 %v9806_v18, %v9828_v52  ;;  %v8295_v6 = vld [vmem:[#allocation2 + $0x391] sm:$0xff]  ;;  %9832 = vst [vmem:[#allocation74_spill] sm:$0xff] %v8299_v13  ;;  %v9834_v52 = vld [vmem:[#allocation32_spill] sm:$0xff] }
 0x311   : > { %9830 = vst [vmem:[#allocation71_spill] sm:$0xff] %v8295_v6  ;;  %v8297_v26 = vld [vmem:[#allocation2 + $0x392] sm:$0xff]  ;;  %v3327_v43 = vadd.f32 %v3319_v3, %v3298_v41  ;;  %v3828_v0 = vmul.f32 %v9809_v33, %v8293_v10  ;;  %v3857_v56 = vmul.f32 %v9810_v40, %v8295_v6  ;;  %v1550_v8 = vmul.f32 %v7860_v7, %v9833_v27  ;;  %v9836_v10 = vld [vmem:[#allocation65_spill] sm:$0xff] }
 0x312   : > { %9831 = vst [vmem:[#allocation73_spill] sm:$0xff] %v8297_v26  ;;  %v3886_v28 = vmul.f32 %v9812_v58, %v8297_v26  ;;  %v2305_v12 = vadd.f32 %v2297_v48, %v2289_v53  ;;  %v3522_v62 = vadd.f32 %v3514_v46, %v3493_v14  ;;  %v3718_v16 = vadd.f32 %v3710_v29, %v3689_v19  ;;  %v9835_v3 = vld [vmem:[#allocation62_spill] sm:$0xff]  ;;  %v9837_v53 = vld [vmem:[#allocation69_spill] sm:$0xff]  ;;  %v8318_v46 = vld [vmem:[#allocation2 + $0x120] sm:$0xff] }
 0x313   : > { %v3356_v11 = vadd.f32 %v3348_v49, %v3327_v43  ;;  %v1571_v13 = vmul.f32 %v7864_v4, %v9834_v52  ;;  %v1600_v41 = vmul.f32 %v7943_v59, %v9835_v3  ;;  %v1629_v34 = vmul.f32 %v7947_v1, %v9836_v10  ;;  %9838 = vst [vmem:[#allocation68_spill] sm:$0xff] %v8318_v46  ;;  %v9839_v14 = vld [vmem:[#allocation54_spill] sm:$0xff]  ;;  %v8324_v43 = vld [vmem:[#allocation2 + $0x121] sm:$0xff] }
 0x314   : > { %v2313_v6 = vadd.f32 %v8244_v32, %v2305_v12  ;;  %v3551_v21 = vadd.f32 %v3543_v57, %v3522_v62  ;;  %v3748_v26 = vadd.f32 %v3740_v61, %v3718_v16  ;;  %v1658_v29 = vmul.f32 %v7952_v25, %v9837_v53  ;;  %9840 = vst [vmem:[#allocation32_spill] sm:$0xff] %v8324_v43  ;;  %v8328_v61 = vld [vmem:[#allocation2 + $0x122] sm:$0xff]  ;;  %v9843_v16 = vld [vmem:[#allocation38_spill] sm:$0xff] }
 0x315   : > { %v3385_v48 = vadd.f32 %v3377_v24, %v3356_v11  ;;  %v1579_v49 = vadd.f32 %v1571_v13, %v1550_v8  ;;  %v1687_v19 = vmul.f32 %v7962_v23, %v9839_v14  ;;  %v1716_v52 = vmul.f32 %v7966_v22, %v8318_v46  ;;  %9841 = vst [vmem:[#allocation62_spill] sm:$0xff] %v8328_v61  ;;  %v9842_v11 = vld [vmem:[#allocation33_spill] sm:$0xff]  ;;  %v9847_v14 = vld [vmem:[#allocation34_spill] sm:$0xff]  ;;  %v8344_v53 = vld [vmem:[#allocation2 + $0x1c0] sm:$0xff] }
 0x316   : > { %v2321_v27 = vmax.f32 %v2313_v6, 0.0  ;;  %v3580_v3 = vadd.f32 %v3572_v60, %v3551_v21  ;;  %v3777_v12 = vadd.f32 %v3769_v35, %v3748_v26  ;;  %v1745_v57 = vmul.f32 %v7978_v17, %v8324_v43  ;;  %v9844_v60 = vld [vmem:[#allocation35_spill] sm:$0xff]  ;;  %v9845_v21 = vld [vmem:[#allocation49_spill] sm:$0xff]  ;;  %9848 = vst [vmem:[#allocation33_spill] sm:$0xff] %v8344_v53 }
 0x317   : > { %v1608_v62 = vadd.f32 %v1600_v41, %v1579_v49  ;;  %v1774_v24 = vmul.f32 %v7988_v42, %v8328_v61  ;;  %v1803_v13 = vmul.f32 %v7994_v36, %v9842_v11  ;;  %v1824_v8 = vmul.f32 %v7998_v51, %v9843_v16  ;;  %v9846_v49 = vld [vmem:[#allocation61_spill] sm:$0xff] }
 0x318   : > { %4739 = vmatmul.mubr.f32.gmra.mrb[12].mxu0 %v2321_v27  ;;  %v3609_v46 = vadd.f32 %v3601_v55, %v3580_v3  ;;  %v3806_v6 = vadd.f32 %v3798_v31, %v3777_v12  ;;  %v1853_v35 = vmul.f32 %v8005_v50, %v9844_v60  ;;  %v1882_v26 = vmul.f32 %v8009_v15, %v9845_v21  ;;  %v8346_v16 = vld [vmem:[#allocation2 + $0x1c1] sm:$0xff] }
 0x319   : > { %v1637_v43 = vadd.f32 %v1629_v34, %v1608_v62  ;;  %v1832_v41 = vadd.f32 %v1824_v8, %v1803_v13  ;;  %v1911_v61 = vmul.f32 %v8013_v45, %v9846_v49  ;;  %v1940_v11 = vmul.f32 %v8017_v63, %v9847_v14  ;;  %9849 = vst [vmem:[#allocation38_spill] sm:$0xff] %v8346_v16  ;;  %v8352_v34 = vld [vmem:[#allocation2 + $0x1c2] sm:$0xff] }
 0x31a   : > { %v3638_v55 = vadd.f32 %v3630_v39, %v3609_v46  ;;  %v3836_v31 = vadd.f32 %v3828_v0, %v3806_v6  ;;  %v1969_v27 = vmul.f32 %v8026_v37, %v8344_v53  ;;  %v1998_v3 = vmul.f32 %v8030_v9, %v8346_v16  ;;  %9850 = vst [vmem:[#allocation35_spill] sm:$0xff] %v8352_v34  ;;  %v9851_v0 = vld [vmem:[#allocation42_spill] sm:$0xff]  ;;  %v9852_v53 = vld [vmem:[#allocation51_spill] sm:$0xff] }
 0x31b   : > { %v1666_v12 = vadd.f32 %v1658_v29, %v1637_v43  ;;  %v1861_v62 = vadd.f32 %v1853_v35, %v1832_v41  ;;  %v2027_v13 = vmul.f32 %v8036_v20, %v8352_v34  ;;  %v2057_v8 = vmul.f32 %v8040_v38, %v8061_v5  ;;  %v9853_v43 = vld [vmem:[#allocation36_spill] sm:$0xff]  ;;  %v8368_v34 = vpop.f32.mrb[4].mxu1 }
 0x31c   : > { %v3865_v60 = vadd.f32 %v3857_v56, %v3836_v31  ;;  %v3902_v14 = vadd.f32 %v3638_v55, %v3385_v48  ;;  %v2078_v39 = vmul.f32 %v9773_v30, %v8074_v44  ;;  %v2107_v46 = vmul.f32 %v9775_v54, %v9851_v0  ;;  %v8366_v41 = vld [vmem:[#allocation2 + $0x260] sm:$0xff]  ;;  %9854 = vst [vmem:[#allocation42_spill] sm:$0xff] %v8368_v34  ;;  %v9855_v55 = vld [vmem:[#allocation41_spill] sm:$0xff] }
 0x31d   : > { %v1695_v6 = vadd.f32 %v1687_v19, %v1666_v12  ;;  %v1890_v16 = vadd.f32 %v1882_v26, %v1861_v62  ;;  %v2136_v29 = vmul.f32 %v9777_v2, %v9852_v53  ;;  %v2165_v35 = vmul.f32 %v9779_v47, %v9853_v43  ;;  %v8374_v19 = vld [vmem:[#allocation2 + $0x261] sm:$0xff]  ;;  %v8378_v12 = vpop.f32.mrb[5].mxu1 }
 0x31e   : > { %v3894_v56 = vadd.f32 %v3886_v28, %v3865_v60  ;;  %v2086_v48 = vadd.f32 %v2078_v39, %v2057_v8  ;;  %v2194_v31 = vmul.f32 %v9806_v18, %v9855_v55  ;;  %v2224_v49 = vmul.f32 %v9809_v33, %v8366_v41  ;;  %v8376_v26 = vld [vmem:[#allocation2 + $0x262] sm:$0xff]  ;;  %9857 = vst [vmem:[#allocation36_spill] sm:$0xff] %v8378_v12 }
 0x31f   : > { %9856 = vst [vmem:[#allocation51_spill] sm:$0xff] %v8376_v26  ;;  %v1724_v62 = vadd.f32 %v1716_v52, %v1695_v6  ;;  %v1919_v21 = vadd.f32 %v1911_v61, %v1890_v16  ;;  %v2253_v10 = vmul.f32 %v9810_v40, %v8374_v19  ;;  %v2282_v28 = vmul.f32 %v9812_v58, %v8376_v26 }
 0x320   : > { %v3910_v8 = vadd.f32 %v3902_v14, %v3894_v56  ;;  %v2115_v60 = vadd.f32 %v2107_v46, %v2086_v48  ;;  %v3154_v39 = vmul.f32 %v7860_v7, %v8061_v5  ;;  %v3175_v34 = vmul.f32 %v7864_v4, %v8074_v44 }
 0x321   : > { %v1753_v33 = vadd.f32 %v1745_v57, %v1724_v62  ;;  %v1948_v18 = vadd.f32 %v1940_v11, %v1919_v21  ;;  %v3204_v52 = vmul.f32 %v7943_v59, %v9851_v0  ;;  %v3233_v61 = vmul.f32 %v7947_v1, %v9852_v53 }
 0x322   : > { %v3918_v16 = vadd.f32 %v8244_v32, %v3910_v8  ;;  %v2144_v6 = vadd.f32 %v2136_v29, %v2115_v60  ;;  %v3183_v12 = vadd.f32 %v3175_v34, %v3154_v39  ;;  %v3262_v14 = vmul.f32 %v7952_v25, %v9853_v43  ;;  %v9858_v29 = vld [vmem:[#allocation63_spill] sm:$0xff]  ;;  %v9860_v8 = vld [vmem:[#allocation72_spill] sm:$0xff] }
 0x323   : > { %v1782_v46 = vadd.f32 %v1774_v24, %v1753_v33  ;;  %v1977_v5 = vadd.f32 %v1969_v27, %v1948_v18  ;;  %v3291_v44 = vmul.f32 %v7962_v23, %v9855_v55  ;;  %v3320_v57 = vmul.f32 %v7966_v22, %v8366_v41  ;;  %v9859_v18 = vld [vmem:[#allocation64_spill] sm:$0xff] }
 0x324   : > { %v3926_v21 = vmax.f32 %v3918_v16, 0.0  ;;  %v2173_v11 = vadd.f32 %v2165_v35, %v2144_v6  ;;  %v3212_v0 = vadd.f32 %v3204_v52, %v3183_v12  ;;  %v3349_v56 = vmul.f32 %v7978_v17, %v8374_v19  ;;  %v9861_v12 = vld [vmem:[#allocation53_spill] sm:$0xff]  ;;  %v9863_v6 = vld [vmem:[#allocation40_spill] sm:$0xff] }
 0x325   : > { %v2006_v48 = vadd.f32 %v1998_v3, %v1977_v5  ;;  %v3378_v34 = vmul.f32 %v7988_v42, %v8376_v26  ;;  %v3407_v33 = vmul.f32 %v7994_v36, %v9858_v29  ;;  %v3428_v24 = vmul.f32 %v7998_v51, %v9859_v18  ;;  %v9862_v52 = vld [vmem:[#allocation37_spill] sm:$0xff]  ;;  %v8415_v29 = vld [vmem:[#allocation2 + $0x300] sm:$0xff] }
 0x326   : > { %4763 = vmatmul.mubr.f32.gmra.mrb[12].mxu1 %v3926_v21  ;;  %v2202_v27 = vadd.f32 %v2194_v31, %v2173_v11  ;;  %v3241_v62 = vadd.f32 %v3233_v61, %v3212_v0  ;;  %v3457_v35 = vmul.f32 %v8005_v50, %v9860_v8  ;;  %v3486_v60 = vmul.f32 %v8009_v15, %v9861_v12  ;;  %v8417_v18 = vld [vmem:[#allocation2 + $0x301] sm:$0xff] }
 0x327   : > { %v2035_v39 = vadd.f32 %v2027_v13, %v2006_v48  ;;  %v3436_v3 = vadd.f32 %v3428_v24, %v3407_v33  ;;  %v3515_v16 = vmul.f32 %v8013_v45, %v9862_v52  ;;  %v3544_v5 = vmul.f32 %v8017_v63, %v9863_v6  ;;  %9864 = vst [vmem:[#allocation41_spill] sm:$0xff] %v8415_v29  ;;  %v8423_v13 = vld [vmem:[#allocation2 + $0x302] sm:$0xff]  ;;  %v9867_v24 = vld [vmem:[#allocation55_spill] sm:$0xff] }
 0x328   : > { %9865 = vst [vmem:[#allocation63_spill] sm:$0xff] %v8417_v18  ;;  %v2232_v31 = vadd.f32 %v2224_v49, %v2202_v27  ;;  %v3270_v61 = vadd.f32 %v3262_v14, %v3241_v62  ;;  %v3573_v21 = vmul.f32 %v8026_v37, %v8415_v29  ;;  %v3602_v11 = vmul.f32 %v8030_v9, %v8417_v18  ;;  %v9868_v49 = vld [vmem:[#allocation50_spill] sm:$0xff]  ;;  %v9869_v27 = vld [vmem:[#allocation43_spill] sm:$0xff]  ;;  %v8439_v26 = vld [vmem:[#allocation2 + $0x3a0] sm:$0xff] }
 0x329   : > { %9866 = vst [vmem:[#allocation64_spill] sm:$0xff] %v8423_v13  ;;  %v2298_v0 = vadd.f32 %v2035_v39, %v1782_v46  ;;  %v3465_v48 = vadd.f32 %v3457_v35, %v3436_v3  ;;  %v3631_v33 = vmul.f32 %v8036_v20, %v8423_v13  ;;  %v3661_v8 = vmul.f32 %v8040_v38, %v9867_v24  ;;  %v9870_v18 = vld [vmem:[#allocation70_spill] sm:$0xff]  ;;  %v9871_v46 = vld [vmem:[#allocation71_spill] sm:$0xff]  ;;  %v9872_v39 = vld [vmem:[#allocation73_spill] sm:$0xff] }
 0x32a   : > { %v2261_v6 = vadd.f32 %v2253_v10, %v2232_v31  ;;  %v3299_v52 = vadd.f32 %v3291_v44, %v3270_v61  ;;  %v3682_v14 = vmul.f32 %v9773_v30, %v9868_v49  ;;  %v3711_v62 = vmul.f32 %v9775_v54, %v9869_v27  ;;  %v9873_v3 = vld [vmem:[#allocation57_spill] sm:$0xff]  ;;  %9874 = vst [vmem:[#allocation72_spill] sm:$0xff] %v8439_v26  ;;  %v9875_v61 = vld [vmem:[#allocation58_spill] sm:$0xff] }
 0x32b   : > { %v3494_v29 = vadd.f32 %v3486_v60, %v3465_v48  ;;  %v3741_v12 = vmul.f32 %v9777_v2, %v9870_v18  ;;  %v3770_v35 = vmul.f32 %v9779_v47, %v9871_v46  ;;  %v3799_v13 = vmul.f32 %v9873_v3, %v9872_v39  ;;  %v8443_v49 = vld [vmem:[#allocation2 + $0x3a1] sm:$0xff]  ;;  %v9880_v3 = vld [vmem:[#allocation54_spill] sm:$0xff] }
 0x32c   : > { %v2290_v10 = vadd.f32 %v2282_v28, %v2261_v6  ;;  %v3328_v44 = vadd.f32 %v3320_v57, %v3299_v52  ;;  %v3690_v31 = vadd.f32 %v3682_v14, %v3661_v8  ;;  %v3829_v24 = vmul.f32 %v9875_v61, %v8439_v26  ;;  %9876 = vst [vmem:[#allocation55_spill] sm:$0xff] %v8443_v49  ;;  %v8445_v60 = vld [vmem:[#allocation2 + $0x3a2] sm:$0xff]  ;;  %v1705_v14 = vld [vmem:[#allocation2 + $0x130] sm:$0xff] }
 0x32d   : > { %9877 = vst [vmem:[#allocation50_spill] sm:$0xff] %v8445_v60  ;;  %v3523_v48 = vadd.f32 %v3515_v16, %v3494_v29  ;;  %v3858_v27 = vmul.f32 %v9810_v40, %v8443_v49  ;;  %v3887_v46 = vmul.f32 %v9812_v58, %v8445_v60  ;;  %v9878_v39 = vld [vmem:[#allocation65_spill] sm:$0xff]  ;;  %v1734_v26 = vld [vmem:[#allocation2 + $0x131] sm:$0xff]  ;;  %v1601_v16 = vmul.f32 %v7943_v59, %v9880_v3  ;;  %v9881_v29 = vld [vmem:[#allocation68_spill] sm:$0xff] }
 0x32e   : > { %v1551_v18 = vmul.f32 %v7860_v7, %v9878_v39  ;;  %v2306_v28 = vadd.f32 %v2298_v0, %v2290_v10  ;;  %v3357_v57 = vadd.f32 %v3349_v56, %v3328_v44  ;;  %v3719_v52 = vadd.f32 %v3711_v62, %v3690_v31  ;;  %v9879_v6 = vld [vmem:[#allocation69_spill] sm:$0xff]  ;;  %v9882_v40 = vld [vmem:[#allocation32_spill] sm:$0xff]  ;;  %v1763_v58 = vld [vmem:[#allocation2 + $0x132] sm:$0xff] }
 0x32f   : > { %v1572_v8 = vmul.f32 %v7864_v4, %v9879_v6  ;;  %v3552_v61 = vadd.f32 %v3544_v5, %v3523_v48  ;;  %v1630_v49 = vmul.f32 %v7947_v1, %v9881_v29  ;;  %v1659_v60 = vmul.f32 %v7952_v25, %v9882_v40  ;;  %v9883_v4 = vld [vmem:[#allocation62_spill] sm:$0xff]  ;;  %v9884_v25 = vld [vmem:[#allocation49_spill] sm:$0xff] }
 0x330   : > { %v2314_v7 = vadd.f32 %v8244_v32, %v2306_v28  ;;  %v3386_v56 = vadd.f32 %v3378_v34, %v3357_v57  ;;  %v3749_v0 = vadd.f32 %v3741_v12, %v3719_v52  ;;  %v1688_v10 = vmul.f32 %v7962_v23, %v9883_v4  ;;  %v1958_v40 = vld [vmem:[#allocation2 + $0x1d0] sm:$0xff]  ;;  %v9885_v12 = vld [vmem:[#allocation61_spill] sm:$0xff] }
 0x331   : > { %v1580_v62 = vadd.f32 %v1572_v8, %v1551_v18  ;;  %v3581_v39 = vadd.f32 %v3573_v21, %v3552_v61  ;;  %v1717_v5 = vmul.f32 %v7966_v22, %v1705_v14  ;;  %v1746_v3 = vmul.f32 %v7978_v17, %v1734_v26  ;;  %v9886_v21 = vld [vmem:[#allocation34_spill] sm:$0xff] }
 0x332   : > { %v2322_v44 = vmax.f32 %v2314_v7, 0.0  ;;  %v3778_v31 = vadd.f32 %v3770_v35, %v3749_v0  ;;  %v1775_v6 = vmul.f32 %v7988_v42, %v1763_v58  ;;  %v1804_v34 = vmul.f32 %v7994_v36, %v9884_v25  ;;  %v1987_v28 = vld [vmem:[#allocation2 + $0x1d1] sm:$0xff]  ;;  %v9887_v35 = vld [vmem:[#allocation33_spill] sm:$0xff] }
 0x333   : > { %v1609_v48 = vadd.f32 %v1601_v16, %v1580_v62  ;;  %v3610_v29 = vadd.f32 %v3602_v11, %v3581_v39  ;;  %v1825_v18 = vmul.f32 %v7998_v51, %v9885_v12  ;;  %v1854_v61 = vmul.f32 %v8005_v50, %v9886_v21  ;;  %v2016_v57 = vld [vmem:[#allocation2 + $0x1d2] sm:$0xff] }
 0x334   : > { %4741 = vmatprep.mubr.f32.mxu0 %v2322_v44  ;;  %v3807_v26 = vadd.f32 %v3799_v13, %v3778_v31  ;;  %v1883_v8 = vmul.f32 %v8009_v15, %v9887_v35  ;;  %v9888_v58 = vld [vmem:[#allocation38_spill] sm:$0xff]  ;;  %v9889_v25 = vld [vmem:[#allocation35_spill] sm:$0xff]  ;;  %v1970_v0 = vmul.f32 %v8026_v37, %v1958_v40  ;;  %v1999_v4 = vmul.f32 %v8030_v9, %v1987_v28 }
 0x335   : > { %v1638_v52 = vadd.f32 %v1630_v49, %v1609_v48  ;;  %v1912_v11 = vmul.f32 %v8013_v45, %v9888_v58  ;;  %v3639_v14 = vadd.f32 %v3631_v33, %v3610_v29  ;;  %v1833_v16 = vadd.f32 %v1825_v18, %v1804_v34  ;;  %v9890_v12 = vld [vmem:[#allocation51_spill] sm:$0xff]  ;;  %v9891_v18 = vld [vmem:[#allocation57_spill] sm:$0xff] }
 0x336   : > { %v1941_v7 = vmul.f32 %v8017_v63, %v9889_v25  ;;  %v3837_v62 = vadd.f32 %v3829_v24, %v3807_v26  ;;  %v2028_v13 = vmul.f32 %v8036_v20, %v2016_v57  ;;  %v2058_v31 = vmul.f32 %v8040_v38, %v9852_v53  ;;  %v2242_v28 = vld [vmem:[#allocation2 + $0x271] sm:$0xff] }
 0x337   : > { %v1667_v39 = vadd.f32 %v1659_v60, %v1638_v52  ;;  %v3903_v49 = vadd.f32 %v3639_v14, %v3386_v56  ;;  %v1862_v44 = vadd.f32 %v1854_v61, %v1833_v16  ;;  %v2079_v33 = vmul.f32 %v9773_v30, %v9853_v43  ;;  %v2213_v61 = vld [vmem:[#allocation2 + $0x270] sm:$0xff]  ;;  %v9893_v52 = vld [vmem:[#allocation39_spill] sm:$0xff] }
 0x338   : > { %v3866_v48 = vadd.f32 %v3858_v27, %v3837_v62  ;;  %v2108_v34 = vmul.f32 %v9775_v54, %v9855_v55  ;;  %v2137_v24 = vmul.f32 %v9777_v2, %v8366_v41  ;;  %v2166_v56 = vmul.f32 %v9779_v47, %v8374_v19  ;;  %v9892_v27 = vld [vmem:[#allocation58_spill] sm:$0xff]  ;;  %v5036_v62 = vld [vmem:[#allocation10] ss:$0 sm:$0xff] }
 0x339   : > { %v1696_v29 = vadd.f32 %v1688_v10, %v1667_v39  ;;  %v1891_v60 = vadd.f32 %v1883_v8, %v1862_v44  ;;  %v2087_v40 = vadd.f32 %v2079_v33, %v2058_v31  ;;  %v2195_v21 = vmul.f32 %v9891_v18, %v9890_v12  ;;  %v2271_v58 = vld [vmem:[#allocation2 + $0x272] sm:$0xff]  ;;  %v5037_v33 = vld [vmem:[#allocation10 + $0x1] ss:$0 sm:$0xff] }
 0x33a   : > { %v3895_v57 = vadd.f32 %v3887_v46, %v3866_v48  ;;  %v2225_v10 = vmul.f32 %v9892_v27, %v2213_v61  ;;  %v2254_v35 = vmul.f32 %v9893_v52, %v2242_v28  ;;  %v9894_v25 = vld [vmem:[#allocation66_spill] sm:$0xff]  ;;  %v3155_v39 = vmul.f32 %v5036_v62, %v9852_v53 }
 0x33b   : > { %v1725_v26 = vadd.f32 %v1717_v5, %v1696_v29  ;;  %v1920_v14 = vadd.f32 %v1912_v11, %v1891_v60  ;;  %v2116_v16 = vadd.f32 %v2108_v34, %v2087_v40  ;;  %v2283_v8 = vmul.f32 %v9894_v25, %v2271_v58  ;;  %v9895_v11 = vld [vmem:[#allocation67_spill] sm:$0xff] }
 0x33c   : > { %v3911_v44 = vadd.f32 %v3903_v49, %v3895_v57  ;;  %v3176_v18 = vmul.f32 %v5037_v33, %v9853_v43  ;;  %v3205_v46 = vmul.f32 %v7943_v59, %v9855_v55  ;;  %v3234_v29 = vmul.f32 %v7947_v1, %v8366_v41  ;;  %v9896_v41 = vld [vmem:[#allocation53_spill] sm:$0xff] }
 0x33d   : > { %v1754_v31 = vadd.f32 %v1746_v3, %v1725_v26  ;;  %v1949_v5 = vadd.f32 %v1941_v7, %v1920_v14  ;;  %v2145_v48 = vadd.f32 %v2137_v24, %v2116_v16  ;;  %v3263_v34 = vmul.f32 %v9895_v11, %v8374_v19  ;;  %v3562_v24 = vld [vmem:[#allocation2 + $0x310] sm:$0xff]  ;;  %v9905_v11 = vld [vmem:[#allocation72_spill] sm:$0xff] }
 0x33e   : > { %v3919_v60 = vadd.f32 %v8244_v32, %v3911_v44  ;;  %v3184_v53 = vadd.f32 %v3176_v18, %v3155_v39  ;;  %v3292_v3 = vmul.f32 %v7962_v23, %v9890_v12  ;;  %v3321_v57 = vmul.f32 %v7966_v22, %v2213_v61  ;;  %v9897_v18 = vld [vmem:[#allocation37_spill] sm:$0xff]  ;;  %v9898_v23 = vld [vmem:[#allocation40_spill] sm:$0xff]  ;;  %v3620_v22 = vld [vmem:[#allocation2 + $0x312] sm:$0xff] }
 0x33f   : > { %v1783_v40 = vadd.f32 %v1775_v6, %v1754_v31  ;;  %v1978_v49 = vadd.f32 %v1970_v0, %v1949_v5  ;;  %v2174_v43 = vadd.f32 %v2166_v56, %v2145_v48  ;;  %v3350_v59 = vmul.f32 %v7978_v17, %v2242_v28  ;;  %v3591_v56 = vld [vmem:[#allocation2 + $0x311] sm:$0xff]  ;;  %v9899_v12 = vld [vmem:[#allocation41_spill] sm:$0xff] }
 0x340   : > { %v3927_v55 = vmax.f32 %v3919_v60, 0.0  ;;  %v3213_v7 = vadd.f32 %v3205_v46, %v3184_v53  ;;  %v3379_v1 = vmul.f32 %v7988_v42, %v2271_v58  ;;  %v3408_v19 = vmul.f32 %v7994_v36, %v9896_v41  ;;  %v9900_v42 = vld [vmem:[#allocation63_spill] sm:$0xff]  ;;  %v9901_v36 = vld [vmem:[#allocation64_spill] sm:$0xff]  ;;  %v9902_v44 = vld [vmem:[#allocation70_spill] sm:$0xff] }
 0x341   : > { %v2007_v26 = vadd.f32 %v1999_v4, %v1978_v49  ;;  %v2203_v6 = vadd.f32 %v2195_v21, %v2174_v43  ;;  %v3429_v14 = vmul.f32 %v7998_v51, %v9897_v18  ;;  %v3458_v0 = vmul.f32 %v8005_v50, %v9898_v23  ;;  %v9908_v53 = vld [vmem:[#allocation50_spill] sm:$0xff] }
 0x342   : > { %4765 = vmatprep.mubr.f32.mxu1 %v3927_v55  ;;  %v3242_v17 = vadd.f32 %v3234_v29, %v3213_v7  ;;  %v3487_v61 = vmul.f32 %v8009_v15, %v9899_v12  ;;  %v3516_v28 = vmul.f32 %v8013_v45, %v9900_v42  ;;  %v3545_v4 = vmul.f32 %v8017_v63, %v9901_v36  ;;  %v9903_v45 = vld [vmem:[#allocation71_spill] sm:$0xff]  ;;  %v3818_v63 = vld [vmem:[#allocation2 + $0x3b0] sm:$0xff]  ;;  %v9904_v29 = vld [vmem:[#allocation73_spill] sm:$0xff] }
 0x343   : > { %v2036_v21 = vadd.f32 %v2028_v13, %v2007_v26  ;;  %v2233_v58 = vadd.f32 %v2225_v10, %v2203_v6  ;;  %v3437_v16 = vadd.f32 %v3429_v14, %v3408_v19  ;;  %v3574_v51 = vmul.f32 %v8026_v37, %v3562_v24  ;;  %v3847_v13 = vld [vmem:[#allocation2 + $0x3b1] sm:$0xff]  ;;  %v9910_v24 = vld [vmem:[#allocation45_spill] sm:$0xff]  ;;  %v9912_v14 = vld [vmem:[#allocation60_spill] sm:$0xff] }
 0x344   : > { %v3271_v62 = vadd.f32 %v3263_v34, %v3242_v17  ;;  %v3603_v50 = vmul.f32 %v8030_v9, %v3591_v56  ;;  %v3632_v39 = vmul.f32 %v8036_v20, %v3620_v22  ;;  %v3662_v31 = vmul.f32 %v8040_v38, %v9902_v44  ;;  %v3876_v10 = vld [vmem:[#allocation2 + $0x3b2] sm:$0xff]  ;;  %v8539_v38 = vld [vmem:[%s9907_s21] ss:$0 sm:$0xff]  ;;  %s5190_s21 = scalar_lea.vmem %s5189_s5, 8192 }
 0x345   : > { %v2262_v15 = vadd.f32 %v2254_v35, %v2233_v58  ;;  %v2299_v33 = vadd.f32 %v2036_v21, %v1783_v40  ;;  %v3466_v46 = vadd.f32 %v3458_v0, %v3437_v16  ;;  %v3683_v5 = vmul.f32 %v9773_v30, %v9903_v45  ;;  %v9906_v20 = vld [vmem:[#allocation55_spill] sm:$0xff]  ;;  %v4731_v35 = vpop.f32.mrb[6].mxu0  ;;  %v9911_v6 = vld [vmem:[#allocation46_spill] sm:$0xff]  ;;  %v9915_v58 = vld [vmem:[#allocation52_spill] sm:$0xff]  ;;  %p5192_p11 = scmp.lt.s32.totalorder %s5190_s21, %s5184_s1 }
 0x346   : > { %v3300_v48 = vadd.f32 %v3292_v3, %v3271_v62  ;;  %v3712_v37 = vmul.f32 %v9775_v54, %v9904_v29  ;;  %v3742_v9 = vmul.f32 %v9777_v2, %v9905_v11  ;;  %v3771_v34 = vmul.f32 %v9779_v47, %v9906_v20  ;;  %v9909_v3 = vld [vmem:[#allocation57_spill] sm:$0xff]  ;;  %v4089_v43 = vpop.f32.mrb[7].mxu0  ;;  %v9914_v36 = vld [vmem:[#allocation47_spill] sm:$0xff]  ;;  %v9916_v16 = vld [vmem:[#allocation48_spill] sm:$0xff] }
 0x347   : > { %v2291_v30 = vadd.f32 %v2283_v8, %v2262_v15  ;;  %v3495_v60 = vadd.f32 %v3487_v61, %v3466_v46  ;;  %v3691_v40 = vadd.f32 %v3683_v5, %v3662_v31  ;;  %v3800_v49 = vmul.f32 %v9909_v3, %v9908_v53  ;;  %v9917_v62 = vld [vmem:[#allocation56_spill] sm:$0xff]  ;;  %v9919_v45 = vld [vmem:[#allocation42_spill] sm:$0xff]  ;;  %p5193_p3 = por %p5192_p11, %p5191_p9 }
 0x348   : > { %v3329_v54 = vadd.f32 %v3321_v57, %v3300_v48  ;;  %v3830_v55 = vmul.f32 %v9892_v27, %v3818_v63  ;;  %v3859_v2 = vmul.f32 %v9893_v52, %v3847_v13  ;;  %v3888_v47 = vmul.f32 %v9894_v25, %v3876_v10  ;;  %v9913_v27 = vld [vmem:[#allocation44_spill] sm:$0xff] }
 0x349   : > { %v2307_v7 = vadd.f32 %v2299_v33, %v2291_v30  ;;  %v3524_v41 = vadd.f32 %v3516_v28, %v3495_v60  ;;  %v3720_v19 = vadd.f32 %v3712_v37, %v3691_v40  ;;  %v4065_v26 = vadd.f32 %v9910_v24, %v8539_v38  ;;  %p5194_p7 = pnand %p5193_p3, %p5187_p6 }
 0x34a   : > { %v3358_v8 = vadd.f32 %v3350_v59, %v3329_v54  ;;  %v4145_v18 = vadd.f32 %v9911_v6, %v8539_v38  ;;  %v4060_v57 = vadd.f32 %v8539_v38, %v9912_v14  ;;  %v4140_v52 = vadd.f32 %v8539_v38, %v9913_v27 }
 0x34b   : > { %v2315_v25 = vadd.f32 %v8244_v32, %v2307_v7  ;;  %v3553_v23 = vadd.f32 %v3545_v4, %v3524_v41  ;;  %v3750_v0 = vadd.f32 %v3742_v9, %v3720_v19  ;;  %v4219_v56 = vmax.f32 %v4065_v26, 0.0  ;;  %v9920_v9 = vld [vmem:[#allocation74_spill] sm:$0xff] }
 0x34c   : > { %v3387_v22 = vadd.f32 %v3379_v1, %v3358_v8  ;;  %v4235_v17 = vmax.f32 %v4145_v18, 0.0  ;;  %v4218_v59 = vmax.f32 %v4060_v57, 0.0  ;;  %v4234_v12 = vmax.f32 %v4140_v52, 0.0 }
 0x34d   : > { %v2323_v61 = vmax.f32 %v2315_v25, 0.0  ;;  %v3582_v42 = vadd.f32 %v3574_v51, %v3553_v23  ;;  %v3779_v28 = vadd.f32 %v3771_v34, %v3750_v0  ;;  %4251 = vst [vmem:[%s5832_s0 + $0x8] sm:$0xff] %v4219_v56  ;;  %v4075_v21 = vadd.f32 %v9914_v36, %v8539_v38  ;;  %v9918_v51 = vld [vmem:[#allocation59_spill] sm:$0xff] }
 0x34e   : > { %4267 = vst [vmem:[%s5832_s0 + $0x88] sm:$0xff] %v4235_v17  ;;  %4250 = vst [vmem:[%s5832_s0] sm:$0xff] %v4218_v59  ;;  %v4155_v4 = vadd.f32 %v9915_v58, %v8539_v38  ;;  %v4070_v1 = vadd.f32 %v8539_v38, %v9916_v16  ;;  %v4150_v44 = vadd.f32 %v8539_v38, %v9917_v62  ;;  %v4755_v54 = vpop.f32.mrb[6].mxu1 }
 0x34f   : > { %4266 = vst [vmem:[%s5832_s0 + $0x80] sm:$0xff] %v4234_v12  ;;  %v4085_v31 = vadd.f32 %v9918_v51, %v8539_v38  ;;  %4742 = vmatmul.mubr.f32.gmra.mrb[14].mxu0 %v2323_v61  ;;  %v3611_v15 = vadd.f32 %v3603_v50, %v3582_v42  ;;  %v3808_v33 = vadd.f32 %v3800_v49, %v3779_v28  ;;  %v4221_v46 = vmax.f32 %v4075_v21, 0.0  ;;  %v9921_v50 = vld [vmem:[#allocation36_spill] sm:$0xff]  ;;  %v4169_v19 = vpop.f32.mrb[7].mxu1 }
 0x350   : > { %v4165_v5 = vadd.f32 %v9919_v45, %v8539_v38  ;;  %v4237_v63 = vmax.f32 %v4155_v4, 0.0  ;;  %v4220_v13 = vmax.f32 %v4070_v1, 0.0  ;;  %v4236_v10 = vmax.f32 %v4150_v44, 0.0 }
 0x351   : > { %v4223_v48 = vmax.f32 %v4085_v31, 0.0  ;;  %v3640_v29 = vadd.f32 %v3632_v39, %v3611_v15  ;;  %v3838_v37 = vadd.f32 %v3830_v55, %v3808_v33  ;;  %4253 = vst [vmem:[%s5832_s0 + $0x18] sm:$0xff] %v4221_v46  ;;  %v4080_v20 = vadd.f32 %v8539_v38, %v9920_v9 }
 0x352   : > { %v4239_v11 = vmax.f32 %v4165_v5, 0.0  ;;  %4269 = vst [vmem:[%s5832_s0 + $0x98] sm:$0xff] %v4237_v63  ;;  %4252 = vst [vmem:[%s5832_s0 + $0x10] sm:$0xff] %v4220_v13  ;;  %v4160_v34 = vadd.f32 %v8539_v38, %v9921_v50  ;;  %v4095_v30 = vadd.f32 %v4731_v35, %v8539_v38  ;;  %v4090_v39 = vadd.f32 %v8539_v38, %v4089_v43 }
 0x353   : > { %4268 = vst [vmem:[%s5832_s0 + $0x90] sm:$0xff] %v4236_v10  ;;  %4255 = vst [vmem:[%s5832_s0 + $0x28] sm:$0xff] %v4223_v48  ;;  %v3867_v60 = vadd.f32 %v3859_v2, %v3838_v37  ;;  %v3904_v40 = vadd.f32 %v3640_v29, %v3387_v22  ;;  %v4222_v53 = vmax.f32 %v4080_v20, 0.0  ;;  %v4175_v41 = vadd.f32 %v4755_v54, %v8539_v38 }
 0x354   : > { %4271 = vst [vmem:[%s5832_s0 + $0xa8] sm:$0xff] %v4239_v11  ;;  %v4238_v3 = vmax.f32 %v4160_v34, 0.0  ;;  %v4225_v49 = vmax.f32 %v4095_v30, 0.0  ;;  %v4224_v55 = vmax.f32 %v4090_v39, 0.0  ;;  %v4170_v35 = vadd.f32 %v8539_v38, %v4169_v19 }
 0x355   : > { %v3896_v7 = vadd.f32 %v3888_v47, %v3867_v60  ;;  %4254 = vst [vmem:[%s5832_s0 + $0x20] sm:$0xff] %v4222_v53  ;;  %v4241_v2 = vmax.f32 %v4175_v41, 0.0 }
 0x356   : > { %4270 = vst [vmem:[%s5832_s0 + $0xa0] sm:$0xff] %v4238_v3  ;;  %4257 = vst [vmem:[%s5832_s0 + $0x38] sm:$0xff] %v4225_v49  ;;  %v4240_v24 = vmax.f32 %v4170_v35, 0.0 }
 0x357   : > { %4256 = vst [vmem:[%s5832_s0 + $0x30] sm:$0xff] %v4224_v55  ;;  %v3912_v43 = vadd.f32 %v3904_v40, %v3896_v7  ;;  %4273 = vst [vmem:[%s5832_s0 + $0xb8] sm:$0xff] %v4241_v2 }
 0x358   : > { %4272 = vst [vmem:[%s5832_s0 + $0xb0] sm:$0xff] %v4240_v24 }
 0x359   : > { %v3920_v26 = vadd.f32 %v8244_v32, %v3912_v43 }
 0x35b   : > { %v3928_v8 = vmax.f32 %v3920_v26, 0.0 }
 0x35d   : > { %4766 = vmatmul.mubr.f32.gmra.mrb[14].mxu1 %v3928_v8 }
 0x378   : > { %v4734_v47 = vpop.f32.mrb[8].mxu0 }
 0x379   : > { %v4105_v6 = vadd.f32 %v4734_v47, %v8539_v38  ;;  %v4099_v18 = vpop.f32.mrb[9].mxu0 }
 0x37a   : > { %v4100_v14 = vadd.f32 %v8539_v38, %v4099_v18 }
 0x37b   : > { %v4227_v57 = vmax.f32 %v4105_v6, 0.0 }
 0x37c   : > { %v4226_v27 = vmax.f32 %v4100_v14, 0.0 }
 0x37d   : > { %4259 = vst [vmem:[%s5832_s0 + $0x48] sm:$0xff] %v4227_v57 }
 0x37e   : > { %4258 = vst [vmem:[%s5832_s0 + $0x40] sm:$0xff] %v4226_v27 }
 0x387   : > { %v4758_v52 = vpop.f32.mrb[8].mxu1 }
 0x388   : > { %v4185_v32 = vadd.f32 %v4758_v52, %v8539_v38  ;;  %v4179_v25 = vpop.f32.mrb[9].mxu1 }
 0x389   : > { %v4180_v23 = vadd.f32 %v8539_v38, %v4179_v25 }
 0x38a   : > { %v4243_v0 = vmax.f32 %v4185_v32, 0.0 }
 0x38b   : > { %v4242_v56 = vmax.f32 %v4180_v23, 0.0 }
 0x38c   : > { %4275 = vst [vmem:[%s5832_s0 + $0xc8] sm:$0xff] %v4243_v0 }
 0x38d   : > { %4274 = vst [vmem:[%s5832_s0 + $0xc0] sm:$0xff] %v4242_v56 }
 0x3b1   : > { %v4737_v22 = vpop.f32.mrb[10].mxu0 }
 0x3b2   : > { %v4115_v17 = vadd.f32 %v4737_v22, %v8539_v38  ;;  %v4109_v59 = vpop.f32.mrb[11].mxu0 }
 0x3b3   : > { %v4110_v12 = vadd.f32 %v8539_v38, %v4109_v59 }
 0x3b4   : > { %v4229_v61 = vmax.f32 %v4115_v17, 0.0 }
 0x3b5   : > { %v4228_v42 = vmax.f32 %v4110_v12, 0.0 }
 0x3b6   : > { %4261 = vst [vmem:[%s5832_s0 + $0x58] sm:$0xff] %v4229_v61 }
 0x3b7   : > { %4260 = vst [vmem:[%s5832_s0 + $0x50] sm:$0xff] %v4228_v42 }
 0x3c1   : > { %v4761_v28 = vpop.f32.mrb[10].mxu1 }
 0x3c2   : > { %v4195_v36 = vadd.f32 %v4761_v28, %v8539_v38  ;;  %v4189_v21 = vpop.f32.mrb[11].mxu1 }
 0x3c3   : > { %v4190_v58 = vadd.f32 %v8539_v38, %v4189_v21 }
 0x3c4   : > { %v4245_v4 = vmax.f32 %v4195_v36, 0.0 }
 0x3c5   : > { %v4244_v16 = vmax.f32 %v4190_v58, 0.0 }
 0x3c6   : > { %4277 = vst [vmem:[%s5832_s0 + $0xd8] sm:$0xff] %v4245_v4 }
 0x3c7   : > { %4276 = vst [vmem:[%s5832_s0 + $0xd0] sm:$0xff] %v4244_v16 }
 0x3eb   : > { %v4740_v1 = vpop.f32.mrb[12].mxu0 }
 0x3ec   : > { %v4125_v62 = vadd.f32 %v4740_v1, %v8539_v38  ;;  %v4119_v44 = vpop.f32.mrb[13].mxu0 }
 0x3ed   : > { %v4120_v51 = vadd.f32 %v8539_v38, %v4119_v44 }
 0x3ee   : > { %v4231_v31 = vmax.f32 %v4125_v62, 0.0 }
 0x3ef   : > { %v4230_v15 = vmax.f32 %v4120_v51, 0.0 }
 0x3f0   : > { %4263 = vst [vmem:[%s5832_s0 + $0x68] sm:$0xff] %v4231_v31 }
 0x3f1   : > { %4262 = vst [vmem:[%s5832_s0 + $0x60] sm:$0xff] %v4230_v15 }
 0x3f9   : > { %v4764_v33 = vpop.f32.mrb[12].mxu1 }
 0x3fa   : > { %v4205_v46 = vadd.f32 %v4764_v33, %v8539_v38  ;;  %v4199_v45 = vpop.f32.mrb[13].mxu1 }
 0x3fb   : > { %v4200_v5 = vadd.f32 %v8539_v38, %v4199_v45 }
 0x3fc   : > { %v4247_v63 = vmax.f32 %v4205_v46, 0.0 }
 0x3fd   : > { %v4246_v13 = vmax.f32 %v4200_v5, 0.0 }
 0x3fe   : > { %4279 = vst [vmem:[%s5832_s0 + $0xe8] sm:$0xff] %v4247_v63 }
 0x3ff   : > { %4278 = vst [vmem:[%s5832_s0 + $0xe0] sm:$0xff] %v4246_v13 }
 0x422   : > { %v4743_v10 = vpop.f32.mrb[14].mxu0 }
 0x423   : > { %v4135_v48 = vadd.f32 %v4743_v10, %v8539_v38  ;;  %v4129_v29 = vpop.f32.mrb[15].mxu0 }
 0x424   : > { %v4130_v37 = vadd.f32 %v8539_v38, %v4129_v29 }
 0x425   : > { %v4233_v11 = vmax.f32 %v4135_v48, 0.0 }
 0x426   : > { %v4232_v9 = vmax.f32 %v4130_v37, 0.0 }
 0x427   : > { %4265 = vst [vmem:[%s5832_s0 + $0x78] sm:$0xff] %v4233_v11 }
 0x428   : > { %4264 = vst [vmem:[%s5832_s0 + $0x70] sm:$0xff] %v4232_v9 }
 0x430   : > { %v4767_v20 = vpop.f32.mrb[14].mxu1 }
 0x431   : > { %v4215_v50 = vadd.f32 %v4767_v20, %v8539_v38  ;;  %v4209_v34 = vpop.f32.mrb[15].mxu1 }
 0x432   : > { %v4210_v30 = vadd.f32 %v8539_v38, %v4209_v34 }
 0x433   : > { %v4249_v39 = vmax.f32 %v4215_v50, 0.0 }
 0x434   : > { %v4248_v60 = vmax.f32 %v4210_v30, 0.0 }
 0x435   : > { %4281 = vst [vmem:[%s5832_s0 + $0xf8] sm:$0xff] %v4249_v39 }
 0x436   : > { %4280 = vst [vmem:[%s5832_s0 + $0xf0] sm:$0xff] %v4248_v60 }
 0x437   : > { %5197 = shalt.err (!%p5194_p7)
}
 0x438   : > { %s5198_s0 = scalar_lea.hbm %s8628_s25, 4096  ;;  %s5202_s18 = scalar_lea.hbm %s9925_s3, 16384 }
 0x439   : > { %p5199_p4 = scmp.ne.s32.totalorder %s8628_s25, %s5198_s0  ;;  %p5203_p2 = scmp.lt.u32.totalorder %s8628_s25, %s9925_s3 }
 0x43a   : > { %p5204_p0 = scmp.lt.u32.totalorder %s5202_s18, %s5198_s0  ;;  %p5206_p1 = scmp.lt.u32.totalorder %s5198_s0, %s8628_s25 }
 0x43b   : > { %p5200_p10 = pnand %p5199_p4, %p9926_p8 }
 0x43c   : > { %p5205_p13 = por %p5204_p0, %p5203_p2 }
 0x43d   : > { %p5201_p12 = pneg %p5200_p10 }
 0x43e   : > { %p5207_p5 = por %p5206_p1, %p5205_p13 }
 0x440   : > { %p5208_p6 = pnand %p5207_p5, %p5201_p12 }
 0x442   : > { %5211 = shalt.err (!%p5208_p6)
}
 0x443   : > { %s5354_s15 = smov 128   ;;  %s5355_s13 = smov 8  }
 0x444   : > { %4830 = dma.vmem_to_hbm [thread:$0]  (%p9926_p8), %s8630_s11, 4096, %s8628_s25, %s4283_s10, %s5354_s15, %s5354_s15, %s5355_s13  }
 0x445 PF: > { %p4858_p9 = scmp.ge.s32.totalorder %s5342_s14, 2  ;;  %s4314_s12 = sand.u32 1, %s5314_s30  }
 0x446   : > { %p9927_p11 = scmp.ne.s32.totalorder %s9229_s2, 0  ;;  %s4315_s24 = scalar_lea.sflag [#allocation6], %s4314_s12 }
 0x448   : > { %p4850_p3 = pnand %p4858_p9, %p9927_p11 }
 0x44a   : > { %5285 = dma.done.wait (!%p4850_p3), %s4315_s24, 4096  }
 0x44b   : > { %5287 = vsyncadd (!%p4850_p3), %s4315_s24, 4294963200  ;;  %s27_s14 = sadd.s32 1, %s5342_s14   ;;  %s9929_s24 = sld [smem:[#allocation20_spill]] }
 0x44c   : > { %p8663_p7 = scmp.ge.s32.totalorder %s27_s14, 6   ;;  %s9930_s25 = sld [smem:[#allocation21_spill]] }
 0x44d   : > { %s9931_s17 = sld [smem:[#allocation22_spill]]  ;;  %s9932_s20 = smov %s5556_s27 }
 0x44e   : > { %s9933_s10 = sld [smem:[#allocation25_spill]]  ;;  %s9934_s11 = sld [smem:[#allocation26_spill]] }
 0x44f   : > { %s9935_s12 = sld [smem:[#allocation28_spill]]  ;;  %s9936_s13 = sld [smem:[#allocation29_spill]] }
 0x450   : > { %s9937_s26 = smov %s9959_s22  ;;  %s9939_s28 = smov %s5310_s29 }
 0x451   : > { %s9940_s29 = smov %s9932_s20  ;;  %s9941_s30 = smov %s5318_s8 }
 0x452   : > { %s9942_s8 = smov %s5322_s9  ;;  %s9943_s9 = smov %s5647_s23 }
 0x453   : > { %s9938_s27 = smov %s9931_s17  ;;  %26 = sbr.rel (!%p8663_p7) target bundleno = 22 (0x16), region = 167 }
 0x45a   :  { %4320 = vsyncpa [#allocation5], 1 }
 0x45b   :  { %4322 = vsyncpa [#allocation5 + $0x1], 1 }
 0x45c   :  { %4323 = vsyncpa [#allocation8], 1 }
 0x45d   :  { %4325 = vsyncpa [#allocation8 + $0x1], 1 }
 0x45e   :  { %4326 = vsyncpa [#allocation11], 1 }
 0x45f   :  { %4327 = vsyncpa [#allocation6], 1 }
 0x460   :  { %4329 = vsyncpa [#allocation6 + $0x1], 1 }

</bundles_post_ra>
